<compile_context>
chip_gen: v6e
topology: v6e:2x2x1
jax: 0.10.0
libtpu: 0.0.40
codegen_flags: <defaults>
</compile_context>

<pallas_src>
import functools

import jax
import jax.numpy as jnp
from jax.experimental import pallas as pl
from jax.experimental.pallas import tpu as pltpu

NATURE_Q_NETWORK_ALLOWED_CHANNELS = (1, 3, 4)

# (kernel, stride, out_channels) of the three Nature-CNN conv layers, no padding.
_CONV_GEOM = ((8, 4, 32), (4, 2, 64), (3, 1, 64))
_FC_HIDDEN = 512
_QPAD = 128            # lane-dense padded width of the Q-value output slab


def _conv_sizes(h, w):
    """Spatial (oh, ow) after each conv layer."""
    sizes = []
    for k, s, _ in _CONV_GEOM:
        h = (h - k) // s + 1
        w = (w - k) // s + 1
        sizes.append((h, w))
    return tuple(sizes)


# ---------------------------------------------------------------------------
# Fused Pallas kernel: conv1 -> conv2 -> conv3 -> fc1 -> fc2 for TB samples
# ---------------------------------------------------------------------------
def _nature_q_kernel(p1_ref, w1_ref, b1_ref, w2_ref, b2_ref, w3_ref, b3_ref,
                     wfc1_ref, bfc1_ref, wfc2_ref, bfc2_ref, q_ref, *, geom):
    TB, ow1h = geom["TB"], geom["ow1h"]
    Hp, H2, H3 = geom["Hp"], geom["H2"], geom["H3"]
    k2, k3 = geom["k2"], geom["k3"]
    c1, c2, c3 = geom["c1"], geom["c2"], geom["c3"]
    oh3, ow3 = geom["oh3"], geom["ow3"]
    f32, bf16 = jnp.float32, jnp.bfloat16

    # conv1: one matmul over all 4 phase blocks (rows already ordered
    # (phase, within-phase position, sample) by the wrapper).
    h1 = jnp.dot(p1_ref[0], w1_ref[...], preferred_element_type=f32)
    h1 = jnp.maximum(h1 + b1_ref[...], 0.0).astype(bf16)           # (4*Hp, 32)

    # conv2 (k=4, s=2): 16-tap accumulate over contiguous phase-block windows.
    acc2 = jnp.zeros((H2, c2), f32)
    for di in range(k2):
        for dj in range(k2):
            ph = (di % 2) * 2 + (dj % 2)
            shift = (di // 2) * ow1h + (dj // 2)
            start = ph * Hp + shift * TB
            tap = di * k2 + dj
            acc2 = acc2 + jnp.dot(h1[start:start + H2, :],
                                  w2_ref[tap * c1:(tap + 1) * c1, :],
                                  preferred_element_type=f32)
    h2 = jnp.maximum(acc2 + b2_ref[...], 0.0).astype(bf16)          # (H2, 64)

    # conv3 (k=3, s=1): 9-tap accumulate.
    acc3 = jnp.zeros((H3, c3), f32)
    for di in range(k3):
        for dj in range(k3):
            start = (di * ow1h + dj) * TB
            tap = di * k3 + dj
            acc3 = acc3 + jnp.dot(h2[start:start + H3, :],
                                  w3_ref[tap * c2:(tap + 1) * c2, :],
                                  preferred_element_type=f32)
    h3 = jnp.maximum(acc3 + b3_ref[...], 0.0).astype(bf16)          # (H3, 64)

    # fc1: sum over valid conv3 positions of (TB, 64) @ (64, 512).
    hidden = bfc1_ref.shape[-1]
    accf = jnp.zeros((TB, hidden), f32)
    for oy in range(oh3):
        for ox in range(ow3):
            pos = oy * ow1h + ox          # pseudo-grid position
            blk = oy * ow3 + ox           # wfc1 block index (packed order)
            accf = accf + jnp.dot(h3[pos * TB:(pos + 1) * TB, :],
                                  wfc1_ref[blk * c3:(blk + 1) * c3, :],
                                  preferred_element_type=f32)
    f1 = jnp.maximum(accf + bfc1_ref[...], 0.0).astype(bf16)        # (TB, 512)

    # fc2 -> dense (TB, 128) f32 slab.
    q_ref[...] = jnp.dot(f1, wfc2_ref[...],
                         preferred_element_type=f32) + bfc2_ref[...]


# ---------------------------------------------------------------------------
# XLA glue: NCHW -> NHWC, conv1 im2col, and (phase, position, sample) row order
# ---------------------------------------------------------------------------
def _conv1_patches(x_nhwc):
    """(B, H, W, C) -> (B, OH1, OW1, 8*8*C) f32, feature order (di, dj, c)."""
    k, s, _ = _CONV_GEOM[0]
    B, H, W, C = x_nhwc.shape
    oh = (H - k) // s + 1
    ow = (W - k) // s + 1
    cols = []
    for i in range(k):
        for j in range(k):
            cols.append(x_nhwc[:, i:i + s * oh:s, j:j + s * ow:s, :])
    p = jnp.stack(cols, axis=3)                   # (B, oh, ow, k*k, C)
    return p.reshape(B, oh, ow, k * k * C)


# ---------------------------------------------------------------------------
# Forward pass
# ---------------------------------------------------------------------------
def nature_q_forward(obs_nchw, packed, *, n_actions, tb=16):
    """obs_nchw: (B, C, H, W) float32 in [0, 255].  Returns (B, n_actions) f32."""
    B, C, H, W = obs_nchw.shape
    (oh1, ow1), (oh2, ow2), (oh3, ow3) = _conv_sizes(H, W)
    assert oh1 % 2 == 0 and ow1 % 2 == 0, "phase decomposition needs even conv1 output"
    assert oh2 == oh1 // 2 - 1 and ow2 == ow1 // 2 - 1
    assert oh3 == oh2 - 2 and ow3 == ow2 - 2
    k1, k2, k3 = (g[0] for g in _CONV_GEOM)
    c1, c2, c3 = (g[2] for g in _CONV_GEOM)
    K1 = k1 * k1 * C

    # NOTE: size TB per generation — larger on v6e/v5e (more VMEM), and keep
    # the grid length (B / TB) >= 2 (ideally even) so v7x's two TensorCores
    # both get work.  TB a multiple of 16 keeps bf16 row slices tile-aligned.
    TB = tb
    nchunks = pl.cdiv(B, TB)
    Bpad = nchunks * TB

    oh1h, ow1h = oh1 // 2, ow1 // 2
    P1 = oh1h * ow1h                           # positions per sample per phase
    P3max = (oh3 - 1) * ow1h + ow3             # pseudo-grid rows needed for conv3 out
    H3 = P3max * TB
    H2 = H3 + (2 * ow1h + 2) * TB              # covers conv3's largest tap shift
    Hp = P1 * TB                               # per-phase conv1 rows (no padding!)
    assert H2 + (ow1h + 1) * TB == Hp          # conv2's largest tap shift fits exactly

    x = jnp.transpose(obs_nchw.astype(jnp.float32), (0, 2, 3, 1))   # NHWC
    if Bpad != B:
        x = jnp.pad(x, ((0, Bpad - B), (0, 0), (0, 0), (0, 0)))

    patches = _conv1_patches(x)                                     # (Bpad, oh1, ow1, K1)
    # Row order inside one grid block: (phase py*2+px, within-phase (yy,xx), sample).
    p = patches.reshape(nchunks, TB, oh1h, 2, ow1h, 2, K1)
    p = jnp.transpose(p, (0, 3, 5, 2, 4, 1, 6))                     # (nc, py, px, yy, xx, t, K1)
    p1 = p.reshape(nchunks, 4 * Hp, K1).astype(jnp.bfloat16)

    def resident(arr):
        # Full-array 2-D block, constant index map: fetched once, stays in VMEM.
        assert arr.ndim == 2
        return pl.BlockSpec(arr.shape, lambda i: (0, 0))

    geom = dict(TB=TB, ow1h=ow1h, Hp=Hp, H2=H2, H3=H3,
                k2=k2, k3=k3, c1=c1, c2=c2, c3=c3, oh3=oh3, ow3=ow3)
    kernel = functools.partial(_nature_q_kernel, geom=geom)

    q_pad = pl.pallas_call(
        kernel,
        out_shape=jax.ShapeDtypeStruct((Bpad, _QPAD), jnp.float32),
        grid=(nchunks,),
        in_specs=[
            pl.BlockSpec((1, 4 * Hp, K1), lambda i: (i, 0, 0)),
            resident(packed["w1"]), resident(packed["b1"]),
            resident(packed["w2"]), resident(packed["b2"]),
            resident(packed["w3"]), resident(packed["b3"]),
            resident(packed["wfc1"]), resident(packed["bfc1"]),
            resident(packed["wfc2"]), resident(packed["bfc2"]),
        ],
        out_specs=pl.BlockSpec((TB, _QPAD), lambda i: (i, 0)),
        compiler_params=pltpu.CompilerParams(
            dimension_semantics=("parallel",),
            vmem_limit_bytes=32 * 1024 * 1024,
        ),
    )(p1, packed["w1"], packed["b1"], packed["w2"], packed["b2"],
      packed["w3"], packed["b3"], packed["wfc1"], packed["bfc1"],
      packed["wfc2"], packed["bfc2"])

    return q_pad[:B, :n_actions]


# ---------------------------------------------------------------------------
# One-time parameter packing (PyTorch layouts -> kernel layouts)
# ---------------------------------------------------------------------------
def pack_params(params, h, w, n_actions):
    assert n_actions <= _QPAD
    f32, bf16 = jnp.float32, jnp.bfloat16
    oh3, ow3 = _conv_sizes(h, w)[-1]
    c3 = _CONV_GEOM[-1][2]

    def conv_mat(w_oihw):
        # (Cout, Cin, KH, KW) -> (KH*KW*Cin, Cout), row order (di, dj, c).
        cout, cin, kh, kw = w_oihw.shape
        return jnp.transpose(w_oihw, (2, 3, 1, 0)).reshape(kh * kw * cin, cout)

    def bias_row(b):
        return b.reshape(1, -1).astype(f32)

    # Fold the /255 image normalization into the conv1 weights (bias unchanged).
    w1 = (conv_mat(params["w1"]) * (1.0 / 255.0)).astype(bf16)
    w2 = conv_mat(params["w2"]).astype(bf16)
    w3 = conv_mat(params["w3"]).astype(bf16)

    # fc1 rows are in PyTorch NCHW-flatten order (c, h, w); permute once to the
    # kernel's per-position-block order (h, w, c).
    wfc1 = params["wfc1"]                                   # (n_flat, 512)
    n_flat, hidden = wfc1.shape
    assert n_flat == c3 * oh3 * ow3
    wfc1 = (wfc1.reshape(c3, oh3, ow3, hidden)
            .transpose(1, 2, 0, 3)
            .reshape(n_flat, hidden)).astype(bf16)

    # fc2: zero-pad the action dimension up to a lane-dense 128-wide slab.
    wfc2 = jnp.zeros((hidden, _QPAD), f32).at[:, :n_actions].set(params["wfc2"])
    bfc2 = jnp.zeros((1, _QPAD), f32).at[0, :n_actions].set(params["bfc2"])

    return {
        "w1": w1, "b1": bias_row(params["b1"]),
        "w2": w2, "b2": bias_row(params["b2"]),
        "w3": w3, "b3": bias_row(params["b3"]),
        "wfc1": wfc1, "bfc1": bias_row(params["bfc1"]),
        "wfc2": wfc2.astype(bf16), "bfc2": bfc2,
    }


# ---------------------------------------------------------------------------
# Deterministic PyTorch-default-style init (stored in PyTorch layouts)
# ---------------------------------------------------------------------------
def init_params(key, c_in, h, w, n_actions):
    assert c_in in NATURE_Q_NETWORK_ALLOWED_CHANNELS
    oh3, ow3 = _conv_sizes(h, w)[-1]
    n_flat = _CONV_GEOM[-1][2] * oh3 * ow3
    keys = jax.random.split(key, 10)

    def u(k, shape, fan_in):
        bound = 1.0 / float(fan_in) ** 0.5
        return jax.random.uniform(k, shape, jnp.float32, -bound, bound)

    return {
        "w1": u(keys[0], (32, c_in, 8, 8), c_in * 8 * 8),
        "b1": u(keys[1], (32,), c_in * 8 * 8),
        "w2": u(keys[2], (64, 32, 4, 4), 32 * 4 * 4),
        "b2": u(keys[3], (64,), 32 * 4 * 4),
        "w3": u(keys[4], (64, 64, 3, 3), 64 * 3 * 3),
        "b3": u(keys[5], (64,), 64 * 3 * 3),
        "wfc1": u(keys[6], (n_flat, _FC_HIDDEN), n_flat),
        "bfc1": u(keys[7], (_FC_HIDDEN,), n_flat),
        "wfc2": u(keys[8], (_FC_HIDDEN, n_actions), _FC_HIDDEN),
        "bfc2": u(keys[9], (n_actions,), _FC_HIDDEN),
    }


def nature_q_reference(obs_nchw, params):
    """Pure-JAX f32 reference with the original PyTorch semantics."""
    x = jnp.transpose(obs_nchw.astype(jnp.float32), (0, 2, 3, 1)) / 255.0

    def conv(x, w, b, s):
        y = jax.lax.conv_general_dilated(
            x, jnp.transpose(w, (2, 3, 1, 0)), (s, s), "VALID",
            dimension_numbers=("NHWC", "HWIO", "NHWC"))
        return jnp.maximum(y + b, 0.0)

    x = conv(x, params["w1"], params["b1"], _CONV_GEOM[0][1])
    x = conv(x, params["w2"], params["b2"], _CONV_GEOM[1][1])
    x = conv(x, params["w3"], params["b3"], _CONV_GEOM[2][1])
    B = x.shape[0]
    flat = jnp.transpose(x, (0, 3, 1, 2)).reshape(B, -1)       # NCHW flatten
    h = jnp.maximum(flat @ params["wfc1"] + params["bfc1"], 0.0)
    return h @ params["wfc2"] + params["bfc2"]


if __name__ == "__main__":
    # Small shapes consistent with the module: obs (C=4, H=W=44), 6 actions.
    # 44 -> conv1(8,s4) -> 10 -> conv2(4,s2) -> 4 -> conv3(3,s1) -> 2  => n_flat = 256
    # B=32 with TB=16 gives a 2-step "parallel" grid (both v7x TensorCores busy).
    B, C, H, W = 32, 4, 44, 44
    N_ACTIONS = 6

    key = jax.random.PRNGKey(0)
    k_obs, k_par = jax.random.split(key)

    obs = jax.random.uniform(k_obs, (B, C, H, W), jnp.float32, 0.0, 255.0)
    params = init_params(k_par, C, H, W, N_ACTIONS)
    packed = pack_params(params, H, W, N_ACTIONS)

    forward = jax.jit(functools.partial(nature_q_forward, n_actions=N_ACTIONS, tb=16))
    q = jax.block_until_ready(forward(obs, packed))

    assert q.shape == (B, N_ACTIONS), q.shape
    assert q.dtype == jnp.float32

    # Loose numerical check against the f32 reference (kernel uses bf16 on the MXU,
    # bf16 inter-layer activations, and /255 folded into bf16 conv1 weights).
    q_ref = nature_q_reference(obs, params)
    err = float(jnp.max(jnp.abs(q - q_ref)))
    scale = float(jnp.max(jnp.abs(q_ref)))
    assert err <= 0.1 * scale + 2e-3, (err, scale)

    print("KERNEL_OK")
</pallas_src>

<mosaic_0001>
module attributes {stable_mosaic.version = 11 : i64} {
  func.func @_nature_q_kernel(%arg0: i32, %arg1: memref<1x1600x256xbf16, #tpu.memory_space<vmem>>, %arg2: memref<256x32xbf16, #tpu.memory_space<vmem>>, %arg3: memref<1x32xf32, #tpu.memory_space<vmem>>, %arg4: memref<512x64xbf16, #tpu.memory_space<vmem>>, %arg5: memref<1x64xf32, #tpu.memory_space<vmem>>, %arg6: memref<576x64xbf16, #tpu.memory_space<vmem>>, %arg7: memref<1x64xf32, #tpu.memory_space<vmem>>, %arg8: memref<256x512xbf16, #tpu.memory_space<vmem>>, %arg9: memref<1x512xf32, #tpu.memory_space<vmem>>, %arg10: memref<512x128xbf16, #tpu.memory_space<vmem>>, %arg11: memref<1x128xf32, #tpu.memory_space<vmem>>, %arg12: memref<16x128xf32, #tpu.memory_space<vmem>>) attributes {dimension_semantics = [#tpu.dimension_semantics<parallel>], iteration_bounds = array<i64: 2>, scalar_prefetch = 0 : i64, scratch_operands = 0 : i64, tpu.core_type = #tpu.core_type<tc>, window_params = [{transform_indices = @transform_0, window_bounds = array<i64: 1, 1600, 256>}, {pipeline_mode = #tpu.pipeline_mode<synchronous>, transform_indices = @transform_1, window_bounds = array<i64: 256, 32>}, {pipeline_mode = #tpu.pipeline_mode<synchronous>, transform_indices = @transform_2, window_bounds = array<i64: 1, 32>}, {pipeline_mode = #tpu.pipeline_mode<synchronous>, transform_indices = @transform_3, window_bounds = array<i64: 512, 64>}, {pipeline_mode = #tpu.pipeline_mode<synchronous>, transform_indices = @transform_4, window_bounds = array<i64: 1, 64>}, {pipeline_mode = #tpu.pipeline_mode<synchronous>, transform_indices = @transform_5, window_bounds = array<i64: 576, 64>}, {pipeline_mode = #tpu.pipeline_mode<synchronous>, transform_indices = @transform_6, window_bounds = array<i64: 1, 64>}, {pipeline_mode = #tpu.pipeline_mode<synchronous>, transform_indices = @transform_7, window_bounds = array<i64: 256, 512>}, {pipeline_mode = #tpu.pipeline_mode<synchronous>, transform_indices = @transform_8, window_bounds = array<i64: 1, 512>}, {pipeline_mode = #tpu.pipeline_mode<synchronous>, transform_indices = @transform_9, window_bounds = array<i64: 512, 128>}, {pipeline_mode = #tpu.pipeline_mode<synchronous>, transform_indices = @transform_10, window_bounds = array<i64: 1, 128>}, {transform_indices = @transform_11, window_bounds = array<i64: 16, 128>}]} {
    %c0 = arith.constant 0 : index
    %c0_0 = arith.constant 0 : index
    %c0_1 = arith.constant 0 : index
    %0 = vector.load %arg1[%c0, %c0_0, %c0_1] : memref<1x1600x256xbf16, #tpu.memory_space<vmem>>, vector<1x1600x256xbf16>
    %1 = vector.shape_cast %0 : vector<1x1600x256xbf16> to vector<1600x256xbf16>
    %c0_2 = arith.constant 0 : index
    %c0_3 = arith.constant 0 : index
    %2 = vector.load %arg2[%c0_2, %c0_3] : memref<256x32xbf16, #tpu.memory_space<vmem>>, vector<256x32xbf16>
    %cst = arith.constant dense<0.000000e+00> : vector<1600x32xf32>
    %3 = tpu.matmul %1, %2, %cst {dimension_numbers = #tpu.dot_dimension_numbers<[1], [0], [0], [1], [0, 0, 1, 1], [], []>} : vector<1600x256xbf16>, vector<256x32xbf16>, vector<1600x32xf32> -> vector<1600x32xf32>
    %c0_4 = arith.constant 0 : index
    %c0_5 = arith.constant 0 : index
    %4 = vector.load %arg3[%c0_4, %c0_5] : memref<1x32xf32, #tpu.memory_space<vmem>>, vector<1x32xf32>
    %5 = vector.broadcast %4 : vector<1x32xf32> to vector<1600x32xf32>
    %6 = arith.addf %3, %5 : vector<1600x32xf32>
    %cst_6 = arith.constant 0.000000e+00 : f32
    %7 = vector.broadcast %cst_6 : f32 to vector<1600x32xf32>
    %8 = arith.maximumf %6, %7 : vector<1600x32xf32>
    %9 = arith.truncf %8 : vector<1600x32xf32> to vector<1600x32xbf16>
    %cst_7 = arith.constant 0.000000e+00 : f32
    %10 = vector.broadcast %cst_7 : f32 to vector<304x64xf32>
    %11 = vector.extract_strided_slice %9 {offsets = [0, 0], sizes = [304, 32], strides = [1, 1]} : vector<1600x32xbf16> to vector<304x32xbf16>
    %c0_8 = arith.constant 0 : index
    %c0_9 = arith.constant 0 : index
    %12 = vector.load %arg4[%c0_8, %c0_9] : memref<512x64xbf16, #tpu.memory_space<vmem>>, vector<32x64xbf16>
    %cst_10 = arith.constant dense<0.000000e+00> : vector<304x64xf32>
    %13 = tpu.matmul %11, %12, %cst_10 {dimension_numbers = #tpu.dot_dimension_numbers<[1], [0], [0], [1], [0, 0, 1, 1], [], []>} : vector<304x32xbf16>, vector<32x64xbf16>, vector<304x64xf32> -> vector<304x64xf32>
    %14 = arith.addf %10, %13 : vector<304x64xf32>
    %15 = vector.extract_strided_slice %9 {offsets = [400, 0], sizes = [304, 32], strides = [1, 1]} : vector<1600x32xbf16> to vector<304x32xbf16>
    %c32 = arith.constant 32 : index
    %c0_11 = arith.constant 0 : index
    %16 = vector.load %arg4[%c32, %c0_11] : memref<512x64xbf16, #tpu.memory_space<vmem>>, vector<32x64xbf16>
    %cst_12 = arith.constant dense<0.000000e+00> : vector<304x64xf32>
    %17 = tpu.matmul %15, %16, %cst_12 {dimension_numbers = #tpu.dot_dimension_numbers<[1], [0], [0], [1], [0, 0, 1, 1], [], []>} : vector<304x32xbf16>, vector<32x64xbf16>, vector<304x64xf32> -> vector<304x64xf32>
    %18 = arith.addf %14, %17 : vector<304x64xf32>
    %19 = vector.extract_strided_slice %9 {offsets = [16, 0], sizes = [304, 32], strides = [1, 1]} : vector<1600x32xbf16> to vector<304x32xbf16>
    %c64 = arith.constant 64 : index
    %c0_13 = arith.constant 0 : index
    %20 = vector.load %arg4[%c64, %c0_13] : memref<512x64xbf16, #tpu.memory_space<vmem>>, vector<32x64xbf16>
    %cst_14 = arith.constant dense<0.000000e+00> : vector<304x64xf32>
    %21 = tpu.matmul %19, %20, %cst_14 {dimension_numbers = #tpu.dot_dimension_numbers<[1], [0], [0], [1], [0, 0, 1, 1], [], []>} : vector<304x32xbf16>, vector<32x64xbf16>, vector<304x64xf32> -> vector<304x64xf32>
    %22 = arith.addf %18, %21 : vector<304x64xf32>
    %23 = vector.extract_strided_slice %9 {offsets = [416, 0], sizes = [304, 32], strides = [1, 1]} : vector<1600x32xbf16> to vector<304x32xbf16>
    %c96 = arith.constant 96 : index
    %c0_15 = arith.constant 0 : index
    %24 = vector.load %arg4[%c96, %c0_15] : memref<512x64xbf16, #tpu.memory_space<vmem>>, vector<32x64xbf16>
    %cst_16 = arith.constant dense<0.000000e+00> : vector<304x64xf32>
    %25 = tpu.matmul %23, %24, %cst_16 {dimension_numbers = #tpu.dot_dimension_numbers<[1], [0], [0], [1], [0, 0, 1, 1], [], []>} : vector<304x32xbf16>, vector<32x64xbf16>, vector<304x64xf32> -> vector<304x64xf32>
    %26 = arith.addf %22, %25 : vector<304x64xf32>
    %27 = vector.extract_strided_slice %9 {offsets = [800, 0], sizes = [304, 32], strides = [1, 1]} : vector<1600x32xbf16> to vector<304x32xbf16>
    %c128 = arith.constant 128 : index
    %c0_17 = arith.constant 0 : index
    %28 = vector.load %arg4[%c128, %c0_17] : memref<512x64xbf16, #tpu.memory_space<vmem>>, vector<32x64xbf16>
    %cst_18 = arith.constant dense<0.000000e+00> : vector<304x64xf32>
    %29 = tpu.matmul %27, %28, %cst_18 {dimension_numbers = #tpu.dot_dimension_numbers<[1], [0], [0], [1], [0, 0, 1, 1], [], []>} : vector<304x32xbf16>, vector<32x64xbf16>, vector<304x64xf32> -> vector<304x64xf32>
    %30 = arith.addf %26, %29 : vector<304x64xf32>
    %31 = vector.extract_strided_slice %9 {offsets = [1200, 0], sizes = [304, 32], strides = [1, 1]} : vector<1600x32xbf16> to vector<304x32xbf16>
    %c160 = arith.constant 160 : index
    %c0_19 = arith.constant 0 : index
    %32 = vector.load %arg4[%c160, %c0_19] : memref<512x64xbf16, #tpu.memory_space<vmem>>, vector<32x64xbf16>
    %cst_20 = arith.constant dense<0.000000e+00> : vector<304x64xf32>
    %33 = tpu.matmul %31, %32, %cst_20 {dimension_numbers = #tpu.dot_dimension_numbers<[1], [0], [0], [1], [0, 0, 1, 1], [], []>} : vector<304x32xbf16>, vector<32x64xbf16>, vector<304x64xf32> -> vector<304x64xf32>
    %34 = arith.addf %30, %33 : vector<304x64xf32>
    %35 = vector.extract_strided_slice %9 {offsets = [816, 0], sizes = [304, 32], strides = [1, 1]} : vector<1600x32xbf16> to vector<304x32xbf16>
    %c192 = arith.constant 192 : index
    %c0_21 = arith.constant 0 : index
    %36 = vector.load %arg4[%c192, %c0_21] : memref<512x64xbf16, #tpu.memory_space<vmem>>, vector<32x64xbf16>
    %cst_22 = arith.constant dense<0.000000e+00> : vector<304x64xf32>
    %37 = tpu.matmul %35, %36, %cst_22 {dimension_numbers = #tpu.dot_dimension_numbers<[1], [0], [0], [1], [0, 0, 1, 1], [], []>} : vector<304x32xbf16>, vector<32x64xbf16>, vector<304x64xf32> -> vector<304x64xf32>
    %38 = arith.addf %34, %37 : vector<304x64xf32>
    %39 = vector.extract_strided_slice %9 {offsets = [1216, 0], sizes = [304, 32], strides = [1, 1]} : vector<1600x32xbf16> to vector<304x32xbf16>
    %c224 = arith.constant 224 : index
    %c0_23 = arith.constant 0 : index
    %40 = vector.load %arg4[%c224, %c0_23] : memref<512x64xbf16, #tpu.memory_space<vmem>>, vector<32x64xbf16>
    %cst_24 = arith.constant dense<0.000000e+00> : vector<304x64xf32>
    %41 = tpu.matmul %39, %40, %cst_24 {dimension_numbers = #tpu.dot_dimension_numbers<[1], [0], [0], [1], [0, 0, 1, 1], [], []>} : vector<304x32xbf16>, vector<32x64xbf16>, vector<304x64xf32> -> vector<304x64xf32>
    %42 = arith.addf %38, %41 : vector<304x64xf32>
    %43 = vector.extract_strided_slice %9 {offsets = [80, 0], sizes = [304, 32], strides = [1, 1]} : vector<1600x32xbf16> to vector<304x32xbf16>
    %c256 = arith.constant 256 : index
    %c0_25 = arith.constant 0 : index
    %44 = vector.load %arg4[%c256, %c0_25] : memref<512x64xbf16, #tpu.memory_space<vmem>>, vector<32x64xbf16>
    %cst_26 = arith.constant dense<0.000000e+00> : vector<304x64xf32>
    %45 = tpu.matmul %43, %44, %cst_26 {dimension_numbers = #tpu.dot_dimension_numbers<[1], [0], [0], [1], [0, 0, 1, 1], [], []>} : vector<304x32xbf16>, vector<32x64xbf16>, vector<304x64xf32> -> vector<304x64xf32>
    %46 = arith.addf %42, %45 : vector<304x64xf32>
    %47 = vector.extract_strided_slice %9 {offsets = [480, 0], sizes = [304, 32], strides = [1, 1]} : vector<1600x32xbf16> to vector<304x32xbf16>
    %c288 = arith.constant 288 : index
    %c0_27 = arith.constant 0 : index
    %48 = vector.load %arg4[%c288, %c0_27] : memref<512x64xbf16, #tpu.memory_space<vmem>>, vector<32x64xbf16>
    %cst_28 = arith.constant dense<0.000000e+00> : vector<304x64xf32>
    %49 = tpu.matmul %47, %48, %cst_28 {dimension_numbers = #tpu.dot_dimension_numbers<[1], [0], [0], [1], [0, 0, 1, 1], [], []>} : vector<304x32xbf16>, vector<32x64xbf16>, vector<304x64xf32> -> vector<304x64xf32>
    %50 = arith.addf %46, %49 : vector<304x64xf32>
    %51 = vector.extract_strided_slice %9 {offsets = [96, 0], sizes = [304, 32], strides = [1, 1]} : vector<1600x32xbf16> to vector<304x32xbf16>
    %c320 = arith.constant 320 : index
    %c0_29 = arith.constant 0 : index
    %52 = vector.load %arg4[%c320, %c0_29] : memref<512x64xbf16, #tpu.memory_space<vmem>>, vector<32x64xbf16>
    %cst_30 = arith.constant dense<0.000000e+00> : vector<304x64xf32>
    %53 = tpu.matmul %51, %52, %cst_30 {dimension_numbers = #tpu.dot_dimension_numbers<[1], [0], [0], [1], [0, 0, 1, 1], [], []>} : vector<304x32xbf16>, vector<32x64xbf16>, vector<304x64xf32> -> vector<304x64xf32>
    %54 = arith.addf %50, %53 : vector<304x64xf32>
    %55 = vector.extract_strided_slice %9 {offsets = [496, 0], sizes = [304, 32], strides = [1, 1]} : vector<1600x32xbf16> to vector<304x32xbf16>
    %c352 = arith.constant 352 : index
    %c0_31 = arith.constant 0 : index
    %56 = vector.load %arg4[%c352, %c0_31] : memref<512x64xbf16, #tpu.memory_space<vmem>>, vector<32x64xbf16>
    %cst_32 = arith.constant dense<0.000000e+00> : vector<304x64xf32>
    %57 = tpu.matmul %55, %56, %cst_32 {dimension_numbers = #tpu.dot_dimension_numbers<[1], [0], [0], [1], [0, 0, 1, 1], [], []>} : vector<304x32xbf16>, vector<32x64xbf16>, vector<304x64xf32> -> vector<304x64xf32>
    %58 = arith.addf %54, %57 : vector<304x64xf32>
    %59 = vector.extract_strided_slice %9 {offsets = [880, 0], sizes = [304, 32], strides = [1, 1]} : vector<1600x32xbf16> to vector<304x32xbf16>
    %c384 = arith.constant 384 : index
    %c0_33 = arith.constant 0 : index
    %60 = vector.load %arg4[%c384, %c0_33] : memref<512x64xbf16, #tpu.memory_space<vmem>>, vector<32x64xbf16>
    %cst_34 = arith.constant dense<0.000000e+00> : vector<304x64xf32>
    %61 = tpu.matmul %59, %60, %cst_34 {dimension_numbers = #tpu.dot_dimension_numbers<[1], [0], [0], [1], [0, 0, 1, 1], [], []>} : vector<304x32xbf16>, vector<32x64xbf16>, vector<304x64xf32> -> vector<304x64xf32>
    %62 = arith.addf %58, %61 : vector<304x64xf32>
    %63 = vector.extract_strided_slice %9 {offsets = [1280, 0], sizes = [304, 32], strides = [1, 1]} : vector<1600x32xbf16> to vector<304x32xbf16>
    %c416 = arith.constant 416 : index
    %c0_35 = arith.constant 0 : index
    %64 = vector.load %arg4[%c416, %c0_35] : memref<512x64xbf16, #tpu.memory_space<vmem>>, vector<32x64xbf16>
    %cst_36 = arith.constant dense<0.000000e+00> : vector<304x64xf32>
    %65 = tpu.matmul %63, %64, %cst_36 {dimension_numbers = #tpu.dot_dimension_numbers<[1], [0], [0], [1], [0, 0, 1, 1], [], []>} : vector<304x32xbf16>, vector<32x64xbf16>, vector<304x64xf32> -> vector<304x64xf32>
    %66 = arith.addf %62, %65 : vector<304x64xf32>
    %67 = vector.extract_strided_slice %9 {offsets = [896, 0], sizes = [304, 32], strides = [1, 1]} : vector<1600x32xbf16> to vector<304x32xbf16>
    %c448 = arith.constant 448 : index
    %c0_37 = arith.constant 0 : index
    %68 = vector.load %arg4[%c448, %c0_37] : memref<512x64xbf16, #tpu.memory_space<vmem>>, vector<32x64xbf16>
    %cst_38 = arith.constant dense<0.000000e+00> : vector<304x64xf32>
    %69 = tpu.matmul %67, %68, %cst_38 {dimension_numbers = #tpu.dot_dimension_numbers<[1], [0], [0], [1], [0, 0, 1, 1], [], []>} : vector<304x32xbf16>, vector<32x64xbf16>, vector<304x64xf32> -> vector<304x64xf32>
    %70 = arith.addf %66, %69 : vector<304x64xf32>
    %71 = vector.extract_strided_slice %9 {offsets = [1296, 0], sizes = [304, 32], strides = [1, 1]} : vector<1600x32xbf16> to vector<304x32xbf16>
    %c480 = arith.constant 480 : index
    %c0_39 = arith.constant 0 : index
    %72 = vector.load %arg4[%c480, %c0_39] : memref<512x64xbf16, #tpu.memory_space<vmem>>, vector<32x64xbf16>
    %cst_40 = arith.constant dense<0.000000e+00> : vector<304x64xf32>
    %73 = tpu.matmul %71, %72, %cst_40 {dimension_numbers = #tpu.dot_dimension_numbers<[1], [0], [0], [1], [0, 0, 1, 1], [], []>} : vector<304x32xbf16>, vector<32x64xbf16>, vector<304x64xf32> -> vector<304x64xf32>
    %74 = arith.addf %70, %73 : vector<304x64xf32>
    %c0_41 = arith.constant 0 : index
    %c0_42 = arith.constant 0 : index
    %75 = vector.load %arg5[%c0_41, %c0_42] : memref<1x64xf32, #tpu.memory_space<vmem>>, vector<1x64xf32>
    %76 = vector.broadcast %75 : vector<1x64xf32> to vector<304x64xf32>
    %77 = arith.addf %74, %76 : vector<304x64xf32>
    %cst_43 = arith.constant 0.000000e+00 : f32
    %78 = vector.broadcast %cst_43 : f32 to vector<304x64xf32>
    %79 = arith.maximumf %77, %78 : vector<304x64xf32>
    %80 = arith.truncf %79 : vector<304x64xf32> to vector<304x64xbf16>
    %cst_44 = arith.constant 0.000000e+00 : f32
    %81 = vector.broadcast %cst_44 : f32 to vector<112x64xf32>
    %82 = vector.extract_strided_slice %80 {offsets = [0, 0], sizes = [112, 64], strides = [1, 1]} : vector<304x64xbf16> to vector<112x64xbf16>
    %c0_45 = arith.constant 0 : index
    %c0_46 = arith.constant 0 : index
    %83 = vector.load %arg6[%c0_45, %c0_46] : memref<576x64xbf16, #tpu.memory_space<vmem>>, vector<64x64xbf16>
    %cst_47 = arith.constant dense<0.000000e+00> : vector<112x64xf32>
    %84 = tpu.matmul %82, %83, %cst_47 {dimension_numbers = #tpu.dot_dimension_numbers<[1], [0], [0], [1], [0, 0, 1, 1], [], []>} : vector<112x64xbf16>, vector<64x64xbf16>, vector<112x64xf32> -> vector<112x64xf32>
    %85 = arith.addf %81, %84 : vector<112x64xf32>
    %86 = vector.extract_strided_slice %80 {offsets = [16, 0], sizes = [112, 64], strides = [1, 1]} : vector<304x64xbf16> to vector<112x64xbf16>
    %c64_48 = arith.constant 64 : index
    %c0_49 = arith.constant 0 : index
    %87 = vector.load %arg6[%c64_48, %c0_49] : memref<576x64xbf16, #tpu.memory_space<vmem>>, vector<64x64xbf16>
    %cst_50 = arith.constant dense<0.000000e+00> : vector<112x64xf32>
    %88 = tpu.matmul %86, %87, %cst_50 {dimension_numbers = #tpu.dot_dimension_numbers<[1], [0], [0], [1], [0, 0, 1, 1], [], []>} : vector<112x64xbf16>, vector<64x64xbf16>, vector<112x64xf32> -> vector<112x64xf32>
    %89 = arith.addf %85, %88 : vector<112x64xf32>
    %90 = vector.extract_strided_slice %80 {offsets = [32, 0], sizes = [112, 64], strides = [1, 1]} : vector<304x64xbf16> to vector<112x64xbf16>
    %c128_51 = arith.constant 128 : index
    %c0_52 = arith.constant 0 : index
    %91 = vector.load %arg6[%c128_51, %c0_52] : memref<576x64xbf16, #tpu.memory_space<vmem>>, vector<64x64xbf16>
    %cst_53 = arith.constant dense<0.000000e+00> : vector<112x64xf32>
    %92 = tpu.matmul %90, %91, %cst_53 {dimension_numbers = #tpu.dot_dimension_numbers<[1], [0], [0], [1], [0, 0, 1, 1], [], []>} : vector<112x64xbf16>, vector<64x64xbf16>, vector<112x64xf32> -> vector<112x64xf32>
    %93 = arith.addf %89, %92 : vector<112x64xf32>
    %94 = vector.extract_strided_slice %80 {offsets = [80, 0], sizes = [112, 64], strides = [1, 1]} : vector<304x64xbf16> to vector<112x64xbf16>
    %c192_54 = arith.constant 192 : index
    %c0_55 = arith.constant 0 : index
    %95 = vector.load %arg6[%c192_54, %c0_55] : memref<576x64xbf16, #tpu.memory_space<vmem>>, vector<64x64xbf16>
    %cst_56 = arith.constant dense<0.000000e+00> : vector<112x64xf32>
    %96 = tpu.matmul %94, %95, %cst_56 {dimension_numbers = #tpu.dot_dimension_numbers<[1], [0], [0], [1], [0, 0, 1, 1], [], []>} : vector<112x64xbf16>, vector<64x64xbf16>, vector<112x64xf32> -> vector<112x64xf32>
    %97 = arith.addf %93, %96 : vector<112x64xf32>
    %98 = vector.extract_strided_slice %80 {offsets = [96, 0], sizes = [112, 64], strides = [1, 1]} : vector<304x64xbf16> to vector<112x64xbf16>
    %c256_57 = arith.constant 256 : index
    %c0_58 = arith.constant 0 : index
    %99 = vector.load %arg6[%c256_57, %c0_58] : memref<576x64xbf16, #tpu.memory_space<vmem>>, vector<64x64xbf16>
    %cst_59 = arith.constant dense<0.000000e+00> : vector<112x64xf32>
    %100 = tpu.matmul %98, %99, %cst_59 {dimension_numbers = #tpu.dot_dimension_numbers<[1], [0], [0], [1], [0, 0, 1, 1], [], []>} : vector<112x64xbf16>, vector<64x64xbf16>, vector<112x64xf32> -> vector<112x64xf32>
    %101 = arith.addf %97, %100 : vector<112x64xf32>
    %102 = vector.extract_strided_slice %80 {offsets = [112, 0], sizes = [112, 64], strides = [1, 1]} : vector<304x64xbf16> to vector<112x64xbf16>
    %c320_60 = arith.constant 320 : index
    %c0_61 = arith.constant 0 : index
    %103 = vector.load %arg6[%c320_60, %c0_61] : memref<576x64xbf16, #tpu.memory_space<vmem>>, vector<64x64xbf16>
    %cst_62 = arith.constant dense<0.000000e+00> : vector<112x64xf32>
    %104 = tpu.matmul %102, %103, %cst_62 {dimension_numbers = #tpu.dot_dimension_numbers<[1], [0], [0], [1], [0, 0, 1, 1], [], []>} : vector<112x64xbf16>, vector<64x64xbf16>, vector<112x64xf32> -> vector<112x64xf32>
    %105 = arith.addf %101, %104 : vector<112x64xf32>
    %106 = vector.extract_strided_slice %80 {offsets = [160, 0], sizes = [112, 64], strides = [1, 1]} : vector<304x64xbf16> to vector<112x64xbf16>
    %c384_63 = arith.constant 384 : index
    %c0_64 = arith.constant 0 : index
    %107 = vector.load %arg6[%c384_63, %c0_64] : memref<576x64xbf16, #tpu.memory_space<vmem>>, vector<64x64xbf16>
    %cst_65 = arith.constant dense<0.000000e+00> : vector<112x64xf32>
    %108 = tpu.matmul %106, %107, %cst_65 {dimension_numbers = #tpu.dot_dimension_numbers<[1], [0], [0], [1], [0, 0, 1, 1], [], []>} : vector<112x64xbf16>, vector<64x64xbf16>, vector<112x64xf32> -> vector<112x64xf32>
    %109 = arith.addf %105, %108 : vector<112x64xf32>
    %110 = vector.extract_strided_slice %80 {offsets = [176, 0], sizes = [112, 64], strides = [1, 1]} : vector<304x64xbf16> to vector<112x64xbf16>
    %c448_66 = arith.constant 448 : index
    %c0_67 = arith.constant 0 : index
    %111 = vector.load %arg6[%c448_66, %c0_67] : memref<576x64xbf16, #tpu.memory_space<vmem>>, vector<64x64xbf16>
    %cst_68 = arith.constant dense<0.000000e+00> : vector<112x64xf32>
    %112 = tpu.matmul %110, %111, %cst_68 {dimension_numbers = #tpu.dot_dimension_numbers<[1], [0], [0], [1], [0, 0, 1, 1], [], []>} : vector<112x64xbf16>, vector<64x64xbf16>, vector<112x64xf32> -> vector<112x64xf32>
    %113 = arith.addf %109, %112 : vector<112x64xf32>
    %114 = vector.extract_strided_slice %80 {offsets = [192, 0], sizes = [112, 64], strides = [1, 1]} : vector<304x64xbf16> to vector<112x64xbf16>
    %c512 = arith.constant 512 : index
    %c0_69 = arith.constant 0 : index
    %115 = vector.load %arg6[%c512, %c0_69] : memref<576x64xbf16, #tpu.memory_space<vmem>>, vector<64x64xbf16>
    %cst_70 = arith.constant dense<0.000000e+00> : vector<112x64xf32>
    %116 = tpu.matmul %114, %115, %cst_70 {dimension_numbers = #tpu.dot_dimension_numbers<[1], [0], [0], [1], [0, 0, 1, 1], [], []>} : vector<112x64xbf16>, vector<64x64xbf16>, vector<112x64xf32> -> vector<112x64xf32>
    %117 = arith.addf %113, %116 : vector<112x64xf32>
    %c0_71 = arith.constant 0 : index
    %c0_72 = arith.constant 0 : index
    %118 = vector.load %arg7[%c0_71, %c0_72] : memref<1x64xf32, #tpu.memory_space<vmem>>, vector<1x64xf32>
    %119 = vector.broadcast %118 : vector<1x64xf32> to vector<112x64xf32>
    %120 = arith.addf %117, %119 : vector<112x64xf32>
    %cst_73 = arith.constant 0.000000e+00 : f32
    %121 = vector.broadcast %cst_73 : f32 to vector<112x64xf32>
    %122 = arith.maximumf %120, %121 : vector<112x64xf32>
    %123 = arith.truncf %122 : vector<112x64xf32> to vector<112x64xbf16>
    %cst_74 = arith.constant 0.000000e+00 : f32
    %124 = vector.broadcast %cst_74 : f32 to vector<16x512xf32>
    %125 = vector.extract_strided_slice %123 {offsets = [0, 0], sizes = [16, 64], strides = [1, 1]} : vector<112x64xbf16> to vector<16x64xbf16>
    %c0_75 = arith.constant 0 : index
    %c0_76 = arith.constant 0 : index
    %126 = vector.load %arg8[%c0_75, %c0_76] : memref<256x512xbf16, #tpu.memory_space<vmem>>, vector<64x512xbf16>
    %cst_77 = arith.constant dense<0.000000e+00> : vector<16x512xf32>
    %127 = tpu.matmul %125, %126, %cst_77 {dimension_numbers = #tpu.dot_dimension_numbers<[1], [0], [0], [1], [0, 0, 1, 1], [], []>} : vector<16x64xbf16>, vector<64x512xbf16>, vector<16x512xf32> -> vector<16x512xf32>
    %128 = arith.addf %124, %127 : vector<16x512xf32>
    %129 = vector.extract_strided_slice %123 {offsets = [16, 0], sizes = [16, 64], strides = [1, 1]} : vector<112x64xbf16> to vector<16x64xbf16>
    %c64_78 = arith.constant 64 : index
    %c0_79 = arith.constant 0 : index
    %130 = vector.load %arg8[%c64_78, %c0_79] : memref<256x512xbf16, #tpu.memory_space<vmem>>, vector<64x512xbf16>
    %cst_80 = arith.constant dense<0.000000e+00> : vector<16x512xf32>
    %131 = tpu.matmul %129, %130, %cst_80 {dimension_numbers = #tpu.dot_dimension_numbers<[1], [0], [0], [1], [0, 0, 1, 1], [], []>} : vector<16x64xbf16>, vector<64x512xbf16>, vector<16x512xf32> -> vector<16x512xf32>
    %132 = arith.addf %128, %131 : vector<16x512xf32>
    %133 = vector.extract_strided_slice %123 {offsets = [80, 0], sizes = [16, 64], strides = [1, 1]} : vector<112x64xbf16> to vector<16x64xbf16>
    %c128_81 = arith.constant 128 : index
    %c0_82 = arith.constant 0 : index
    %134 = vector.load %arg8[%c128_81, %c0_82] : memref<256x512xbf16, #tpu.memory_space<vmem>>, vector<64x512xbf16>
    %cst_83 = arith.constant dense<0.000000e+00> : vector<16x512xf32>
    %135 = tpu.matmul %133, %134, %cst_83 {dimension_numbers = #tpu.dot_dimension_numbers<[1], [0], [0], [1], [0, 0, 1, 1], [], []>} : vector<16x64xbf16>, vector<64x512xbf16>, vector<16x512xf32> -> vector<16x512xf32>
    %136 = arith.addf %132, %135 : vector<16x512xf32>
    %137 = vector.extract_strided_slice %123 {offsets = [96, 0], sizes = [16, 64], strides = [1, 1]} : vector<112x64xbf16> to vector<16x64xbf16>
    %c192_84 = arith.constant 192 : index
    %c0_85 = arith.constant 0 : index
    %138 = vector.load %arg8[%c192_84, %c0_85] : memref<256x512xbf16, #tpu.memory_space<vmem>>, vector<64x512xbf16>
    %cst_86 = arith.constant dense<0.000000e+00> : vector<16x512xf32>
    %139 = tpu.matmul %137, %138, %cst_86 {dimension_numbers = #tpu.dot_dimension_numbers<[1], [0], [0], [1], [0, 0, 1, 1], [], []>} : vector<16x64xbf16>, vector<64x512xbf16>, vector<16x512xf32> -> vector<16x512xf32>
    %140 = arith.addf %136, %139 : vector<16x512xf32>
    %c0_87 = arith.constant 0 : index
    %c0_88 = arith.constant 0 : index
    %141 = vector.load %arg9[%c0_87, %c0_88] : memref<1x512xf32, #tpu.memory_space<vmem>>, vector<1x512xf32>
    %142 = vector.broadcast %141 : vector<1x512xf32> to vector<16x512xf32>
    %143 = arith.addf %140, %142 : vector<16x512xf32>
    %cst_89 = arith.constant 0.000000e+00 : f32
    %144 = vector.broadcast %cst_89 : f32 to vector<16x512xf32>
    %145 = arith.maximumf %143, %144 : vector<16x512xf32>
    %146 = arith.truncf %145 : vector<16x512xf32> to vector<16x512xbf16>
    %c0_90 = arith.constant 0 : index
    %c0_91 = arith.constant 0 : index
    %147 = vector.load %arg10[%c0_90, %c0_91] : memref<512x128xbf16, #tpu.memory_space<vmem>>, vector<512x128xbf16>
    %cst_92 = arith.constant dense<0.000000e+00> : vector<16x128xf32>
    %148 = tpu.matmul %146, %147, %cst_92 {dimension_numbers = #tpu.dot_dimension_numbers<[1], [0], [0], [1], [0, 0, 1, 1], [], []>} : vector<16x512xbf16>, vector<512x128xbf16>, vector<16x128xf32> -> vector<16x128xf32>
    %c0_93 = arith.constant 0 : index
    %c0_94 = arith.constant 0 : index
    %149 = vector.load %arg11[%c0_93, %c0_94] : memref<1x128xf32, #tpu.memory_space<vmem>>, vector<1x128xf32>
    %150 = vector.broadcast %149 : vector<1x128xf32> to vector<16x128xf32>
    %151 = arith.addf %148, %150 : vector<16x128xf32>
    %c0_95 = arith.constant 0 : index
    %c0_96 = arith.constant 0 : index
    %152 = vector.load %arg12[%c0_95, %c0_96] : memref<16x128xf32, #tpu.memory_space<vmem>>, vector<16x128xf32>
    tpu.vector_store %arg12[%c0_95, %c0_96], %151 {strides = array<i32>} : memref<16x128xf32, #tpu.memory_space<vmem>>, vector<16x128xf32>,
    return
  }
  func.func @transform_0(%arg0: i32) -> (i32, i32, i32) {
    %c0_i32 = arith.constant 0 : i32
    %c0_i32_0 = arith.constant 0 : i32
    %c0_i32_1 = arith.constant 0 : i32
    return %arg0, %c0_i32, %c0_i32_0 : i32, i32, i32
  }
  func.func @transform_1(%arg0: i32) -> (i32, i32) {
    %c0_i32 = arith.constant 0 : i32
    %c0_i32_0 = arith.constant 0 : i32
    %c0_i32_1 = arith.constant 0 : i32
    return %c0_i32, %c0_i32_0 : i32, i32
  }
  func.func @transform_2(%arg0: i32) -> (i32, i32) {
    %c0_i32 = arith.constant 0 : i32
    %c0_i32_0 = arith.constant 0 : i32
    %c0_i32_1 = arith.constant 0 : i32
    return %c0_i32, %c0_i32_0 : i32, i32
  }
  func.func @transform_3(%arg0: i32) -> (i32, i32) {
    %c0_i32 = arith.constant 0 : i32
    %c0_i32_0 = arith.constant 0 : i32
    %c0_i32_1 = arith.constant 0 : i32
    return %c0_i32, %c0_i32_0 : i32, i32
  }
  func.func @transform_4(%arg0: i32) -> (i32, i32) {
    %c0_i32 = arith.constant 0 : i32
    %c0_i32_0 = arith.constant 0 : i32
    %c0_i32_1 = arith.constant 0 : i32
    return %c0_i32, %c0_i32_0 : i32, i32
  }
  func.func @transform_5(%arg0: i32) -> (i32, i32) {
    %c0_i32 = arith.constant 0 : i32
    %c0_i32_0 = arith.constant 0 : i32
    %c0_i32_1 = arith.constant 0 : i32
    return %c0_i32, %c0_i32_0 : i32, i32
  }
  func.func @transform_6(%arg0: i32) -> (i32, i32) {
    %c0_i32 = arith.constant 0 : i32
    %c0_i32_0 = arith.constant 0 : i32
    %c0_i32_1 = arith.constant 0 : i32
    return %c0_i32, %c0_i32_0 : i32, i32
  }
  func.func @transform_7(%arg0: i32) -> (i32, i32) {
    %c0_i32 = arith.constant 0 : i32
    %c0_i32_0 = arith.constant 0 : i32
    %c0_i32_1 = arith.constant 0 : i32
    return %c0_i32, %c0_i32_0 : i32, i32
  }
  func.func @transform_8(%arg0: i32) -> (i32, i32) {
    %c0_i32 = arith.constant 0 : i32
    %c0_i32_0 = arith.constant 0 : i32
    %c0_i32_1 = arith.constant 0 : i32
    return %c0_i32, %c0_i32_0 : i32, i32
  }
  func.func @transform_9(%arg0: i32) -> (i32, i32) {
    %c0_i32 = arith.constant 0 : i32
    %c0_i32_0 = arith.constant 0 : i32
    %c0_i32_1 = arith.constant 0 : i32
    return %c0_i32, %c0_i32_0 : i32, i32
  }
  func.func @transform_10(%arg0: i32) -> (i32, i32) {
    %c0_i32 = arith.constant 0 : i32
    %c0_i32_0 = arith.constant 0 : i32
    %c0_i32_1 = arith.constant 0 : i32
    return %c0_i32, %c0_i32_0 : i32, i32
  }
  func.func @transform_11(%arg0: i32) -> (i32, i32) {
    %c0_i32 = arith.constant 0 : i32
    %c0_i32_0 = arith.constant 0 : i32
    return %arg0, %c0_i32 : i32, i32
  }
}

</mosaic_0001>

<bundles_post_ra>
// kernel: nature_q_forward.1
= control target key start
LH: loop header
LB: loop body
LE: loop exit
PB: predicated region body
PF: predicated region fallthrough
CT: control target
= control target key end

     0   :  { %s12835_s17 = smov 0   ;;  %s17586_s0 = inlined_call_operand.vmem [shape: bf16[2,1600,256], index: 0, kind: input, shape index: {}]   ;;  %s17587_s1 = inlined_call_operand.vmem [shape: bf16[256,32], index: 1, kind: input, shape index: {}]   ;;  %s17588_s2 = inlined_call_operand.vmem [shape: f32[1,32], index: 2, kind: input, shape index: {}]   ;;  %s17589_s3 = inlined_call_operand.vmem [shape: bf16[512,64], index: 3, kind: input, shape index: {}]   ;;  %s17590_s4 = inlined_call_operand.vmem [shape: f32[1,64], index: 4, kind: input, shape index: {}]   ;;  %s17591_s5 = inlined_call_operand.vmem [shape: bf16[576,64], index: 5, kind: input, shape index: {}]   ;;  %s17592_s6 = inlined_call_operand.vmem [shape: f32[1,64], index: 6, kind: input, shape index: {}]   ;;  %s17593_s7 = inlined_call_operand.vmem [shape: bf16[256,512], index: 7, kind: input, shape index: {}]   ;;  %s17594_s8 = inlined_call_operand.vmem [shape: f32[1,512], index: 8, kind: input, shape index: {}]   ;;  %s17595_s9 = inlined_call_operand.vmem [shape: bf16[512,128], index: 9, kind: input, shape index: {}]   ;;  %s17596_s10 = inlined_call_operand.vmem [shape: f32[1,128], index: 10, kind: input, shape index: {}]   ;;  %s17597_s11 = inlined_call_operand.vmem [shape: f32[32,128], index: 11, kind: output, shape index: {}]  }
   0x1 LB: > { %s12841_s18 = sadd.s32 4294967295, %s12770_s17   ;;  %p9389_p0 = scmp.ge.s32.totalorder %s12770_s17, 1  ;;  %s12770_s17 = sphi %s12835_s17, %s21_s17  }
   0x2   : > { %p337_p1 = scmp.lt.s32.totalorder %s12770_s17, 3 }
   0x4   : > { %p338_p2 = pnand %p9389_p0, %p337_p1 }
   0x6   : > { %341 = sbr.rel (%p338_p2) target bundleno = 3113 (0xc29), region = 64 }
   0xb   : > { %v12249_v0 = vld [vmem:[%s17587_s1 + $0x38] sm:$0xff]   ;;  %v17598_v1 = vmov 0   ;;  %v12250_v2 = vld [vmem:[%s17587_s1 + $0x30] sm:$0xff]   ;;  %p377_p3 = scmp.lt.s32.totalorder %s12841_s18, 1  ;;  %v12251_v3 = vld [vmem:[%s17587_s1 + $0x28] sm:$0xff]   ;;  %vm12774_vm0 = vmmov 0  }
   0xc   : > { %1724 = vmatprep.subr.bf16.mxu0 %v17598_v1  ;;  %v12252_v4 = vld [vmem:[%s17587_s1 + $0x20] sm:$0xff]   ;;  %v12253_v5 = vld [vmem:[%s17587_s1 + $0x18] sm:$0xff]   ;;  %v12254_v7 = vld [vmem:[%s17587_s1 + $0x10] sm:$0xff]   ;;  %vm2877_vm1 = vcmask 261120   ;;  %vm7048_vm2 = vcmask 523264   ;;  %s9391_s26 = sshll.u32 %s12841_s18, 1 }
   0xd   : > { %1725 = vmatpush1.bf16.msra.mxu0 %v12249_v0  ;;  %s378_s25 = scalar_select %p377_p3, %s12841_s18, 1  ;;  %v12255_v8 = vld [vmem:[%s17587_s1 + $0x8] sm:$0xff]   ;;  %v12256_v9 = vld [vmem:[%s17587_s1] sm:$0xff]   ;;  %v12257_v10 = vld [vmem:[%s17587_s1 + $0x78] sm:$0xff]  }
   0xe   : > { %1726 = vmatprep.subr.bf16.mxu0 %v17598_v1  ;;  %v12258_v11 = vld [vmem:[%s17587_s1 + $0x70] sm:$0xff]   ;;  %v12259_v12 = vld [vmem:[%s17587_s1 + $0x68] sm:$0xff]   ;;  %v12260_v13 = vld [vmem:[%s17587_s1 + $0x60] sm:$0xff]   ;;  %p383_p4 = scmp.lt.s32.totalorder %s9391_s26, 3 }
   0xf   : > { %s12237_s28 = smul.u32 1600, %s378_s25  ;;  %v12261_v14 = vld [vmem:[%s17587_s1 + $0x58] sm:$0xff]   ;;  %v12262_v15 = vld [vmem:[%s17587_s1 + $0x50] sm:$0xff]   ;;  %v12263_v16 = vld [vmem:[%s17587_s1 + $0x48] sm:$0xff]  }
  0x10   : > { %v12264_v17 = vld [vmem:[%s17587_s1 + $0x40] sm:$0xff]   ;;  %s18449_s26 = smov (!%p383_p4, %s9391_s26), 3 }
  0x11   : > { %1727 = vmatpush1.bf16.msra.mxu0 %v12250_v2  ;;  %s12869_s14 = scalar_lea.vmem %s17586_s0, %s12237_s28  ;;  %s9392_s29 = sshll.u32 %s18449_s26, 3 }
  0x12   : > { %1728 = vmatprep.subr.bf16.mxu0 %v17598_v1  ;;  %v12267_v6 = vld [vmem:[%s12869_s14 + $0x4] ss:$8 sps:$4 sm:$0xff]   ;;  %v12265_v18 = vld [vmem:[%s12869_s14] ss:$8 sps:$4 sm:$0xff]   ;;  %v12268_v19 = vld [vmem:[%s12869_s14 + $0x14] ss:$8 sps:$4 sm:$0xff]   ;;  %s386_s18 = scalar_lea.vmem %s17597_s11, %s9392_s29 }
  0x13   : > { %1756 = vmatprep.mubr.bf16.mxu0 %v12267_v6  ;;  %v12270_v20 = vld [vmem:[%s12869_s14 + $0x10] ss:$8 sps:$4 sm:$0xff]   ;;  %v12271_v21 = vld [vmem:[%s12869_s14 + $0x24] ss:$8 sps:$4 sm:$0xff]   ;;  %v12273_v22 = vld [vmem:[%s12869_s14 + $0x20] ss:$8 sps:$4 sm:$0xff]  }
  0x14   : > { %v12274_v23 = vld [vmem:[%s12869_s14 + $0x34] ss:$8 sps:$4 sm:$0xff]   ;;  %v12276_v24 = vld [vmem:[%s12869_s14 + $0x30] ss:$8 sps:$4 sm:$0xff]   ;;  %v12277_v25 = vld [vmem:[%s12869_s14 + $0x44] ss:$8 sps:$4 sm:$0xff]  }
  0x15   : > { %1729 = vmatpush1.bf16.msra.mxu0 %v12251_v3  ;;  %v12279_v26 = vld [vmem:[%s12869_s14 + $0x40] ss:$8 sps:$4 sm:$0xff]   ;;  %v12280_v27 = vld [vmem:[%s12869_s14 + $0x54] ss:$8 sps:$4 sm:$0xff]   ;;  %v12282_v28 = vld [vmem:[%s12869_s14 + $0x50] ss:$8 sps:$4 sm:$0xff]  }
  0x16   : > { %1730 = vmatprep.subr.bf16.mxu0 %v17598_v1  ;;  %v12283_v29 = vld [vmem:[%s12869_s14 + $0x64] ss:$8 sps:$4 sm:$0xff]   ;;  %v12285_v30 = vld [vmem:[%s12869_s14 + $0x60] ss:$8 sps:$4 sm:$0xff]   ;;  %v12286_v31 = vld [vmem:[%s12869_s14 + $0x74] ss:$8 sps:$4 sm:$0xff]  }
  0x17   : > { %v12288_v32 = vld [vmem:[%s12869_s14 + $0x70] ss:$8 sps:$4 sm:$0xff]   ;;  %v12289_v33 = vld [vmem:[%s12869_s14 + $0x84] ss:$8 sps:$4 sm:$0xff]   ;;  %v12291_v34 = vld [vmem:[%s12869_s14 + $0x80] ss:$8 sps:$4 sm:$0xff]  }
  0x18   : > { %v12292_v35 = vld [vmem:[%s12869_s14 + $0x94] ss:$8 sps:$4 sm:$0xff]   ;;  %v12294_v36 = vld [vmem:[%s12869_s14 + $0x90] ss:$8 sps:$4 sm:$0xff]   ;;  %v12295_v37 = vld [vmem:[%s12869_s14 + $0xa4] ss:$8 sps:$4 sm:$0xff]  }
  0x19   : > { %1731 = vmatpush1.bf16.msra.mxu0 %v12252_v4  ;;  %v12297_v38 = vld [vmem:[%s12869_s14 + $0xa0] ss:$8 sps:$4 sm:$0xff]   ;;  %v12298_v39 = vld [vmem:[%s12869_s14 + $0xb4] ss:$8 sps:$4 sm:$0xff]   ;;  %v12300_v40 = vld [vmem:[%s12869_s14 + $0xb0] ss:$8 sps:$4 sm:$0xff]  }
  0x1a   : > { %1732 = vmatprep.subr.bf16.mxu0 %v17598_v1  ;;  %v12301_v41 = vld [vmem:[%s12869_s14 + $0xc4] ss:$8 sps:$4 sm:$0xff]   ;;  %v12303_v42 = vld [vmem:[%s12869_s14 + $0xc0] ss:$8 sps:$4 sm:$0xff]   ;;  %v12304_v43 = vld [vmem:[%s12869_s14 + $0xd4] ss:$8 sps:$4 sm:$0xff]  }
  0x1b   : > { %v12306_v44 = vld [vmem:[%s12869_s14 + $0xd0] ss:$8 sps:$4 sm:$0xff]   ;;  %v12307_v45 = vld [vmem:[%s12869_s14 + $0xe4] ss:$8 sps:$4 sm:$0xff]   ;;  %v12309_v46 = vld [vmem:[%s12869_s14 + $0xe0] ss:$8 sps:$4 sm:$0xff]  }
  0x1c   : > { %v12310_v47 = vld [vmem:[%s12869_s14 + $0xf4] ss:$8 sps:$4 sm:$0xff]   ;;  %v12312_v48 = vld [vmem:[%s12869_s14 + $0xf0] ss:$8 sps:$4 sm:$0xff]   ;;  %v12313_v49 = vld [vmem:[%s12869_s14 + $0x104] ss:$8 sps:$4 sm:$0xff]  }
  0x1d   : > { %1733 = vmatpush1.bf16.msra.mxu0 %v12253_v5  ;;  %v12315_v50 = vld [vmem:[%s12869_s14 + $0x100] ss:$8 sps:$4 sm:$0xff]   ;;  %v12316_v51 = vld [vmem:[%s12869_s14 + $0x114] ss:$8 sps:$4 sm:$0xff]   ;;  %v12318_v52 = vld [vmem:[%s12869_s14 + $0x110] ss:$8 sps:$4 sm:$0xff]  }
  0x1e   : > { %1734 = vmatprep.subr.bf16.mxu0 %v17598_v1  ;;  %v12319_v53 = vld [vmem:[%s12869_s14 + $0x124] ss:$8 sps:$4 sm:$0xff]   ;;  %v12321_v54 = vld [vmem:[%s12869_s14 + $0x120] ss:$8 sps:$4 sm:$0xff]   ;;  %v12322_v55 = vld [vmem:[%s12869_s14 + $0x134] ss:$8 sps:$4 sm:$0xff]  }
  0x1f   : > { %v12324_v56 = vld [vmem:[%s12869_s14 + $0x130] ss:$8 sps:$4 sm:$0xff]   ;;  %v12325_v57 = vld [vmem:[%s12869_s14 + $0x144] ss:$8 sps:$4 sm:$0xff]   ;;  %v12327_v58 = vld [vmem:[%s12869_s14 + $0x140] ss:$8 sps:$4 sm:$0xff]  }
  0x20   : > { %v12328_v59 = vld [vmem:[%s12869_s14 + $0x154] ss:$8 sps:$4 sm:$0xff]   ;;  %v12330_v60 = vld [vmem:[%s12869_s14 + $0x150] ss:$8 sps:$4 sm:$0xff]   ;;  %v12331_v61 = vld [vmem:[%s12869_s14 + $0x164] ss:$8 sps:$4 sm:$0xff]  }
  0x21   : > { %1735 = vmatpush1.bf16.msra.mxu0 %v12254_v7  ;;  %v12333_v62 = vld [vmem:[%s12869_s14 + $0x160] ss:$8 sps:$4 sm:$0xff]   ;;  %v12334_v63 = vld [vmem:[%s12869_s14 + $0x174] ss:$8 sps:$4 sm:$0xff]   ;;  %v12336_v0 = vld [vmem:[%s12869_s14 + $0x170] ss:$8 sps:$4 sm:$0xff]  }
  0x22   : > { %1736 = vmatprep.subr.bf16.mxu0 %v17598_v1  ;;  %v12337_v2 = vld [vmem:[%s12869_s14 + $0x184] ss:$8 sps:$4 sm:$0xff]   ;;  %v12339_v3 = vld [vmem:[%s12869_s14 + $0x180] ss:$8 sps:$4 sm:$0xff]   ;;  %v12340_v4 = vld [vmem:[%s12869_s14 + $0x194] ss:$8 sps:$4 sm:$0xff]  }
  0x23   : > { %v12970_v5 = vld [vmem:[%s17588_s2] ss:$0 sm:$0xff] }
  0x25   : > { %1737 = vmatpush1.bf16.msra.mxu0 %v12255_v8 }
  0x26   : > { %1738 = vmatprep.subr.bf16.mxu0 %v17598_v1 }
  0x29   : > { %1739 = vmatpush1.bf16.msra.mxu0 %v12256_v9 }
  0x2a   : > { %1740 = vmatprep.subr.bf16.mxu0 %v17598_v1 }
  0x2d   : > { %1741 = vmatpush2.bf16.msra.mxu0 %v12257_v10  ;;  %v12342_v10 = vld [vmem:[%s12869_s14 + $0x190] ss:$8 sps:$4 sm:$0xff]  }
  0x2e   : > { %1742 = vmatprep.subr.bf16.mxu0 %v17598_v1 }
  0x31   : > { %1743 = vmatpush2.bf16.msra.mxu0 %v12258_v11 }
  0x32   : > { %1744 = vmatprep.subr.bf16.mxu0 %v17598_v1 }
  0x35   : > { %1745 = vmatpush2.bf16.msra.mxu0 %v12259_v12  ;;  %v12343_v12 = vld [vmem:[%s12869_s14 + $0x1a4] ss:$8 sps:$4 sm:$0xff]  }
  0x36   : > { %1746 = vmatprep.subr.bf16.mxu0 %v17598_v1 }
  0x39   : > { %1747 = vmatpush2.bf16.msra.mxu0 %v12260_v13 }
  0x3a   : > { %1748 = vmatprep.subr.bf16.mxu0 %v17598_v1 }
  0x3d   : > { %1749 = vmatpush2.bf16.msra.mxu0 %v12261_v14 }
  0x3e   : > { %1750 = vmatprep.subr.bf16.mxu0 %v17598_v1 }
  0x41   : > { %1751 = vmatpush2.bf16.msra.mxu0 %v12262_v15 }
  0x42   : > { %1752 = vmatprep.subr.bf16.mxu0 %v17598_v1 }
  0x45   : > { %1753 = vmatpush2.bf16.msra.mxu0 %v12263_v16 }
  0x46   : > { %1754 = vmatprep.subr.bf16.mxu0 %v17598_v1 }
  0x49   : > { %1755 = vmatpush2.bf16.msra.mxu0 %v12264_v17 }
  0x4c   : > { %1757 = vmatmul.mubr.bf16.vlgmr.msra.gmra.mxu0 %v12265_v18 }
  0x4d   : > { %1764 = vmatprep.mubr.bf16.mxu0 %v12268_v19 }
  0x54   : > { %1765 = vmatmul.mubr.bf16.gmra.mxu0 %v12270_v20 }
  0x55   : > { %1772 = vmatprep.mubr.bf16.mxu0 %v12271_v21  ;;  %v12345_v21 = vld [vmem:[%s12869_s14 + $0x1a0] ss:$8 sps:$4 sm:$0xff]  }
  0x5c   : > { %1773 = vmatmul.mubr.bf16.gmra.mxu0 %v12273_v22 }
  0x5d   : > { %1780 = vmatprep.mubr.bf16.mxu0 %v12274_v23  ;;  %v12346_v23 = vld [vmem:[%s12869_s14 + $0x1b4] ss:$8 sps:$4 sm:$0xff]  }
  0x64   : > { %1781 = vmatmul.mubr.bf16.gmra.mxu0 %v12276_v24 }
  0x65   : > { %1788 = vmatprep.mubr.bf16.mxu0 %v12277_v25 }
  0x6c   : > { %1789 = vmatmul.mubr.bf16.gmra.mxu0 %v12279_v26 }
  0x6d   : > { %1796 = vmatprep.mubr.bf16.mxu0 %v12280_v27 }
  0x74   : > { %1797 = vmatmul.mubr.bf16.gmra.mxu0 %v12282_v28 }
  0x75   : > { %1804 = vmatprep.mubr.bf16.mxu0 %v12283_v29 }
  0x7c   : > { %1805 = vmatmul.mubr.bf16.gmra.mxu0 %v12285_v30 }
  0x7d   : > { %1812 = vmatprep.mubr.bf16.mxu0 %v12286_v31 }
  0x84   : > { %1813 = vmatmul.mubr.bf16.gmra.mxu0 %v12288_v32  ;;  %v12348_v32 = vld [vmem:[%s12869_s14 + $0x1b0] ss:$8 sps:$4 sm:$0xff]  }
  0x85   : > { %1820 = vmatprep.mubr.bf16.mxu0 %v12289_v33 }
  0x8c   : > { %1821 = vmatmul.mubr.bf16.gmra.mxu0 %v12291_v34  ;;  %v12351_v34 = vld [vmem:[%s12869_s14 + $0x1c4] ss:$8 sps:$4 sm:$0xff]  }
  0x8d   : > { %1828 = vmatprep.mubr.bf16.mxu0 %v12292_v35 }
  0x94   : > { %1829 = vmatmul.mubr.bf16.gmra.mxu0 %v12294_v36 }
  0x95   : > { %1836 = vmatprep.mubr.bf16.mxu0 %v12295_v37 }
  0x9c   : > { %1837 = vmatmul.mubr.bf16.gmra.mxu0 %v12297_v38 }
  0x9d   : > { %1844 = vmatprep.mubr.bf16.mxu0 %v12298_v39 }
  0xa4   : > { %1845 = vmatmul.mubr.bf16.gmra.mxu0 %v12300_v40 }
  0xa5   : > { %1852 = vmatprep.mubr.bf16.mxu0 %v12301_v41 }
  0xac   : > { %1853 = vmatmul.mubr.bf16.gmra.mxu0 %v12303_v42 }
  0xad   : > { %1860 = vmatprep.mubr.bf16.mxu0 %v12304_v43  ;;  %v12349_v43 = vld [vmem:[%s12869_s14 + $0x1c0] ss:$8 sps:$4 sm:$0xff]  }
  0xb4   : > { %1861 = vmatmul.mubr.bf16.gmra.mxu0 %v12306_v44 }
  0xb5   : > { %1868 = vmatprep.mubr.bf16.mxu0 %v12307_v45  ;;  %v12354_v45 = vld [vmem:[%s12869_s14 + $0x1d4] ss:$8 sps:$4 sm:$0xff]  }
  0xbc   : > { %1869 = vmatmul.mubr.bf16.gmra.mxu0 %v12309_v46 }
  0xbd   : > { %1876 = vmatprep.mubr.bf16.mxu0 %v12310_v47 }
  0xc4   : > { %1877 = vmatmul.mubr.bf16.gmra.mxu0 %v12312_v48 }
  0xc5   : > { %1884 = vmatprep.mubr.bf16.mxu0 %v12313_v49 }
  0xcc   : > { %1885 = vmatmul.mubr.bf16.gmra.mxu0 %v12315_v50 }
  0xcd   : > { %1892 = vmatprep.mubr.bf16.mxu0 %v12316_v51 }
  0xd4   : > { %1893 = vmatmul.mubr.bf16.gmra.mxu0 %v12318_v52 }
  0xd5   : > { %1900 = vmatprep.mubr.bf16.mxu0 %v12319_v53 }
  0xdc   : > { %1901 = vmatmul.mubr.bf16.gmra.mxu0 %v12321_v54  ;;  %v12352_v54 = vld [vmem:[%s12869_s14 + $0x1d0] ss:$8 sps:$4 sm:$0xff]  }
  0xdd   : > { %1908 = vmatprep.mubr.bf16.mxu0 %v12322_v55 }
  0xe4   : > { %1909 = vmatmul.mubr.bf16.gmra.mxu0 %v12324_v56  ;;  %v12357_v56 = vld [vmem:[%s12869_s14 + $0x1e4] ss:$8 sps:$4 sm:$0xff]  }
  0xe5   : > { %1916 = vmatprep.mubr.bf16.mxu0 %v12325_v57 }
  0xec   : > { %1917 = vmatmul.mubr.bf16.gmra.mxu0 %v12327_v58 }
  0xed   : > { %1924 = vmatprep.mubr.bf16.mxu0 %v12328_v59 }
  0xf4   : > { %1925 = vmatmul.mubr.bf16.gmra.mxu0 %v12330_v60 }
  0xf5   : > { %1932 = vmatprep.mubr.bf16.mxu0 %v12331_v61 }
  0xfc   : > { %1933 = vmatmul.mubr.bf16.gmra.mxu0 %v12333_v62 }
  0xfd   : > { %1940 = vmatprep.mubr.bf16.mxu0 %v12334_v63 }
 0x104   : > { %1941 = vmatmul.mubr.bf16.gmra.mxu0 %v12336_v0 }
 0x105   : > { %1948 = vmatprep.mubr.bf16.mxu0 %v12337_v2  ;;  %v12355_v2 = vld [vmem:[%s12869_s14 + $0x1e0] ss:$8 sps:$4 sm:$0xff]  }
 0x10c   : > { %v1758_v6 = vpop.f32.mrf.mxu0  ;;  %1949 = vmatmul.mubr.bf16.gmra.mxu0 %v12339_v3 }
 0x10d   : > { %1956 = vmatprep.mubr.bf16.mxu0 %v12340_v4  ;;  %v1759_v8 = vadd.f32 %v12970_v5, %v1758_v6  ;;  %v12360_v4 = vld [vmem:[%s12869_s14 + $0x1f4] ss:$8 sps:$4 sm:$0xff]  }
 0x10e   : > { %v1760_v7 = vpop.f32.mrf.mxu0 }
 0x10f   : > { %v2557_v14 = vmax.f32 %v1759_v8, 0.0 }
 0x110   : > { %v1761_v9 = vpop.f32.mrf.mxu0 }
 0x111   : > { %v1762_v11 = vadd.f32 %v12970_v5, %v1761_v9 }
 0x112   : > { %v1763_v13 = vpop.f32.mrf.mxu0 }
 0x113   : > { %v2558_v15 = vmax.f32 %v1762_v11, 0.0 }
 0x114   : > { %v1766_v16 = vpop.f32.mrf.mxu0  ;;  %1957 = vmatmul.mubr.bf16.gmra.mxu0 %v12342_v10 }
 0x115   : > { %v12976_v17 = vpack.c.bf16 %v2558_v15, %v2557_v14  ;;  %1964 = vmatprep.mubr.bf16.mxu0 %v12343_v12  ;;  %v1767_v19 = vadd.f32 %v12970_v5, %v1766_v16  ;;  %v12358_v14 = vld [vmem:[%s12869_s14 + $0x1f0] ss:$8 sps:$4 sm:$0xff]   ;;  %v12363_v16 = vld [vmem:[%s12869_s14 + $0x204] ss:$8 sps:$4 sm:$0xff]  }
 0x116   : > { %v1768_v18 = vpop.f32.mrf.mxu0 }
 0x117   : > { %v2559_v25 = vmax.f32 %v1767_v19, 0.0 }
 0x118   : > { %v1769_v20 = vpop.f32.mrf.mxu0 }
 0x119   : > { %v1770_v22 = vadd.f32 %v12970_v5, %v1769_v20 }
 0x11a   : > { %v1771_v24 = vpop.f32.mrf.mxu0 }
 0x11b   : > { %v2560_v26 = vmax.f32 %v1770_v22, 0.0 }
 0x11c   : > { %v1774_v27 = vpop.f32.mrf.mxu0  ;;  %1965 = vmatmul.mubr.bf16.gmra.mxu0 %v12345_v21 }
 0x11d   : > { %v12982_v28 = vpack.c.bf16 %v2560_v26, %v2559_v25  ;;  %1972 = vmatprep.mubr.bf16.mxu0 %v12346_v23  ;;  %v1775_v30 = vadd.f32 %v12970_v5, %v1774_v27  ;;  %v12361_v26 = vld [vmem:[%s12869_s14 + $0x200] ss:$8 sps:$4 sm:$0xff]  }
 0x11e   : > { %v1776_v29 = vpop.f32.mrf.mxu0 }
 0x11f   : > { %v2561_v36 = vmax.f32 %v1775_v30, 0.0  ;;  %v12366_v29 = vld [vmem:[%s12869_s14 + $0x214] ss:$8 sps:$4 sm:$0xff]  }
 0x120   : > { %v1777_v31 = vpop.f32.mrf.mxu0 }
 0x121   : > { %v1778_v33 = vadd.f32 %v12970_v5, %v1777_v31 }
 0x122   : > { %v1779_v35 = vpop.f32.mrf.mxu0 }
 0x123   : > { %v2562_v37 = vmax.f32 %v1778_v33, 0.0 }
 0x124   : > { %v1782_v38 = vpop.f32.mrf.mxu0  ;;  %1973 = vmatmul.mubr.bf16.gmra.mxu0 %v12348_v32 }
 0x125   : > { %v12988_v39 = vpack.c.bf16 %v2562_v37, %v2561_v36  ;;  %1980 = vmatprep.mubr.bf16.mxu0 %v12351_v34  ;;  %v1783_v41 = vadd.f32 %v12970_v5, %v1782_v38  ;;  %v12364_v38 = vld [vmem:[%s12869_s14 + $0x210] ss:$8 sps:$4 sm:$0xff]  }
 0x126   : > { %v1784_v40 = vpop.f32.mrf.mxu0 }
 0x127   : > { %v2563_v47 = vmax.f32 %v1783_v41, 0.0  ;;  %v12369_v41 = vld [vmem:[%s12869_s14 + $0x224] ss:$8 sps:$4 sm:$0xff]  }
 0x128   : > { %v1785_v42 = vpop.f32.mrf.mxu0 }
 0x129   : > { %v1786_v44 = vadd.f32 %v12970_v5, %v1785_v42 }
 0x12a   : > { %v1787_v46 = vpop.f32.mrf.mxu0 }
 0x12b   : > { %v2564_v48 = vmax.f32 %v1786_v44, 0.0 }
 0x12c   : > { %v1790_v49 = vpop.f32.mrf.mxu0  ;;  %1981 = vmatmul.mubr.bf16.gmra.mxu0 %v12349_v43 }
 0x12d   : > { %v12994_v50 = vpack.c.bf16 %v2564_v48, %v2563_v47  ;;  %1988 = vmatprep.mubr.bf16.mxu0 %v12354_v45  ;;  %v1791_v52 = vadd.f32 %v12970_v5, %v1790_v49  ;;  %v12415_v48 = vld [vmem:[%s17589_s3 + $0x18] sm:$0xff]  }
 0x12e   : > { %v1792_v51 = vpop.f32.mrf.mxu0 }
 0x12f   : > { %v2565_v58 = vmax.f32 %v1791_v52, 0.0  ;;  %v17600_v51 = vmov 0.0  }
 0x130   : > { %v1793_v53 = vpop.f32.mrf.mxu0  ;;  %10633 = vmatprep.subr.bf16.mxu1 %v17600_v51  ;;  %11113 = vmatprep.subr.bf16.mxu0 %v17600_v51 }
 0x131   : > { %v1794_v55 = vadd.f32 %v12970_v5, %v1793_v53  ;;  %v12367_v53 = vld [vmem:[%s12869_s14 + $0x220] ss:$8 sps:$4 sm:$0xff]   ;;  %10634 = vmatpush3.bf16.msra.mxu1 %v12415_v48  ;;  %10637 = vmatprep.mubr.msk.bf16.mxu1 %vm12774_vm0, %v17600_v51 }
 0x132   : > { %v1795_v57 = vpop.f32.mrf.mxu0  ;;  %10635 = vmatprep.subr.bf16.mxu1 %v17600_v51 }
 0x133   : > { %v2566_v59 = vmax.f32 %v1794_v55, 0.0  ;;  %v12372_v55 = vld [vmem:[%s12869_s14 + $0x234] ss:$8 sps:$4 sm:$0xff]  }
 0x134   : > { %v1798_v60 = vpop.f32.mrf.mxu0  ;;  %1989 = vmatmul.mubr.bf16.gmra.mxu0 %v12352_v54  ;;  %v12419_v57 = vld [vmem:[%s17589_s3 + $0x10] sm:$0xff]  }
 0x135   : > { %v13000_v61 = vpack.c.bf16 %v2566_v59, %v2565_v58  ;;  %1996 = vmatprep.mubr.bf16.mxu0 %v12357_v56  ;;  %v1799_v63 = vadd.f32 %v12970_v5, %v1798_v60  ;;  %10636 = vmatpush3.bf16.msra.mxu1 %v12419_v57  ;;  %v12382_v57 = vld [vmem:[%s12869_s14 + $0x270] ss:$8 sps:$4 sm:$0xff]  }
 0x136   : > { %v1800_v62 = vpop.f32.mrf.mxu0  ;;  %10713 = vmatprep.subr.bf16.mxu1 %v17600_v51 }
 0x137   : > { %v2567_v7 = vmax.f32 %v1799_v63, 0.0 }
 0x138   : > { %v1801_v0 = vpop.f32.mrf.mxu0 }
 0x139   : > { %v1802_v3 = vadd.f32 %v12970_v5, %v1801_v0 }
 0x13a   : > { %v1803_v6 = vpop.f32.mrf.mxu0 }
 0x13b   : > { %v2568_v8 = vmax.f32 %v1802_v3, 0.0  ;;  %v12370_v3 = vld [vmem:[%s12869_s14 + $0x230] ss:$8 sps:$4 sm:$0xff]   ;;  %v12375_v6 = vld [vmem:[%s12869_s14 + $0x244] ss:$8 sps:$4 sm:$0xff]  }
 0x13c   : > { %v1806_v9 = vpop.f32.mrf.mxu0  ;;  %1997 = vmatmul.mubr.bf16.gmra.mxu0 %v12355_v2 }
 0x13d   : > { %v13006_v10 = vpack.c.bf16 %v2568_v8, %v2567_v7  ;;  %2004 = vmatprep.mubr.bf16.mxu0 %v12360_v4  ;;  %v1807_v12 = vadd.f32 %v12970_v5, %v1806_v9 }
 0x13e   : > { %v1808_v11 = vpop.f32.mrf.mxu0 }
 0x13f   : > { %17729 = vst [vmem:[#allocation2_spill] sm:$0xff] %v13006_v10  ;;  %v2569_v19 = vmax.f32 %v1807_v12, 0.0 }
 0x140   : > { %v1809_v13 = vpop.f32.mrf.mxu0 }
 0x141   : > { %v1810_v15 = vadd.f32 %v12970_v5, %v1809_v13 }
 0x142   : > { %v1811_v18 = vpop.f32.mrf.mxu0 }
 0x143   : > { %v2570_v20 = vmax.f32 %v1810_v15, 0.0 }
 0x144   : > { %v1814_v21 = vpop.f32.mrf.mxu0  ;;  %2005 = vmatmul.mubr.bf16.gmra.mxu0 %v12358_v14 }
 0x145   : > { %v13012_v22 = vpack.c.bf16 %v2570_v20, %v2569_v19  ;;  %2012 = vmatprep.mubr.bf16.mxu0 %v12363_v16  ;;  %v1815_v24 = vadd.f32 %v12970_v5, %v1814_v21  ;;  %v12373_v16 = vld [vmem:[%s12869_s14 + $0x240] ss:$8 sps:$4 sm:$0xff]   ;;  %v12378_v19 = vld [vmem:[%s12869_s14 + $0x254] ss:$8 sps:$4 sm:$0xff]  }
 0x146   : > { %v1816_v23 = vpop.f32.mrf.mxu0 }
 0x147   : > { %17730 = vst [vmem:[#allocation3_spill] sm:$0xff] %v13012_v22  ;;  %v2571_v31 = vmax.f32 %v1815_v24, 0.0 }
 0x148   : > { %v1817_v25 = vpop.f32.mrf.mxu0 }
 0x149   : > { %v1818_v27 = vadd.f32 %v12970_v5, %v1817_v25 }
 0x14a   : > { %v1819_v30 = vpop.f32.mrf.mxu0 }
 0x14b   : > { %v2572_v32 = vmax.f32 %v1818_v27, 0.0  ;;  %v12376_v30 = vld [vmem:[%s12869_s14 + $0x250] ss:$8 sps:$4 sm:$0xff]  }
 0x14c   : > { %v1822_v33 = vpop.f32.mrf.mxu0  ;;  %2013 = vmatmul.mubr.bf16.gmra.mxu0 %v12361_v26 }
 0x14d   : > { %v13018_v34 = vpack.c.bf16 %v2572_v32, %v2571_v31  ;;  %2020 = vmatprep.mubr.bf16.mxu0 %v12366_v29  ;;  %v1823_v36 = vadd.f32 %v12970_v5, %v1822_v33  ;;  %v12381_v32 = vld [vmem:[%s12869_s14 + $0x264] ss:$8 sps:$4 sm:$0xff]  }
 0x14e   : > { %v1824_v35 = vpop.f32.mrf.mxu0 }
 0x14f   : > { %17731 = vst [vmem:[#allocation4_spill] sm:$0xff] %v13018_v34  ;;  %v2573_v43 = vmax.f32 %v1823_v36, 0.0 }
 0x150   : > { %v1825_v37 = vpop.f32.mrf.mxu0 }
 0x151   : > { %v1826_v40 = vadd.f32 %v12970_v5, %v1825_v37 }
 0x152   : > { %v1827_v42 = vpop.f32.mrf.mxu0 }
 0x153   : > { %v2574_v44 = vmax.f32 %v1826_v40, 0.0 }
 0x154   : > { %v1830_v45 = vpop.f32.mrf.mxu0  ;;  %2021 = vmatmul.mubr.bf16.gmra.mxu0 %v12364_v38 }
 0x155   : > { %v13024_v46 = vpack.c.bf16 %v2574_v44, %v2573_v43  ;;  %2028 = vmatprep.mubr.bf16.mxu0 %v12369_v41  ;;  %v1831_v49 = vadd.f32 %v12970_v5, %v1830_v45  ;;  %v12379_v43 = vld [vmem:[%s12869_s14 + $0x260] ss:$8 sps:$4 sm:$0xff]   ;;  %v12384_v45 = vld [vmem:[%s12869_s14 + $0x274] ss:$8 sps:$4 sm:$0xff]  }
 0x156   : > { %v1832_v47 = vpop.f32.mrf.mxu0 }
 0x157   : > { %17732 = vst [vmem:[#allocation5_spill] sm:$0xff] %v13024_v46  ;;  %v2575_v58 = vmax.f32 %v1831_v49, 0.0 }
 0x158   : > { %v1833_v52 = vpop.f32.mrf.mxu0 }
 0x159   : > { %v1834_v54 = vadd.f32 %v12970_v5, %v1833_v52 }
 0x15a   : > { %v1835_v56 = vpop.f32.mrf.mxu0 }
 0x15b   : > { %v2576_v59 = vmax.f32 %v1834_v54, 0.0 }
 0x15c   : > { %v1838_v60 = vpop.f32.mrf.mxu0  ;;  %2029 = vmatmul.mubr.bf16.gmra.mxu0 %v12367_v53 }
 0x15d   : > { %v13039_v62 = vpack.c.bf16 %v2576_v59, %v2575_v58  ;;  %2036 = vmatprep.mubr.bf16.mxu0 %v12372_v55  ;;  %v1839_v0 = vadd.f32 %v12970_v5, %v1838_v60  ;;  %v12387_v59 = vld [vmem:[%s12869_s14 + $0x284] ss:$8 sps:$4 sm:$0xff]  }
 0x15e   : > { %v1840_v63 = vpop.f32.mrf.mxu0 }
 0x15f   : > { %17733 = vst [vmem:[#allocation6_spill] sm:$0xff] %v13039_v62  ;;  %v2577_v8 = vmax.f32 %v1839_v0, 0.0 }
 0x160   : > { %v1841_v2 = vpop.f32.mrf.mxu0 }
 0x161   : > { %v1842_v4 = vadd.f32 %v12970_v5, %v1841_v2 }
 0x162   : > { %v1843_v7 = vpop.f32.mrf.mxu0 }
 0x163   : > { %v2578_v9 = vmax.f32 %v1842_v4, 0.0 }
 0x164   : > { %v1846_v11 = vpop.f32.mrf.mxu0  ;;  %2037 = vmatmul.mubr.bf16.gmra.mxu0 %v12370_v3 }
 0x165   : > { %v13048_v12 = vpack.c.bf16 %v2578_v9, %v2577_v8  ;;  %2044 = vmatprep.mubr.bf16.mxu0 %v12375_v6  ;;  %v1847_v14 = vadd.f32 %v12970_v5, %v1846_v11  ;;  %v12385_v8 = vld [vmem:[%s12869_s14 + $0x280] ss:$8 sps:$4 sm:$0xff]   ;;  %v12390_v11 = vld [vmem:[%s12869_s14 + $0x294] ss:$8 sps:$4 sm:$0xff]  }
 0x166   : > { %v1848_v13 = vpop.f32.mrf.mxu0 }
 0x167   : > { %17734 = vst [vmem:[#allocation7_spill] sm:$0xff] %v13048_v12  ;;  %v2579_v21 = vmax.f32 %v1847_v14, 0.0 }
 0x168   : > { %v1849_v15 = vpop.f32.mrf.mxu0 }
 0x169   : > { %v1850_v18 = vadd.f32 %v12970_v5, %v1849_v15 }
 0x16a   : > { %v1851_v20 = vpop.f32.mrf.mxu0 }
 0x16b   : > { %v2580_v23 = vmax.f32 %v1850_v18, 0.0 }
 0x16c   : > { %v1854_v24 = vpop.f32.mrf.mxu0  ;;  %2045 = vmatmul.mubr.bf16.gmra.mxu0 %v12373_v16 }
 0x16d   : > { %v13054_v25 = vpack.c.bf16 %v2580_v23, %v2579_v21  ;;  %2052 = vmatprep.mubr.bf16.mxu0 %v12378_v19  ;;  %v1855_v27 = vadd.f32 %v12970_v5, %v1854_v24  ;;  %v12388_v23 = vld [vmem:[%s12869_s14 + $0x290] ss:$8 sps:$4 sm:$0xff]  }
 0x16e   : > { %v1856_v26 = vpop.f32.mrf.mxu0 }
 0x16f   : > { %17735 = vst [vmem:[#allocation8_spill] sm:$0xff] %v13054_v25  ;;  %v2581_v35 = vmax.f32 %v1855_v27, 0.0  ;;  %v12393_v26 = vld [vmem:[%s12869_s14 + $0x2a4] ss:$8 sps:$4 sm:$0xff]  }
 0x170   : > { %v1857_v29 = vpop.f32.mrf.mxu0 }
 0x171   : > { %v1858_v31 = vadd.f32 %v12970_v5, %v1857_v29 }
 0x172   : > { %v1859_v33 = vpop.f32.mrf.mxu0 }
 0x173   : > { %v2582_v36 = vmax.f32 %v1858_v31, 0.0 }
 0x174   : > { %v1862_v37 = vpop.f32.mrf.mxu0  ;;  %2053 = vmatmul.mubr.bf16.gmra.mxu0 %v12376_v30 }
 0x175   : > { %v13060_v38 = vpack.c.bf16 %v2582_v36, %v2581_v35  ;;  %2060 = vmatprep.mubr.bf16.mxu0 %v12381_v32  ;;  %v1863_v41 = vadd.f32 %v12970_v5, %v1862_v37  ;;  %v12391_v37 = vld [vmem:[%s12869_s14 + $0x2a0] ss:$8 sps:$4 sm:$0xff]  }
 0x176   : > { %v1864_v40 = vpop.f32.mrf.mxu0 }
 0x177   : > { %v2583_v48 = vmax.f32 %v1863_v41, 0.0  ;;  %v12396_v41 = vld [vmem:[%s12869_s14 + $0x2b4] ss:$8 sps:$4 sm:$0xff]  }
 0x178   : > { %v1865_v42 = vpop.f32.mrf.mxu0 }
 0x179   : > { %v1866_v44 = vadd.f32 %v12970_v5, %v1865_v42 }
 0x17a   : > { %v1867_v47 = vpop.f32.mrf.mxu0 }
 0x17b   : > { %v2584_v49 = vmax.f32 %v1866_v44, 0.0 }
 0x17c   : > { %v1870_v52 = vpop.f32.mrf.mxu0  ;;  %2061 = vmatmul.mubr.bf16.gmra.mxu0 %v12379_v43 }
 0x17d   : > { %v13066_v53 = vpack.c.bf16 %v2584_v49, %v2583_v48  ;;  %2068 = vmatprep.mubr.bf16.mxu0 %v12384_v45  ;;  %v1871_v55 = vadd.f32 %v12970_v5, %v1870_v52 }
 0x17e   : > { %v1872_v54 = vpop.f32.mrf.mxu0 }
 0x17f   : > { %17736 = vst [vmem:[#allocation9_spill] sm:$0xff] %v13066_v53  ;;  %v2585_v63 = vmax.f32 %v1871_v55, 0.0  ;;  %v12394_v54 = vld [vmem:[%s12869_s14 + $0x2b0] ss:$8 sps:$4 sm:$0xff]  }
 0x180   : > { %v1873_v56 = vpop.f32.mrf.mxu0 }
 0x181   : > { %v1874_v58 = vadd.f32 %v12970_v5, %v1873_v56  ;;  %v12399_v56 = vld [vmem:[%s12869_s14 + $0x2c4] ss:$8 sps:$4 sm:$0xff]  }
 0x182   : > { %v1875_v60 = vpop.f32.mrf.mxu0 }
 0x183   : > { %v2586_v0 = vmax.f32 %v1874_v58, 0.0 }
 0x184   : > { %v1878_v2 = vpop.f32.mrf.mxu0  ;;  %2069 = vmatmul.mubr.bf16.gmra.mxu0 %v12382_v57 }
 0x185   : > { %v13072_v3 = vpack.c.bf16 %v2586_v0, %v2585_v63  ;;  %2076 = vmatprep.mubr.bf16.mxu0 %v12387_v59  ;;  %v1879_v6 = vadd.f32 %v12970_v5, %v1878_v2 }
 0x186   : > { %v1880_v4 = vpop.f32.mrf.mxu0 }
 0x187   : > { %17737 = vst [vmem:[#allocation10_spill] sm:$0xff] %v13072_v3  ;;  %v2587_v14 = vmax.f32 %v1879_v6, 0.0  ;;  %v12397_v6 = vld [vmem:[%s12869_s14 + $0x2c0] ss:$8 sps:$4 sm:$0xff]  }
 0x188   : > { %v1881_v7 = vpop.f32.mrf.mxu0 }
 0x189   : > { %v1882_v9 = vadd.f32 %v12970_v5, %v1881_v7 }
 0x18a   : > { %v1883_v13 = vpop.f32.mrf.mxu0 }
 0x18b   : > { %v2588_v15 = vmax.f32 %v1882_v9, 0.0 }
 0x18c   : > { %v1886_v16 = vpop.f32.mrf.mxu0  ;;  %2077 = vmatmul.mubr.bf16.gmra.mxu0 %v12385_v8  ;;  %v12402_v8 = vld [vmem:[%s12869_s14 + $0x2d4] ss:$8 sps:$4 sm:$0xff]  }
 0x18d   : > { %v13078_v18 = vpack.c.bf16 %v2588_v15, %v2587_v14  ;;  %2084 = vmatprep.mubr.bf16.mxu0 %v12390_v11  ;;  %v1887_v20 = vadd.f32 %v12970_v5, %v1886_v16 }
 0x18e   : > { %v1888_v19 = vpop.f32.mrf.mxu0 }
 0x18f   : > { %17738 = vst [vmem:[#allocation11_spill] sm:$0xff] %v13078_v18  ;;  %v2589_v29 = vmax.f32 %v1887_v20, 0.0 }
 0x190   : > { %v1889_v21 = vpop.f32.mrf.mxu0 }
 0x191   : > { %v1890_v24 = vadd.f32 %v12970_v5, %v1889_v21  ;;  %v12400_v21 = vld [vmem:[%s12869_s14 + $0x2d0] ss:$8 sps:$4 sm:$0xff]  }
 0x192   : > { %v1891_v27 = vpop.f32.mrf.mxu0 }
 0x193   : > { %v2590_v30 = vmax.f32 %v1890_v24, 0.0  ;;  %v12405_v24 = vld [vmem:[%s12869_s14 + $0x2e4] ss:$8 sps:$4 sm:$0xff]  }
 0x194   : > { %v1894_v31 = vpop.f32.mrf.mxu0  ;;  %2085 = vmatmul.mubr.bf16.gmra.mxu0 %v12388_v23 }
 0x195   : > { %v13084_v32 = vpack.c.bf16 %v2590_v30, %v2589_v29  ;;  %2092 = vmatprep.mubr.bf16.mxu0 %v12393_v26  ;;  %v1895_v35 = vadd.f32 %v12970_v5, %v1894_v31 }
 0x196   : > { %v1896_v33 = vpop.f32.mrf.mxu0 }
 0x197   : > { %17739 = vst [vmem:[#allocation12_spill] sm:$0xff] %v13084_v32  ;;  %v2591_v43 = vmax.f32 %v1895_v35, 0.0 }
 0x198   : > { %v1897_v36 = vpop.f32.mrf.mxu0 }
 0x199   : > { %v1898_v40 = vadd.f32 %v12970_v5, %v1897_v36 }
 0x19a   : > { %v1899_v42 = vpop.f32.mrf.mxu0 }
 0x19b   : > { %v2592_v44 = vmax.f32 %v1898_v40, 0.0 }
 0x19c   : > { %v1902_v45 = vpop.f32.mrf.mxu0  ;;  %2093 = vmatmul.mubr.bf16.gmra.mxu0 %v12391_v37  ;;  %v12403_v37 = vld [vmem:[%s12869_s14 + $0x2e0] ss:$8 sps:$4 sm:$0xff]  }
 0x19d   : > { %v13090_v47 = vpack.c.bf16 %v2592_v44, %v2591_v43  ;;  %2100 = vmatprep.mubr.bf16.mxu0 %v12396_v41  ;;  %v1903_v49 = vadd.f32 %v12970_v5, %v1902_v45  ;;  %v12408_v41 = vld [vmem:[%s12869_s14 + $0x2f4] ss:$8 sps:$4 sm:$0xff]  }
 0x19e   : > { %v1904_v48 = vpop.f32.mrf.mxu0 }
 0x19f   : > { %17740 = vst [vmem:[#allocation13_spill] sm:$0xff] %v13090_v47  ;;  %v2593_v58 = vmax.f32 %v1903_v49, 0.0 }
 0x1a0   : > { %v1905_v52 = vpop.f32.mrf.mxu0 }
 0x1a1   : > { %v1906_v55 = vadd.f32 %v12970_v5, %v1905_v52 }
 0x1a2   : > { %v1907_v57 = vpop.f32.mrf.mxu0 }
 0x1a3   : > { %v2594_v59 = vmax.f32 %v1906_v55, 0.0  ;;  %v12406_v55 = vld [vmem:[%s12869_s14 + $0x2f0] ss:$8 sps:$4 sm:$0xff]   ;;  %v12411_v57 = vld [vmem:[%s12869_s14 + $0x304] ss:$8 sps:$4 sm:$0xff]  }
 0x1a4   : > { %v1910_v60 = vpop.f32.mrf.mxu0  ;;  %2101 = vmatmul.mubr.bf16.gmra.mxu0 %v12394_v54 }
 0x1a5   : > { %v13096_v63 = vpack.c.bf16 %v2594_v59, %v2593_v58  ;;  %2108 = vmatprep.mubr.bf16.mxu0 %v12399_v56  ;;  %v1911_v2 = vadd.f32 %v12970_v5, %v1910_v60 }
 0x1a6   : > { %v1912_v0 = vpop.f32.mrf.mxu0 }
 0x1a7   : > { %17741 = vst [vmem:[#allocation14_spill] sm:$0xff] %v13096_v63  ;;  %v2595_v11 = vmax.f32 %v1911_v2, 0.0 }
 0x1a8   : > { %v1913_v4 = vpop.f32.mrf.mxu0 }
 0x1a9   : > { %v1914_v7 = vadd.f32 %v12970_v5, %v1913_v4 }
 0x1aa   : > { %v1915_v9 = vpop.f32.mrf.mxu0 }
 0x1ab   : > { %v2596_v13 = vmax.f32 %v1914_v7, 0.0 }
 0x1ac   : > { %v1918_v14 = vpop.f32.mrf.mxu0  ;;  %2109 = vmatmul.mubr.bf16.gmra.mxu0 %v12397_v6 }
 0x1ad   : > { %v13102_v15 = vpack.c.bf16 %v2596_v13, %v2595_v11  ;;  %2116 = vmatprep.mubr.bf16.mxu0 %v12402_v8  ;;  %v1919_v19 = vadd.f32 %v12970_v5, %v1918_v14  ;;  %v12409_v8 = vld [vmem:[%s12869_s14 + $0x300] ss:$8 sps:$4 sm:$0xff]   ;;  %v12414_v11 = vld [vmem:[%s12869_s14 + $0x314] ss:$8 sps:$4 sm:$0xff]  }
 0x1ae   : > { %v1920_v16 = vpop.f32.mrf.mxu0 }
 0x1af   : > { %17742 = vst [vmem:[#allocation15_spill] sm:$0xff] %v13102_v15  ;;  %v2597_v27 = vmax.f32 %v1919_v19, 0.0 }
 0x1b0   : > { %v1921_v20 = vpop.f32.mrf.mxu0 }
 0x1b1   : > { %v1922_v23 = vadd.f32 %v12970_v5, %v1921_v20 }
 0x1b2   : > { %v1923_v26 = vpop.f32.mrf.mxu0 }
 0x1b3   : > { %v2598_v29 = vmax.f32 %v1922_v23, 0.0 }
 0x1b4   : > { %v1926_v30 = vpop.f32.mrf.mxu0  ;;  %2117 = vmatmul.mubr.bf16.gmra.mxu0 %v12400_v21 }
 0x1b5   : > { %v13108_v31 = vpack.c.bf16 %v2598_v29, %v2597_v27  ;;  %2124 = vmatprep.mubr.bf16.mxu0 %v12405_v24  ;;  %v1927_v35 = vadd.f32 %v12970_v5, %v1926_v30  ;;  %v12464_v24 = vld [vmem:[%s17589_s3 + $0x68] sm:$0xff]   ;;  %v12412_v27 = vld [vmem:[%s12869_s14 + $0x310] ss:$8 sps:$4 sm:$0xff]  }
 0x1b6   : > { %v1928_v33 = vpop.f32.mrf.mxu0  ;;  %v12418_v30 = vld [vmem:[%s12869_s14 + $0x324] ss:$8 sps:$4 sm:$0xff]   ;;  %11114 = vmatpush3.bf16.msra.mxu0 %v12464_v24  ;;  %v12424_v24 = vld [vmem:[%s12869_s14 + $0x340] ss:$8 sps:$4 sm:$0xff]  }
 0x1b7   : > { %17743 = vst [vmem:[#allocation16_spill] sm:$0xff] %v13108_v31  ;;  %v2599_v43 = vmax.f32 %v1927_v35, 0.0  ;;  %11115 = vmatprep.subr.bf16.mxu0 %v17600_v51 }
 0x1b8   : > { %v1929_v36 = vpop.f32.mrf.mxu0 }
 0x1b9   : > { %v1930_v40 = vadd.f32 %v12970_v5, %v1929_v36 }
 0x1ba   : > { %v1931_v42 = vpop.f32.mrf.mxu0 }
 0x1bb   : > { %v2600_v44 = vmax.f32 %v1930_v40, 0.0 }
 0x1bc   : > { %v1934_v45 = vpop.f32.mrf.mxu0  ;;  %2125 = vmatmul.mubr.bf16.gmra.mxu0 %v12403_v37 }
 0x1bd   : > { %v13114_v48 = vpack.c.bf16 %v2600_v44, %v2599_v43  ;;  %2132 = vmatprep.mubr.bf16.mxu0 %v12408_v41  ;;  %v1935_v52 = vadd.f32 %v12970_v5, %v1934_v45  ;;  %v12416_v44 = vld [vmem:[%s12869_s14 + $0x320] ss:$8 sps:$4 sm:$0xff]  }
 0x1be   : > { %v1936_v49 = vpop.f32.mrf.mxu0 }
 0x1bf   : > { %17744 = vst [vmem:[#allocation17_spill] sm:$0xff] %v13114_v48  ;;  %v2601_v59 = vmax.f32 %v1935_v52, 0.0  ;;  %v12423_v49 = vld [vmem:[%s12869_s14 + $0x334] ss:$8 sps:$4 sm:$0xff]  }
 0x1c0   : > { %v1937_v54 = vpop.f32.mrf.mxu0 }
 0x1c1   : > { %v1938_v56 = vadd.f32 %v12970_v5, %v1937_v54 }
 0x1c2   : > { %v1939_v58 = vpop.f32.mrf.mxu0 }
 0x1c3   : > { %v2602_v60 = vmax.f32 %v1938_v56, 0.0 }
 0x1c4   : > { %v1942_v0 = vpop.f32.mrf.mxu0  ;;  %2133 = vmatmul.mubr.bf16.gmra.mxu0 %v12406_v55 }
 0x1c5   : > { %v13120_v2 = vpack.c.bf16 %v2602_v60, %v2601_v59  ;;  %2140 = vmatprep.mubr.bf16.mxu0 %v12411_v57  ;;  %v1943_v6 = vadd.f32 %v12970_v5, %v1942_v0  ;;  %v12420_v57 = vld [vmem:[%s17589_s3 + $0x8] sm:$0xff]  }
 0x1c6   : > { %v1944_v4 = vpop.f32.mrf.mxu0 }
 0x1c7   : > { %17745 = vst [vmem:[#allocation18_spill] sm:$0xff] %v13120_v2  ;;  %v2603_v14 = vmax.f32 %v1943_v6, 0.0  ;;  %v12421_v4 = vld [vmem:[%s12869_s14 + $0x330] ss:$8 sps:$4 sm:$0xff]   ;;  %v12451_v6 = vld [vmem:[%s17589_s3] sm:$0xff]  }
 0x1c8   : > { %v1945_v7 = vpop.f32.mrf.mxu0 }
 0x1c9   : > { %v1946_v9 = vadd.f32 %v12970_v5, %v1945_v7 }
 0x1ca   : > { %v1947_v13 = vpop.f32.mrf.mxu0 }
 0x1cb   : > { %v2604_v16 = vmax.f32 %v1946_v9, 0.0 }
 0x1cc   : > { %v1950_v19 = vpop.f32.mrf.mxu0  ;;  %2141 = vmatmul.mubr.bf16.gmra.mxu0 %v12409_v8  ;;  %v12426_v8 = vld [vmem:[%s12869_s14 + $0x344] ss:$8 sps:$4 sm:$0xff]  }
 0x1cd   : > { %v13126_v20 = vpack.c.bf16 %v2604_v16, %v2603_v14  ;;  %2148 = vmatprep.mubr.bf16.mxu0 %v12414_v11  ;;  %v1951_v23 = vadd.f32 %v12970_v5, %v1950_v19 }
 0x1ce   : > { %v1952_v21 = vpop.f32.mrf.mxu0 }
 0x1cf   : > { %17746 = vst [vmem:[#allocation19_spill] sm:$0xff] %v13126_v20  ;;  %v2605_v35 = vmax.f32 %v1951_v23, 0.0 }
 0x1d0   : > { %v1953_v26 = vpop.f32.mrf.mxu0 }
 0x1d1   : > { %v1954_v29 = vadd.f32 %v12970_v5, %v1953_v26 }
 0x1d2   : > { %v1955_v33 = vpop.f32.mrf.mxu0 }
 0x1d3   : > { %v2606_v36 = vmax.f32 %v1954_v29, 0.0 }
 0x1d4   : > { %v1958_v37 = vpop.f32.mrf.mxu0  ;;  %2149 = vmatmul.mubr.bf16.gmra.mxu0 %v12412_v27  ;;  %v12429_v27 = vld [vmem:[%s12869_s14 + $0x354] ss:$8 sps:$4 sm:$0xff]  }
 0x1d5   : > { %v13136_v40 = vpack.c.bf16 %v2606_v36, %v2605_v35  ;;  %2156 = vmatprep.mubr.bf16.mxu0 %v12418_v30  ;;  %v1959_v42 = vadd.f32 %v12970_v5, %v1958_v37 }
 0x1d6   : > { %v1960_v41 = vpop.f32.mrf.mxu0 }
 0x1d7   : > { %17747 = vst [vmem:[#allocation20_spill] sm:$0xff] %v13136_v40  ;;  %v2607_v54 = vmax.f32 %v1959_v42, 0.0 }
 0x1d8   : > { %v1961_v43 = vpop.f32.mrf.mxu0 }
 0x1d9   : > { %v1962_v45 = vadd.f32 %v12970_v5, %v1961_v43  ;;  %v12427_v43 = vld [vmem:[%s12869_s14 + $0x350] ss:$8 sps:$4 sm:$0xff]  }
 0x1da   : > { %v1963_v52 = vpop.f32.mrf.mxu0 }
 0x1db   : > { %v2608_v55 = vmax.f32 %v1962_v45, 0.0  ;;  %v12432_v45 = vld [vmem:[%s12869_s14 + $0x364] ss:$8 sps:$4 sm:$0xff]  }
 0x1dc   : > { %v1966_v56 = vpop.f32.mrf.mxu0  ;;  %2157 = vmatmul.mubr.bf16.gmra.mxu0 %v12416_v44 }
 0x1dd   : > { %v2782_v58 = vpack.c.bf16 %v2608_v55, %v2607_v54  ;;  %2164 = vmatprep.mubr.bf16.mxu0 %v12423_v49  ;;  %v1967_v60 = vadd.f32 %v12970_v5, %v1966_v56 }
 0x1de   : > { %v1968_v59 = vpop.f32.mrf.mxu0 }
 0x1df   : > { %10638 = vmatmul.mubr.msk.bf16.vlgmr.msra.gmra.mxu1 %vm2877_vm1, %v2782_v58  ;;  %v2609_v11 = vmax.f32 %v1967_v60, 0.0  ;;  %v12430_v60 = vld [vmem:[%s12869_s14 + $0x360] ss:$8 sps:$4 sm:$0xff]  }
 0x1e0   : > { %10714 = vmatpush3.bf16.msra.mxu1 %v12420_v57  ;;  %v1969_v0 = vpop.f32.mrf.mxu0  ;;  %10641 = vmatprep.mubr.msk.bf16.mxu1 %vm12774_vm0, %v17600_v51 }
 0x1e1   : > { %v1970_v7 = vadd.f32 %v12970_v5, %v1969_v0  ;;  %10715 = vmatprep.subr.bf16.mxu1 %v17600_v51 }
 0x1e2   : > { %v1971_v9 = vpop.f32.mrf.mxu0 }
 0x1e3   : > { %v2610_v13 = vmax.f32 %v1970_v7, 0.0 }
 0x1e4   : > { %v1974_v14 = vpop.f32.mrf.mxu0  ;;  %2165 = vmatmul.mubr.bf16.gmra.mxu0 %v12421_v4  ;;  %10716 = vmatpush3.bf16.msra.mxu1 %v12451_v6  ;;  %v12435_v4 = vld [vmem:[%s12869_s14 + $0x374] ss:$8 sps:$4 sm:$0xff]  }
 0x1e5   : > { %v13156_v16 = vpack.c.bf16 %v2610_v13, %v2609_v11  ;;  %2172 = vmatprep.mubr.bf16.mxu0 %v12426_v8  ;;  %10793 = vmatprep.subr.bf16.mxu1 %v17600_v51  ;;  %v1975_v21 = vadd.f32 %v12970_v5, %v1974_v14 }
 0x1e6   : > { %v1976_v19 = vpop.f32.mrf.mxu0 }
 0x1e7   : > { %10642 = vmatmul.mubr.msk.bf16.gmra.mxu1 %vm2877_vm1, %v13156_v16  ;;  %v2611_v30 = vmax.f32 %v1975_v21, 0.0  ;;  %v12433_v21 = vld [vmem:[%s12869_s14 + $0x370] ss:$8 sps:$4 sm:$0xff]  }
 0x1e8   : > { %v1977_v23 = vpop.f32.mrf.mxu0  ;;  %10645 = vmatprep.mubr.msk.bf16.mxu1 %vm12774_vm0, %v17600_v51 }
 0x1e9   : > { %v1978_v26 = vadd.f32 %v12970_v5, %v1977_v23 }
 0x1ea   : > { %v1979_v29 = vpop.f32.mrf.mxu0 }
 0x1eb   : > { %v2612_v33 = vmax.f32 %v1978_v26, 0.0 }
 0x1ec   : > { %v1982_v35 = vpop.f32.mrf.mxu0  ;;  %2173 = vmatmul.mubr.bf16.gmra.mxu0 %v12424_v24  ;;  %v12438_v24 = vld [vmem:[%s12869_s14 + $0x384] ss:$8 sps:$4 sm:$0xff]  }
 0x1ed   : > { %v13167_v36 = vpack.c.bf16 %v2612_v33, %v2611_v30  ;;  %2180 = vmatprep.mubr.bf16.mxu0 %v12429_v27  ;;  %v1983_v41 = vadd.f32 %v12970_v5, %v1982_v35 }
 0x1ee   : > { %v1984_v37 = vpop.f32.mrf.mxu0 }
 0x1ef   : > { %10646 = vmatmul.mubr.msk.bf16.gmra.mxu1 %vm2877_vm1, %v13167_v36  ;;  %v2613_v52 = vmax.f32 %v1983_v41, 0.0 }
 0x1f0   : > { %v1985_v42 = vpop.f32.mrf.mxu0  ;;  %10649 = vmatprep.mubr.msk.bf16.mxu1 %vm12774_vm0, %v17600_v51 }
 0x1f1   : > { %v1986_v44 = vadd.f32 %v12970_v5, %v1985_v42  ;;  %v12436_v42 = vld [vmem:[%s12869_s14 + $0x380] ss:$8 sps:$4 sm:$0xff]  }
 0x1f2   : > { %v1987_v49 = vpop.f32.mrf.mxu0 }
 0x1f3   : > { %v2614_v54 = vmax.f32 %v1986_v44, 0.0  ;;  %v12441_v44 = vld [vmem:[%s12869_s14 + $0x394] ss:$8 sps:$4 sm:$0xff]  }
 0x1f4   : > { %v1990_v55 = vpop.f32.mrf.mxu0  ;;  %2181 = vmatmul.mubr.bf16.gmra.mxu0 %v12427_v43 }
 0x1f5   : > { %v13177_v56 = vpack.c.bf16 %v2614_v54, %v2613_v52  ;;  %2188 = vmatprep.mubr.bf16.mxu0 %v12432_v45  ;;  %v1991_v58 = vadd.f32 %v12970_v5, %v1990_v55 }
 0x1f6   : > { %v1992_v57 = vpop.f32.mrf.mxu0 }
 0x1f7   : > { %10650 = vmatmul.mubr.msk.bf16.gmra.mxu1 %vm2877_vm1, %v13177_v56  ;;  %v2615_v7 = vmax.f32 %v1991_v58, 0.0 }
 0x1f8   : > { %v1993_v59 = vpop.f32.mrf.mxu0  ;;  %10653 = vmatprep.mubr.msk.bf16.mxu1 %vm12774_vm0, %v17600_v51 }
 0x1f9   : > { %v1994_v0 = vadd.f32 %v12970_v5, %v1993_v59 }
 0x1fa   : > { %v1995_v6 = vpop.f32.mrf.mxu0 }
 0x1fb   : > { %v2616_v8 = vmax.f32 %v1994_v0, 0.0 }
 0x1fc   : > { %v1998_v9 = vpop.f32.mrf.mxu0  ;;  %2189 = vmatmul.mubr.bf16.gmra.mxu0 %v12430_v60  ;;  %v12439_v60 = vld [vmem:[%s12869_s14 + $0x390] ss:$8 sps:$4 sm:$0xff]  }
 0x1fd   : > { %v13187_v11 = vpack.c.bf16 %v2616_v8, %v2615_v7  ;;  %2196 = vmatprep.mubr.bf16.mxu0 %v12435_v4  ;;  %v1999_v14 = vadd.f32 %v12970_v5, %v1998_v9  ;;  %v12444_v4 = vld [vmem:[%s12869_s14 + $0x3a4] ss:$8 sps:$4 sm:$0xff]  }
 0x1fe   : > { %v2000_v13 = vpop.f32.mrf.mxu0 }
 0x1ff   : > { %10654 = vmatmul.mubr.msk.bf16.gmra.mxu1 %vm2877_vm1, %v13187_v11  ;;  %v2617_v27 = vmax.f32 %v1999_v14, 0.0 }
 0x200   : > { %v2001_v19 = vpop.f32.mrf.mxu0  ;;  %10657 = vmatprep.mubr.msk.bf16.mxu1 %vm12774_vm0, %v17600_v51 }
 0x201   : > { %v2002_v23 = vadd.f32 %v12970_v5, %v2001_v19 }
 0x202   : > { %v2003_v26 = vpop.f32.mrf.mxu0 }
 0x203   : > { %v2618_v29 = vmax.f32 %v2002_v23, 0.0  ;;  %v12442_v23 = vld [vmem:[%s12869_s14 + $0x3a0] ss:$8 sps:$4 sm:$0xff]   ;;  %v12447_v26 = vld [vmem:[%s12869_s14 + $0x3b4] ss:$8 sps:$4 sm:$0xff]  }
 0x204   : > { %v2006_v30 = vpop.f32.mrf.mxu0  ;;  %2197 = vmatmul.mubr.bf16.gmra.mxu0 %v12433_v21 }
 0x205   : > { %v13197_v33 = vpack.c.bf16 %v2618_v29, %v2617_v27  ;;  %2204 = vmatprep.mubr.bf16.mxu0 %v12438_v24  ;;  %v2007_v37 = vadd.f32 %v12970_v5, %v2006_v30 }
 0x206   : > { %v2008_v35 = vpop.f32.mrf.mxu0 }
 0x207   : > { %17748 = vst [vmem:[#allocation21_spill] sm:$0xff] %v13197_v33  ;;  %10658 = vmatmul.mubr.msk.bf16.gmra.mxu1 %vm2877_vm1, %v13197_v33  ;;  %v2619_v49 = vmax.f32 %v2007_v37, 0.0 }
 0x208   : > { %v2009_v41 = vpop.f32.mrf.mxu0  ;;  %10661 = vmatprep.mubr.msk.bf16.mxu1 %vm12774_vm0, %v17600_v51 }
 0x209   : > { %v2010_v43 = vadd.f32 %v12970_v5, %v2009_v41 }
 0x20a   : > { %v2011_v45 = vpop.f32.mrf.mxu0 }
 0x20b   : > { %v2620_v52 = vmax.f32 %v2010_v43, 0.0 }
 0x20c   : > { %v2014_v54 = vpop.f32.mrf.mxu0  ;;  %2205 = vmatmul.mubr.bf16.gmra.mxu0 %v12436_v42 }
 0x20d   : > { %v13207_v55 = vpack.c.bf16 %v2620_v52, %v2619_v49  ;;  %2212 = vmatprep.mubr.bf16.mxu0 %v12441_v44  ;;  %v2015_v58 = vadd.f32 %v12970_v5, %v2014_v54  ;;  %v12445_v44 = vld [vmem:[%s12869_s14 + $0x3b0] ss:$8 sps:$4 sm:$0xff]   ;;  %v12450_v49 = vld [vmem:[%s12869_s14 + $0x3c4] ss:$8 sps:$4 sm:$0xff]  }
 0x20e   : > { %v2016_v57 = vpop.f32.mrf.mxu0 }
 0x20f   : > { %17749 = vst [vmem:[#allocation22_spill] sm:$0xff] %v13207_v55  ;;  %10662 = vmatmul.mubr.msk.bf16.gmra.mxu1 %vm2877_vm1, %v13207_v55  ;;  %v2621_v7 = vmax.f32 %v2015_v58, 0.0 }
 0x210   : > { %v2017_v59 = vpop.f32.mrf.mxu0  ;;  %10665 = vmatprep.mubr.msk.bf16.mxu1 %vm12774_vm0, %v17600_v51 }
 0x211   : > { %v2018_v0 = vadd.f32 %v12970_v5, %v2017_v59 }
 0x212   : > { %v2019_v6 = vpop.f32.mrf.mxu0 }
 0x213   : > { %v2622_v8 = vmax.f32 %v2018_v0, 0.0  ;;  %v12448_v6 = vld [vmem:[%s12869_s14 + $0x3c0] ss:$8 sps:$4 sm:$0xff]  }
 0x214   : > { %v2022_v9 = vpop.f32.mrf.mxu0  ;;  %2213 = vmatmul.mubr.bf16.gmra.mxu0 %v12439_v60 }
 0x215   : > { %v13217_v13 = vpack.c.bf16 %v2622_v8, %v2621_v7  ;;  %2220 = vmatprep.mubr.bf16.mxu0 %v12444_v4  ;;  %v2023_v19 = vadd.f32 %v12970_v5, %v2022_v9  ;;  %v12454_v8 = vld [vmem:[%s12869_s14 + $0x3d4] ss:$8 sps:$4 sm:$0xff]  }
 0x216   : > { %v2024_v14 = vpop.f32.mrf.mxu0 }
 0x217   : > { %17750 = vst [vmem:[#allocation23_spill] sm:$0xff] %v13217_v13  ;;  %10666 = vmatmul.mubr.msk.bf16.gmra.mxu1 %vm2877_vm1, %v13217_v13  ;;  %v2623_v29 = vmax.f32 %v2023_v19, 0.0 }
 0x218   : > { %v2025_v21 = vpop.f32.mrf.mxu0  ;;  %10669 = vmatprep.mubr.msk.bf16.mxu1 %vm12774_vm0, %v17600_v51 }
 0x219   : > { %v2026_v24 = vadd.f32 %v12970_v5, %v2025_v21 }
 0x21a   : > { %v2027_v27 = vpop.f32.mrf.mxu0 }
 0x21b   : > { %v2624_v30 = vmax.f32 %v2026_v24, 0.0 }
 0x21c   : > { %v2030_v35 = vpop.f32.mrf.mxu0  ;;  %2221 = vmatmul.mubr.bf16.gmra.mxu0 %v12442_v23 }
 0x21d   : > { %v13227_v37 = vpack.c.bf16 %v2624_v30, %v2623_v29  ;;  %2228 = vmatprep.mubr.bf16.mxu0 %v12447_v26  ;;  %v2031_v42 = vadd.f32 %v12970_v5, %v2030_v35  ;;  %v13252_v26 = vld [vmem:[%s17588_s2] ss:$0 sm:$0xff]  ;;  %v12452_v29 = vld [vmem:[%s12869_s14 + $0x3d0] ss:$8 sps:$4 sm:$0xff]   ;;  %v12457_v35 = vld [vmem:[%s12869_s14 + $0x3e4] ss:$8 sps:$4 sm:$0xff]  }
 0x21e   : > { %v2032_v41 = vpop.f32.mrf.mxu0 }
 0x21f   : > { %17751 = vst [vmem:[#allocation24_spill] sm:$0xff] %v13227_v37  ;;  %10670 = vmatmul.mubr.msk.bf16.gmra.mxu1 %vm2877_vm1, %v13227_v37  ;;  %v2625_v54 = vmax.f32 %v2031_v42, 0.0 }
 0x220   : > { %v2033_v43 = vpop.f32.mrf.mxu0  ;;  %10673 = vmatprep.mubr.msk.bf16.mxu1 %vm12774_vm0, %v17600_v51 }
 0x221   : > { %v2034_v45 = vadd.f32 %v12970_v5, %v2033_v43 }
 0x222   : > { %v2035_v52 = vpop.f32.mrf.mxu0 }
 0x223   : > { %v2626_v57 = vmax.f32 %v2034_v45, 0.0 }
 0x224   : > { %v2038_v58 = vpop.f32.mrf.mxu0  ;;  %2229 = vmatmul.mubr.bf16.gmra.mxu0 %v12445_v44 }
 0x225   : > { %v13237_v59 = vpack.c.bf16 %v2626_v57, %v2625_v54  ;;  %2236 = vmatprep.mubr.bf16.mxu0 %v12450_v49  ;;  %v2039_v0 = vadd.f32 %v12970_v5, %v2038_v58  ;;  %v12455_v57 = vld [vmem:[%s12869_s14 + $0x3e0] ss:$8 sps:$4 sm:$0xff]  }
 0x226   : > { %v2040_v60 = vpop.f32.mrf.mxu0 }
 0x227   : > { %17752 = vst [vmem:[#allocation25_spill] sm:$0xff] %v13237_v59  ;;  %10674 = vmatmul.mubr.msk.bf16.gmra.mxu1 %vm2877_vm1, %v13237_v59  ;;  %v2627_v14 = vmax.f32 %v2039_v0, 0.0  ;;  %v12460_v60 = vld [vmem:[%s12869_s14 + $0x3f4] ss:$8 sps:$4 sm:$0xff]  }
 0x228   : > { %v2041_v4 = vpop.f32.mrf.mxu0  ;;  %10677 = vmatprep.mubr.msk.bf16.mxu1 %vm12774_vm0, %v17600_v51 }
 0x229   : > { %v2042_v7 = vadd.f32 %v12970_v5, %v2041_v4 }
 0x22a   : > { %v2043_v9 = vpop.f32.mrf.mxu0 }
 0x22b   : > { %v2628_v19 = vmax.f32 %v2042_v7, 0.0 }
 0x22c   : > { %v2046_v21 = vpop.f32.mrf.mxu0  ;;  %2237 = vmatmul.mubr.bf16.gmra.mxu0 %v12448_v6 }
 0x22d   : > { %v13247_v23 = vpack.c.bf16 %v2628_v19, %v2627_v14  ;;  %2244 = vmatprep.mubr.bf16.mxu0 %v12454_v8  ;;  %v2047_v27 = vadd.f32 %v13252_v26, %v2046_v21  ;;  %v12458_v21 = vld [vmem:[%s12869_s14 + $0x3f0] ss:$8 sps:$4 sm:$0xff]  }
 0x22e   : > { %v2048_v24 = vpop.f32.mrf.mxu0 }
 0x22f   : > { %17753 = vst [vmem:[#allocation26_spill] sm:$0xff] %v13247_v23  ;;  %10678 = vmatmul.mubr.msk.bf16.gmra.mxu1 %vm2877_vm1, %v13247_v23  ;;  %v2629_v42 = vmax.f32 %v2047_v27, 0.0  ;;  %v12463_v27 = vld [vmem:[%s12869_s14 + $0x404] ss:$8 sps:$4 sm:$0xff]  }
 0x230   : > { %v2049_v5 = vpop.f32.mrf.mxu0  ;;  %10681 = vmatprep.mubr.msk.bf16.mxu1 %vm12774_vm0, %v17600_v51 }
 0x231   : > { %v2050_v30 = vadd.f32 %v13252_v26, %v2049_v5 }
 0x232   : > { %v2051_v41 = vpop.f32.mrf.mxu0 }
 0x233   : > { %v2630_v43 = vmax.f32 %v2050_v30, 0.0 }
 0x234   : > { %v2054_v44 = vpop.f32.mrf.mxu0  ;;  %2245 = vmatmul.mubr.bf16.gmra.mxu0 %v12452_v29 }
 0x235   : > { %v13262_v45 = vpack.c.bf16 %v2630_v43, %v2629_v42  ;;  %2252 = vmatprep.mubr.bf16.mxu0 %v12457_v35  ;;  %v2055_v52 = vadd.f32 %v13252_v26, %v2054_v44 }
 0x236   : > { %v2056_v49 = vpop.f32.mrf.mxu0 }
 0x237   : > { %17754 = vst [vmem:[#allocation27_spill] sm:$0xff] %v13262_v45  ;;  %10682 = vmatmul.mubr.msk.bf16.gmra.mxu1 %vm2877_vm1, %v13262_v45  ;;  %v2631_v4 = vmax.f32 %v2055_v52, 0.0  ;;  %v12461_v49 = vld [vmem:[%s12869_s14 + $0x400] ss:$8 sps:$4 sm:$0xff]  }
 0x238   : > { %v2057_v54 = vpop.f32.mrf.mxu0  ;;  %10685 = vmatprep.mubr.msk.bf16.mxu1 %vm12774_vm0, %v17600_v51 }
 0x239   : > { %v2058_v58 = vadd.f32 %v13252_v26, %v2057_v54  ;;  %v12467_v54 = vld [vmem:[%s12869_s14 + $0x414] ss:$8 sps:$4 sm:$0xff]  }
 0x23a   : > { %v2059_v0 = vpop.f32.mrf.mxu0 }
 0x23b   : > { %v2632_v6 = vmax.f32 %v2058_v58, 0.0 }
 0x23c   : > { %v2062_v7 = vpop.f32.mrf.mxu0  ;;  %2253 = vmatmul.mubr.bf16.gmra.mxu0 %v12455_v57 }
 0x23d   : > { %v13272_v8 = vpack.c.bf16 %v2632_v6, %v2631_v4  ;;  %2260 = vmatprep.mubr.bf16.mxu0 %v12460_v60  ;;  %v2063_v14 = vadd.f32 %v13252_v26, %v2062_v7 }
 0x23e   : > { %v2064_v9 = vpop.f32.mrf.mxu0 }
 0x23f   : > { %17755 = vst [vmem:[#allocation28_spill] sm:$0xff] %v13272_v8  ;;  %10686 = vmatmul.mubr.msk.bf16.gmra.mxu1 %vm2877_vm1, %v13272_v8  ;;  %v2633_v29 = vmax.f32 %v2063_v14, 0.0  ;;  %v12465_v14 = vld [vmem:[%s12869_s14 + $0x410] ss:$8 sps:$4 sm:$0xff]  }
 0x240   : > { %v2065_v19 = vpop.f32.mrf.mxu0  ;;  %10689 = vmatprep.mubr.msk.bf16.mxu1 %vm12774_vm0, %v17600_v51 }
 0x241   : > { %v2066_v24 = vadd.f32 %v13252_v26, %v2065_v19 }
 0x242   : > { %v2067_v5 = vpop.f32.mrf.mxu0 }
 0x243   : > { %v2634_v30 = vmax.f32 %v2066_v24, 0.0 }
 0x244   : > { %v2070_v35 = vpop.f32.mrf.mxu0  ;;  %2261 = vmatmul.mubr.bf16.gmra.mxu0 %v12458_v21  ;;  %v12470_v21 = vld [vmem:[%s12869_s14 + $0x424] ss:$8 sps:$4 sm:$0xff]  }
 0x245   : > { %v13282_v41 = vpack.c.bf16 %v2634_v30, %v2633_v29  ;;  %2268 = vmatprep.mubr.bf16.mxu0 %v12463_v27  ;;  %v2071_v43 = vadd.f32 %v13252_v26, %v2070_v35 }
 0x246   : > { %v2072_v42 = vpop.f32.mrf.mxu0 }
 0x247   : > { %17756 = vst [vmem:[#allocation29_spill] sm:$0xff] %v13282_v41  ;;  %10690 = vmatmul.mubr.msk.bf16.gmra.mxu1 %vm2877_vm1, %v13282_v41  ;;  %v2635_v58 = vmax.f32 %v2071_v43, 0.0 }
 0x248   : > { %v2073_v44 = vpop.f32.mrf.mxu0  ;;  %10693 = vmatprep.mubr.msk.bf16.mxu1 %vm12774_vm0, %v17600_v51 }
 0x249   : > { %v2074_v52 = vadd.f32 %v13252_v26, %v2073_v44  ;;  %v12468_v44 = vld [vmem:[%s12869_s14 + $0x420] ss:$8 sps:$4 sm:$0xff]  }
 0x24a   : > { %v2075_v57 = vpop.f32.mrf.mxu0 }
 0x24b   : > { %v2636_v60 = vmax.f32 %v2074_v52, 0.0  ;;  %v12473_v52 = vld [vmem:[%s12869_s14 + $0x434] ss:$8 sps:$4 sm:$0xff]  }
 0x24c   : > { %v2078_v0 = vpop.f32.mrf.mxu0  ;;  %2269 = vmatmul.mubr.bf16.gmra.mxu0 %v12461_v49 }
 0x24d   : > { %v13292_v4 = vpack.c.bf16 %v2636_v60, %v2635_v58  ;;  %2276 = vmatprep.mubr.bf16.mxu0 %v12467_v54  ;;  %v2079_v7 = vadd.f32 %v13252_v26, %v2078_v0 }
 0x24e   : > { %v2080_v6 = vpop.f32.mrf.mxu0 }
 0x24f   : > { %17757 = vst [vmem:[#allocation30_spill] sm:$0xff] %v13292_v4  ;;  %10694 = vmatmul.mubr.msk.bf16.gmra.mxu1 %vm2877_vm1, %v13292_v4  ;;  %v2637_v27 = vmax.f32 %v2079_v7, 0.0 }
 0x250   : > { %v2081_v9 = vpop.f32.mrf.mxu0  ;;  %10697 = vmatprep.mubr.msk.bf16.mxu1 %vm12774_vm0, %v17600_v51 }
 0x251   : > { %v2082_v19 = vadd.f32 %v13252_v26, %v2081_v9 }
 0x252   : > { %v2083_v24 = vpop.f32.mrf.mxu0 }
 0x253   : > { %v2638_v5 = vmax.f32 %v2082_v19, 0.0 }
 0x254   : > { %v2086_v29 = vpop.f32.mrf.mxu0  ;;  %2277 = vmatmul.mubr.bf16.gmra.mxu0 %v12465_v14  ;;  %v12471_v14 = vld [vmem:[%s12869_s14 + $0x430] ss:$8 sps:$4 sm:$0xff]  }
 0x255   : > { %v13302_v30 = vpack.c.bf16 %v2638_v5, %v2637_v27  ;;  %2284 = vmatprep.mubr.bf16.mxu0 %v12470_v21  ;;  %v2087_v42 = vadd.f32 %v13252_v26, %v2086_v29  ;;  %v12476_v21 = vld [vmem:[%s12869_s14 + $0x444] ss:$8 sps:$4 sm:$0xff]  }
 0x256   : > { %v2088_v35 = vpop.f32.mrf.mxu0 }
 0x257   : > { %17758 = vst [vmem:[#allocation31_spill] sm:$0xff] %v13302_v30  ;;  %10698 = vmatmul.mubr.msk.bf16.gmra.mxu1 %vm2877_vm1, %v13302_v30  ;;  %v2639_v57 = vmax.f32 %v2087_v42, 0.0 }
 0x258   : > { %v2089_v43 = vpop.f32.mrf.mxu0  ;;  %10701 = vmatprep.mubr.msk.bf16.mxu1 %vm12774_vm0, %v17600_v51 }
 0x259   : > { %v2090_v49 = vadd.f32 %v13252_v26, %v2089_v43 }
 0x25a   : > { %v2091_v54 = vpop.f32.mrf.mxu0 }
 0x25b   : > { %v2640_v58 = vmax.f32 %v2090_v49, 0.0  ;;  %v12474_v49 = vld [vmem:[%s12869_s14 + $0x440] ss:$8 sps:$4 sm:$0xff]   ;;  %v12479_v54 = vld [vmem:[%s12869_s14 + $0x454] ss:$8 sps:$4 sm:$0xff]  }
 0x25c   : > { %v2094_v60 = vpop.f32.mrf.mxu0  ;;  %2285 = vmatmul.mubr.bf16.gmra.mxu0 %v12468_v44 }
 0x25d   : > { %v13312_v0 = vpack.c.bf16 %v2640_v58, %v2639_v57  ;;  %2292 = vmatprep.mubr.bf16.mxu0 %v12473_v52  ;;  %v2095_v7 = vadd.f32 %v13252_v26, %v2094_v60 }
 0x25e   : > { %v2096_v6 = vpop.f32.mrf.mxu0 }
 0x25f   : > { %17759 = vst [vmem:[#allocation32_spill] sm:$0xff] %v13312_v0  ;;  %10702 = vmatmul.mubr.msk.bf16.gmra.mxu1 %vm2877_vm1, %v13312_v0  ;;  %v2641_v27 = vmax.f32 %v2095_v7, 0.0 }
 0x260   : > { %v2097_v9 = vpop.f32.mrf.mxu0  ;;  %10705 = vmatprep.mubr.msk.bf16.mxu1 %vm12774_vm0, %v17600_v51 }
 0x261   : > { %v2098_v19 = vadd.f32 %v13252_v26, %v2097_v9 }
 0x262   : > { %v2099_v24 = vpop.f32.mrf.mxu0 }
 0x263   : > { %v2642_v5 = vmax.f32 %v2098_v19, 0.0 }
 0x264   : > { %v2102_v29 = vpop.f32.mrf.mxu0  ;;  %2293 = vmatmul.mubr.bf16.gmra.mxu0 %v12471_v14 }
 0x265   : > { %v13322_v35 = vpack.c.bf16 %v2642_v5, %v2641_v27  ;;  %2300 = vmatprep.mubr.bf16.mxu0 %v12476_v21  ;;  %v2103_v43 = vadd.f32 %v13252_v26, %v2102_v29  ;;  %v12477_v21 = vld [vmem:[%s12869_s14 + $0x450] ss:$8 sps:$4 sm:$0xff]   ;;  %v12483_v5 = vld [vmem:[%s12869_s14 + $0x464] ss:$8 sps:$4 sm:$0xff]  }
 0x266   : > { %v2104_v42 = vpop.f32.mrf.mxu0 }
 0x267   : > { %17760 = vst [vmem:[#allocation33_spill] sm:$0xff] %v13322_v35  ;;  %10706 = vmatmul.mubr.msk.bf16.gmra.mxu1 %vm2877_vm1, %v13322_v35  ;;  %v2643_v58 = vmax.f32 %v2103_v43, 0.0 }
 0x268   : > { %v2105_v44 = vpop.f32.mrf.mxu0  ;;  %10709 = vmatprep.mubr.msk.bf16.mxu1 %vm12774_vm0, %v17600_v51 }
 0x269   : > { %v2106_v52 = vadd.f32 %v13252_v26, %v2105_v44  ;;  %v12480_v44 = vld [vmem:[%s17589_s3 + $0x28] sm:$0xff]  }
 0x26a   : > { %v2107_v57 = vpop.f32.mrf.mxu0 }
 0x26b   : > { %v2644_v60 = vmax.f32 %v2106_v52, 0.0 }
 0x26c   : > { %v2110_v6 = vpop.f32.mrf.mxu0  ;;  %2301 = vmatmul.mubr.bf16.gmra.mxu0 %v12474_v49 }
 0x26d   : > { %v13332_v7 = vpack.c.bf16 %v2644_v60, %v2643_v58  ;;  %v2111_v9 = vadd.f32 %v13252_v26, %v2110_v6  ;;  %2308 = vmatprep.mubr.bf16.mxu0 %v12479_v54  ;;  %v12481_v58 = vld [vmem:[%s12869_s14 + $0x460] ss:$8 sps:$4 sm:$0xff]  }
 0x26e   : > { %v2112_v14 = vpop.f32.mrf.mxu0  ;;  %v12511_v60 = vld [vmem:[%s17589_s3 + $0x20] sm:$0xff]  }
 0x26f   : > { %17761 = vst [vmem:[#allocation34_spill] sm:$0xff] %v13332_v7  ;;  %10710 = vmatmul.mubr.msk.bf16.gmra.mxu1 %vm2877_vm1, %v13332_v7  ;;  %v2645_v24 = vmax.f32 %v2111_v9, 0.0  ;;  %v12486_v14 = vld [vmem:[%s12869_s14 + $0x474] ss:$8 sps:$4 sm:$0xff]  }
 0x270   : > { %v2113_v19 = vpop.f32.mrf.mxu0  ;;  %10717 = vmatprep.mubr.msk.bf16.mxu1 %vm12774_vm0, %v17600_v51 }
 0x271   : > { %v2114_v27 = vadd.f32 %v13252_v26, %v2113_v19 }
 0x272   : > { %v2115_v29 = vpop.f32.mrf.mxu0 }
 0x273   : > { %v2646_v42 = vmax.f32 %v2114_v27, 0.0 }
 0x274   : > { %v2118_v43 = vpop.f32.mrf.mxu0  ;;  %2309 = vmatmul.mubr.bf16.gmra.mxu0 %v12477_v21 }
 0x275   : > { %v13345_v49 = vpack.c.bf16 %v2646_v42, %v2645_v24  ;;  %v2119_v52 = vadd.f32 %v13252_v26, %v2118_v43  ;;  %2316 = vmatprep.mubr.bf16.mxu0 %v12483_v5  ;;  %v12484_v42 = vld [vmem:[%s12869_s14 + $0x470] ss:$8 sps:$4 sm:$0xff]  }
 0x276   : > { %v2120_v54 = vpop.f32.mrf.mxu0 }
 0x277   : > { %17762 = vst [vmem:[#allocation35_spill] sm:$0xff] %v13345_v49  ;;  %10718 = vmatmul.mubr.msk.bf16.vlgmr.msra.gmra.mxu1 %vm2877_vm1, %v12976_v17  ;;  %v2647_v6 = vmax.f32 %v2119_v52, 0.0  ;;  %v12489_v52 = vld [vmem:[%s12869_s14 + $0x484] ss:$8 sps:$4 sm:$0xff]  }
 0x278   : > { %10794 = vmatpush3.bf16.msra.mxu1 %v12480_v44  ;;  %v2121_v57 = vpop.f32.mrf.mxu0  ;;  %10721 = vmatprep.mubr.msk.bf16.mxu1 %vm12774_vm0, %v17600_v51 }
 0x279   : > { %v2122_v9 = vadd.f32 %v13252_v26, %v2121_v57  ;;  %10795 = vmatprep.subr.bf16.mxu1 %v17600_v51 }
 0x27a   : > { %v2123_v19 = vpop.f32.mrf.mxu0 }
 0x27b   : > { %v2648_v17 = vmax.f32 %v2122_v9, 0.0  ;;  %v12487_v19 = vld [vmem:[%s12869_s14 + $0x480] ss:$8 sps:$4 sm:$0xff]  }
 0x27c   : > { %v2126_v21 = vpop.f32.mrf.mxu0  ;;  %2317 = vmatmul.mubr.bf16.gmra.mxu0 %v12481_v58  ;;  %10796 = vmatpush3.bf16.msra.mxu1 %v12511_v60 }
 0x27d   : > { %v13359_v24 = vpack.c.bf16 %v2648_v17, %v2647_v6  ;;  %v2127_v27 = vadd.f32 %v13252_v26, %v2126_v21  ;;  %2324 = vmatprep.mubr.bf16.mxu0 %v12486_v14  ;;  %10873 = vmatprep.subr.bf16.mxu1 %v17600_v51 }
 0x27e   : > { %v2128_v5 = vpop.f32.mrf.mxu0 }
 0x27f   : > { %17763 = vst [vmem:[#allocation36_spill] sm:$0xff] %v13359_v24  ;;  %10722 = vmatmul.mubr.msk.bf16.gmra.mxu1 %vm2877_vm1, %v12982_v28  ;;  %v2649_v43 = vmax.f32 %v2127_v27, 0.0  ;;  %v12492_v27 = vld [vmem:[%s12869_s14 + $0x494] ss:$8 sps:$4 sm:$0xff]  }
 0x280   : > { %v2129_v29 = vpop.f32.mrf.mxu0  ;;  %10725 = vmatprep.mubr.msk.bf16.mxu1 %vm12774_vm0, %v17600_v51 }
 0x281   : > { %v2130_v44 = vadd.f32 %v13252_v26, %v2129_v29 }
 0x282   : > { %v2131_v54 = vpop.f32.mrf.mxu0 }
 0x283   : > { %v2650_v57 = vmax.f32 %v2130_v44, 0.0 }
 0x284   : > { %v2134_v58 = vpop.f32.mrf.mxu0  ;;  %2325 = vmatmul.mubr.bf16.gmra.mxu0 %v12484_v42 }
 0x285   : > { %v13370_v60 = vpack.c.bf16 %v2650_v57, %v2649_v43  ;;  %v2135_v6 = vadd.f32 %v13252_v26, %v2134_v58  ;;  %2332 = vmatprep.mubr.bf16.mxu0 %v12489_v52  ;;  %v12490_v57 = vld [vmem:[%s12869_s14 + $0x490] ss:$8 sps:$4 sm:$0xff]  }
 0x286   : > { %v2136_v9 = vpop.f32.mrf.mxu0 }
 0x287   : > { %17764 = vst [vmem:[#allocation37_spill] sm:$0xff] %v13370_v60  ;;  %10726 = vmatmul.mubr.msk.bf16.gmra.mxu1 %vm2877_vm1, %v12988_v39  ;;  %v2651_v17 = vmax.f32 %v2135_v6, 0.0  ;;  %v12495_v9 = vld [vmem:[%s12869_s14 + $0x4a4] ss:$8 sps:$4 sm:$0xff]  }
 0x288   : > { %v2137_v14 = vpop.f32.mrf.mxu0  ;;  %10729 = vmatprep.mubr.msk.bf16.mxu1 %vm12774_vm0, %v17600_v51 }
 0x289   : > { %v2138_v21 = vadd.f32 %v13252_v26, %v2137_v14 }
 0x28a   : > { %v2139_v5 = vpop.f32.mrf.mxu0 }
 0x28b   : > { %v2652_v29 = vmax.f32 %v2138_v21, 0.0 }
 0x28c   : > { %v2142_v42 = vpop.f32.mrf.mxu0  ;;  %2333 = vmatmul.mubr.bf16.gmra.mxu0 %v12487_v19 }
 0x28d   : > { %v13380_v43 = vpack.c.bf16 %v2652_v29, %v2651_v17  ;;  %v2143_v44 = vadd.f32 %v13252_v26, %v2142_v42  ;;  %2340 = vmatprep.mubr.bf16.mxu0 %v12492_v27  ;;  %v12493_v42 = vld [vmem:[%s12869_s14 + $0x4a0] ss:$8 sps:$4 sm:$0xff]  }
 0x28e   : > { %v2144_v52 = vpop.f32.mrf.mxu0 }
 0x28f   : > { %17765 = vst [vmem:[#allocation38_spill] sm:$0xff] %v13380_v43  ;;  %10730 = vmatmul.mubr.msk.bf16.gmra.mxu1 %vm2877_vm1, %v12994_v50  ;;  %v2653_v58 = vmax.f32 %v2143_v44, 0.0 }
 0x290   : > { %v2145_v54 = vpop.f32.mrf.mxu0  ;;  %10733 = vmatprep.mubr.msk.bf16.mxu1 %vm12774_vm0, %v17600_v51 }
 0x291   : > { %v2146_v6 = vadd.f32 %v13252_v26, %v2145_v54  ;;  %v12498_v54 = vld [vmem:[%s12869_s14 + $0x4b4] ss:$8 sps:$4 sm:$0xff]  }
 0x292   : > { %v2147_v14 = vpop.f32.mrf.mxu0 }
 0x293   : > { %v2654_v19 = vmax.f32 %v2146_v6, 0.0 }
 0x294   : > { %v2150_v17 = vpop.f32.mrf.mxu0  ;;  %2341 = vmatmul.mubr.bf16.gmra.mxu0 %v12490_v57 }
 0x295   : > { %v13390_v21 = vpack.c.bf16 %v2654_v19, %v2653_v58  ;;  %v2151_v27 = vadd.f32 %v13252_v26, %v2150_v17  ;;  %2348 = vmatprep.mubr.bf16.mxu0 %v12495_v9 }
 0x296   : > { %v2152_v5 = vpop.f32.mrf.mxu0 }
 0x297   : > { %17766 = vst [vmem:[#allocation39_spill] sm:$0xff] %v13390_v21  ;;  %10734 = vmatmul.mubr.msk.bf16.gmra.mxu1 %vm2877_vm1, %v13000_v61  ;;  %v2655_v44 = vmax.f32 %v2151_v27, 0.0  ;;  %v12496_v5 = vld [vmem:[%s12869_s14 + $0x4b0] ss:$8 sps:$4 sm:$0xff]  }
 0x298   : > { %v2153_v29 = vpop.f32.mrf.mxu0  ;;  %10737 = vmatprep.mubr.msk.bf16.mxu1 %vm12774_vm0, %v17600_v51 }
 0x299   : > { %v2154_v52 = vadd.f32 %v13252_v26, %v2153_v29 }
 0x29a   : > { %v2155_v57 = vpop.f32.mrf.mxu0 }
 0x29b   : > { %v2656_v58 = vmax.f32 %v2154_v52, 0.0 }
 0x29c   : > { %v2158_v6 = vpop.f32.mrf.mxu0  ;;  %2349 = vmatmul.mubr.bf16.gmra.mxu0 %v12493_v42 }
 0x29d   : > { %v13400_v9 = vpack.c.bf16 %v2656_v58, %v2655_v44  ;;  %v2159_v14 = vadd.f32 %v13252_v26, %v2158_v6  ;;  %2356 = vmatprep.mubr.bf16.mxu0 %v12498_v54  ;;  %v12501_v44 = vld [vmem:[%s12869_s14 + $0x4c4] ss:$8 sps:$4 sm:$0xff]  }
 0x29e   : > { %v2160_v19 = vpop.f32.mrf.mxu0 }
 0x29f   : > { %17767 = vst [vmem:[#allocation40_spill] sm:$0xff] %v13400_v9  ;;  %v13403_v17 = vpop.f32.mrf.mxu1  ;;  %10738 = vmatmul.mubr.msk.bf16.gmra.mxu1 %vm2877_vm1, %v13006_v10  ;;  %v2657_v29 = vmax.f32 %v2159_v14, 0.0 }
 0x2a0   : > { %v2161_v27 = vpop.f32.mrf.mxu0  ;;  %10741 = vmatprep.mubr.msk.bf16.mxu1 %vm12774_vm0, %v17600_v51 }
 0x2a1   : > { %v2162_v52 = vadd.f32 %v13252_v26, %v2161_v27  ;;  %v10639_v42 = vpop.f32.mrf.mxu1 }
 0x2a2   : > { %v2163_v57 = vpop.f32.mrf.mxu0  ;;  %v12499_v42 = vld [vmem:[%s12869_s14 + $0x4c0] ss:$8 sps:$4 sm:$0xff]  }
 0x2a3   : > { %v2658_v58 = vmax.f32 %v2162_v52, 0.0  ;;  %v13412_v54 = vpop.f32.mrf.mxu1  ;;  %v17769_v52 = vmov 0.0  }
 0x2a4   : > { %v2166_v6 = vpop.f32.mrf.mxu0  ;;  %2357 = vmatmul.mubr.bf16.gmra.mxu0 %v12496_v5 }
 0x2a5   : > { %v13414_v19 = vpack.c.bf16 %v2658_v58, %v2657_v29  ;;  %v2167_v1 = vadd.f32 %v13252_v26, %v2166_v6  ;;  %v10640_v9 = vpop.f32.mrf.mxu1  ;;  %2364 = vmatprep.mubr.bf16.mxu0 %v12501_v44  ;;  %v12504_v58 = vld [vmem:[%s12869_s14 + $0x4d4] ss:$8 sps:$4 sm:$0xff]  }
 0x2a6   : > { %v2168_v51 = vpop.f32.mrf.mxu0 }
 0x2a7   : > { %17768 = vst [vmem:[#allocation41_spill] sm:$0xff] %v13414_v19  ;;  %v13417_v14 = vpop.f32.mrf.mxu1  ;;  %10742 = vmatmul.mubr.msk.bf16.gmra.mxu1 %vm2877_vm1, %v13012_v22  ;;  %v2659_v57 = vmax.f32 %v2167_v1, 0.0 }
 0x2a8   : > { %v2169_v27 = vpop.f32.mrf.mxu0  ;;  %10745 = vmatprep.mubr.msk.bf16.mxu1 %vm12774_vm0, %v17769_v52 }
 0x2a9   : > { %v2170_v5 = vadd.f32 %v13252_v26, %v2169_v27  ;;  %v10643_v29 = vpop.f32.mrf.mxu1 }
 0x2aa   : > { %v2171_v6 = vpop.f32.mrf.mxu0  ;;  %v12502_v29 = vld [vmem:[%s12869_s14 + $0x4d0] ss:$8 sps:$4 sm:$0xff]  }
 0x2ab   : > { %v2660_v9 = vmax.f32 %v2170_v5, 0.0  ;;  %v13426_v44 = vpop.f32.mrf.mxu1  ;;  %v12507_v6 = vld [vmem:[%s12869_s14 + $0x4e4] ss:$8 sps:$4 sm:$0xff]  }
 0x2ac   : > { %v2174_v51 = vpop.f32.mrf.mxu0  ;;  %2365 = vmatmul.mubr.bf16.gmra.mxu0 %v12499_v42 }
 0x2ad   : > { %v13428_v21 = vpack.c.bf16 %v2660_v9, %v2659_v57  ;;  %v2175_v43 = vadd.f32 %v13252_v26, %v2174_v51  ;;  %v10644_v60 = vpop.f32.mrf.mxu1  ;;  %2372 = vmatprep.mubr.bf16.mxu0 %v12504_v58 }
 0x2ae   : > { %v2176_v24 = vpop.f32.mrf.mxu0 }
 0x2af   : > { %17770 = vst [vmem:[#allocation42_spill] sm:$0xff] %v13428_v21  ;;  %v13431_v1 = vpop.f32.mrf.mxu1  ;;  %10746 = vmatmul.mubr.msk.bf16.gmra.mxu1 %vm2877_vm1, %v13018_v34  ;;  %v2661_v5 = vmax.f32 %v2175_v43, 0.0 }
 0x2b0   : > { %v2177_v27 = vpop.f32.mrf.mxu0  ;;  %10749 = vmatprep.mubr.msk.bf16.mxu1 %vm12774_vm0, %v17769_v52 }
 0x2b1   : > { %v2178_v42 = vadd.f32 %v13252_v26, %v2177_v27  ;;  %v10647_v57 = vpop.f32.mrf.mxu1 }
 0x2b2   : > { %v2179_v9 = vpop.f32.mrf.mxu0  ;;  %v12505_v57 = vld [vmem:[%s12869_s14 + $0x4e0] ss:$8 sps:$4 sm:$0xff]  }
 0x2b3   : > { %v2662_v60 = vmax.f32 %v2178_v42, 0.0  ;;  %v13440_v58 = vpop.f32.mrf.mxu1  ;;  %v12510_v9 = vld [vmem:[%s12869_s14 + $0x4f4] ss:$8 sps:$4 sm:$0xff]  }
 0x2b4   : > { %v2182_v24 = vpop.f32.mrf.mxu0  ;;  %2373 = vmatmul.mubr.bf16.gmra.mxu0 %v12502_v29 }
 0x2b5   : > { %v13442_v51 = vpack.c.bf16 %v2662_v60, %v2661_v5  ;;  %v2183_v40 = vadd.f32 %v13252_v26, %v2182_v24  ;;  %v10648_v20 = vpop.f32.mrf.mxu1  ;;  %2380 = vmatprep.mubr.bf16.mxu0 %v12507_v6 }
 0x2b6   : > { %v2184_v2 = vpop.f32.mrf.mxu0 }
 0x2b7   : > { %17771 = vst [vmem:[#allocation43_spill] sm:$0xff] %v13442_v51  ;;  %v13445_v43 = vpop.f32.mrf.mxu1  ;;  %10750 = vmatmul.mubr.msk.bf16.gmra.mxu1 %vm2877_vm1, %v13024_v46  ;;  %v2663_v42 = vmax.f32 %v2183_v40, 0.0 }
 0x2b8   : > { %v2185_v27 = vpop.f32.mrf.mxu0  ;;  %10753 = vmatprep.mubr.msk.bf16.mxu1 %vm12774_vm0, %v17769_v52 }
 0x2b9   : > { %v2186_v29 = vadd.f32 %v13252_v26, %v2185_v27  ;;  %v10651_v5 = vpop.f32.mrf.mxu1 }
 0x2ba   : > { %v2187_v60 = vpop.f32.mrf.mxu0  ;;  %v12508_v5 = vld [vmem:[%s12869_s14 + $0x4f0] ss:$8 sps:$4 sm:$0xff]  }
 0x2bb   : > { %v2664_v20 = vmax.f32 %v2186_v29, 0.0  ;;  %v13454_v6 = vpop.f32.mrf.mxu1  ;;  %v12514_v60 = vld [vmem:[%s12869_s14 + $0x504] ss:$8 sps:$4 sm:$0xff]  }
 0x2bc   : > { %17772 = vst [vmem:[#allocation44_spill] sm:$0xff] %v13454_v6  ;;  %v2190_v2 = vpop.f32.mrf.mxu0  ;;  %2381 = vmatmul.mubr.bf16.gmra.mxu0 %v12505_v57 }
 0x2bd   : > { %v13456_v24 = vpack.c.bf16 %v2664_v20, %v2663_v42  ;;  %v2191_v48 = vadd.f32 %v13252_v26, %v2190_v2  ;;  %v10652_v31 = vpop.f32.mrf.mxu1  ;;  %2388 = vmatprep.mubr.bf16.mxu0 %v12510_v9 }
 0x2be   : > { %v2192_v19 = vpop.f32.mrf.mxu0 }
 0x2bf   : > { %17773 = vst [vmem:[#allocation45_spill] sm:$0xff] %v13456_v24  ;;  %v13459_v40 = vpop.f32.mrf.mxu1  ;;  %10754 = vmatmul.mubr.msk.bf16.gmra.mxu1 %vm2877_vm1, %v13039_v62  ;;  %v2665_v29 = vmax.f32 %v2191_v48, 0.0 }
 0x2c0   : > { %17774 = vst [vmem:[#allocation46_spill] sm:$0xff] %v13459_v40  ;;  %v2193_v27 = vpop.f32.mrf.mxu0  ;;  %10757 = vmatprep.mubr.msk.bf16.mxu1 %vm12774_vm0, %v17769_v52 }
 0x2c1   : > { %v2194_v57 = vadd.f32 %v13252_v26, %v2193_v27  ;;  %v10655_v42 = vpop.f32.mrf.mxu1 }
 0x2c2   : > { %v2195_v20 = vpop.f32.mrf.mxu0  ;;  %v12512_v42 = vld [vmem:[%s12869_s14 + $0x500] ss:$8 sps:$4 sm:$0xff]  }
 0x2c3   : > { %v2666_v31 = vmax.f32 %v2194_v57, 0.0  ;;  %v13468_v9 = vpop.f32.mrf.mxu1  ;;  %v12517_v20 = vld [vmem:[%s12869_s14 + $0x514] ss:$8 sps:$4 sm:$0xff]  }
 0x2c4   : > { %17775 = vst [vmem:[#allocation47_spill] sm:$0xff] %v13468_v9  ;;  %v2198_v19 = vpop.f32.mrf.mxu0  ;;  %2389 = vmatmul.mubr.bf16.gmra.mxu0 %v12508_v5 }
 0x2c5   : > { %v13470_v2 = vpack.c.bf16 %v2666_v31, %v2665_v29  ;;  %v2199_v49 = vadd.f32 %v13252_v26, %v2198_v19  ;;  %v10656_v7 = vpop.f32.mrf.mxu1  ;;  %2396 = vmatprep.mubr.bf16.mxu0 %v12514_v60 }
 0x2c6   : > { %v2200_v35 = vpop.f32.mrf.mxu0 }
 0x2c7   : > { %17776 = vst [vmem:[#allocation48_spill] sm:$0xff] %v13470_v2  ;;  %v13473_v48 = vpop.f32.mrf.mxu1  ;;  %10758 = vmatmul.mubr.msk.bf16.gmra.mxu1 %vm2877_vm1, %v13048_v12  ;;  %v2667_v57 = vmax.f32 %v2199_v49, 0.0 }
 0x2c8   : > { %17777 = vst [vmem:[#allocation49_spill] sm:$0xff] %v13473_v48  ;;  %v2201_v27 = vpop.f32.mrf.mxu0  ;;  %10761 = vmatprep.mubr.msk.bf16.mxu1 %vm12774_vm0, %v17769_v52 }
 0x2c9   : > { %v2202_v5 = vadd.f32 %v13252_v26, %v2201_v27  ;;  %v10659_v29 = vpop.f32.mrf.mxu1 }
 0x2ca   : > { %v2203_v31 = vpop.f32.mrf.mxu0  ;;  %v12515_v29 = vld [vmem:[%s12869_s14 + $0x510] ss:$8 sps:$4 sm:$0xff]  }
 0x2cb   : > { %v2668_v7 = vmax.f32 %v2202_v5, 0.0  ;;  %v13482_v60 = vpop.f32.mrf.mxu1  ;;  %v12520_v31 = vld [vmem:[%s12869_s14 + $0x524] ss:$8 sps:$4 sm:$0xff]  }
 0x2cc   : > { %17778 = vst [vmem:[#allocation50_spill] sm:$0xff] %v13482_v60  ;;  %v2206_v35 = vpop.f32.mrf.mxu0  ;;  %2397 = vmatmul.mubr.bf16.gmra.mxu0 %v12512_v42 }
 0x2cd   : > { %v13484_v19 = vpack.c.bf16 %v2668_v7, %v2667_v57  ;;  %v2207_v0 = vadd.f32 %v13252_v26, %v2206_v35  ;;  %v10660_v30 = vpop.f32.mrf.mxu1  ;;  %2404 = vmatprep.mubr.bf16.mxu0 %v12517_v20 }
 0x2ce   : > { %v2208_v4 = vpop.f32.mrf.mxu0 }
 0x2cf   : > { %17779 = vst [vmem:[#allocation51_spill] sm:$0xff] %v13484_v19  ;;  %v13487_v49 = vpop.f32.mrf.mxu1  ;;  %10762 = vmatmul.mubr.msk.bf16.gmra.mxu1 %vm2877_vm1, %v13054_v25  ;;  %v2669_v5 = vmax.f32 %v2207_v0, 0.0 }
 0x2d0   : > { %17780 = vst [vmem:[#allocation52_spill] sm:$0xff] %v13487_v49  ;;  %v2209_v27 = vpop.f32.mrf.mxu0  ;;  %10765 = vmatprep.mubr.msk.bf16.mxu1 %vm12774_vm0, %v17769_v52 }
 0x2d1   : > { %v2210_v42 = vadd.f32 %v13252_v26, %v2209_v27  ;;  %v10663_v57 = vpop.f32.mrf.mxu1 }
 0x2d2   : > { %v2211_v7 = vpop.f32.mrf.mxu0  ;;  %v12518_v57 = vld [vmem:[%s12869_s14 + $0x520] ss:$8 sps:$4 sm:$0xff]  }
 0x2d3   : > { %v2670_v30 = vmax.f32 %v2210_v42, 0.0  ;;  %v13496_v20 = vpop.f32.mrf.mxu1  ;;  %v12523_v7 = vld [vmem:[%s12869_s14 + $0x534] ss:$8 sps:$4 sm:$0xff]  }
 0x2d4   : > { %17781 = vst [vmem:[#allocation53_spill] sm:$0xff] %v13496_v20  ;;  %v2214_v4 = vpop.f32.mrf.mxu0  ;;  %2405 = vmatmul.mubr.bf16.gmra.mxu0 %v12515_v29 }
 0x2d5   : > { %v13498_v35 = vpack.c.bf16 %v2670_v30, %v2669_v5  ;;  %v2215_v41 = vadd.f32 %v13252_v26, %v2214_v4  ;;  %v10664_v8 = vpop.f32.mrf.mxu1  ;;  %2412 = vmatprep.mubr.bf16.mxu0 %v12520_v31 }
 0x2d6   : > { %v2216_v49 = vpop.f32.mrf.mxu0 }
 0x2d7   : > { %17782 = vst [vmem:[#allocation54_spill] sm:$0xff] %v13498_v35  ;;  %v13501_v0 = vpop.f32.mrf.mxu1  ;;  %10766 = vmatmul.mubr.msk.bf16.gmra.mxu1 %vm2877_vm1, %v13060_v38  ;;  %v2671_v42 = vmax.f32 %v2215_v41, 0.0 }
 0x2d8   : > { %17783 = vst [vmem:[#allocation55_spill] sm:$0xff] %v13501_v0  ;;  %v2217_v27 = vpop.f32.mrf.mxu0  ;;  %10769 = vmatprep.mubr.msk.bf16.mxu1 %vm12774_vm0, %v17769_v52 }
 0x2d9   : > { %v2218_v29 = vadd.f32 %v13252_v26, %v2217_v27  ;;  %v10667_v5 = vpop.f32.mrf.mxu1 }
 0x2da   : > { %v2219_v30 = vpop.f32.mrf.mxu0  ;;  %v12521_v5 = vld [vmem:[%s12869_s14 + $0x530] ss:$8 sps:$4 sm:$0xff]  }
 0x2db   : > { %v2672_v8 = vmax.f32 %v2218_v29, 0.0  ;;  %v13510_v31 = vpop.f32.mrf.mxu1  ;;  %v12526_v30 = vld [vmem:[%s12869_s14 + $0x544] ss:$8 sps:$4 sm:$0xff]  }
 0x2dc   : > { %17784 = vst [vmem:[#allocation56_spill] sm:$0xff] %v13510_v31  ;;  %v2222_v49 = vpop.f32.mrf.mxu0  ;;  %2413 = vmatmul.mubr.bf16.gmra.mxu0 %v12518_v57 }
 0x2dd   : > { %v13512_v4 = vpack.c.bf16 %v2672_v8, %v2671_v42  ;;  %v2223_v0 = vadd.f32 %v13252_v26, %v2222_v49  ;;  %v10668_v20 = vpop.f32.mrf.mxu1  ;;  %2420 = vmatprep.mubr.bf16.mxu0 %v12523_v7 }
 0x2de   : > { %v2224_v60 = vpop.f32.mrf.mxu0 }
 0x2df   : > { %17785 = vst [vmem:[#allocation57_spill] sm:$0xff] %v13512_v4  ;;  %v13515_v41 = vpop.f32.mrf.mxu1  ;;  %10770 = vmatmul.mubr.msk.bf16.gmra.mxu1 %vm2877_vm1, %v13066_v53  ;;  %v2673_v29 = vmax.f32 %v2223_v0, 0.0 }
 0x2e0   : > { %17786 = vst [vmem:[#allocation58_spill] sm:$0xff] %v13515_v41  ;;  %v2225_v27 = vpop.f32.mrf.mxu0  ;;  %10773 = vmatprep.mubr.msk.bf16.mxu1 %vm12774_vm0, %v17769_v52 }
 0x2e1   : > { %v2226_v57 = vadd.f32 %v13252_v26, %v2225_v27  ;;  %v10671_v42 = vpop.f32.mrf.mxu1  ;;  %v12574_v27 = vld [vmem:[%s17589_s3 + $0x60] sm:$0xff]  }
 0x2e2   : > { %v2227_v8 = vpop.f32.mrf.mxu0  ;;  %v12524_v42 = vld [vmem:[%s12869_s14 + $0x540] ss:$8 sps:$4 sm:$0xff]   ;;  %11116 = vmatpush3.bf16.msra.mxu0 %v12574_v27 }
 0x2e3   : > { %v2674_v20 = vmax.f32 %v2226_v57, 0.0  ;;  %v13524_v7 = vpop.f32.mrf.mxu1  ;;  %11273 = vmatprep.subr.bf16.mxu0 %v17769_v52 }
 0x2e4   : > { %17787 = vst [vmem:[#allocation59_spill] sm:$0xff] %v13524_v7  ;;  %v2230_v60 = vpop.f32.mrf.mxu0  ;;  %2421 = vmatmul.mubr.bf16.gmra.mxu0 %v12521_v5 }
 0x2e5   : > { %v13526_v49 = vpack.c.bf16 %v2674_v20, %v2673_v29  ;;  %v2231_v41 = vadd.f32 %v13252_v26, %v2230_v60  ;;  %v10672_v31 = vpop.f32.mrf.mxu1  ;;  %2428 = vmatprep.mubr.bf16.mxu0 %v12526_v30  ;;  %v12529_v30 = vld [vmem:[%s12869_s14 + $0x554] ss:$8 sps:$4 sm:$0xff]  }
 0x2e6   : > { %v2232_v45 = vpop.f32.mrf.mxu0 }
 0x2e7   : > { %17788 = vst [vmem:[#allocation60_spill] sm:$0xff] %v13526_v49  ;;  %v13529_v0 = vpop.f32.mrf.mxu1  ;;  %10774 = vmatmul.mubr.msk.bf16.gmra.mxu1 %vm2877_vm1, %v13072_v3  ;;  %v2675_v5 = vmax.f32 %v2231_v41, 0.0 }
 0x2e8   : > { %17789 = vst [vmem:[#allocation61_spill] sm:$0xff] %v13529_v0  ;;  %v2233_v57 = vpop.f32.mrf.mxu0  ;;  %10777 = vmatprep.mubr.msk.bf16.mxu1 %vm12774_vm0, %v17769_v52 }
 0x2e9   : > { %v2234_v29 = vadd.f32 %v13252_v26, %v2233_v57  ;;  %v10675_v31 = vpop.f32.mrf.mxu1 }
 0x2ea   : > { %v2235_v45 = vpop.f32.mrf.mxu0 }
 0x2eb   : > { %v2676_v8 = vmax.f32 %v2234_v29, 0.0  ;;  %v13542_v20 = vpop.f32.mrf.mxu1  ;;  %v12527_v45 = vld [vmem:[%s12869_s14 + $0x550] ss:$8 sps:$4 sm:$0xff]  }
 0x2ec   : > { %17790 = vst [vmem:[#allocation62_spill] sm:$0xff] %v13542_v20  ;;  %v2238_v60 = vpop.f32.mrf.mxu0  ;;  %2429 = vmatmul.mubr.bf16.gmra.mxu0 %v12524_v42 }
 0x2ed   : > { %v13544_v0 = vpack.c.bf16 %v2676_v8, %v2675_v5  ;;  %v2239_v7 = vadd.f32 %v13252_v26, %v2238_v60  ;;  %v10676_v41 = vpop.f32.mrf.mxu1  ;;  %2436 = vmatprep.mubr.bf16.mxu0 %v12529_v30  ;;  %v12532_v8 = vld [vmem:[%s12869_s14 + $0x564] ss:$8 sps:$4 sm:$0xff]  }
 0x2ee   : > { %v2240_v57 = vpop.f32.mrf.mxu0 }
 0x2ef   : > { %17791 = vst [vmem:[#allocation63_spill] sm:$0xff] %v13544_v0  ;;  %v13547_v31 = vpop.f32.mrf.mxu1  ;;  %10778 = vmatmul.mubr.msk.bf16.gmra.mxu1 %vm2877_vm1, %v13078_v18  ;;  %v2677_v29 = vmax.f32 %v2239_v7, 0.0 }
 0x2f0   : > { %17792 = vst [vmem:[#allocation64_spill] sm:$0xff] %v13547_v31  ;;  %v2241_v27 = vpop.f32.mrf.mxu0  ;;  %10781 = vmatprep.mubr.msk.bf16.mxu1 %vm12774_vm0, %v17769_v52 }
 0x2f1   : > { %v2242_v42 = vadd.f32 %v13252_v26, %v2241_v27  ;;  %v10679_v5 = vpop.f32.mrf.mxu1 }
 0x2f2   : > { %v2243_v60 = vpop.f32.mrf.mxu0  ;;  %v12530_v5 = vld [vmem:[%s12869_s14 + $0x560] ss:$8 sps:$4 sm:$0xff]  }
 0x2f3   : > { %v2678_v41 = vmax.f32 %v2242_v42, 0.0  ;;  %v13556_v30 = vpop.f32.mrf.mxu1  ;;  %v12535_v60 = vld [vmem:[%s12869_s14 + $0x574] ss:$8 sps:$4 sm:$0xff]  }
 0x2f4   : > { %17793 = vst [vmem:[#allocation65_spill] sm:$0xff] %v13556_v30  ;;  %v2246_v57 = vpop.f32.mrf.mxu0  ;;  %2437 = vmatmul.mubr.bf16.gmra.mxu0 %v12527_v45 }
 0x2f5   : > { %v13558_v31 = vpack.c.bf16 %v2678_v41, %v2677_v29  ;;  %v2247_v20 = vadd.f32 %v13252_v26, %v2246_v57  ;;  %v10680_v48 = vpop.f32.mrf.mxu1  ;;  %2444 = vmatprep.mubr.bf16.mxu0 %v12532_v8 }
 0x2f6   : > { %v2248_v9 = vpop.f32.mrf.mxu0 }
 0x2f7   : > { %17794 = vst [vmem:[#allocation66_spill] sm:$0xff] %v13558_v31  ;;  %v13561_v7 = vpop.f32.mrf.mxu1  ;;  %10782 = vmatmul.mubr.msk.bf16.gmra.mxu1 %vm2877_vm1, %v13084_v32  ;;  %v2679_v42 = vmax.f32 %v2247_v20, 0.0 }
 0x2f8   : > { %17795 = vst [vmem:[#allocation67_spill] sm:$0xff] %v13561_v7  ;;  %v2249_v27 = vpop.f32.mrf.mxu0  ;;  %10785 = vmatprep.mubr.msk.bf16.mxu1 %vm12774_vm0, %v17769_v52 }
 0x2f9   : > { %v2250_v45 = vadd.f32 %v13252_v26, %v2249_v27  ;;  %v10683_v29 = vpop.f32.mrf.mxu1 }
 0x2fa   : > { %v2251_v41 = vpop.f32.mrf.mxu0  ;;  %v12533_v29 = vld [vmem:[%s12869_s14 + $0x570] ss:$8 sps:$4 sm:$0xff]  }
 0x2fb   : > { %v2680_v48 = vmax.f32 %v2250_v45, 0.0  ;;  %v13570_v8 = vpop.f32.mrf.mxu1  ;;  %v12538_v41 = vld [vmem:[%s12869_s14 + $0x584] ss:$8 sps:$4 sm:$0xff]  }
 0x2fc   : > { %17796 = vst [vmem:[#allocation68_spill] sm:$0xff] %v13570_v8  ;;  %v2254_v9 = vpop.f32.mrf.mxu0  ;;  %2445 = vmatmul.mubr.bf16.gmra.mxu0 %v12530_v5 }
 0x2fd   : > { %v13572_v57 = vpack.c.bf16 %v2680_v48, %v2679_v42  ;;  %v2255_v7 = vadd.f32 %v13252_v26, %v2254_v9  ;;  %v10684_v30 = vpop.f32.mrf.mxu1  ;;  %2452 = vmatprep.mubr.bf16.mxu0 %v12535_v60 }
 0x2fe   : > { %v2256_v23 = vpop.f32.mrf.mxu0 }
 0x2ff   : > { %17797 = vst [vmem:[#allocation69_spill] sm:$0xff] %v13572_v57  ;;  %v13575_v20 = vpop.f32.mrf.mxu1  ;;  %10786 = vmatmul.mubr.msk.bf16.gmra.mxu1 %vm2877_vm1, %v13090_v47  ;;  %v2681_v45 = vmax.f32 %v2255_v7, 0.0 }
 0x300   : > { %17798 = vst [vmem:[#allocation70_spill] sm:$0xff] %v13575_v20  ;;  %v2257_v27 = vpop.f32.mrf.mxu0  ;;  %10789 = vmatprep.mubr.msk.bf16.mxu1 %vm12774_vm0, %v17769_v52 }
 0x301   : > { %v2258_v5 = vadd.f32 %v13252_v26, %v2257_v27  ;;  %v10687_v42 = vpop.f32.mrf.mxu1 }
 0x302   : > { %v2259_v48 = vpop.f32.mrf.mxu0  ;;  %v12536_v42 = vld [vmem:[%s12869_s14 + $0x580] ss:$8 sps:$4 sm:$0xff]  }
 0x303   : > { %v2682_v30 = vmax.f32 %v2258_v5, 0.0  ;;  %v13584_v60 = vpop.f32.mrf.mxu1  ;;  %v12542_v48 = vld [vmem:[%s12869_s14 + $0x594] ss:$8 sps:$4 sm:$0xff]  }
 0x304   : > { %17799 = vst [vmem:[#allocation71_spill] sm:$0xff] %v13584_v60  ;;  %v2262_v23 = vpop.f32.mrf.mxu0  ;;  %2453 = vmatmul.mubr.bf16.gmra.mxu0 %v12533_v29 }
 0x305   : > { %v13586_v9 = vpack.c.bf16 %v2682_v30, %v2681_v45  ;;  %v2263_v20 = vadd.f32 %v13252_v26, %v2262_v23  ;;  %v10688_v8 = vpop.f32.mrf.mxu1  ;;  %2460 = vmatprep.mubr.bf16.mxu0 %v12538_v41  ;;  %v12539_v23 = vld [vmem:[%s17589_s3 + $0x38] sm:$0xff]  }
 0x306   : > { %v2264_v40 = vpop.f32.mrf.mxu0 }
 0x307   : > { %v13589_v7 = vpop.f32.mrf.mxu1  ;;  %10790 = vmatmul.mubr.msk.bf16.gmra.mxu1 %vm2877_vm1, %v13096_v63  ;;  %v2683_v5 = vmax.f32 %v2263_v20, 0.0 }
 0x308   : > { %17800 = vst [vmem:[#allocation72_spill] sm:$0xff] %v13589_v7  ;;  %v2265_v27 = vpop.f32.mrf.mxu0  ;;  %10797 = vmatprep.mubr.msk.bf16.mxu1 %vm12774_vm0, %v17769_v52 }
 0x309   : > { %v2266_v29 = vadd.f32 %v13252_v26, %v2265_v27  ;;  %v10691_v45 = vpop.f32.mrf.mxu1 }
 0x30a   : > { %v2267_v30 = vpop.f32.mrf.mxu0 }
 0x30b   : > { %v2684_v8 = vmax.f32 %v2266_v29, 0.0  ;;  %v13598_v41 = vpop.f32.mrf.mxu1 }
 0x30c   : > { %17801 = vst [vmem:[#allocation73_spill] sm:$0xff] %v13598_v41  ;;  %v2270_v40 = vpop.f32.mrf.mxu0  ;;  %2461 = vmatmul.mubr.bf16.gmra.mxu0 %v12536_v42  ;;  %v12540_v42 = vld [vmem:[%s12869_s14 + $0x590] ss:$8 sps:$4 sm:$0xff]  }
 0x30d   : > { %v13603_v7 = vpack.c.bf16 %v2684_v8, %v2683_v5  ;;  %v2271_v20 = vadd.f32 %v13252_v26, %v2270_v40  ;;  %v10692_v60 = vpop.f32.mrf.mxu1  ;;  %2468 = vmatprep.mubr.bf16.mxu0 %v12542_v48  ;;  %v12570_v5 = vld [vmem:[%s17589_s3 + $0x30] sm:$0xff]   ;;  %v12545_v8 = vld [vmem:[%s12869_s14 + $0x5a4] ss:$8 sps:$4 sm:$0xff]  }
 0x30e   : > { %v2272_v27 = vpop.f32.mrf.mxu0 }
 0x30f   : > { %17802 = vst [vmem:[#allocation74_spill] sm:$0xff] %v13603_v7  ;;  %v13606_v45 = vpop.f32.mrf.mxu1  ;;  %10798 = vmatmul.mubr.msk.bf16.vlgmr.msra.gmra.mxu1 %vm2877_vm1, %v12982_v28  ;;  %v2685_v30 = vmax.f32 %v2271_v20, 0.0 }
 0x310   : > { %17803 = vst [vmem:[#allocation75_spill] sm:$0xff] %v13606_v45  ;;  %10874 = vmatpush3.bf16.msra.mxu1 %v12539_v23  ;;  %v2273_v29 = vpop.f32.mrf.mxu0  ;;  %10801 = vmatprep.mubr.msk.bf16.mxu1 %vm12774_vm0, %v17769_v52 }
 0x311   : > { %v2274_v60 = vadd.f32 %v13252_v26, %v2273_v29  ;;  %v10695_v48 = vpop.f32.mrf.mxu1  ;;  %10875 = vmatprep.subr.bf16.mxu1 %v17769_v52 }
 0x312   : > { %v2275_v40 = vpop.f32.mrf.mxu0 }
 0x313   : > { %v2686_v28 = vmax.f32 %v2274_v60, 0.0  ;;  %v13619_v23 = vpop.f32.mrf.mxu1  ;;  %v12543_v40 = vld [vmem:[%s12869_s14 + $0x5a0] ss:$8 sps:$4 sm:$0xff]  }
 0x314   : > { %17804 = vst [vmem:[#allocation76_spill] sm:$0xff] %v13619_v23  ;;  %v2278_v27 = vpop.f32.mrf.mxu0  ;;  %2469 = vmatmul.mubr.bf16.gmra.mxu0 %v12540_v42  ;;  %10876 = vmatpush3.bf16.msra.mxu1 %v12570_v5 }
 0x315   : > { %v13621_v45 = vpack.c.bf16 %v2686_v28, %v2685_v30  ;;  %v2279_v41 = vadd.f32 %v13252_v26, %v2278_v27  ;;  %v10696_v20 = vpop.f32.mrf.mxu1  ;;  %2476 = vmatprep.mubr.bf16.mxu0 %v12545_v8  ;;  %10953 = vmatprep.subr.bf16.mxu1 %v17769_v52  ;;  %v13635_v26 = vld [vmem:[%s17588_s2] ss:$0 sm:$0xff]  ;;  %v12548_v8 = vld [vmem:[%s12869_s14 + $0x5b4] ss:$8 sps:$4 sm:$0xff]  }
 0x316   : > { %v2280_v29 = vpop.f32.mrf.mxu0 }
 0x317   : > { %v13625_v48 = vpop.f32.mrf.mxu1  ;;  %10802 = vmatmul.mubr.msk.bf16.gmra.mxu1 %vm2877_vm1, %v12988_v39  ;;  %v2687_v42 = vmax.f32 %v2279_v41, 0.0 }
 0x318   : > { %17805 = vst [vmem:[#allocation77_spill] sm:$0xff] %v13625_v48  ;;  %v2281_v60 = vpop.f32.mrf.mxu0  ;;  %10805 = vmatprep.mubr.msk.bf16.mxu1 %vm12774_vm0, %v17769_v52 }
 0x319   : > { %v2282_v5 = vadd.f32 %v13635_v26, %v2281_v60  ;;  %v10699_v30 = vpop.f32.mrf.mxu1 }
 0x31a   : > { %v2283_v28 = vpop.f32.mrf.mxu0  ;;  %v12546_v30 = vld [vmem:[%s12869_s14 + $0x5b0] ss:$8 sps:$4 sm:$0xff]  }
 0x31b   : > { %v2688_v27 = vmax.f32 %v2282_v5, 0.0  ;;  %v13639_v20 = vpop.f32.mrf.mxu1  ;;  %v12551_v28 = vld [vmem:[%s12869_s14 + $0x5c4] ss:$8 sps:$4 sm:$0xff]  }
 0x31c   : > { %17806 = vst [vmem:[#allocation78_spill] sm:$0xff] %v13639_v20  ;;  %v2286_v39 = vpop.f32.mrf.mxu0  ;;  %2477 = vmatmul.mubr.bf16.gmra.mxu0 %v12543_v40 }
 0x31d   : > { %v13641_v29 = vpack.c.bf16 %v2688_v27, %v2687_v42  ;;  %v2287_v41 = vadd.f32 %v13635_v26, %v2286_v39  ;;  %v10700_v48 = vpop.f32.mrf.mxu1  ;;  %2484 = vmatprep.mubr.bf16.mxu0 %v12548_v8 }
 0x31e   : > { %v2288_v23 = vpop.f32.mrf.mxu0 }
 0x31f   : > { %v13644_v6 = vpop.f32.mrf.mxu1  ;;  %10806 = vmatmul.mubr.msk.bf16.gmra.mxu1 %vm2877_vm1, %v12994_v50  ;;  %v2689_v5 = vmax.f32 %v2287_v41, 0.0 }
 0x320   : > { %17807 = vst [vmem:[#allocation79_spill] sm:$0xff] %v13644_v6  ;;  %v2289_v60 = vpop.f32.mrf.mxu0  ;;  %10809 = vmatprep.mubr.msk.bf16.mxu1 %vm12774_vm0, %v17769_v52 }
 0x321   : > { %v2290_v40 = vadd.f32 %v13635_v26, %v2289_v60  ;;  %v10703_v42 = vpop.f32.mrf.mxu1 }
 0x322   : > { %v2291_v27 = vpop.f32.mrf.mxu0  ;;  %v12549_v42 = vld [vmem:[%s12869_s14 + $0x5c0] ss:$8 sps:$4 sm:$0xff]  }
 0x323   : > { %v2690_v48 = vmax.f32 %v2290_v40, 0.0  ;;  %v13653_v8 = vpop.f32.mrf.mxu1  ;;  %v12554_v27 = vld [vmem:[%s12869_s14 + $0x5d4] ss:$8 sps:$4 sm:$0xff]  }
 0x324   : > { %17808 = vst [vmem:[#allocation80_spill] sm:$0xff] %v13653_v8  ;;  %v2294_v23 = vpop.f32.mrf.mxu0  ;;  %2485 = vmatmul.mubr.bf16.gmra.mxu0 %v12546_v30 }
 0x325   : > { %v13655_v39 = vpack.c.bf16 %v2690_v48, %v2689_v5  ;;  %v2295_v50 = vadd.f32 %v13635_v26, %v2294_v23  ;;  %v10704_v6 = vpop.f32.mrf.mxu1  ;;  %2492 = vmatprep.mubr.bf16.mxu0 %v12551_v28 }
 0x326   : > { %v2296_v20 = vpop.f32.mrf.mxu0 }
 0x327   : > { %v13658_v41 = vpop.f32.mrf.mxu1  ;;  %10810 = vmatmul.mubr.msk.bf16.gmra.mxu1 %vm2877_vm1, %v13000_v61  ;;  %v2691_v40 = vmax.f32 %v2295_v50, 0.0 }
 0x328   : > { %17809 = vst [vmem:[#allocation81_spill] sm:$0xff] %v13658_v41  ;;  %v2297_v60 = vpop.f32.mrf.mxu0  ;;  %10813 = vmatprep.mubr.msk.bf16.mxu1 %vm12774_vm0, %v17769_v52 }
 0x329   : > { %v2298_v30 = vadd.f32 %v13635_v26, %v2297_v60  ;;  %v10707_v5 = vpop.f32.mrf.mxu1 }
 0x32a   : > { %v2299_v48 = vpop.f32.mrf.mxu0  ;;  %v12552_v5 = vld [vmem:[%s12869_s14 + $0x5d0] ss:$8 sps:$4 sm:$0xff]  }
 0x32b   : > { %v2692_v6 = vmax.f32 %v2298_v30, 0.0  ;;  %v13667_v28 = vpop.f32.mrf.mxu1  ;;  %v12557_v48 = vld [vmem:[%s12869_s14 + $0x5e4] ss:$8 sps:$4 sm:$0xff]  }
 0x32c   : > { %17810 = vst [vmem:[#allocation82_spill] sm:$0xff] %v13667_v28  ;;  %v2302_v20 = vpop.f32.mrf.mxu0  ;;  %2493 = vmatmul.mubr.bf16.gmra.mxu0 %v12549_v42 }
 0x32d   : > { %v13669_v23 = vpack.c.bf16 %v2692_v6, %v2691_v40  ;;  %v2303_v61 = vadd.f32 %v13635_v26, %v2302_v20  ;;  %v10708_v41 = vpop.f32.mrf.mxu1  ;;  %2500 = vmatprep.mubr.bf16.mxu0 %v12554_v27 }
 0x32e   : > { %v2304_v8 = vpop.f32.mrf.mxu0 }
 0x32f   : > { %17811 = vst [vmem:[#allocation83_spill] sm:$0xff] %v13669_v23  ;;  %v13672_v50 = vpop.f32.mrf.mxu1  ;;  %10814 = vmatmul.mubr.msk.bf16.gmra.mxu1 %vm2877_vm1, %v13006_v10  ;;  %v2693_v30 = vmax.f32 %v2303_v61, 0.0 }
 0x330   : > { %17812 = vst [vmem:[#allocation84_spill] sm:$0xff] %v13672_v50  ;;  %v2305_v60 = vpop.f32.mrf.mxu0  ;;  %10817 = vmatprep.mubr.msk.bf16.mxu1 %vm12774_vm0, %v17769_v52 }
 0x331   : > { %v2306_v42 = vadd.f32 %v13635_v26, %v2305_v60  ;;  %v10711_v40 = vpop.f32.mrf.mxu1 }
 0x332   : > { %v2307_v6 = vpop.f32.mrf.mxu0  ;;  %v12555_v40 = vld [vmem:[%s12869_s14 + $0x5e0] ss:$8 sps:$4 sm:$0xff]  }
 0x333   : > { %v2694_v41 = vmax.f32 %v2306_v42, 0.0  ;;  %v13681_v27 = vpop.f32.mrf.mxu1  ;;  %v12560_v6 = vld [vmem:[%s12869_s14 + $0x5f4] ss:$8 sps:$4 sm:$0xff]  }
 0x334   : > { %17813 = vst [vmem:[#allocation85_spill] sm:$0xff] %v13681_v27  ;;  %v2310_v8 = vpop.f32.mrf.mxu0  ;;  %2501 = vmatmul.mubr.bf16.gmra.mxu0 %v12552_v5 }
 0x335   : > { %v13683_v20 = vpack.c.bf16 %v2694_v41, %v2693_v30  ;;  %v2311_v50 = vadd.f32 %v13635_v26, %v2310_v8  ;;  %v10712_v28 = vpop.f32.mrf.mxu1  ;;  %2508 = vmatprep.mubr.bf16.mxu0 %v12557_v48 }
 0x336   : > { %v2312_v10 = vpop.f32.mrf.mxu0 }
 0x337   : > { %17814 = vst [vmem:[#allocation86_spill] sm:$0xff] %v13683_v20  ;;  %v13686_v61 = vpop.f32.mrf.mxu1  ;;  %10818 = vmatmul.mubr.msk.bf16.gmra.mxu1 %vm2877_vm1, %v13012_v22  ;;  %v2695_v42 = vmax.f32 %v2311_v50, 0.0 }
 0x338   : > { %v2313_v60 = vpop.f32.mrf.mxu0  ;;  %10821 = vmatprep.mubr.msk.bf16.mxu1 %vm12774_vm0, %v17769_v52 }
 0x339   : > { %v2314_v5 = vadd.f32 %v13635_v26, %v2313_v60  ;;  %v10719_v30 = vpop.f32.mrf.mxu1 }
 0x33a   : > { %v2315_v41 = vpop.f32.mrf.mxu0  ;;  %v12558_v30 = vld [vmem:[%s12869_s14 + $0x5f0] ss:$8 sps:$4 sm:$0xff]  }
 0x33b   : > { %v2696_v28 = vmax.f32 %v2314_v5, 0.0  ;;  %v13695_v48 = vpop.f32.mrf.mxu1  ;;  %v12563_v41 = vld [vmem:[%s12869_s14 + $0x604] ss:$8 sps:$4 sm:$0xff]  }
 0x33c   : > { %v2318_v10 = vpop.f32.mrf.mxu0  ;;  %2509 = vmatmul.mubr.bf16.gmra.mxu0 %v12555_v40 }
 0x33d   : > { %v13697_v8 = vpack.c.bf16 %v2696_v28, %v2695_v42  ;;  %v2319_v27 = vadd.f32 %v13635_v26, %v2318_v10  ;;  %v10720_v22 = vpop.f32.mrf.mxu1  ;;  %2516 = vmatprep.mubr.bf16.mxu0 %v12560_v6 }
 0x33e   : > { %v2320_v20 = vpop.f32.mrf.mxu0 }
 0x33f   : > { %17815 = vst [vmem:[#allocation87_spill] sm:$0xff] %v13697_v8  ;;  %v13700_v50 = vpop.f32.mrf.mxu1  ;;  %10822 = vmatmul.mubr.msk.bf16.gmra.mxu1 %vm2877_vm1, %v13018_v34  ;;  %v2697_v5 = vmax.f32 %v2319_v27, 0.0 }
 0x340   : > { %v2321_v60 = vpop.f32.mrf.mxu0  ;;  %10825 = vmatprep.mubr.msk.bf16.mxu1 %vm12774_vm0, %v17769_v52 }
 0x341   : > { %v2322_v40 = vadd.f32 %v13635_v26, %v2321_v60  ;;  %v10723_v42 = vpop.f32.mrf.mxu1 }
 0x342   : > { %v2323_v28 = vpop.f32.mrf.mxu0  ;;  %v12561_v42 = vld [vmem:[%s12869_s14 + $0x600] ss:$8 sps:$4 sm:$0xff]  }
 0x343   : > { %v2698_v22 = vmax.f32 %v2322_v40, 0.0  ;;  %v13709_v6 = vpop.f32.mrf.mxu1  ;;  %v12566_v28 = vld [vmem:[%s12869_s14 + $0x614] ss:$8 sps:$4 sm:$0xff]  }
 0x344   : > { %v2326_v20 = vpop.f32.mrf.mxu0  ;;  %2517 = vmatmul.mubr.bf16.gmra.mxu0 %v12558_v30 }
 0x345   : > { %v13711_v10 = vpack.c.bf16 %v2698_v22, %v2697_v5  ;;  %v2327_v34 = vadd.f32 %v13635_v26, %v2326_v20  ;;  %v10724_v8 = vpop.f32.mrf.mxu1  ;;  %2524 = vmatprep.mubr.bf16.mxu0 %v12563_v41 }
 0x346   : > { %v2328_v23 = vpop.f32.mrf.mxu0 }
 0x347   : > { %17816 = vst [vmem:[#allocation88_spill] sm:$0xff] %v13711_v10  ;;  %v13714_v27 = vpop.f32.mrf.mxu1  ;;  %10826 = vmatmul.mubr.msk.bf16.gmra.mxu1 %vm2877_vm1, %v13024_v46  ;;  %v2699_v40 = vmax.f32 %v2327_v34, 0.0 }
 0x348   : > { %v2329_v60 = vpop.f32.mrf.mxu0  ;;  %10829 = vmatprep.mubr.msk.bf16.mxu1 %vm12774_vm0, %v17769_v52 }
 0x349   : > { %v2330_v30 = vadd.f32 %v13635_v26, %v2329_v60  ;;  %v10727_v5 = vpop.f32.mrf.mxu1 }
 0x34a   : > { %v2331_v22 = vpop.f32.mrf.mxu0  ;;  %v12564_v5 = vld [vmem:[%s12869_s14 + $0x610] ss:$8 sps:$4 sm:$0xff]  }
 0x34b   : > { %v2700_v8 = vmax.f32 %v2330_v30, 0.0  ;;  %v13723_v41 = vpop.f32.mrf.mxu1  ;;  %v12569_v22 = vld [vmem:[%s12869_s14 + $0x624] ss:$8 sps:$4 sm:$0xff]  }
 0x34c   : > { %v2334_v23 = vpop.f32.mrf.mxu0  ;;  %2525 = vmatmul.mubr.bf16.gmra.mxu0 %v12561_v42 }
 0x34d   : > { %v13725_v20 = vpack.c.bf16 %v2700_v8, %v2699_v40  ;;  %v2335_v10 = vadd.f32 %v13635_v26, %v2334_v23  ;;  %v10728_v46 = vpop.f32.mrf.mxu1  ;;  %2532 = vmatprep.mubr.bf16.mxu0 %v12566_v28 }
 0x34e   : > { %v2336_v59 = vpop.f32.mrf.mxu0 }
 0x34f   : > { %17817 = vst [vmem:[#allocation89_spill] sm:$0xff] %v13725_v20  ;;  %v13728_v34 = vpop.f32.mrf.mxu1  ;;  %10830 = vmatmul.mubr.msk.bf16.gmra.mxu1 %vm2877_vm1, %v13039_v62  ;;  %v2701_v30 = vmax.f32 %v2335_v10, 0.0 }
 0x350   : > { %17818 = vst [vmem:[#allocation90_spill] sm:$0xff] %v13728_v34  ;;  %v2337_v60 = vpop.f32.mrf.mxu0  ;;  %10833 = vmatprep.mubr.msk.bf16.mxu1 %vm12774_vm0, %v17769_v52 }
 0x351   : > { %v2338_v42 = vadd.f32 %v13635_v26, %v2337_v60  ;;  %v10731_v40 = vpop.f32.mrf.mxu1 }
 0x352   : > { %v2339_v8 = vpop.f32.mrf.mxu0  ;;  %v12567_v40 = vld [vmem:[%s12869_s14 + $0x620] ss:$8 sps:$4 sm:$0xff]  }
 0x353   : > { %v2702_v46 = vmax.f32 %v2338_v42, 0.0  ;;  %v13737_v28 = vpop.f32.mrf.mxu1  ;;  %v12573_v8 = vld [vmem:[%s12869_s14 + $0x634] ss:$8 sps:$4 sm:$0xff]  }
 0x354   : > { %17819 = vst [vmem:[#allocation91_spill] sm:$0xff] %v13737_v28  ;;  %v2342_v59 = vpop.f32.mrf.mxu0  ;;  %2533 = vmatmul.mubr.bf16.gmra.mxu0 %v12564_v5 }
 0x355   : > { %v13739_v23 = vpack.c.bf16 %v2702_v46, %v2701_v30  ;;  %v2343_v20 = vadd.f32 %v13635_v26, %v2342_v59  ;;  %v10732_v62 = vpop.f32.mrf.mxu1  ;;  %2540 = vmatprep.mubr.bf16.mxu0 %v12569_v22 }
 0x356   : > { %v2344_v34 = vpop.f32.mrf.mxu0 }
 0x357   : > { %17820 = vst [vmem:[#allocation92_spill] sm:$0xff] %v13739_v23  ;;  %v13742_v10 = vpop.f32.mrf.mxu1  ;;  %10834 = vmatmul.mubr.msk.bf16.gmra.mxu1 %vm2877_vm1, %v13048_v12  ;;  %v2703_v42 = vmax.f32 %v2343_v20, 0.0 }
 0x358   : > { %17821 = vst [vmem:[#allocation93_spill] sm:$0xff] %v13742_v10  ;;  %v2345_v60 = vpop.f32.mrf.mxu0  ;;  %10837 = vmatprep.mubr.msk.bf16.mxu1 %vm12774_vm0, %v17769_v52 }
 0x359   : > { %v2346_v5 = vadd.f32 %v13635_v26, %v2345_v60  ;;  %v10735_v30 = vpop.f32.mrf.mxu1  ;;  %v12571_v60 = vld [vmem:[%s12869_s14 + $0x630] ss:$8 sps:$4 sm:$0xff]  }
 0x35a   : > { %v2347_v46 = vpop.f32.mrf.mxu0 }
 0x35b   : > { %v2704_v62 = vmax.f32 %v2346_v5, 0.0  ;;  %v13751_v22 = vpop.f32.mrf.mxu1 }
 0x35c   : > { %v2350_v34 = vpop.f32.mrf.mxu0  ;;  %2541 = vmatmul.mubr.bf16.gmra.mxu0 %v12567_v40 }
 0x35d   : > { %v13753_v59 = vpack.c.bf16 %v2704_v62, %v2703_v42  ;;  %v2351_v23 = vadd.f32 %v13635_v26, %v2350_v34  ;;  %v10736_v12 = vpop.f32.mrf.mxu1  ;;  %2548 = vmatprep.mubr.bf16.mxu0 %v12573_v8 }
 0x35e   : > { %v2352_v10 = vpop.f32.mrf.mxu0 }
 0x35f   : > { %17822 = vst [vmem:[#allocation94_spill] sm:$0xff] %v13753_v59  ;;  %v13756_v28 = vpop.f32.mrf.mxu1  ;;  %10838 = vmatmul.mubr.msk.bf16.gmra.mxu1 %vm2877_vm1, %v13054_v25  ;;  %v2705_v5 = vmax.f32 %v2351_v23, 0.0 }
 0x360   : > { %v2353_v20 = vpop.f32.mrf.mxu0  ;;  %10841 = vmatprep.mubr.msk.bf16.mxu1 %vm12774_vm0, %v17769_v52 }
 0x361   : > { %v2354_v40 = vadd.f32 %v13635_v26, %v2353_v20  ;;  %v10739_v42 = vpop.f32.mrf.mxu1 }
 0x362   : > { %v2355_v30 = vpop.f32.mrf.mxu0 }
 0x363   : > { %v2706_v46 = vmax.f32 %v2354_v40, 0.0  ;;  %v13764_v62 = vpop.f32.mrf.mxu1 }
 0x364   : > { %v2358_v12 = vpop.f32.mrf.mxu0  ;;  %2549 = vmatmul.mubr.bf16.gmra.mxu0 %v12571_v60 }
 0x365   : > { %v13766_v10 = vpack.c.bf16 %v2706_v46, %v2705_v5  ;;  %v2359_v8 = vadd.f32 %v13635_v26, %v2358_v12  ;;  %v10740_v34 = vpop.f32.mrf.mxu1  ;;  %11117 = vmatprep.mubr.msk.bf16.mxu0 %vm12774_vm0, %v17769_v52 }
 0x366   : > { %v2360_v59 = vpop.f32.mrf.mxu0 }
 0x367   : > { %17823 = vst [vmem:[#allocation95_spill] sm:$0xff] %v13766_v10  ;;  %v13771_v25 = vpop.f32.mrf.mxu1  ;;  %10842 = vmatmul.mubr.msk.bf16.gmra.mxu1 %vm2877_vm1, %v13060_v38  ;;  %v2707_v20 = vmax.f32 %v2359_v8, 0.0 }
 0x368   : > { %v2361_v23 = vpop.f32.mrf.mxu0  ;;  %10845 = vmatprep.mubr.msk.bf16.mxu1 %vm12774_vm0, %v17769_v52 }
 0x369   : > { %v2362_v60 = vadd.f32 %v13635_v26, %v2361_v23  ;;  %v10743_v5 = vpop.f32.mrf.mxu1 }
 0x36a   : > { %v2363_v40 = vpop.f32.mrf.mxu0 }
 0x36b   : > { %v2708_v42 = vmax.f32 %v2362_v60, 0.0  ;;  %v13778_v30 = vpop.f32.mrf.mxu1 }
 0x36c   : > { %v2366_v46 = vpop.f32.mrf.mxu0  ;;  %11118 = vmatmul.mubr.msk.bf16.vlgmr.msra.gmra.mxu0 %vm2877_vm1, %v13428_v21 }
 0x36d   : > { %v13782_v59 = vpack.c.bf16 %v2708_v42, %v2707_v20  ;;  %v2367_v12 = vadd.f32 %v13635_v26, %v2366_v46  ;;  %v10744_v34 = vpop.f32.mrf.mxu1  ;;  %11121 = vmatprep.mubr.msk.bf16.mxu0 %vm12774_vm0, %v17769_v52 }
 0x36e   : > { %v2368_v8 = vpop.f32.mrf.mxu0 }
 0x36f   : > { %17824 = vst [vmem:[#allocation96_spill] sm:$0xff] %v13782_v59  ;;  %v13787_v10 = vpop.f32.mrf.mxu1  ;;  %10846 = vmatmul.mubr.msk.bf16.gmra.mxu1 %vm2877_vm1, %v13066_v53  ;;  %v2709_v60 = vmax.f32 %v2367_v12, 0.0 }
 0x370   : > { %v2369_v23 = vpop.f32.mrf.mxu0  ;;  %10849 = vmatprep.mubr.msk.bf16.mxu1 %vm12774_vm0, %v17769_v52 }
 0x371   : > { %v2370_v20 = vadd.f32 %v13635_v26, %v2369_v23  ;;  %v10747_v5 = vpop.f32.mrf.mxu1 }
 0x372   : > { %v2371_v40 = vpop.f32.mrf.mxu0 }
 0x373   : > { %v2710_v42 = vmax.f32 %v2370_v20, 0.0  ;;  %v13794_v46 = vpop.f32.mrf.mxu1 }
 0x374   : > { %v2374_v34 = vpop.f32.mrf.mxu0  ;;  %11122 = vmatmul.mubr.msk.bf16.gmra.mxu0 %vm2877_vm1, %v13442_v51 }
 0x375   : > { %v13798_v8 = vpack.c.bf16 %v2710_v42, %v2709_v60  ;;  %v2375_v59 = vadd.f32 %v13635_v26, %v2374_v34  ;;  %v10748_v21 = vpop.f32.mrf.mxu1  ;;  %11125 = vmatprep.mubr.msk.bf16.mxu0 %vm12774_vm0, %v17769_v52  ;;  %v12577_v34 = vld [vmem:[%s17589_s3 + $0x88] sm:$0xff]  }
 0x376   : > { %v2376_v12 = vpop.f32.mrf.mxu0  ;;  %11274 = vmatpush3.bf16.msra.mxu0 %v12577_v34 }
 0x377   : > { %17825 = vst [vmem:[#allocation97_spill] sm:$0xff] %v13798_v8  ;;  %v13803_v53 = vpop.f32.mrf.mxu1  ;;  %10850 = vmatmul.mubr.msk.bf16.gmra.mxu1 %vm2877_vm1, %v13072_v3  ;;  %v2711_v20 = vmax.f32 %v2375_v59, 0.0  ;;  %11275 = vmatprep.subr.bf16.mxu0 %v17769_v52 }
 0x378   : > { %v2377_v23 = vpop.f32.mrf.mxu0  ;;  %10853 = vmatprep.mubr.msk.bf16.mxu1 %vm12774_vm0, %v17769_v52 }
 0x379   : > { %v2378_v60 = vadd.f32 %v13635_v26, %v2377_v23  ;;  %v10751_v5 = vpop.f32.mrf.mxu1 }
 0x37a   : > { %v2379_v40 = vpop.f32.mrf.mxu0 }
 0x37b   : > { %v2712_v42 = vmax.f32 %v2378_v60, 0.0  ;;  %v13810_v21 = vpop.f32.mrf.mxu1 }
 0x37c   : > { %v2382_v12 = vpop.f32.mrf.mxu0  ;;  %11126 = vmatmul.mubr.msk.bf16.gmra.mxu0 %vm2877_vm1, %v13456_v24 }
 0x37d   : > { %v13817_v8 = vpack.c.bf16 %v2712_v42, %v2711_v20  ;;  %v2383_v51 = vadd.f32 %v13635_v26, %v2382_v12  ;;  %v10752_v59 = vpop.f32.mrf.mxu1  ;;  %11129 = vmatprep.mubr.msk.bf16.mxu0 %vm12774_vm0, %v17769_v52  ;;  %v12578_v20 = vld [vmem:[%s17589_s3 + $0x80] sm:$0xff]  }
 0x37e   : > { %v2384_v23 = vpop.f32.mrf.mxu0  ;;  %11276 = vmatpush3.bf16.msra.mxu0 %v12578_v20 }
 0x37f   : > { %17826 = vst [vmem:[#allocation98_spill] sm:$0xff] %v13817_v8  ;;  %v13823_v60 = vpop.f32.mrf.mxu1  ;;  %10854 = vmatmul.mubr.msk.bf16.gmra.mxu1 %vm2877_vm1, %v13078_v18  ;;  %v2713_v40 = vmax.f32 %v2383_v51, 0.0  ;;  %11433 = vmatprep.subr.bf16.mxu0 %v17769_v52 }
 0x380   : > { %v2385_v5 = vpop.f32.mrf.mxu0  ;;  %10857 = vmatprep.mubr.msk.bf16.mxu1 %vm12774_vm0, %v17769_v52 }
 0x381   : > { %v2386_v42 = vadd.f32 %v13635_v26, %v2385_v5  ;;  %v10755_v34 = vpop.f32.mrf.mxu1 }
 0x382   : > { %v2387_v12 = vpop.f32.mrf.mxu0 }
 0x383   : > { %v2714_v59 = vmax.f32 %v2386_v42, 0.0  ;;  %v13834_v23 = vpop.f32.mrf.mxu1 }
 0x384   : > { %v2390_v8 = vpop.f32.mrf.mxu0  ;;  %11130 = vmatmul.mubr.msk.bf16.gmra.mxu0 %vm2877_vm1, %v13470_v2 }
 0x385   : > { %v13838_v24 = vpack.c.bf16 %v2714_v59, %v2713_v40  ;;  %v2391_v18 = vadd.f32 %v13635_v26, %v2390_v8  ;;  %v10756_v3 = vpop.f32.mrf.mxu1  ;;  %11133 = vmatprep.mubr.msk.bf16.mxu0 %vm12774_vm0, %v17769_v52 }
 0x386   : > { %v2392_v51 = vpop.f32.mrf.mxu0 }
 0x387   : > { %17827 = vst [vmem:[#allocation99_spill] sm:$0xff] %v13838_v24  ;;  %v13843_v20 = vpop.f32.mrf.mxu1  ;;  %10858 = vmatmul.mubr.msk.bf16.gmra.mxu1 %vm2877_vm1, %v13084_v32  ;;  %v2715_v42 = vmax.f32 %v2391_v18, 0.0 }
 0x388   : > { %v2393_v5 = vpop.f32.mrf.mxu0  ;;  %10861 = vmatprep.mubr.msk.bf16.mxu1 %vm12774_vm0, %v17769_v52 }
 0x389   : > { %v2394_v40 = vadd.f32 %v13635_v26, %v2393_v5  ;;  %v10759_v34 = vpop.f32.mrf.mxu1 }
 0x38a   : > { %v2395_v12 = vpop.f32.mrf.mxu0 }
 0x38b   : > { %v2716_v8 = vmax.f32 %v2394_v40, 0.0  ;;  %v13850_v3 = vpop.f32.mrf.mxu1 }
 0x38c   : > { %v2398_v59 = vpop.f32.mrf.mxu0  ;;  %11134 = vmatmul.mubr.msk.bf16.gmra.mxu0 %vm2877_vm1, %v13484_v19 }
 0x38d   : > { %v13854_v51 = vpack.c.bf16 %v2716_v8, %v2715_v42  ;;  %v2399_v24 = vadd.f32 %v13635_v26, %v2398_v59  ;;  %v10760_v2 = vpop.f32.mrf.mxu1  ;;  %11137 = vmatprep.mubr.msk.bf16.mxu0 %vm12774_vm0, %v17769_v52 }
 0x38e   : > { %v2400_v18 = vpop.f32.mrf.mxu0 }
 0x38f   : > { %17828 = vst [vmem:[#allocation100_spill] sm:$0xff] %v13854_v51  ;;  %v13859_v32 = vpop.f32.mrf.mxu1  ;;  %10862 = vmatmul.mubr.msk.bf16.gmra.mxu1 %vm2877_vm1, %v13090_v47  ;;  %v2717_v40 = vmax.f32 %v2399_v24, 0.0 }
 0x390   : > { %v2401_v5 = vpop.f32.mrf.mxu0  ;;  %10865 = vmatprep.mubr.msk.bf16.mxu1 %vm12774_vm0, %v17769_v52 }
 0x391   : > { %v2402_v42 = vadd.f32 %v13635_v26, %v2401_v5  ;;  %v10763_v34 = vpop.f32.mrf.mxu1 }
 0x392   : > { %v2403_v12 = vpop.f32.mrf.mxu0 }
 0x393   : > { %v2718_v8 = vmax.f32 %v2402_v42, 0.0  ;;  %v13866_v2 = vpop.f32.mrf.mxu1 }
 0x394   : > { %v2406_v59 = vpop.f32.mrf.mxu0  ;;  %11138 = vmatmul.mubr.msk.bf16.gmra.mxu0 %vm2877_vm1, %v13498_v35 }
 0x395   : > { %v13870_v18 = vpack.c.bf16 %v2718_v8, %v2717_v40  ;;  %v2407_v51 = vadd.f32 %v13635_v26, %v2406_v59  ;;  %v10764_v19 = vpop.f32.mrf.mxu1  ;;  %11141 = vmatprep.mubr.msk.bf16.mxu0 %vm12774_vm0, %v17769_v52 }
 0x396   : > { %v2408_v24 = vpop.f32.mrf.mxu0 }
 0x397   : > { %17829 = vst [vmem:[#allocation101_spill] sm:$0xff] %v13870_v18  ;;  %v13875_v47 = vpop.f32.mrf.mxu1  ;;  %10866 = vmatmul.mubr.msk.bf16.gmra.mxu1 %vm2877_vm1, %v13096_v63  ;;  %v2719_v42 = vmax.f32 %v2407_v51, 0.0 }
 0x398   : > { %v2409_v5 = vpop.f32.mrf.mxu0  ;;  %10869 = vmatprep.mubr.msk.bf16.mxu1 %vm12774_vm0, %v17769_v52 }
 0x399   : > { %v2410_v40 = vadd.f32 %v13635_v26, %v2409_v5  ;;  %v10767_v34 = vpop.f32.mrf.mxu1 }
 0x39a   : > { %v2411_v12 = vpop.f32.mrf.mxu0 }
 0x39b   : > { %v2720_v8 = vmax.f32 %v2410_v40, 0.0  ;;  %v13882_v19 = vpop.f32.mrf.mxu1 }
 0x39c   : > { %v2414_v59 = vpop.f32.mrf.mxu0  ;;  %11142 = vmatmul.mubr.msk.bf16.gmra.mxu0 %vm2877_vm1, %v13512_v4 }
 0x39d   : > { %v13886_v24 = vpack.c.bf16 %v2720_v8, %v2719_v42  ;;  %v2415_v18 = vadd.f32 %v13635_v26, %v2414_v59  ;;  %v10768_v35 = vpop.f32.mrf.mxu1  ;;  %11145 = vmatprep.mubr.msk.bf16.mxu0 %vm12774_vm0, %v17769_v52 }
 0x39e   : > { %v2416_v51 = vpop.f32.mrf.mxu0 }
 0x39f   : > { %17830 = vst [vmem:[#allocation102_spill] sm:$0xff] %v13886_v24  ;;  %v13891_v63 = vpop.f32.mrf.mxu1  ;;  %10870 = vmatmul.mubr.msk.bf16.gmra.mxu1 %vm2877_vm1, %v13102_v15  ;;  %v2721_v40 = vmax.f32 %v2415_v18, 0.0  ;;  %v12575_v51 = vld [vmem:[%s17589_s3 + $0x48] sm:$0xff]  }
 0x3a0   : > { %v2417_v5 = vpop.f32.mrf.mxu0  ;;  %10877 = vmatprep.mubr.msk.bf16.mxu1 %vm12774_vm0, %v17769_v52 }
 0x3a1   : > { %v2418_v42 = vadd.f32 %v13635_v26, %v2417_v5  ;;  %v10771_v34 = vpop.f32.mrf.mxu1 }
 0x3a2   : > { %v2419_v12 = vpop.f32.mrf.mxu0 }
 0x3a3   : > { %v2722_v8 = vmax.f32 %v2418_v42, 0.0  ;;  %v13898_v35 = vpop.f32.mrf.mxu1 }
 0x3a4   : > { %v2422_v59 = vpop.f32.mrf.mxu0  ;;  %11146 = vmatmul.mubr.msk.bf16.gmra.mxu0 %vm2877_vm1, %v13526_v49 }
 0x3a5   : > { %v13905_v24 = vpack.c.bf16 %v2722_v8, %v2721_v40  ;;  %v2423_v4 = vadd.f32 %v13635_v26, %v2422_v59  ;;  %v10772_v18 = vpop.f32.mrf.mxu1  ;;  %11149 = vmatprep.mubr.msk.bf16.mxu0 %vm12774_vm0, %v17769_v52  ;;  %v12576_v40 = vld [vmem:[%s17589_s3 + $0x40] sm:$0xff]  }
 0x3a6   : > { %v2424_v5 = vpop.f32.mrf.mxu0 }
 0x3a7   : > { %17831 = vst [vmem:[#allocation103_spill] sm:$0xff] %v13905_v24  ;;  %v13910_v42 = vpop.f32.mrf.mxu1  ;;  %10878 = vmatmul.mubr.msk.bf16.vlgmr.msra.gmra.mxu1 %vm2877_vm1, %v13156_v16  ;;  %v2723_v12 = vmax.f32 %v2423_v4, 0.0 }
 0x3a8   : > { %10954 = vmatpush3.bf16.msra.mxu1 %v12575_v51  ;;  %v2425_v34 = vpop.f32.mrf.mxu0  ;;  %10881 = vmatprep.mubr.msk.bf16.mxu1 %vm12774_vm0, %v17769_v52 }
 0x3a9   : > { %v2426_v8 = vadd.f32 %v13635_v26, %v2425_v34  ;;  %v10775_v59 = vpop.f32.mrf.mxu1  ;;  %10955 = vmatprep.subr.bf16.mxu1 %v17769_v52 }
 0x3aa   : > { %v2427_v18 = vpop.f32.mrf.mxu0 }
 0x3ab   : > { %v2724_v5 = vmax.f32 %v2426_v8, 0.0  ;;  %v13921_v24 = vpop.f32.mrf.mxu1 }
 0x3ac   : > { %v2430_v16 = vpop.f32.mrf.mxu0  ;;  %11150 = vmatmul.mubr.msk.bf16.gmra.mxu0 %vm2877_vm1, %v13544_v0  ;;  %10956 = vmatpush3.bf16.msra.mxu1 %v12576_v40 }
 0x3ad   : > { %v13925_v51 = vpack.c.bf16 %v2724_v5, %v2723_v12  ;;  %v2431_v49 = vadd.f32 %v13635_v26, %v2430_v16  ;;  %v10776_v15 = vpop.f32.mrf.mxu1  ;;  %11153 = vmatprep.mubr.msk.bf16.mxu0 %vm12774_vm0, %v17769_v52  ;;  %11033 = vmatprep.subr.bf16.mxu1 %v17769_v52 }
 0x3ae   : > { %v2432_v4 = vpop.f32.mrf.mxu0 }
 0x3af   : > { %17832 = vst [vmem:[#allocation104_spill] sm:$0xff] %v13925_v51  ;;  %v13931_v34 = vpop.f32.mrf.mxu1  ;;  %10882 = vmatmul.mubr.msk.bf16.gmra.mxu1 %vm2877_vm1, %v13167_v36  ;;  %v2725_v40 = vmax.f32 %v2431_v49, 0.0 }
 0x3b0   : > { %v2433_v8 = vpop.f32.mrf.mxu0  ;;  %10885 = vmatprep.mubr.msk.bf16.mxu1 %vm12774_vm0, %v17769_v52 }
 0x3b1   : > { %v2434_v12 = vadd.f32 %v13635_v26, %v2433_v8  ;;  %v10779_v59 = vpop.f32.mrf.mxu1 }
 0x3b2   : > { %v2435_v15 = vpop.f32.mrf.mxu0 }
 0x3b3   : > { %v2726_v18 = vmax.f32 %v2434_v12, 0.0  ;;  %v13938_v5 = vpop.f32.mrf.mxu1 }
 0x3b4   : > { %v2438_v16 = vpop.f32.mrf.mxu0  ;;  %11154 = vmatmul.mubr.msk.bf16.gmra.mxu0 %vm2877_vm1, %v13558_v31 }
 0x3b5   : > { %v13942_v4 = vpack.c.bf16 %v2726_v18, %v2725_v40  ;;  %v2439_v36 = vadd.f32 %v13635_v26, %v2438_v16  ;;  %v10780_v51 = vpop.f32.mrf.mxu1  ;;  %11157 = vmatprep.mubr.msk.bf16.mxu0 %vm12774_vm0, %v17769_v52 }
 0x3b6   : > { %v2440_v49 = vpop.f32.mrf.mxu0 }
 0x3b7   : > { %17833 = vst [vmem:[#allocation105_spill] sm:$0xff] %v13942_v4  ;;  %v13947_v0 = vpop.f32.mrf.mxu1  ;;  %10886 = vmatmul.mubr.msk.bf16.gmra.mxu1 %vm2877_vm1, %v13177_v56  ;;  %v2727_v12 = vmax.f32 %v2439_v36, 0.0 }
 0x3b8   : > { %v2441_v8 = vpop.f32.mrf.mxu0  ;;  %10889 = vmatprep.mubr.msk.bf16.mxu1 %vm12774_vm0, %v17769_v52 }
 0x3b9   : > { %v2442_v40 = vadd.f32 %v13635_v26, %v2441_v8  ;;  %v10783_v59 = vpop.f32.mrf.mxu1 }
 0x3ba   : > { %v2443_v15 = vpop.f32.mrf.mxu0 }
 0x3bb   : > { %v2728_v18 = vmax.f32 %v2442_v40, 0.0  ;;  %v13954_v51 = vpop.f32.mrf.mxu1 }
 0x3bc   : > { %v2446_v16 = vpop.f32.mrf.mxu0  ;;  %11158 = vmatmul.mubr.msk.bf16.gmra.mxu0 %vm2877_vm1, %v13572_v57 }
 0x3bd   : > { %v13958_v49 = vpack.c.bf16 %v2728_v18, %v2727_v12  ;;  %v2447_v56 = vadd.f32 %v13635_v26, %v2446_v16  ;;  %v10784_v4 = vpop.f32.mrf.mxu1  ;;  %11161 = vmatprep.mubr.msk.bf16.mxu0 %vm12774_vm0, %v17769_v52 }
 0x3be   : > { %v2448_v36 = vpop.f32.mrf.mxu0 }
 0x3bf   : > { %17834 = vst [vmem:[#allocation106_spill] sm:$0xff] %v13958_v49  ;;  %v13963_v31 = vpop.f32.mrf.mxu1  ;;  %10890 = vmatmul.mubr.msk.bf16.gmra.mxu1 %vm2877_vm1, %v13187_v11  ;;  %v2729_v40 = vmax.f32 %v2447_v56, 0.0 }
 0x3c0   : > { %v2449_v8 = vpop.f32.mrf.mxu0  ;;  %10893 = vmatprep.mubr.msk.bf16.mxu1 %vm12774_vm0, %v17769_v52 }
 0x3c1   : > { %v2450_v12 = vadd.f32 %v13635_v26, %v2449_v8  ;;  %v10787_v59 = vpop.f32.mrf.mxu1 }
 0x3c2   : > { %v2451_v15 = vpop.f32.mrf.mxu0 }
 0x3c3   : > { %v2730_v18 = vmax.f32 %v2450_v12, 0.0  ;;  %v13970_v4 = vpop.f32.mrf.mxu1 }
 0x3c4   : > { %v2454_v16 = vpop.f32.mrf.mxu0  ;;  %11162 = vmatmul.mubr.msk.bf16.gmra.mxu0 %vm2877_vm1, %v13586_v9 }
 0x3c5   : > { %v13974_v36 = vpack.c.bf16 %v2730_v18, %v2729_v40  ;;  %v2455_v11 = vadd.f32 %v13635_v26, %v2454_v16  ;;  %v10788_v49 = vpop.f32.mrf.mxu1  ;;  %11165 = vmatprep.mubr.msk.bf16.mxu0 %vm12774_vm0, %v17769_v52 }
 0x3c6   : > { %v2456_v56 = vpop.f32.mrf.mxu0 }
 0x3c7   : > { %17835 = vst [vmem:[#allocation107_spill] sm:$0xff] %v13974_v36  ;;  %v13979_v57 = vpop.f32.mrf.mxu1  ;;  %10894 = vmatmul.mubr.msk.bf16.gmra.mxu1 %vm2877_vm1, %v13197_v33  ;;  %v2731_v12 = vmax.f32 %v2455_v11, 0.0  ;;  %v3224_v11 = vadd.f32 %v13686_v61, %v13403_v17 }
 0x3c8   : > { %v2457_v8 = vpop.f32.mrf.mxu0  ;;  %10897 = vmatprep.mubr.msk.bf16.mxu1 %vm12774_vm0, %v17769_v52 }
 0x3c9   : > { %v2458_v40 = vadd.f32 %v13635_v26, %v2457_v8  ;;  %v10791_v59 = vpop.f32.mrf.mxu1 }
 0x3ca   : > { %v2459_v15 = vpop.f32.mrf.mxu0 }
 0x3cb   : > { %v2732_v18 = vmax.f32 %v2458_v40, 0.0  ;;  %v13986_v49 = vpop.f32.mrf.mxu1 }
 0x3cc   : > { %v2462_v16 = vpop.f32.mrf.mxu0  ;;  %11166 = vmatmul.mubr.msk.bf16.gmra.mxu0 %vm2877_vm1, %v13603_v7 }
 0x3cd   : > { %v13990_v56 = vpack.c.bf16 %v2732_v18, %v2731_v12  ;;  %v2463_v33 = vadd.f32 %v13635_v26, %v2462_v16  ;;  %v10792_v36 = vpop.f32.mrf.mxu1  ;;  %11169 = vmatprep.mubr.msk.bf16.mxu0 %vm12774_vm0, %v17769_v52  ;;  %v3227_v16 = vadd.f32 %v13695_v48, %v13412_v54  ;;  %v3232_v54 = vadd.f32 %v13700_v50, %v13417_v14 }
 0x3ce   : > { %v2464_v8 = vpop.f32.mrf.mxu0 }
 0x3cf   : > { %17836 = vst [vmem:[#allocation108_spill] sm:$0xff] %v13990_v56  ;;  %v3427_v59 = vpop.f32.mrf.mxu1  ;;  %10898 = vmatmul.mubr.msk.bf16.gmra.mxu1 %vm2877_vm1, %v13207_v55  ;;  %v2733_v12 = vmax.f32 %v2463_v33, 0.0 }
 0x3d0   : > { %v13999_v40 = vadd.f32 %v3427_v59, %v3224_v11  ;;  %v2465_v15 = vpop.f32.mrf.mxu0  ;;  %10901 = vmatprep.mubr.msk.bf16.mxu1 %vm12774_vm0, %v17769_v52 }
 0x3d1   : > { %v2466_v36 = vadd.f32 %v13635_v26, %v2465_v15  ;;  %v10799_v18 = vpop.f32.mrf.mxu1 }
 0x3d2   : > { %v2467_v56 = vpop.f32.mrf.mxu0 }
 0x3d3   : > { %v2734_v17 = vmax.f32 %v2466_v36, 0.0  ;;  %v3430_v61 = vpop.f32.mrf.mxu1 }
 0x3d4   : > { %v14006_v8 = vadd.f32 %v3430_v61, %v3227_v16  ;;  %v2470_v7 = vpop.f32.mrf.mxu0  ;;  %11170 = vmatmul.mubr.msk.bf16.gmra.mxu0 %vm2877_vm1, %v13621_v45  ;;  %v3235_v16 = vadd.f32 %v13709_v6, %v13426_v44  ;;  %v3240_v44 = vadd.f32 %v13714_v27, %v13431_v1 }
 0x3d5   : > { %v14010_v11 = vpack.c.bf16 %v2734_v17, %v2733_v12  ;;  %v2471_v59 = vadd.f32 %v13635_v26, %v2470_v7  ;;  %v10800_v33 = vpop.f32.mrf.mxu1  ;;  %11173 = vmatprep.mubr.msk.bf16.mxu0 %vm12774_vm0, %v17769_v52 }
 0x3d6   : > { %v2472_v48 = vpop.f32.mrf.mxu0 }
 0x3d7   : > { %17837 = vst [vmem:[#allocation109_spill] sm:$0xff] %v14010_v11  ;;  %v3435_v56 = vpop.f32.mrf.mxu1  ;;  %10902 = vmatmul.mubr.msk.bf16.gmra.mxu1 %vm2877_vm1, %v13217_v13  ;;  %v2735_v12 = vmax.f32 %v2471_v59, 0.0 }
 0x3d8   : > { %v14019_v15 = vadd.f32 %v3435_v56, %v3232_v54  ;;  %v2473_v36 = vpop.f32.mrf.mxu0  ;;  %10905 = vmatprep.mubr.msk.bf16.mxu1 %vm12774_vm0, %v17769_v52 }
 0x3d9   : > { %v2474_v7 = vadd.f32 %v13635_v26, %v2473_v36  ;;  %v10803_v18 = vpop.f32.mrf.mxu1 }
 0x3da   : > { %v2475_v17 = vpop.f32.mrf.mxu0 }
 0x3db   : > { %v2736_v14 = vmax.f32 %v2474_v7, 0.0  ;;  %v3438_v50 = vpop.f32.mrf.mxu1  ;;  %v3243_v17 = vadd.f32 %v13723_v41, %v13440_v58 }
 0x3dc   : > { %v14026_v61 = vadd.f32 %v3438_v50, %v3235_v16  ;;  %v2478_v33 = vpop.f32.mrf.mxu0  ;;  %11174 = vmatmul.mubr.msk.bf16.gmra.mxu0 %vm2877_vm1, %v13641_v29 }
 0x3dd   : > { %v14030_v54 = vpack.c.bf16 %v2736_v14, %v2735_v12  ;;  %v2479_v48 = vadd.f32 %v13635_v26, %v2478_v33  ;;  %v10804_v59 = vpop.f32.mrf.mxu1  ;;  %11177 = vmatprep.mubr.msk.bf16.mxu0 %vm12774_vm0, %v17769_v52 }
 0x3de   : > { %v2480_v6 = vpop.f32.mrf.mxu0 }
 0x3df   : > { %17838 = vst [vmem:[#allocation110_spill] sm:$0xff] %v14030_v54  ;;  %v3443_v56 = vpop.f32.mrf.mxu1  ;;  %10906 = vmatmul.mubr.msk.bf16.gmra.mxu1 %vm2877_vm1, %v13227_v37  ;;  %v2737_v12 = vmax.f32 %v2479_v48, 0.0  ;;  %v17840_v6 = vld [vmem:[#allocation90_spill] sm:$0xff] }
 0x3e0   : > { %v14039_v36 = vadd.f32 %v3443_v56, %v3240_v44  ;;  %v2481_v7 = vpop.f32.mrf.mxu0  ;;  %10909 = vmatprep.mubr.msk.bf16.mxu1 %vm12774_vm0, %v17769_v52  ;;  %v3248_v58 = vadd.f32 %v17840_v6, %v13445_v43 }
 0x3e1   : > { %v2482_v18 = vadd.f32 %v13635_v26, %v2481_v7  ;;  %v10807_v16 = vpop.f32.mrf.mxu1  ;;  %v17841_v7 = vld [vmem:[#allocation25_spill] sm:$0xff] }
 0x3e2   : > { %v2483_v14 = vpop.f32.mrf.mxu0 }
 0x3e3   : > { %v2738_v1 = vmax.f32 %v2482_v18, 0.0  ;;  %v3446_v27 = vpop.f32.mrf.mxu1 }
 0x3e4   : > { %v14046_v50 = vadd.f32 %v3446_v27, %v3243_v17  ;;  %v2486_v33 = vpop.f32.mrf.mxu0  ;;  %11178 = vmatmul.mubr.msk.bf16.gmra.mxu0 %vm2877_vm1, %v13655_v39  ;;  %v17843_v27 = vld [vmem:[#allocation91_spill] sm:$0xff] }
 0x3e5   : > { %v14050_v59 = vpack.c.bf16 %v2738_v1, %v2737_v12  ;;  %v2487_v44 = vadd.f32 %v13635_v26, %v2486_v33  ;;  %v10808_v48 = vpop.f32.mrf.mxu1  ;;  %11181 = vmatprep.mubr.msk.bf16.mxu0 %vm12774_vm0, %v17769_v52  ;;  %v17842_v1 = vld [vmem:[#allocation44_spill] sm:$0xff] }
 0x3e6   : > { %v2488_v41 = vpop.f32.mrf.mxu0  ;;  %v3251_v33 = vadd.f32 %v17843_v27, %v17842_v1 }
 0x3e7   : > { %17839 = vst [vmem:[#allocation111_spill] sm:$0xff] %v14050_v59  ;;  %v3451_v56 = vpop.f32.mrf.mxu1  ;;  %10910 = vmatmul.mubr.msk.bf16.gmra.mxu1 %vm2877_vm1, %v17841_v7  ;;  %v2739_v12 = vmax.f32 %v2487_v44, 0.0  ;;  %v17844_v7 = vld [vmem:[#allocation83_spill] sm:$0xff] }
 0x3e8   : > { %v14059_v18 = vadd.f32 %v3451_v56, %v3248_v58  ;;  %v2489_v16 = vpop.f32.mrf.mxu0  ;;  %10913 = vmatprep.mubr.msk.bf16.mxu1 %vm12774_vm0, %v17769_v52 }
 0x3e9   : > { %v2490_v17 = vadd.f32 %v13635_v26, %v2489_v16  ;;  %v10811_v14 = vpop.f32.mrf.mxu1  ;;  %v17846_v16 = vld [vmem:[#allocation46_spill] sm:$0xff] }
 0x3ea   : > { %v2491_v48 = vpop.f32.mrf.mxu0  ;;  %v17847_v14 = vld [vmem:[#allocation93_spill] sm:$0xff] }
 0x3eb   : > { %v2740_v43 = vmax.f32 %v2490_v17, 0.0  ;;  %v3454_v6 = vpop.f32.mrf.mxu1  ;;  %v3256_v1 = vadd.f32 %v17847_v14, %v17846_v16  ;;  %v17848_v48 = vld [vmem:[#allocation26_spill] sm:$0xff] }
 0x3ec   : > { %v14066_v41 = vadd.f32 %v3454_v6, %v3251_v33  ;;  %v2494_v37 = vpop.f32.mrf.mxu0  ;;  %11182 = vmatmul.mubr.msk.bf16.gmra.mxu0 %vm2877_vm1, %v17844_v7 }
 0x3ed   : > { %v14070_v58 = vpack.c.bf16 %v2740_v43, %v2739_v12  ;;  %v2495_v56 = vadd.f32 %v13635_v26, %v2494_v37  ;;  %v10812_v44 = vpop.f32.mrf.mxu1  ;;  %11185 = vmatprep.mubr.msk.bf16.mxu0 %vm12774_vm0, %v17769_v52 }
 0x3ee   : > { %v2496_v27 = vpop.f32.mrf.mxu0  ;;  %v17849_v44 = vld [vmem:[#allocation47_spill] sm:$0xff] }
 0x3ef   : > { %17845 = vst [vmem:[#allocation90_spill] sm:$0xff] %v14070_v58  ;;  %v3459_v17 = vpop.f32.mrf.mxu1  ;;  %10914 = vmatmul.mubr.msk.bf16.gmra.mxu1 %vm2877_vm1, %v17848_v48  ;;  %v2741_v12 = vmax.f32 %v2495_v56, 0.0  ;;  %v3259_v13 = vadd.f32 %v13751_v22, %v17849_v44  ;;  %v17850_v48 = vld [vmem:[#allocation86_spill] sm:$0xff] }
 0x3f0   : > { %v14079_v33 = vadd.f32 %v3459_v17, %v3256_v1  ;;  %v2497_v6 = vpop.f32.mrf.mxu0  ;;  %10917 = vmatprep.mubr.msk.bf16.mxu1 %vm12774_vm0, %v17769_v52  ;;  %v14095_v56 = vld [vmem:[%s17588_s2] ss:$0 sm:$0xff] }
 0x3f1   : > { %v2498_v37 = vadd.f32 %v13635_v26, %v2497_v6  ;;  %v10815_v43 = vpop.f32.mrf.mxu1 }
 0x3f2   : > { %v2499_v55 = vpop.f32.mrf.mxu0 }
 0x3f3   : > { %v2742_v16 = vmax.f32 %v2498_v37, 0.0  ;;  %v3462_v14 = vpop.f32.mrf.mxu1  ;;  %v17852_v55 = vld [vmem:[#allocation49_spill] sm:$0xff]  ;;  %v17853_v37 = vld [vmem:[#allocation27_spill] sm:$0xff] }
 0x3f4   : > { %v14086_v27 = vadd.f32 %v3462_v14, %v3259_v13  ;;  %v2502_v58 = vpop.f32.mrf.mxu0  ;;  %11186 = vmatmul.mubr.msk.bf16.gmra.mxu0 %vm2877_vm1, %v17850_v48  ;;  %v3264_v13 = vadd.f32 %v13756_v28, %v17852_v55  ;;  %v17854_v14 = vld [vmem:[#allocation50_spill] sm:$0xff] }
 0x3f5   : > { %v14090_v1 = vpack.c.bf16 %v2742_v16, %v2741_v12  ;;  %v2503_v26 = vadd.f32 %v14095_v56, %v2502_v58  ;;  %v10816_v17 = vpop.f32.mrf.mxu1  ;;  %11189 = vmatprep.mubr.msk.bf16.mxu0 %vm12774_vm0, %v17769_v52 }
 0x3f6   : > { %v2504_v22 = vpop.f32.mrf.mxu0  ;;  %v3267_v17 = vadd.f32 %v13764_v62, %v17854_v14 }
 0x3f7   : > { %17851 = vst [vmem:[#allocation44_spill] sm:$0xff] %v14090_v1  ;;  %v3467_v6 = vpop.f32.mrf.mxu1  ;;  %10918 = vmatmul.mubr.msk.bf16.gmra.mxu1 %vm2877_vm1, %v17853_v37  ;;  %v2743_v44 = vmax.f32 %v2503_v26, 0.0  ;;  %v17855_v37 = vld [vmem:[#allocation87_spill] sm:$0xff] }
 0x3f8   : > { %v14104_v12 = vadd.f32 %v3467_v6, %v3264_v13  ;;  %v2505_v43 = vpop.f32.mrf.mxu0  ;;  %10921 = vmatprep.mubr.msk.bf16.mxu1 %vm12774_vm0, %v17769_v52 }
 0x3f9   : > { %v2506_v58 = vadd.f32 %v14095_v56, %v2505_v43  ;;  %v10819_v16 = vpop.f32.mrf.mxu1  ;;  %v17857_v43 = vld [vmem:[#allocation52_spill] sm:$0xff] }
 0x3fa   : > { %v2507_v1 = vpop.f32.mrf.mxu0  ;;  %v3272_v62 = vadd.f32 %v13771_v25, %v17857_v43  ;;  %v17858_v16 = vld [vmem:[#allocation28_spill] sm:$0xff] }
 0x3fb   : > { %v2744_v28 = vmax.f32 %v2506_v58, 0.0  ;;  %v3470_v55 = vpop.f32.mrf.mxu1 }
 0x3fc   : > { %v14111_v22 = vadd.f32 %v3470_v55, %v3267_v17  ;;  %v2510_v59 = vpop.f32.mrf.mxu0  ;;  %11190 = vmatmul.mubr.msk.bf16.gmra.mxu0 %vm2877_vm1, %v17855_v37  ;;  %v17859_v55 = vld [vmem:[#allocation53_spill] sm:$0xff] }
 0x3fd   : > { %v14115_v13 = vpack.c.bf16 %v2744_v28, %v2743_v44  ;;  %v2511_v6 = vadd.f32 %v14095_v56, %v2510_v59  ;;  %v10820_v26 = vpop.f32.mrf.mxu1  ;;  %11277 = vmatprep.mubr.msk.bf16.mxu0 %vm12774_vm0, %v17769_v52 }
 0x3fe   : > { %v2512_v1 = vpop.f32.mrf.mxu0  ;;  %v3275_v26 = vadd.f32 %v13778_v30, %v17859_v55 }
 0x3ff   : > { %17856 = vst [vmem:[#allocation91_spill] sm:$0xff] %v14115_v13  ;;  %v3475_v58 = vpop.f32.mrf.mxu1  ;;  %10922 = vmatmul.mubr.msk.bf16.gmra.mxu1 %vm2877_vm1, %v17858_v16  ;;  %v2745_v44 = vmax.f32 %v2511_v6, 0.0  ;;  %v17860_v16 = vld [vmem:[#allocation2_spill] sm:$0xff] }
 0x400   : > { %v14124_v14 = vadd.f32 %v3475_v58, %v3272_v62  ;;  %v2513_v17 = vpop.f32.mrf.mxu0  ;;  %10925 = vmatprep.mubr.msk.bf16.mxu1 %vm12774_vm0, %v17769_v52 }
 0x401   : > { %v2514_v59 = vadd.f32 %v14095_v56, %v2513_v17  ;;  %v10823_v28 = vpop.f32.mrf.mxu1  ;;  %v17862_v17 = vld [vmem:[#allocation55_spill] sm:$0xff] }
 0x402   : > { %v2515_v37 = vpop.f32.mrf.mxu0  ;;  %v3280_v30 = vadd.f32 %v13787_v10, %v17862_v17  ;;  %v17863_v28 = vld [vmem:[#allocation29_spill] sm:$0xff] }
 0x403   : > { %v2746_v25 = vmax.f32 %v2514_v59, 0.0  ;;  %v3478_v43 = vpop.f32.mrf.mxu1 }
 0x404   : > { %v14131_v1 = vadd.f32 %v3478_v43, %v3275_v26  ;;  %v2518_v13 = vpop.f32.mrf.mxu0  ;;  %11278 = vmatmul.mubr.msk.bf16.vlgmr.msra.gmra.mxu0 %vm2877_vm1, %v17860_v16 }
 0x405   : > { %v14135_v62 = vpack.c.bf16 %v2746_v25, %v2745_v44  ;;  %v2519_v58 = vadd.f32 %v14095_v56, %v2518_v13  ;;  %v10824_v6 = vpop.f32.mrf.mxu1  ;;  %11281 = vmatprep.mubr.msk.bf16.mxu0 %vm12774_vm0, %v17769_v52  ;;  %v17864_v25 = vld [vmem:[#allocation56_spill] sm:$0xff] }
 0x406   : > { %v2520_v37 = vpop.f32.mrf.mxu0  ;;  %v3283_v43 = vadd.f32 %v13794_v46, %v17864_v25  ;;  %v17868_v25 = vld [vmem:[#allocation30_spill] sm:$0xff] }
 0x407   : > { %17861 = vst [vmem:[#allocation46_spill] sm:$0xff] %v14135_v62  ;;  %v3483_v59 = vpop.f32.mrf.mxu1  ;;  %10926 = vmatmul.mubr.msk.bf16.gmra.mxu1 %vm2877_vm1, %v17863_v28  ;;  %v2747_v16 = vmax.f32 %v2519_v58, 0.0  ;;  %v17865_v28 = vld [vmem:[#allocation3_spill] sm:$0xff] }
 0x408   : > { %v14144_v55 = vadd.f32 %v3483_v59, %v3280_v30  ;;  %v2521_v26 = vpop.f32.mrf.mxu0  ;;  %10929 = vmatprep.mubr.msk.bf16.mxu1 %vm12774_vm0, %v17769_v52 }
 0x409   : > { %v2522_v13 = vadd.f32 %v14095_v56, %v2521_v26  ;;  %v10827_v44 = vpop.f32.mrf.mxu1  ;;  %v17867_v26 = vld [vmem:[#allocation58_spill] sm:$0xff] }
 0x40a   : > { %v2523_v6 = vpop.f32.mrf.mxu0  ;;  %v3288_v46 = vadd.f32 %v13803_v53, %v17867_v26 }
 0x40b   : > { %v2748_v10 = vmax.f32 %v2522_v13, 0.0  ;;  %v3486_v17 = vpop.f32.mrf.mxu1 }
 0x40c   : > { %v14151_v37 = vadd.f32 %v3486_v17, %v3283_v43  ;;  %v2526_v62 = vpop.f32.mrf.mxu0  ;;  %11282 = vmatmul.mubr.msk.bf16.gmra.mxu0 %vm2877_vm1, %v17865_v28  ;;  %v17869_v17 = vld [vmem:[#allocation59_spill] sm:$0xff] }
 0x40d   : > { %v14155_v30 = vpack.c.bf16 %v2748_v10, %v2747_v16  ;;  %v2527_v59 = vadd.f32 %v14095_v56, %v2526_v62  ;;  %v10828_v58 = vpop.f32.mrf.mxu1  ;;  %11285 = vmatprep.mubr.msk.bf16.mxu0 %vm12774_vm0, %v17769_v52 }
 0x40e   : > { %v2528_v44 = vpop.f32.mrf.mxu0  ;;  %v3291_v58 = vadd.f32 %v13810_v21, %v17869_v17  ;;  %v17872_v21 = vld [vmem:[#allocation61_spill] sm:$0xff] }
 0x40f   : > { %17866 = vst [vmem:[#allocation93_spill] sm:$0xff] %v14155_v30  ;;  %v3491_v13 = vpop.f32.mrf.mxu1  ;;  %10930 = vmatmul.mubr.msk.bf16.gmra.mxu1 %vm2877_vm1, %v17868_v25  ;;  %v2749_v16 = vmax.f32 %v2527_v59, 0.0  ;;  %v12581_v44 = vld [vmem:[%s17589_s3 + $0xa8] sm:$0xff]   ;;  %v17870_v25 = vld [vmem:[#allocation4_spill] sm:$0xff] }
 0x410   : > { %v14164_v43 = vadd.f32 %v3491_v13, %v3288_v46  ;;  %v2529_v6 = vpop.f32.mrf.mxu0  ;;  %10933 = vmatprep.mubr.msk.bf16.mxu1 %vm12774_vm0, %v17769_v52  ;;  %11434 = vmatpush3.bf16.msra.mxu0 %v12581_v44 }
 0x411   : > { %v2530_v62 = vadd.f32 %v14095_v56, %v2529_v6  ;;  %v10831_v10 = vpop.f32.mrf.mxu1  ;;  %11435 = vmatprep.subr.bf16.mxu0 %v17769_v52 }
 0x412   : > { %v2531_v30 = vpop.f32.mrf.mxu0 }
 0x413   : > { %v2750_v53 = vmax.f32 %v2530_v62, 0.0  ;;  %v3494_v26 = vpop.f32.mrf.mxu1  ;;  %v3296_v30 = vadd.f32 %v13823_v60, %v17872_v21 }
 0x414   : > { %v14174_v46 = vadd.f32 %v3494_v26, %v3291_v58  ;;  %v2534_v13 = vpop.f32.mrf.mxu0  ;;  %11286 = vmatmul.mubr.msk.bf16.gmra.mxu0 %vm2877_vm1, %v17870_v25  ;;  %v17873_v58 = vld [vmem:[#allocation31_spill] sm:$0xff] }
 0x415   : > { %v14178_v59 = vpack.c.bf16 %v2750_v53, %v2749_v16  ;;  %v2535_v6 = vadd.f32 %v14095_v56, %v2534_v13  ;;  %v10832_v10 = vpop.f32.mrf.mxu1  ;;  %11289 = vmatprep.mubr.msk.bf16.mxu0 %vm12774_vm0, %v17769_v52  ;;  %v12582_v16 = vld [vmem:[%s17589_s3 + $0xa0] sm:$0xff]  }
 0x416   : > { %v2536_v62 = vpop.f32.mrf.mxu0  ;;  %11436 = vmatpush3.bf16.msra.mxu0 %v12582_v16  ;;  %v17874_v10 = vld [vmem:[#allocation62_spill] sm:$0xff] }
 0x417   : > { %17871 = vst [vmem:[#allocation47_spill] sm:$0xff] %v14178_v59  ;;  %v3499_v17 = vpop.f32.mrf.mxu1  ;;  %10934 = vmatmul.mubr.msk.bf16.gmra.mxu1 %vm2877_vm1, %v17873_v58  ;;  %v2751_v44 = vmax.f32 %v2535_v6, 0.0  ;;  %v3299_v21 = vadd.f32 %v13834_v23, %v17874_v10  ;;  %11593 = vmatprep.subr.bf16.mxu0 %v17769_v52  ;;  %v17877_v23 = vld [vmem:[#allocation64_spill] sm:$0xff] }
 0x418   : > { %v14191_v53 = vadd.f32 %v3499_v17, %v3296_v30  ;;  %v2537_v26 = vpop.f32.mrf.mxu0  ;;  %10937 = vmatprep.mubr.msk.bf16.mxu1 %vm12774_vm0, %v17769_v52  ;;  %v17875_v17 = vld [vmem:[#allocation5_spill] sm:$0xff]  ;;  %v3304_v16 = vadd.f32 %v13843_v20, %v17877_v23  ;;  %v17878_v10 = vld [vmem:[#allocation32_spill] sm:$0xff] }
 0x419   : > { %v2538_v60 = vadd.f32 %v14095_v56, %v2537_v26  ;;  %v10835_v13 = vpop.f32.mrf.mxu1 }
 0x41a   : > { %v2539_v62 = vpop.f32.mrf.mxu0 }
 0x41b   : > { %v2752_v59 = vmax.f32 %v2538_v60, 0.0  ;;  %v3502_v58 = vpop.f32.mrf.mxu1 }
 0x41c   : > { %v14199_v54 = vadd.f32 %v3502_v58, %v3299_v21  ;;  %v2542_v30 = vpop.f32.mrf.mxu0  ;;  %11290 = vmatmul.mubr.msk.bf16.gmra.mxu0 %vm2877_vm1, %v17875_v17 }
 0x41d   : > { %v14203_v11 = vpack.c.bf16 %v2752_v59, %v2751_v44  ;;  %v2543_v6 = vadd.f32 %v14095_v56, %v2542_v30  ;;  %v10836_v26 = vpop.f32.mrf.mxu1  ;;  %11293 = vmatprep.mubr.msk.bf16.mxu0 %vm12774_vm0, %v17769_v52  ;;  %v17879_v30 = vld [vmem:[#allocation65_spill] sm:$0xff] }
 0x41e   : > { %v2544_v13 = vpop.f32.mrf.mxu0  ;;  %v3307_v26 = vadd.f32 %v13850_v3, %v17879_v30 }
 0x41f   : > { %17876 = vst [vmem:[#allocation49_spill] sm:$0xff] %v14203_v11  ;;  %v3507_v60 = vpop.f32.mrf.mxu1  ;;  %10938 = vmatmul.mubr.msk.bf16.gmra.mxu1 %vm2877_vm1, %v17878_v10  ;;  %v2753_v59 = vmax.f32 %v2543_v6, 0.0  ;;  %v17880_v10 = vld [vmem:[#allocation6_spill] sm:$0xff] }
 0x420   : > { %v14212_v58 = vadd.f32 %v3507_v60, %v3304_v16  ;;  %v2545_v21 = vpop.f32.mrf.mxu0  ;;  %10941 = vmatprep.mubr.msk.bf16.mxu1 %vm12774_vm0, %v17769_v52 }
 0x421   : > { %v2546_v44 = vadd.f32 %v14095_v56, %v2545_v21  ;;  %v10839_v62 = vpop.f32.mrf.mxu1  ;;  %v17882_v21 = vld [vmem:[#allocation67_spill] sm:$0xff] }
 0x422   : > { %v2547_v11 = vpop.f32.mrf.mxu0  ;;  %v3312_v3 = vadd.f32 %v13859_v32, %v17882_v21  ;;  %v17883_v62 = vld [vmem:[#allocation33_spill] sm:$0xff] }
 0x423   : > { %v2754_v20 = vmax.f32 %v2546_v44, 0.0  ;;  %v3510_v23 = vpop.f32.mrf.mxu1 }
 0x424   : > { %v14219_v13 = vadd.f32 %v3510_v23, %v3307_v26  ;;  %v2550_v48 = vpop.f32.mrf.mxu0  ;;  %11294 = vmatmul.mubr.msk.bf16.gmra.mxu0 %vm2877_vm1, %v17880_v10  ;;  %v17884_v23 = vld [vmem:[#allocation68_spill] sm:$0xff] }
 0x425   : > { %v14223_v16 = vpack.c.bf16 %v2754_v20, %v2753_v59  ;;  %v2551_v60 = vadd.f32 %v14095_v56, %v2550_v48  ;;  %v10840_v6 = vpop.f32.mrf.mxu1  ;;  %11297 = vmatprep.mubr.msk.bf16.mxu0 %vm12774_vm0, %v17769_v52 }
 0x426   : > { %v2552_v11 = vpop.f32.mrf.mxu0  ;;  %v3315_v6 = vadd.f32 %v13866_v2, %v17884_v23 }
 0x427   : > { %17881 = vst [vmem:[#allocation50_spill] sm:$0xff] %v14223_v16  ;;  %v3515_v44 = vpop.f32.mrf.mxu1  ;;  %10942 = vmatmul.mubr.msk.bf16.gmra.mxu1 %vm2877_vm1, %v17883_v62  ;;  %v2755_v59 = vmax.f32 %v2551_v60, 0.0 }
 0x428   : > { %v14232_v30 = vadd.f32 %v3515_v44, %v3312_v3  ;;  %v2553_v26 = vpop.f32.mrf.mxu0  ;;  %10945 = vmatprep.mubr.msk.bf16.mxu1 %vm12774_vm0, %v17769_v52  ;;  %v17886_v3 = vld [vmem:[#allocation7_spill] sm:$0xff] }
 0x429   : > { %v2554_v48 = vadd.f32 %v14095_v56, %v2553_v26  ;;  %v10843_v20 = vpop.f32.mrf.mxu1  ;;  %v17888_v56 = vld [vmem:[#allocation70_spill] sm:$0xff] }
 0x42a   : > { %v2555_v16 = vpop.f32.mrf.mxu0  ;;  %v3320_v60 = vadd.f32 %v13875_v47, %v17888_v56  ;;  %v17889_v26 = vld [vmem:[#allocation34_spill] sm:$0xff]  ;;  %v17893_v56 = vld [vmem:[#allocation8_spill] sm:$0xff] }
 0x42b   : > { %v2756_v32 = vmax.f32 %v2554_v48, 0.0  ;;  %v3518_v21 = vpop.f32.mrf.mxu1 }
 0x42c   : > { %v14239_v11 = vadd.f32 %v3518_v21, %v3315_v6  ;;  %v14241_v7 = vpop.f32.mrf.mxu0  ;;  %11298 = vmatmul.mubr.msk.bf16.gmra.mxu0 %vm2877_vm1, %v17886_v3 }
 0x42d   : > { %17885 = vst [vmem:[#allocation52_spill] sm:$0xff] %v14241_v7  ;;  %v14245_v44 = vpack.c.bf16 %v2756_v32, %v2755_v59  ;;  %v10844_v62 = vpop.f32.mrf.mxu1  ;;  %11301 = vmatprep.mubr.msk.bf16.mxu0 %vm12774_vm0, %v17769_v52 }
 0x42e   : > { %v11119_v2 = vpop.f32.mrf.mxu0  ;;  %v17891_v62 = vld [vmem:[#allocation71_spill] sm:$0xff] }
 0x42f   : > { %17887 = vst [vmem:[#allocation53_spill] sm:$0xff] %v14245_v44  ;;  %v3523_v16 = vpop.f32.mrf.mxu1  ;;  %10946 = vmatmul.mubr.msk.bf16.gmra.mxu1 %vm2877_vm1, %v17889_v26  ;;  %v3323_v23 = vadd.f32 %v13882_v19, %v17891_v62  ;;  %v17894_v2 = vld [vmem:[#allocation72_spill] sm:$0xff]  ;;  %v17895_v26 = vld [vmem:[#allocation35_spill] sm:$0xff] }
 0x430   : > { %v14253_v48 = vadd.f32 %v3523_v16, %v3320_v60  ;;  %v14255_v20 = vpop.f32.mrf.mxu0  ;;  %10949 = vmatprep.mubr.msk.bf16.mxu1 %vm12774_vm0, %v17769_v52  ;;  %v3328_v16 = vadd.f32 %v13891_v63, %v17894_v2 }
 0x431   : > { %17890 = vst [vmem:[#allocation2_spill] sm:$0xff] %v14255_v20  ;;  %v10847_v59 = vpop.f32.mrf.mxu1 }
 0x432   : > { %v11120_v6 = vpop.f32.mrf.mxu0 }
 0x433   : > { %v3526_v32 = vpop.f32.mrf.mxu1  ;;  %v17897_v6 = vld [vmem:[#allocation73_spill] sm:$0xff] }
 0x434   : > { %v14261_v21 = vadd.f32 %v3526_v32, %v3323_v23  ;;  %v14263_v47 = vpop.f32.mrf.mxu0  ;;  %11302 = vmatmul.mubr.msk.bf16.gmra.mxu0 %vm2877_vm1, %v17893_v56  ;;  %v3331_v32 = vadd.f32 %v13898_v35, %v17897_v6 }
 0x435   : > { %17892 = vst [vmem:[#allocation55_spill] sm:$0xff] %v14263_v47  ;;  %v10848_v60 = vpop.f32.mrf.mxu1  ;;  %11305 = vmatprep.mubr.msk.bf16.mxu0 %vm12774_vm0, %v17769_v52 }
 0x436   : > { %v11123_v59 = vpop.f32.mrf.mxu0 }
 0x437   : > { %v3531_v44 = vpop.f32.mrf.mxu1  ;;  %10950 = vmatmul.mubr.msk.bf16.gmra.mxu1 %vm2877_vm1, %v17895_v26 }
 0x438   : > { %v14273_v19 = vadd.f32 %v3531_v44, %v3328_v16  ;;  %v14275_v62 = vpop.f32.mrf.mxu0  ;;  %10957 = vmatprep.mubr.msk.bf16.mxu1 %vm12774_vm0, %v17769_v52  ;;  %v12579_v44 = vld [vmem:[%s17589_s3 + $0x58] sm:$0xff]   ;;  %v17899_v16 = vld [vmem:[#allocation75_spill] sm:$0xff] }
 0x439   : > { %17896 = vst [vmem:[#allocation56_spill] sm:$0xff] %v14275_v62  ;;  %v10851_v23 = vpop.f32.mrf.mxu1  ;;  %v3336_v35 = vadd.f32 %v13910_v42, %v17899_v16  ;;  %v17902_v42 = vld [vmem:[#allocation76_spill] sm:$0xff] }
 0x43a   : > { %v11124_v60 = vpop.f32.mrf.mxu0  ;;  %v3339_v16 = vadd.f32 %v13921_v24, %v17902_v42 }
 0x43b   : > { %v3534_v47 = vpop.f32.mrf.mxu1  ;;  %v12580_v60 = vld [vmem:[%s17589_s3 + $0x50] sm:$0xff]  }
 0x43c   : > { %v14281_v20 = vadd.f32 %v3534_v47, %v3331_v32  ;;  %v14283_v63 = vpop.f32.mrf.mxu0  ;;  %11306 = vmatmul.mubr.msk.bf16.gmra.mxu0 %vm2877_vm1, %v13060_v38  ;;  %v17900_v47 = vld [vmem:[#allocation41_spill] sm:$0xff] }
 0x43d   : > { %17898 = vst [vmem:[#allocation3_spill] sm:$0xff] %v14283_v63  ;;  %v10852_v2 = vpop.f32.mrf.mxu1  ;;  %11309 = vmatprep.mubr.msk.bf16.mxu0 %vm12774_vm0, %v17769_v52 }
 0x43e   : > { %v11127_v59 = vpop.f32.mrf.mxu0 }
 0x43f   : > { %v3539_v23 = vpop.f32.mrf.mxu1  ;;  %10958 = vmatmul.mubr.msk.bf16.vlgmr.msra.gmra.mxu1 %vm2877_vm1, %v17900_v47 }
 0x440   : > { %v14296_v6 = vadd.f32 %v3539_v23, %v3336_v35  ;;  %11034 = vmatpush3.bf16.msra.mxu1 %v12579_v44  ;;  %v14298_v32 = vpop.f32.mrf.mxu0  ;;  %10961 = vmatprep.mubr.msk.bf16.mxu1 %vm12774_vm0, %v17769_v52  ;;  %v17904_v23 = vld [vmem:[#allocation9_spill] sm:$0xff] }
 0x441   : > { %17901 = vst [vmem:[#allocation58_spill] sm:$0xff] %v14298_v32  ;;  %v10855_v2 = vpop.f32.mrf.mxu1  ;;  %11035 = vmatprep.subr.bf16.mxu1 %v17769_v52 }
 0x442   : > { %v11128_v59 = vpop.f32.mrf.mxu0  ;;  %v17905_v2 = vld [vmem:[#allocation77_spill] sm:$0xff] }
 0x443   : > { %v3542_v47 = vpop.f32.mrf.mxu1  ;;  %v3344_v32 = vadd.f32 %v13931_v34, %v17905_v2  ;;  %v17906_v59 = vld [vmem:[#allocation42_spill] sm:$0xff] }
 0x444   : > { %v14308_v35 = vadd.f32 %v3542_v47, %v3339_v16  ;;  %v14310_v44 = vpop.f32.mrf.mxu0  ;;  %11310 = vmatmul.mubr.msk.bf16.gmra.mxu0 %vm2877_vm1, %v17904_v23  ;;  %11036 = vmatpush3.bf16.msra.mxu1 %v12580_v60  ;;  %v17908_v60 = vld [vmem:[#allocation78_spill] sm:$0xff] }
 0x445   : > { %17903 = vst [vmem:[#allocation59_spill] sm:$0xff] %v14310_v44  ;;  %v10856_v26 = vpop.f32.mrf.mxu1  ;;  %11313 = vmatprep.mubr.msk.bf16.mxu0 %vm12774_vm0, %v17769_v52  ;;  %11193 = vmatprep.subr.bf16.mxu1 %v17769_v52  ;;  %v3347_v44 = vadd.f32 %v13938_v5, %v17908_v60  ;;  %v17911_v2 = vld [vmem:[#allocation10_spill] sm:$0xff] }
 0x446   : > { %v11131_v24 = vpop.f32.mrf.mxu0 }
 0x447   : > { %v3547_v42 = vpop.f32.mrf.mxu1  ;;  %10962 = vmatmul.mubr.msk.bf16.gmra.mxu1 %vm2877_vm1, %v17906_v59  ;;  %v17912_v24 = vld [vmem:[#allocation79_spill] sm:$0xff] }
 0x448   : > { %v14321_v16 = vadd.f32 %v3547_v42, %v3344_v32  ;;  %v14323_v47 = vpop.f32.mrf.mxu0  ;;  %10965 = vmatprep.mubr.msk.bf16.mxu1 %vm12774_vm0, %v17769_v52  ;;  %v3352_v42 = vadd.f32 %v13947_v0, %v17912_v24  ;;  %v17918_v24 = vld [vmem:[#allocation11_spill] sm:$0xff] }
 0x449   : > { %17907 = vst [vmem:[#allocation4_spill] sm:$0xff] %v14323_v47  ;;  %v10859_v26 = vpop.f32.mrf.mxu1  ;;  %v17913_v47 = vld [vmem:[#allocation43_spill] sm:$0xff] }
 0x44a   : > { %v11132_v63 = vpop.f32.mrf.mxu0 }
 0x44b   : > { %v3550_v62 = vpop.f32.mrf.mxu1 }
 0x44c   : > { %v14329_v7 = vadd.f32 %v3550_v62, %v3347_v44  ;;  %v14331_v34 = vpop.f32.mrf.mxu0  ;;  %11314 = vmatmul.mubr.msk.bf16.gmra.mxu0 %vm2877_vm1, %v17911_v2  ;;  %v17915_v44 = vld [vmem:[#allocation80_spill] sm:$0xff] }
 0x44d   : > { %17910 = vst [vmem:[#allocation62_spill] sm:$0xff] %v14331_v34  ;;  %v10860_v32 = vpop.f32.mrf.mxu1  ;;  %11317 = vmatprep.mubr.msk.bf16.mxu0 %vm12774_vm0, %v17769_v52  ;;  %v3355_v60 = vadd.f32 %v13954_v51, %v17915_v44 }
 0x44e   : > { %17909 = vst [vmem:[#allocation61_spill] sm:$0xff] %v14329_v7  ;;  %v11135_v59 = vpop.f32.mrf.mxu0 }
 0x44f   : > { %v3555_v26 = vpop.f32.mrf.mxu1  ;;  %10966 = vmatmul.mubr.msk.bf16.gmra.mxu1 %vm2877_vm1, %v17913_v47 }
 0x450   : > { %v14341_v5 = vadd.f32 %v3555_v26, %v3352_v42  ;;  %v14343_v62 = vpop.f32.mrf.mxu0  ;;  %10969 = vmatprep.mubr.msk.bf16.mxu1 %vm12774_vm0, %v17769_v52  ;;  %v17919_v42 = vld [vmem:[#allocation81_spill] sm:$0xff] }
 0x451   : > { %17914 = vst [vmem:[#allocation5_spill] sm:$0xff] %v14343_v62  ;;  %v10863_v63 = vpop.f32.mrf.mxu1  ;;  %v3360_v59 = vadd.f32 %v13963_v31, %v17919_v42  ;;  %v17920_v62 = vld [vmem:[#allocation45_spill] sm:$0xff]  ;;  %v17925_v42 = vld [vmem:[#allocation12_spill] sm:$0xff] }
 0x452   : > { %v11136_v32 = vpop.f32.mrf.mxu0 }
 0x453   : > { %v3558_v34 = vpop.f32.mrf.mxu1 }
 0x454   : > { %v14349_v7 = vadd.f32 %v3558_v34, %v3355_v60  ;;  %v14351_v0 = vpop.f32.mrf.mxu0  ;;  %11318 = vmatmul.mubr.msk.bf16.gmra.mxu0 %vm2877_vm1, %v17918_v24  ;;  %v17922_v60 = vld [vmem:[#allocation82_spill] sm:$0xff] }
 0x455   : > { %17917 = vst [vmem:[#allocation65_spill] sm:$0xff] %v14351_v0  ;;  %v10864_v47 = vpop.f32.mrf.mxu1  ;;  %11321 = vmatprep.mubr.msk.bf16.mxu0 %vm12774_vm0, %v17769_v52  ;;  %v3363_v32 = vadd.f32 %v13970_v4, %v17922_v60 }
 0x456   : > { %17916 = vst [vmem:[#allocation64_spill] sm:$0xff] %v14349_v7  ;;  %v11139_v26 = vpop.f32.mrf.mxu0 }
 0x457   : > { %v3563_v63 = vpop.f32.mrf.mxu1  ;;  %10970 = vmatmul.mubr.msk.bf16.gmra.mxu1 %vm2877_vm1, %v17920_v62 }
 0x458   : > { %v14361_v51 = vadd.f32 %v3563_v63, %v3360_v59  ;;  %v14363_v34 = vpop.f32.mrf.mxu0  ;;  %10973 = vmatprep.mubr.msk.bf16.mxu1 %vm12774_vm0, %v17769_v52  ;;  %v17926_v59 = vld [vmem:[#allocation84_spill] sm:$0xff] }
 0x459   : > { %17921 = vst [vmem:[#allocation6_spill] sm:$0xff] %v14363_v34  ;;  %v10867_v44 = vpop.f32.mrf.mxu1  ;;  %v3368_v26 = vadd.f32 %v13979_v57, %v17926_v59  ;;  %v17927_v34 = vld [vmem:[#allocation48_spill] sm:$0xff]  ;;  %v17931_v59 = vld [vmem:[#allocation13_spill] sm:$0xff] }
 0x45a   : > { %v11140_v47 = vpop.f32.mrf.mxu0 }
 0x45b   : > { %v3566_v0 = vpop.f32.mrf.mxu1 }
 0x45c   : > { %v14369_v7 = vadd.f32 %v3566_v0, %v3363_v32  ;;  %v14371_v31 = vpop.f32.mrf.mxu0  ;;  %11322 = vmatmul.mubr.msk.bf16.gmra.mxu0 %vm2877_vm1, %v17925_v42  ;;  %v17929_v32 = vld [vmem:[#allocation85_spill] sm:$0xff] }
 0x45d   : > { %17924 = vst [vmem:[#allocation68_spill] sm:$0xff] %v14371_v31  ;;  %v10868_v62 = vpop.f32.mrf.mxu1  ;;  %11325 = vmatprep.mubr.msk.bf16.mxu0 %vm12774_vm0, %v17769_v52  ;;  %v3371_v47 = vadd.f32 %v13986_v49, %v17929_v32 }
 0x45e   : > { %17923 = vst [vmem:[#allocation67_spill] sm:$0xff] %v14369_v7  ;;  %v11143_v63 = vpop.f32.mrf.mxu0 }
 0x45f   : > { %v3571_v44 = vpop.f32.mrf.mxu1  ;;  %10974 = vmatmul.mubr.msk.bf16.gmra.mxu1 %vm2877_vm1, %v17927_v34 }
 0x460   : > { %v14381_v4 = vadd.f32 %v3571_v44, %v3368_v26  ;;  %v14383_v0 = vpop.f32.mrf.mxu0  ;;  %10977 = vmatprep.mubr.msk.bf16.mxu1 %vm12774_vm0, %v17769_v52  ;;  %v17932_v44 = vld [vmem:[#allocation51_spill] sm:$0xff] }
 0x461   : > { %17928 = vst [vmem:[#allocation7_spill] sm:$0xff] %v14383_v0  ;;  %v10871_v60 = vpop.f32.mrf.mxu1 }
 0x462   : > { %v11144_v62 = vpop.f32.mrf.mxu0 }
 0x463   : > { %v3574_v31 = vpop.f32.mrf.mxu1 }
 0x464   : > { %v14389_v7 = vadd.f32 %v3574_v31, %v3371_v47  ;;  %v14391_v57 = vpop.f32.mrf.mxu0  ;;  %11326 = vmatmul.mubr.msk.bf16.gmra.mxu0 %vm2877_vm1, %v17931_v59 }
 0x465   : > { %17930 = vst [vmem:[#allocation70_spill] sm:$0xff] %v14391_v57  ;;  %v10872_v34 = vpop.f32.mrf.mxu1  ;;  %11329 = vmatprep.mubr.msk.bf16.mxu0 %vm12774_vm0, %v17769_v52 }
 0x466   : > { %v11147_v26 = vpop.f32.mrf.mxu0 }
 0x467   : > { %v3669_v63 = vpop.f32.mrf.mxu1  ;;  %10978 = vmatmul.mubr.msk.bf16.gmra.mxu1 %vm2877_vm1, %v17932_v44  ;;  %v17935_v26 = vld [vmem:[#allocation14_spill] sm:$0xff] }
 0x468   : > { %v14400_v49 = vadd.f32 %v3669_v63, %v13999_v40  ;;  %v14402_v60 = vpop.f32.mrf.mxu0  ;;  %10981 = vmatprep.mubr.msk.bf16.mxu1 %vm12774_vm0, %v17769_v52 }
 0x469   : > { %17933 = vst [vmem:[#allocation71_spill] sm:$0xff] %v14402_v60  ;;  %v10879_v31 = vpop.f32.mrf.mxu1  ;;  %v17936_v60 = vld [vmem:[#allocation54_spill] sm:$0xff] }
 0x46a   : > { %v11148_v32 = vpop.f32.mrf.mxu0 }
 0x46b   : > { %v3672_v47 = vpop.f32.mrf.mxu1 }
 0x46c   : > { %v14407_v62 = vadd.f32 %v3672_v47, %v14006_v8  ;;  %v14409_v34 = vpop.f32.mrf.mxu0  ;;  %11330 = vmatmul.mubr.msk.bf16.gmra.mxu0 %vm2877_vm1, %v17935_v26 }
 0x46d   : > { %17934 = vst [vmem:[#allocation8_spill] sm:$0xff] %v14409_v34  ;;  %v10880_v57 = vpop.f32.mrf.mxu1  ;;  %11333 = vmatprep.mubr.msk.bf16.mxu0 %vm12774_vm0, %v17769_v52 }
 0x46e   : > { %v11151_v40 = vpop.f32.mrf.mxu0 }
 0x46f   : > { %v3677_v63 = vpop.f32.mrf.mxu1  ;;  %10982 = vmatmul.mubr.msk.bf16.gmra.mxu1 %vm2877_vm1, %v17936_v60  ;;  %v17939_v40 = vld [vmem:[#allocation15_spill] sm:$0xff] }
 0x470   : > { %v14418_v31 = vadd.f32 %v3677_v63, %v14019_v15  ;;  %v14420_v32 = vpop.f32.mrf.mxu0  ;;  %10985 = vmatprep.mubr.msk.bf16.mxu1 %vm12774_vm0, %v17769_v52 }
 0x471   : > { %17937 = vst [vmem:[#allocation72_spill] sm:$0xff] %v14420_v32  ;;  %v10883_v8 = vpop.f32.mrf.mxu1  ;;  %v17940_v32 = vld [vmem:[#allocation57_spill] sm:$0xff] }
 0x472   : > { %v11152_v47 = vpop.f32.mrf.mxu0 }
 0x473   : > { %v3680_v34 = vpop.f32.mrf.mxu1 }
 0x474   : > { %v14425_v57 = vadd.f32 %v3680_v34, %v14026_v61  ;;  %v14427_v0 = vpop.f32.mrf.mxu0  ;;  %11334 = vmatmul.mubr.msk.bf16.gmra.mxu0 %vm2877_vm1, %v17939_v40 }
 0x475   : > { %17938 = vst [vmem:[#allocation73_spill] sm:$0xff] %v14427_v0  ;;  %v10884_v60 = vpop.f32.mrf.mxu1  ;;  %11337 = vmatprep.mubr.msk.bf16.mxu0 %vm12774_vm0, %v17769_v52 }
 0x476   : > { %v11155_v15 = vpop.f32.mrf.mxu0 }
 0x477   : > { %v3685_v63 = vpop.f32.mrf.mxu1  ;;  %10986 = vmatmul.mubr.msk.bf16.gmra.mxu1 %vm2877_vm1, %v17940_v32  ;;  %v17944_v15 = vld [vmem:[#allocation16_spill] sm:$0xff] }
 0x478   : > { %v14436_v8 = vadd.f32 %v3685_v63, %v14039_v36  ;;  %v14438_v47 = vpop.f32.mrf.mxu0  ;;  %10989 = vmatprep.mubr.msk.bf16.mxu1 %vm12774_vm0, %v17769_v52 }
 0x479   : > { %17941 = vst [vmem:[#allocation75_spill] sm:$0xff] %v14438_v47  ;;  %v10887_v61 = vpop.f32.mrf.mxu1  ;;  %v17945_v47 = vld [vmem:[#allocation60_spill] sm:$0xff] }
 0x47a   : > { %v11156_v34 = vpop.f32.mrf.mxu0 }
 0x47b   : > { %v3688_v0 = vpop.f32.mrf.mxu1 }
 0x47c   : > { %v14443_v60 = vadd.f32 %v3688_v0, %v14046_v50  ;;  %v14445_v44 = vpop.f32.mrf.mxu0  ;;  %11338 = vmatmul.mubr.msk.bf16.gmra.mxu0 %vm2877_vm1, %v17944_v15 }
 0x47d   : > { %17943 = vst [vmem:[#allocation76_spill] sm:$0xff] %v14445_v44  ;;  %v10888_v32 = vpop.f32.mrf.mxu1  ;;  %11341 = vmatprep.mubr.msk.bf16.mxu0 %vm12774_vm0, %v17769_v52 }
 0x47e   : > { %17942 = vst [vmem:[#allocation41_spill] sm:$0xff] %v14443_v60  ;;  %v11159_v36 = vpop.f32.mrf.mxu0 }
 0x47f   : > { %v3693_v63 = vpop.f32.mrf.mxu1  ;;  %10990 = vmatmul.mubr.msk.bf16.gmra.mxu1 %vm2877_vm1, %v17945_v47  ;;  %v17949_v36 = vld [vmem:[#allocation17_spill] sm:$0xff] }
 0x480   : > { %v14454_v61 = vadd.f32 %v3693_v63, %v14059_v18  ;;  %v14456_v34 = vpop.f32.mrf.mxu0  ;;  %10993 = vmatprep.mubr.msk.bf16.mxu1 %vm12774_vm0, %v17769_v52 }
 0x481   : > { %17946 = vst [vmem:[#allocation9_spill] sm:$0xff] %v14456_v34  ;;  %v10891_v50 = vpop.f32.mrf.mxu1  ;;  %v17950_v34 = vld [vmem:[#allocation63_spill] sm:$0xff] }
 0x482   : > { %v11160_v0 = vpop.f32.mrf.mxu0 }
 0x483   : > { %v3696_v44 = vpop.f32.mrf.mxu1 }
 0x484   : > { %v14461_v32 = vadd.f32 %v3696_v44, %v14066_v41  ;;  %v14463_v60 = vpop.f32.mrf.mxu0  ;;  %11342 = vmatmul.mubr.msk.bf16.gmra.mxu0 %vm2877_vm1, %v17949_v36 }
 0x485   : > { %17948 = vst [vmem:[#allocation42_spill] sm:$0xff] %v14463_v60  ;;  %v10892_v47 = vpop.f32.mrf.mxu1  ;;  %11345 = vmatprep.mubr.msk.bf16.mxu0 %vm12774_vm0, %v17769_v52 }
 0x486   : > { %17947 = vst [vmem:[#allocation77_spill] sm:$0xff] %v14461_v32  ;;  %v11163_v18 = vpop.f32.mrf.mxu0 }
 0x487   : > { %v3701_v63 = vpop.f32.mrf.mxu1  ;;  %10994 = vmatmul.mubr.msk.bf16.gmra.mxu1 %vm2877_vm1, %v17950_v34  ;;  %v17954_v18 = vld [vmem:[#allocation18_spill] sm:$0xff] }
 0x488   : > { %v14472_v50 = vadd.f32 %v3701_v63, %v14079_v33  ;;  %v14474_v0 = vpop.f32.mrf.mxu0  ;;  %10997 = vmatprep.mubr.msk.bf16.mxu1 %vm12774_vm0, %v17769_v52 }
 0x489   : > { %17951 = vst [vmem:[#allocation78_spill] sm:$0xff] %v14474_v0  ;;  %v10895_v41 = vpop.f32.mrf.mxu1  ;;  %v17955_v0 = vld [vmem:[#allocation66_spill] sm:$0xff] }
 0x48a   : > { %v11164_v44 = vpop.f32.mrf.mxu0 }
 0x48b   : > { %v3704_v60 = vpop.f32.mrf.mxu1 }
 0x48c   : > { %v14479_v47 = vadd.f32 %v3704_v60, %v14086_v27  ;;  %v14481_v32 = vpop.f32.mrf.mxu0  ;;  %11346 = vmatmul.mubr.msk.bf16.gmra.mxu0 %vm2877_vm1, %v17954_v18 }
 0x48d   : > { %17953 = vst [vmem:[#allocation79_spill] sm:$0xff] %v14481_v32  ;;  %v10896_v34 = vpop.f32.mrf.mxu1  ;;  %11349 = vmatprep.mubr.msk.bf16.mxu0 %vm12774_vm0, %v17769_v52 }
 0x48e   : > { %17952 = vst [vmem:[#allocation10_spill] sm:$0xff] %v14479_v47  ;;  %v11167_v33 = vpop.f32.mrf.mxu0 }
 0x48f   : > { %v3709_v63 = vpop.f32.mrf.mxu1  ;;  %10998 = vmatmul.mubr.msk.bf16.gmra.mxu1 %vm2877_vm1, %v17955_v0  ;;  %v17959_v33 = vld [vmem:[#allocation19_spill] sm:$0xff] }
 0x490   : > { %v14490_v41 = vadd.f32 %v3709_v63, %v14104_v12  ;;  %v14492_v44 = vpop.f32.mrf.mxu0  ;;  %11001 = vmatprep.mubr.msk.bf16.mxu1 %vm12774_vm0, %v17769_v52 }
 0x491   : > { %17956 = vst [vmem:[#allocation43_spill] sm:$0xff] %v14492_v44  ;;  %v10899_v27 = vpop.f32.mrf.mxu1  ;;  %v17960_v44 = vld [vmem:[#allocation69_spill] sm:$0xff] }
 0x492   : > { %v11168_v60 = vpop.f32.mrf.mxu0 }
 0x493   : > { %v3712_v32 = vpop.f32.mrf.mxu1 }
 0x494   : > { %v14497_v34 = vadd.f32 %v3712_v32, %v14111_v22  ;;  %v14499_v47 = vpop.f32.mrf.mxu0  ;;  %11350 = vmatmul.mubr.msk.bf16.gmra.mxu0 %vm2877_vm1, %v17959_v33 }
 0x495   : > { %17958 = vst [vmem:[#allocation11_spill] sm:$0xff] %v14499_v47  ;;  %v10900_v0 = vpop.f32.mrf.mxu1  ;;  %11437 = vmatprep.mubr.msk.bf16.mxu0 %vm12774_vm0, %v17769_v52 }
 0x496   : > { %17957 = vst [vmem:[#allocation80_spill] sm:$0xff] %v14497_v34  ;;  %v11171_v12 = vpop.f32.mrf.mxu0 }
 0x497   : > { %v3717_v63 = vpop.f32.mrf.mxu1  ;;  %11002 = vmatmul.mubr.msk.bf16.gmra.mxu1 %vm2877_vm1, %v17960_v44 }
 0x498   : > { %v14508_v27 = vadd.f32 %v3717_v63, %v14124_v14  ;;  %v14510_v60 = vpop.f32.mrf.mxu0  ;;  %11005 = vmatprep.mubr.msk.bf16.mxu1 %vm12774_vm0, %v17769_v52 }
 0x499   : > { %17961 = vst [vmem:[#allocation81_spill] sm:$0xff] %v14510_v60  ;;  %v10903_v22 = vpop.f32.mrf.mxu1 }
 0x49a   : > { %v11172_v32 = vpop.f32.mrf.mxu0 }
 0x49b   : > { %v3720_v47 = vpop.f32.mrf.mxu1 }
 0x49c   : > { %v14515_v0 = vadd.f32 %v3720_v47, %v14131_v1  ;;  %v14517_v34 = vpop.f32.mrf.mxu0  ;;  %11438 = vmatmul.mubr.msk.bf16.vlgmr.msra.gmra.mxu0 %vm2877_vm1, %v17865_v28 }
 0x49d   : > { %17962 = vst [vmem:[#allocation45_spill] sm:$0xff] %v14517_v34  ;;  %v10904_v12 = vpop.f32.mrf.mxu1  ;;  %11441 = vmatprep.mubr.msk.bf16.mxu0 %vm12774_vm0, %v17769_v52 }
 0x49e   : > { %v11175_v14 = vpop.f32.mrf.mxu0 }
 0x49f   : > { %v3725_v63 = vpop.f32.mrf.mxu1  ;;  %11006 = vmatmul.mubr.msk.bf16.gmra.mxu1 %vm2877_vm1, %v13586_v9 }
 0x4a0   : > { %v14526_v22 = vadd.f32 %v3725_v63, %v14144_v55  ;;  %v14528_v32 = vpop.f32.mrf.mxu0  ;;  %11009 = vmatprep.mubr.msk.bf16.mxu1 %vm12774_vm0, %v17769_v52 }
 0x4a1   : > { %17963 = vst [vmem:[#allocation82_spill] sm:$0xff] %v14528_v32  ;;  %v10907_v1 = vpop.f32.mrf.mxu1  ;;  %v17965_v32 = vld [vmem:[#allocation74_spill] sm:$0xff] }
 0x4a2   : > { %v11176_v47 = vpop.f32.mrf.mxu0 }
 0x4a3   : > { %v3728_v28 = vpop.f32.mrf.mxu1 }
 0x4a4   : > { %v14533_v12 = vadd.f32 %v3728_v28, %v14151_v37  ;;  %v14535_v34 = vpop.f32.mrf.mxu0  ;;  %11442 = vmatmul.mubr.msk.bf16.gmra.mxu0 %vm2877_vm1, %v17870_v25 }
 0x4a5   : > { %17964 = vst [vmem:[#allocation12_spill] sm:$0xff] %v14535_v34  ;;  %v10908_v14 = vpop.f32.mrf.mxu1  ;;  %11445 = vmatprep.mubr.msk.bf16.mxu0 %vm12774_vm0, %v17769_v52 }
 0x4a6   : > { %v11179_v55 = vpop.f32.mrf.mxu0  ;;  %v12585_v14 = vld [vmem:[%s17589_s3 + $0xc8] sm:$0xff]  }
 0x4a7   : > { %v3733_v63 = vpop.f32.mrf.mxu1  ;;  %11010 = vmatmul.mubr.msk.bf16.gmra.mxu1 %vm2877_vm1, %v17965_v32  ;;  %11594 = vmatpush3.bf16.msra.mxu0 %v12585_v14 }
 0x4a8   : > { %v14544_v1 = vadd.f32 %v3733_v63, %v14164_v43  ;;  %v14546_v47 = vpop.f32.mrf.mxu0  ;;  %11013 = vmatprep.mubr.msk.bf16.mxu1 %vm12774_vm0, %v17769_v52  ;;  %11595 = vmatprep.subr.bf16.mxu0 %v17769_v52 }
 0x4a9   : > { %17966 = vst [vmem:[#allocation84_spill] sm:$0xff] %v14546_v47  ;;  %v10911_v37 = vpop.f32.mrf.mxu1 }
 0x4aa   : > { %v11180_v28 = vpop.f32.mrf.mxu0 }
 0x4ab   : > { %v3736_v25 = vpop.f32.mrf.mxu1 }
 0x4ac   : > { %v14554_v55 = vadd.f32 %v3736_v25, %v14174_v46  ;;  %v14556_v34 = vpop.f32.mrf.mxu0  ;;  %11446 = vmatmul.mubr.msk.bf16.gmra.mxu0 %vm2877_vm1, %v17875_v17  ;;  %v12586_v46 = vld [vmem:[%s17589_s3 + $0xc0] sm:$0xff]  }
 0x4ad   : > { %17967 = vst [vmem:[#allocation48_spill] sm:$0xff] %v14556_v34  ;;  %v10912_v43 = vpop.f32.mrf.mxu1  ;;  %11449 = vmatprep.mubr.msk.bf16.mxu0 %vm12774_vm0, %v17769_v52  ;;  %11596 = vmatpush3.bf16.msra.mxu0 %v12586_v46 }
 0x4ae   : > { %v11183_v63 = vpop.f32.mrf.mxu0  ;;  %11753 = vmatprep.subr.bf16.mxu0 %v17769_v52 }
 0x4af   : > { %v3741_v37 = vpop.f32.mrf.mxu1  ;;  %11014 = vmatmul.mubr.msk.bf16.gmra.mxu1 %vm2877_vm1, %v13621_v45 }
 0x4b0   : > { %v14569_v28 = vadd.f32 %v3741_v37, %v14191_v53  ;;  %v14571_v17 = vpop.f32.mrf.mxu0  ;;  %11017 = vmatprep.mubr.msk.bf16.mxu1 %vm12774_vm0, %v17769_v52 }
 0x4b1   : > { %17968 = vst [vmem:[#allocation85_spill] sm:$0xff] %v14571_v17  ;;  %v10915_v25 = vpop.f32.mrf.mxu1 }
 0x4b2   : > { %v11184_v14 = vpop.f32.mrf.mxu0 }
 0x4b3   : > { %v3744_v43 = vpop.f32.mrf.mxu1 }
 0x4b4   : > { %v14577_v63 = vadd.f32 %v3744_v43, %v14199_v54  ;;  %v14579_v34 = vpop.f32.mrf.mxu0  ;;  %11450 = vmatmul.mubr.msk.bf16.gmra.mxu0 %vm2877_vm1, %v17880_v10 }
 0x4b5   : > { %17969 = vst [vmem:[#allocation13_spill] sm:$0xff] %v14579_v34  ;;  %v10916_v53 = vpop.f32.mrf.mxu1  ;;  %11453 = vmatprep.mubr.msk.bf16.mxu0 %vm12774_vm0, %v17769_v52 }
 0x4b6   : > { %v11187_v37 = vpop.f32.mrf.mxu0 }
 0x4b7   : > { %v3749_v17 = vpop.f32.mrf.mxu1  ;;  %11018 = vmatmul.mubr.msk.bf16.gmra.mxu1 %vm2877_vm1, %v13641_v29 }
 0x4b8   : > { %v14588_v46 = vadd.f32 %v3749_v17, %v14212_v58  ;;  %v14590_v25 = vpop.f32.mrf.mxu0  ;;  %11021 = vmatprep.mubr.msk.bf16.mxu1 %vm12774_vm0, %v17769_v52 }
 0x4b9   : > { %17970 = vst [vmem:[#allocation14_spill] sm:$0xff] %v14590_v25  ;;  %v10919_v54 = vpop.f32.mrf.mxu1 }
 0x4ba   : > { %v11188_v14 = vpop.f32.mrf.mxu0 }
 0x4bb   : > { %v3752_v10 = vpop.f32.mrf.mxu1 }
 0x4bc   : > { %v14595_v43 = vadd.f32 %v3752_v10, %v14219_v13  ;;  %v14597_v53 = vpop.f32.mrf.mxu0  ;;  %11454 = vmatmul.mubr.msk.bf16.gmra.mxu0 %vm2877_vm1, %v17886_v3 }
 0x4bd   : > { %17971 = vst [vmem:[#allocation15_spill] sm:$0xff] %v14597_v53  ;;  %v10920_v37 = vpop.f32.mrf.mxu1  ;;  %11457 = vmatprep.mubr.msk.bf16.mxu0 %vm12774_vm0, %v17769_v52 }
 0x4be   : > { %v11191_v58 = vpop.f32.mrf.mxu0 }
 0x4bf   : > { %v3757_v17 = vpop.f32.mrf.mxu1  ;;  %11022 = vmatmul.mubr.msk.bf16.gmra.mxu1 %vm2877_vm1, %v13655_v39 }
 0x4c0   : > { %v14606_v54 = vadd.f32 %v3757_v17, %v14232_v30  ;;  %v14608_v14 = vpop.f32.mrf.mxu0  ;;  %11025 = vmatprep.mubr.msk.bf16.mxu1 %vm12774_vm0, %v17769_v52 }
 0x4c1   : > { %17972 = vst [vmem:[#allocation16_spill] sm:$0xff] %v14608_v14  ;;  %v10923_v13 = vpop.f32.mrf.mxu1  ;;  %v17974_v14 = vld [vmem:[#allocation83_spill] sm:$0xff] }
 0x4c2   : > { %v11192_v10 = vpop.f32.mrf.mxu0 }
 0x4c3   : > { %v3760_v3 = vpop.f32.mrf.mxu1 }
 0x4c4   : > { %v14613_v37 = vadd.f32 %v3760_v3, %v14239_v11  ;;  %v14615_v53 = vpop.f32.mrf.mxu0  ;;  %11458 = vmatmul.mubr.msk.bf16.gmra.mxu0 %vm2877_vm1, %v17893_v56 }
 0x4c5   : > { %17973 = vst [vmem:[#allocation17_spill] sm:$0xff] %v14615_v53  ;;  %v10924_v58 = vpop.f32.mrf.mxu1  ;;  %11461 = vmatprep.mubr.msk.bf16.mxu0 %vm12774_vm0, %v17769_v52 }
 0x4c6   : > { %v11279_v30 = vpop.f32.mrf.mxu0 }
 0x4c7   : > { %v3765_v17 = vpop.f32.mrf.mxu1  ;;  %11026 = vmatmul.mubr.msk.bf16.gmra.mxu1 %vm2877_vm1, %v17974_v14 }
 0x4c8   : > { %v14624_v13 = vadd.f32 %v3765_v17, %v14253_v48  ;;  %v14626_v10 = vpop.f32.mrf.mxu0  ;;  %11029 = vmatprep.mubr.msk.bf16.mxu1 %vm12774_vm0, %v17769_v52 }
 0x4c9   : > { %17975 = vst [vmem:[#allocation18_spill] sm:$0xff] %v14626_v10  ;;  %v10927_v11 = vpop.f32.mrf.mxu1  ;;  %v17977_v10 = vld [vmem:[#allocation86_spill] sm:$0xff] }
 0x4ca   : > { %v11280_v3 = vpop.f32.mrf.mxu0 }
 0x4cb   : > { %v3768_v56 = vpop.f32.mrf.mxu1 }
 0x4cc   : > { %v14631_v58 = vadd.f32 %v3768_v56, %v14261_v21  ;;  %v14633_v53 = vpop.f32.mrf.mxu0  ;;  %11462 = vmatmul.mubr.msk.bf16.gmra.mxu0 %vm2877_vm1, %v13060_v38 }
 0x4cd   : > { %17976 = vst [vmem:[#allocation19_spill] sm:$0xff] %v14633_v53  ;;  %v10928_v30 = vpop.f32.mrf.mxu1  ;;  %11465 = vmatprep.mubr.msk.bf16.mxu0 %vm12774_vm0, %v17769_v52 }
 0x4ce   : > { %v11283_v48 = vpop.f32.mrf.mxu0 }
 0x4cf   : > { %v3773_v17 = vpop.f32.mrf.mxu1  ;;  %11030 = vmatmul.mubr.msk.bf16.gmra.mxu1 %vm2877_vm1, %v17977_v10 }
 0x4d0   : > { %v14642_v11 = vadd.f32 %v3773_v17, %v14273_v19  ;;  %v14644_v3 = vpop.f32.mrf.mxu0  ;;  %11037 = vmatprep.mubr.msk.bf16.mxu1 %vm12774_vm0, %v17769_v52  ;;  %v12583_v19 = vld [vmem:[%s17589_s3 + $0x78] sm:$0xff]  }
 0x4d1   : > { %17978 = vst [vmem:[#allocation69_spill] sm:$0xff] %v14644_v3  ;;  %v10931_v21 = vpop.f32.mrf.mxu1 }
 0x4d2   : > { %v11284_v56 = vpop.f32.mrf.mxu0 }
 0x4d3   : > { %v3776_v38 = vpop.f32.mrf.mxu1  ;;  %v17980_v56 = vld [vmem:[#allocation96_spill] sm:$0xff] }
 0x4d4   : > { %v14649_v30 = vadd.f32 %v3776_v38, %v14281_v20  ;;  %v14651_v53 = vpop.f32.mrf.mxu0  ;;  %11466 = vmatmul.mubr.msk.bf16.gmra.mxu0 %vm2877_vm1, %v17904_v23  ;;  %v12584_v23 = vld [vmem:[%s17589_s3 + $0x70] sm:$0xff]  }
 0x4d5   : > { %17979 = vst [vmem:[#allocation74_spill] sm:$0xff] %v14651_v53  ;;  %v10932_v48 = vpop.f32.mrf.mxu1  ;;  %11469 = vmatprep.mubr.msk.bf16.mxu0 %vm12774_vm0, %v17769_v52 }
 0x4d6   : > { %v11287_v17 = vpop.f32.mrf.mxu0 }
 0x4d7   : > { %v3781_v21 = vpop.f32.mrf.mxu1  ;;  %11038 = vmatmul.mubr.msk.bf16.vlgmr.msra.gmra.mxu1 %vm2877_vm1, %v17980_v56 }
 0x4d8   : > { %v14663_v20 = vadd.f32 %v3781_v21, %v14296_v6  ;;  %11194 = vmatpush3.bf16.msra.mxu1 %v12583_v19  ;;  %v14665_v38 = vpop.f32.mrf.mxu0  ;;  %11041 = vmatprep.mubr.msk.bf16.mxu1 %vm12774_vm0, %v17769_v52 }
 0x4d9   : > { %17981 = vst [vmem:[#allocation83_spill] sm:$0xff] %v14665_v38  ;;  %v10935_v48 = vpop.f32.mrf.mxu1  ;;  %11195 = vmatprep.subr.bf16.mxu1 %v17769_v52  ;;  %v17983_v38 = vld [vmem:[#allocation97_spill] sm:$0xff] }
 0x4da   : > { %v11288_v17 = vpop.f32.mrf.mxu0 }
 0x4db   : > { %v3784_v53 = vpop.f32.mrf.mxu1 }
 0x4dc   : > { %v14674_v56 = vadd.f32 %v3784_v53, %v14308_v35  ;;  %v14676_v6 = vpop.f32.mrf.mxu0  ;;  %11470 = vmatmul.mubr.msk.bf16.gmra.mxu0 %vm2877_vm1, %v17911_v2  ;;  %11196 = vmatpush3.bf16.msra.mxu1 %v12584_v23 }
 0x4dd   : > { %17982 = vst [vmem:[#allocation86_spill] sm:$0xff] %v14676_v6  ;;  %v10936_v19 = vpop.f32.mrf.mxu1  ;;  %11473 = vmatprep.mubr.msk.bf16.mxu0 %vm12774_vm0, %v17769_v52  ;;  %11353 = vmatprep.subr.bf16.mxu1 %v17769_v52 }
 0x4de   : > { %v11291_v21 = vpop.f32.mrf.mxu0  ;;  %v17985_v19 = vld [vmem:[#allocation61_spill] sm:$0xff] }
 0x4df   : > { %v3789_v48 = vpop.f32.mrf.mxu1  ;;  %11042 = vmatmul.mubr.msk.bf16.gmra.mxu1 %vm2877_vm1, %v17983_v38 }
 0x4e0   : > { %v14686_v35 = vadd.f32 %v3789_v48, %v14321_v16  ;;  %v14688_v53 = vpop.f32.mrf.mxu0  ;;  %11045 = vmatprep.mubr.msk.bf16.mxu1 %vm12774_vm0, %v17769_v52 }
 0x4e1   : > { %17984 = vst [vmem:[#allocation96_spill] sm:$0xff] %v14688_v53  ;;  %v10939_v2 = vpop.f32.mrf.mxu1  ;;  %v17987_v53 = vld [vmem:[#allocation98_spill] sm:$0xff] }
 0x4e2   : > { %v11292_v23 = vpop.f32.mrf.mxu0 }
 0x4e3   : > { %v3792_v17 = vpop.f32.mrf.mxu1 }
 0x4e4   : > { %v14693_v6 = vadd.f32 %v3792_v17, %v17985_v19  ;;  %v14695_v3 = vpop.f32.mrf.mxu0  ;;  %11474 = vmatmul.mubr.msk.bf16.gmra.mxu0 %vm2877_vm1, %v17918_v24 }
 0x4e5   : > { %17986 = vst [vmem:[#allocation97_spill] sm:$0xff] %v14695_v3  ;;  %v10940_v21 = vpop.f32.mrf.mxu1  ;;  %11477 = vmatprep.mubr.msk.bf16.mxu0 %vm12774_vm0, %v17769_v52 }
 0x4e6   : > { %v11295_v16 = vpop.f32.mrf.mxu0  ;;  %v17989_v21 = vld [vmem:[#allocation64_spill] sm:$0xff] }
 0x4e7   : > { %v3797_v48 = vpop.f32.mrf.mxu1  ;;  %11046 = vmatmul.mubr.msk.bf16.gmra.mxu1 %vm2877_vm1, %v17987_v53 }
 0x4e8   : > { %v14704_v2 = vadd.f32 %v3797_v48, %v14341_v5  ;;  %v14706_v23 = vpop.f32.mrf.mxu0  ;;  %11049 = vmatprep.mubr.msk.bf16.mxu1 %vm12774_vm0, %v17769_v52 }
 0x4e9   : > { %17988 = vst [vmem:[#allocation61_spill] sm:$0xff] %v14706_v23  ;;  %v10943_v17 = vpop.f32.mrf.mxu1  ;;  %v17991_v23 = vld [vmem:[#allocation99_spill] sm:$0xff] }
 0x4ea   : > { %v11296_v19 = vpop.f32.mrf.mxu0 }
 0x4eb   : > { %v3800_v24 = vpop.f32.mrf.mxu1 }
 0x4ec   : > { %v14711_v3 = vadd.f32 %v3800_v24, %v17989_v21  ;;  %v14713_v25 = vpop.f32.mrf.mxu0  ;;  %11478 = vmatmul.mubr.msk.bf16.gmra.mxu0 %vm2877_vm1, %v17925_v42 }
 0x4ed   : > { %17990 = vst [vmem:[#allocation98_spill] sm:$0xff] %v14713_v25  ;;  %v10944_v16 = vpop.f32.mrf.mxu1  ;;  %11481 = vmatprep.mubr.msk.bf16.mxu0 %vm12774_vm0, %v17769_v52 }
 0x4ee   : > { %v11299_v5 = vpop.f32.mrf.mxu0  ;;  %v17993_v16 = vld [vmem:[#allocation67_spill] sm:$0xff] }
 0x4ef   : > { %v3805_v48 = vpop.f32.mrf.mxu1  ;;  %11050 = vmatmul.mubr.msk.bf16.gmra.mxu1 %vm2877_vm1, %v17991_v23 }
 0x4f0   : > { %v14722_v17 = vadd.f32 %v3805_v48, %v14361_v51  ;;  %v14724_v19 = vpop.f32.mrf.mxu0  ;;  %11053 = vmatprep.mubr.msk.bf16.mxu1 %vm12774_vm0, %v17769_v52 }
 0x4f1   : > { %17992 = vst [vmem:[#allocation64_spill] sm:$0xff] %v14724_v19  ;;  %v10947_v24 = vpop.f32.mrf.mxu1  ;;  %v17995_v19 = vld [vmem:[#allocation100_spill] sm:$0xff] }
 0x4f2   : > { %v11300_v21 = vpop.f32.mrf.mxu0 }
 0x4f3   : > { %v3808_v42 = vpop.f32.mrf.mxu1 }
 0x4f4   : > { %v14729_v25 = vadd.f32 %v3808_v42, %v17993_v16  ;;  %v14731_v34 = vpop.f32.mrf.mxu0  ;;  %11482 = vmatmul.mubr.msk.bf16.gmra.mxu0 %vm2877_vm1, %v17931_v59 }
 0x4f5   : > { %17994 = vst [vmem:[#allocation99_spill] sm:$0xff] %v14731_v34  ;;  %v10948_v5 = vpop.f32.mrf.mxu1  ;;  %11485 = vmatprep.mubr.msk.bf16.mxu0 %vm12774_vm0, %v17769_v52 }
 0x4f6   : > { %v11303_v51 = vpop.f32.mrf.mxu0 }
 0x4f7   : > { %v3813_v48 = vpop.f32.mrf.mxu1  ;;  %11054 = vmatmul.mubr.msk.bf16.gmra.mxu1 %vm2877_vm1, %v17995_v19 }
 0x4f8   : > { %v14740_v24 = vadd.f32 %v3813_v48, %v14381_v4  ;;  %v14742_v21 = vpop.f32.mrf.mxu0  ;;  %11057 = vmatprep.mubr.msk.bf16.mxu1 %vm12774_vm0, %v17769_v52 }
 0x4f9   : > { %17996 = vst [vmem:[#allocation67_spill] sm:$0xff] %v14742_v21  ;;  %v10951_v42 = vpop.f32.mrf.mxu1  ;;  %v17998_v21 = vld [vmem:[#allocation101_spill] sm:$0xff] }
 0x4fa   : > { %v11304_v16 = vpop.f32.mrf.mxu0 }
 0x4fb   : > { %v3816_v59 = vpop.f32.mrf.mxu1 }
 0x4fc   : > { %v14747_v5 = vadd.f32 %v3816_v59, %v14389_v7  ;;  %v14749_v34 = vpop.f32.mrf.mxu0  ;;  %11486 = vmatmul.mubr.msk.bf16.gmra.mxu0 %vm2877_vm1, %v17935_v26 }
 0x4fd   : > { %17997 = vst [vmem:[#allocation100_spill] sm:$0xff] %v14749_v34  ;;  %v10952_v51 = vpop.f32.mrf.mxu1  ;;  %11489 = vmatprep.mubr.msk.bf16.mxu0 %vm12774_vm0, %v17769_v52 }
 0x4fe   : > { %v11307_v4 = vpop.f32.mrf.mxu0 }
 0x4ff   : > { %v3965_v48 = vpop.f32.mrf.mxu1  ;;  %11058 = vmatmul.mubr.msk.bf16.gmra.mxu1 %vm2877_vm1, %v17998_v21 }
 0x500   : > { %v14758_v42 = vadd.f32 %v3965_v48, %v14400_v49  ;;  %v14760_v16 = vpop.f32.mrf.mxu0  ;;  %11061 = vmatprep.mubr.msk.bf16.mxu1 %vm12774_vm0, %v17769_v52 }
 0x501   : > { %17999 = vst [vmem:[#allocation112_spill] sm:$0xff] %v14760_v16  ;;  %v10959_v7 = vpop.f32.mrf.mxu1  ;;  %v18001_v16 = vld [vmem:[#allocation102_spill] sm:$0xff] }
 0x502   : > { %v11308_v59 = vpop.f32.mrf.mxu0 }
 0x503   : > { %v3968_v26 = vpop.f32.mrf.mxu1 }
 0x504   : > { %v14765_v51 = vadd.f32 %v3968_v26, %v14407_v62  ;;  %v14767_v34 = vpop.f32.mrf.mxu0  ;;  %11490 = vmatmul.mubr.msk.bf16.gmra.mxu0 %vm2877_vm1, %v17939_v40 }
 0x505   : > { %18000 = vst [vmem:[#allocation113_spill] sm:$0xff] %v14767_v34  ;;  %v10960_v4 = vpop.f32.mrf.mxu1  ;;  %11493 = vmatprep.mubr.msk.bf16.mxu0 %vm12774_vm0, %v17769_v52 }
 0x506   : > { %v11311_v49 = vpop.f32.mrf.mxu0 }
 0x507   : > { %v3973_v48 = vpop.f32.mrf.mxu1  ;;  %11062 = vmatmul.mubr.msk.bf16.gmra.mxu1 %vm2877_vm1, %v18001_v16 }
 0x508   : > { %v14776_v7 = vadd.f32 %v3973_v48, %v14418_v31  ;;  %v14778_v59 = vpop.f32.mrf.mxu0  ;;  %11065 = vmatprep.mubr.msk.bf16.mxu1 %vm12774_vm0, %v17769_v52 }
 0x509   : > { %18002 = vst [vmem:[#allocation114_spill] sm:$0xff] %v14778_v59  ;;  %v10963_v62 = vpop.f32.mrf.mxu1  ;;  %v18004_v59 = vld [vmem:[#allocation103_spill] sm:$0xff] }
 0x50a   : > { %v11312_v26 = vpop.f32.mrf.mxu0 }
 0x50b   : > { %v3976_v40 = vpop.f32.mrf.mxu1 }
 0x50c   : > { %v14783_v4 = vadd.f32 %v3976_v40, %v14425_v57  ;;  %v14785_v34 = vpop.f32.mrf.mxu0  ;;  %11494 = vmatmul.mubr.msk.bf16.gmra.mxu0 %vm2877_vm1, %v17944_v15 }
 0x50d   : > { %18003 = vst [vmem:[#allocation115_spill] sm:$0xff] %v14785_v34  ;;  %v10964_v49 = vpop.f32.mrf.mxu1  ;;  %11497 = vmatprep.mubr.msk.bf16.mxu0 %vm12774_vm0, %v17769_v52 }
 0x50e   : > { %v11315_v31 = vpop.f32.mrf.mxu0  ;;  %v18006_v49 = vld [vmem:[#allocation41_spill] sm:$0xff] }
 0x50f   : > { %v3981_v48 = vpop.f32.mrf.mxu1  ;;  %11066 = vmatmul.mubr.msk.bf16.gmra.mxu1 %vm2877_vm1, %v18004_v59 }
 0x510   : > { %v14794_v62 = vadd.f32 %v3981_v48, %v14436_v8  ;;  %v14796_v26 = vpop.f32.mrf.mxu0  ;;  %11069 = vmatprep.mubr.msk.bf16.mxu1 %vm12774_vm0, %v17769_v52 }
 0x511   : > { %18005 = vst [vmem:[#allocation116_spill] sm:$0xff] %v14796_v26  ;;  %v10967_v57 = vpop.f32.mrf.mxu1  ;;  %v18008_v26 = vld [vmem:[#allocation104_spill] sm:$0xff] }
 0x512   : > { %v11316_v40 = vpop.f32.mrf.mxu0 }
 0x513   : > { %v3984_v15 = vpop.f32.mrf.mxu1 }
 0x514   : > { %v14801_v34 = vadd.f32 %v3984_v15, %v18006_v49  ;;  %v14803_v47 = vpop.f32.mrf.mxu0  ;;  %11498 = vmatmul.mubr.msk.bf16.gmra.mxu0 %vm2877_vm1, %v17949_v36 }
 0x515   : > { %18007 = vst [vmem:[#allocation41_spill] sm:$0xff] %v14803_v47  ;;  %v10968_v31 = vpop.f32.mrf.mxu1  ;;  %11501 = vmatprep.mubr.msk.bf16.mxu0 %vm12774_vm0, %v17769_v52 }
 0x516   : > { %v11319_v8 = vpop.f32.mrf.mxu0  ;;  %v18010_v31 = vld [vmem:[#allocation77_spill] sm:$0xff] }
 0x517   : > { %v3989_v48 = vpop.f32.mrf.mxu1  ;;  %11070 = vmatmul.mubr.msk.bf16.gmra.mxu1 %vm2877_vm1, %v18008_v26 }
 0x518   : > { %v14812_v57 = vadd.f32 %v3989_v48, %v14454_v61  ;;  %v14814_v40 = vpop.f32.mrf.mxu0  ;;  %11073 = vmatprep.mubr.msk.bf16.mxu1 %vm12774_vm0, %v17769_v52 }
 0x519   : > { %18009 = vst [vmem:[#allocation117_spill] sm:$0xff] %v14814_v40  ;;  %v10971_v15 = vpop.f32.mrf.mxu1  ;;  %v18013_v40 = vld [vmem:[#allocation105_spill] sm:$0xff] }
 0x51a   : > { %v11320_v49 = vpop.f32.mrf.mxu0 }
 0x51b   : > { %v3992_v36 = vpop.f32.mrf.mxu1 }
 0x51c   : > { %v14819_v47 = vadd.f32 %v3992_v36, %v18010_v31  ;;  %v14821_v60 = vpop.f32.mrf.mxu0  ;;  %11502 = vmatmul.mubr.msk.bf16.gmra.mxu0 %vm2877_vm1, %v17954_v18 }
 0x51d   : > { %18012 = vst [vmem:[#allocation118_spill] sm:$0xff] %v14821_v60  ;;  %v10972_v8 = vpop.f32.mrf.mxu1  ;;  %11505 = vmatprep.mubr.msk.bf16.mxu0 %vm12774_vm0, %v17769_v52 }
 0x51e   : > { %18011 = vst [vmem:[#allocation77_spill] sm:$0xff] %v14819_v47  ;;  %v11323_v61 = vpop.f32.mrf.mxu0  ;;  %v18016_v8 = vld [vmem:[#allocation10_spill] sm:$0xff] }
 0x51f   : > { %v3997_v48 = vpop.f32.mrf.mxu1  ;;  %11074 = vmatmul.mubr.msk.bf16.gmra.mxu1 %vm2877_vm1, %v18013_v40 }
 0x520   : > { %v14830_v15 = vadd.f32 %v3997_v48, %v14472_v50  ;;  %v14832_v49 = vpop.f32.mrf.mxu0  ;;  %11077 = vmatprep.mubr.msk.bf16.mxu1 %vm12774_vm0, %v17769_v52 }
 0x521   : > { %18015 = vst [vmem:[#allocation120_spill] sm:$0xff] %v14832_v49  ;;  %v10975_v36 = vpop.f32.mrf.mxu1  ;;  %v18019_v49 = vld [vmem:[#allocation106_spill] sm:$0xff] }
 0x522   : > { %18014 = vst [vmem:[#allocation119_spill] sm:$0xff] %v14830_v15  ;;  %v11324_v31 = vpop.f32.mrf.mxu0 }
 0x523   : > { %v4000_v18 = vpop.f32.mrf.mxu1 }
 0x524   : > { %v14837_v60 = vadd.f32 %v4000_v18, %v18016_v8  ;;  %v14839_v47 = vpop.f32.mrf.mxu0  ;;  %11506 = vmatmul.mubr.msk.bf16.gmra.mxu0 %vm2877_vm1, %v17959_v33 }
 0x525   : > { %18018 = vst [vmem:[#allocation121_spill] sm:$0xff] %v14839_v47  ;;  %v10976_v61 = vpop.f32.mrf.mxu1  ;;  %11509 = vmatprep.mubr.msk.bf16.mxu0 %vm12774_vm0, %v17769_v52 }
 0x526   : > { %18017 = vst [vmem:[#allocation10_spill] sm:$0xff] %v14837_v60  ;;  %v11327_v50 = vpop.f32.mrf.mxu0  ;;  %v18021_v61 = vld [vmem:[#allocation80_spill] sm:$0xff] }
 0x527   : > { %v4005_v48 = vpop.f32.mrf.mxu1  ;;  %11078 = vmatmul.mubr.msk.bf16.gmra.mxu1 %vm2877_vm1, %v18019_v49  ;;  %v18024_v50 = vld [vmem:[#allocation20_spill] sm:$0xff] }
 0x528   : > { %v14848_v36 = vadd.f32 %v4005_v48, %v14490_v41  ;;  %v14850_v31 = vpop.f32.mrf.mxu0  ;;  %11081 = vmatprep.mubr.msk.bf16.mxu1 %vm12774_vm0, %v17769_v52 }
 0x529   : > { %18020 = vst [vmem:[#allocation122_spill] sm:$0xff] %v14850_v31  ;;  %v10979_v18 = vpop.f32.mrf.mxu1  ;;  %v18025_v31 = vld [vmem:[#allocation107_spill] sm:$0xff] }
 0x52a   : > { %v11328_v8 = vpop.f32.mrf.mxu0 }
 0x52b   : > { %v4008_v33 = vpop.f32.mrf.mxu1 }
 0x52c   : > { %v14855_v47 = vadd.f32 %v4008_v33, %v18021_v61  ;;  %v14857_v60 = vpop.f32.mrf.mxu0  ;;  %11510 = vmatmul.mubr.msk.bf16.gmra.mxu0 %vm2877_vm1, %v18024_v50 }
 0x52d   : > { %18023 = vst [vmem:[#allocation123_spill] sm:$0xff] %v14857_v60  ;;  %v10980_v15 = vpop.f32.mrf.mxu1  ;;  %11597 = vmatprep.mubr.msk.bf16.mxu0 %vm12774_vm0, %v17769_v52 }
 0x52e   : > { %18022 = vst [vmem:[#allocation80_spill] sm:$0xff] %v14855_v47  ;;  %v11331_v41 = vpop.f32.mrf.mxu0 }
 0x52f   : > { %v4013_v48 = vpop.f32.mrf.mxu1  ;;  %11082 = vmatmul.mubr.msk.bf16.gmra.mxu1 %vm2877_vm1, %v18025_v31  ;;  %v18029_v41 = vld [vmem:[#allocation51_spill] sm:$0xff] }
 0x530   : > { %v14866_v18 = vadd.f32 %v4013_v48, %v14508_v27  ;;  %v14868_v8 = vpop.f32.mrf.mxu0  ;;  %11085 = vmatprep.mubr.msk.bf16.mxu1 %vm12774_vm0, %v17769_v52 }
 0x531   : > { %18026 = vst [vmem:[#allocation20_spill] sm:$0xff] %v14868_v8  ;;  %v10983_v33 = vpop.f32.mrf.mxu1  ;;  %v18030_v8 = vld [vmem:[#allocation108_spill] sm:$0xff] }
 0x532   : > { %v11332_v61 = vpop.f32.mrf.mxu0 }
 0x533   : > { %v4016_v50 = vpop.f32.mrf.mxu1 }
 0x534   : > { %v14873_v15 = vadd.f32 %v4016_v50, %v14515_v0  ;;  %v14875_v60 = vpop.f32.mrf.mxu0  ;;  %11598 = vmatmul.mubr.msk.bf16.vlgmr.msra.gmra.mxu0 %vm2877_vm1, %v18029_v41 }
 0x535   : > { %18028 = vst [vmem:[#allocation125_spill] sm:$0xff] %v14875_v60  ;;  %v10984_v47 = vpop.f32.mrf.mxu1  ;;  %11601 = vmatprep.mubr.msk.bf16.mxu0 %vm12774_vm0, %v17769_v52 }
 0x536   : > { %18027 = vst [vmem:[#allocation124_spill] sm:$0xff] %v14873_v15  ;;  %v11335_v27 = vpop.f32.mrf.mxu0 }
 0x537   : > { %v4021_v48 = vpop.f32.mrf.mxu1  ;;  %11086 = vmatmul.mubr.msk.bf16.gmra.mxu1 %vm2877_vm1, %v18030_v8  ;;  %v18035_v27 = vld [vmem:[#allocation54_spill] sm:$0xff] }
 0x538   : > { %v14884_v33 = vadd.f32 %v4021_v48, %v14526_v22  ;;  %v14886_v61 = vpop.f32.mrf.mxu0  ;;  %11089 = vmatprep.mubr.msk.bf16.mxu1 %vm12774_vm0, %v17769_v52 }
 0x539   : > { %18032 = vst [vmem:[#allocation126_spill] sm:$0xff] %v14886_v61  ;;  %v10987_v0 = vpop.f32.mrf.mxu1  ;;  %v18036_v61 = vld [vmem:[#allocation109_spill] sm:$0xff] }
 0x53a   : > { %18031 = vst [vmem:[#allocation51_spill] sm:$0xff] %v14884_v33  ;;  %v11336_v50 = vpop.f32.mrf.mxu0  ;;  %v18041_v33 = vld [vmem:[#allocation57_spill] sm:$0xff] }
 0x53b   : > { %v4024_v41 = vpop.f32.mrf.mxu1 }
 0x53c   : > { %v14891_v47 = vadd.f32 %v4024_v41, %v14533_v12  ;;  %v14893_v60 = vpop.f32.mrf.mxu0  ;;  %11602 = vmatmul.mubr.msk.bf16.gmra.mxu0 %vm2877_vm1, %v18035_v27 }
 0x53d   : > { %18034 = vst [vmem:[#allocation128_spill] sm:$0xff] %v14893_v60  ;;  %v10988_v15 = vpop.f32.mrf.mxu1  ;;  %11605 = vmatprep.mubr.msk.bf16.mxu0 %vm12774_vm0, %v17769_v52 }
 0x53e   : > { %18033 = vst [vmem:[#allocation127_spill] sm:$0xff] %v14891_v47  ;;  %v11339_v22 = vpop.f32.mrf.mxu0  ;;  %v12589_v15 = vld [vmem:[%s17589_s3 + $0xe8] sm:$0xff]  }
 0x53f   : > { %v4029_v48 = vpop.f32.mrf.mxu1  ;;  %11090 = vmatmul.mubr.msk.bf16.gmra.mxu1 %vm2877_vm1, %v18036_v61  ;;  %11754 = vmatpush3.bf16.msra.mxu0 %v12589_v15 }
 0x540   : > { %v14902_v0 = vadd.f32 %v4029_v48, %v14544_v1  ;;  %v14904_v50 = vpop.f32.mrf.mxu0  ;;  %11093 = vmatprep.mubr.msk.bf16.mxu1 %vm12774_vm0, %v17769_v52  ;;  %11755 = vmatprep.subr.bf16.mxu0 %v17769_v52 }
 0x541   : > { %18038 = vst [vmem:[#allocation129_spill] sm:$0xff] %v14904_v50  ;;  %v10991_v12 = vpop.f32.mrf.mxu1 }
 0x542   : > { %18037 = vst [vmem:[#allocation54_spill] sm:$0xff] %v14902_v0  ;;  %v11340_v41 = vpop.f32.mrf.mxu0  ;;  %v18047_v0 = vld [vmem:[#allocation60_spill] sm:$0xff] }
 0x543   : > { %v4032_v60 = vpop.f32.mrf.mxu1  ;;  %v18042_v41 = vld [vmem:[#allocation110_spill] sm:$0xff] }
 0x544   : > { %v14912_v22 = vadd.f32 %v4032_v60, %v14554_v55  ;;  %v14914_v47 = vpop.f32.mrf.mxu0  ;;  %11606 = vmatmul.mubr.msk.bf16.gmra.mxu0 %vm2877_vm1, %v18041_v33  ;;  %v12590_v60 = vld [vmem:[%s17589_s3 + $0xe0] sm:$0xff]  }
 0x545   : > { %18040 = vst [vmem:[#allocation131_spill] sm:$0xff] %v14914_v47  ;;  %v10992_v1 = vpop.f32.mrf.mxu1  ;;  %11609 = vmatprep.mubr.msk.bf16.mxu0 %vm12774_vm0, %v17769_v52  ;;  %11756 = vmatpush3.bf16.msra.mxu0 %v12590_v60 }
 0x546   : > { %18039 = vst [vmem:[#allocation130_spill] sm:$0xff] %v14912_v22  ;;  %v11343_v48 = vpop.f32.mrf.mxu0  ;;  %11913 = vmatprep.subr.bf16.mxu0 %v17769_v52 }
 0x547   : > { %v4037_v12 = vpop.f32.mrf.mxu1  ;;  %11094 = vmatmul.mubr.msk.bf16.gmra.mxu1 %vm2877_vm1, %v18042_v41 }
 0x548   : > { %v14927_v55 = vadd.f32 %v4037_v12, %v14569_v28  ;;  %v14929_v47 = vpop.f32.mrf.mxu0  ;;  %11097 = vmatprep.mubr.msk.bf16.mxu1 %vm12774_vm0, %v17769_v52 }
 0x549   : > { %18044 = vst [vmem:[#allocation132_spill] sm:$0xff] %v14929_v47  ;;  %v10995_v15 = vpop.f32.mrf.mxu1 }
 0x54a   : > { %18043 = vst [vmem:[#allocation57_spill] sm:$0xff] %v14927_v55  ;;  %v11344_v1 = vpop.f32.mrf.mxu0  ;;  %v18048_v15 = vld [vmem:[#allocation111_spill] sm:$0xff] }
 0x54b   : > { %v4040_v48 = vpop.f32.mrf.mxu1 }
 0x54c   : > { %v14935_v50 = vadd.f32 %v4040_v48, %v14577_v63  ;;  %v14937_v22 = vpop.f32.mrf.mxu0  ;;  %11610 = vmatmul.mubr.msk.bf16.gmra.mxu0 %vm2877_vm1, %v18047_v0 }
 0x54d   : > { %18046 = vst [vmem:[#allocation134_spill] sm:$0xff] %v14937_v22  ;;  %v10996_v28 = vpop.f32.mrf.mxu1  ;;  %11613 = vmatprep.mubr.msk.bf16.mxu0 %vm12774_vm0, %v17769_v52 }
 0x54e   : > { %18045 = vst [vmem:[#allocation133_spill] sm:$0xff] %v14935_v50  ;;  %v11347_v12 = vpop.f32.mrf.mxu0 }
 0x54f   : > { %v4045_v47 = vpop.f32.mrf.mxu1  ;;  %11098 = vmatmul.mubr.msk.bf16.gmra.mxu1 %vm2877_vm1, %v18048_v15  ;;  %v18053_v12 = vld [vmem:[#allocation63_spill] sm:$0xff] }
 0x550   : > { %v14946_v60 = vadd.f32 %v4045_v47, %v14588_v46  ;;  %v14948_v1 = vpop.f32.mrf.mxu0  ;;  %11101 = vmatprep.mubr.msk.bf16.mxu1 %vm12774_vm0, %v17769_v52 }
 0x551   : > { %18050 = vst [vmem:[#allocation135_spill] sm:$0xff] %v14948_v1  ;;  %v10999_v63 = vpop.f32.mrf.mxu1  ;;  %v18054_v1 = vld [vmem:[#allocation90_spill] sm:$0xff] }
 0x552   : > { %18049 = vst [vmem:[#allocation60_spill] sm:$0xff] %v14946_v60  ;;  %v11348_v48 = vpop.f32.mrf.mxu0 }
 0x553   : > { %v4048_v22 = vpop.f32.mrf.mxu1 }
 0x554   : > { %v14953_v28 = vadd.f32 %v4048_v22, %v14595_v43  ;;  %v14955_v50 = vpop.f32.mrf.mxu0  ;;  %11614 = vmatmul.mubr.msk.bf16.gmra.mxu0 %vm2877_vm1, %v18053_v12 }
 0x555   : > { %18052 = vst [vmem:[#allocation137_spill] sm:$0xff] %v14955_v50  ;;  %v11000_v55 = vpop.f32.mrf.mxu1  ;;  %11617 = vmatprep.mubr.msk.bf16.mxu0 %vm12774_vm0, %v17769_v52 }
 0x556   : > { %18051 = vst [vmem:[#allocation136_spill] sm:$0xff] %v14953_v28  ;;  %v11351_v46 = vpop.f32.mrf.mxu0 }
 0x557   : > { %v4053_v47 = vpop.f32.mrf.mxu1  ;;  %11102 = vmatmul.mubr.msk.bf16.gmra.mxu1 %vm2877_vm1, %v18054_v1  ;;  %v18058_v46 = vld [vmem:[#allocation66_spill] sm:$0xff] }
 0x558   : > { %v14964_v63 = vadd.f32 %v4053_v47, %v14606_v54  ;;  %v14966_v48 = vpop.f32.mrf.mxu0  ;;  %11105 = vmatprep.mubr.msk.bf16.mxu1 %vm12774_vm0, %v17769_v52 }
 0x559   : > { %18055 = vst [vmem:[#allocation63_spill] sm:$0xff] %v14966_v48  ;;  %v11003_v43 = vpop.f32.mrf.mxu1  ;;  %v18059_v48 = vld [vmem:[#allocation44_spill] sm:$0xff] }
 0x55a   : > { %v11352_v22 = vpop.f32.mrf.mxu0 }
 0x55b   : > { %v4056_v50 = vpop.f32.mrf.mxu1 }
 0x55c   : > { %v14971_v55 = vadd.f32 %v4056_v50, %v14613_v37  ;;  %v14973_v28 = vpop.f32.mrf.mxu0  ;;  %11618 = vmatmul.mubr.msk.bf16.gmra.mxu0 %vm2877_vm1, %v18058_v46 }
 0x55d   : > { %18057 = vst [vmem:[#allocation139_spill] sm:$0xff] %v14973_v28  ;;  %v11004_v60 = vpop.f32.mrf.mxu1  ;;  %11621 = vmatprep.mubr.msk.bf16.mxu0 %vm12774_vm0, %v17769_v52 }
 0x55e   : > { %18056 = vst [vmem:[#allocation138_spill] sm:$0xff] %v14971_v55  ;;  %v11439_v54 = vpop.f32.mrf.mxu0 }
 0x55f   : > { %v4061_v47 = vpop.f32.mrf.mxu1  ;;  %11106 = vmatmul.mubr.msk.bf16.gmra.mxu1 %vm2877_vm1, %v18059_v48 }
 0x560   : > { %v14982_v43 = vadd.f32 %v4061_v47, %v14624_v13  ;;  %v14984_v22 = vpop.f32.mrf.mxu0  ;;  %11109 = vmatprep.mubr.msk.bf16.mxu1 %vm12774_vm0, %v17769_v52 }
 0x561   : > { %18060 = vst [vmem:[#allocation66_spill] sm:$0xff] %v14984_v22  ;;  %v11007_v37 = vpop.f32.mrf.mxu1  ;;  %v18063_v22 = vld [vmem:[#allocation91_spill] sm:$0xff] }
 0x562   : > { %v11440_v50 = vpop.f32.mrf.mxu0 }
 0x563   : > { %v4064_v28 = vpop.f32.mrf.mxu1 }
 0x564   : > { %v14989_v60 = vadd.f32 %v4064_v28, %v14631_v58  ;;  %v14991_v55 = vpop.f32.mrf.mxu0  ;;  %11622 = vmatmul.mubr.msk.bf16.gmra.mxu0 %vm2877_vm1, %v17960_v44 }
 0x565   : > { %18062 = vst [vmem:[#allocation141_spill] sm:$0xff] %v14991_v55  ;;  %v11008_v54 = vpop.f32.mrf.mxu1  ;;  %11625 = vmatprep.mubr.msk.bf16.mxu0 %vm12774_vm0, %v17769_v52 }
 0x566   : > { %18061 = vst [vmem:[#allocation140_spill] sm:$0xff] %v14989_v60  ;;  %v11443_v13 = vpop.f32.mrf.mxu0 }
 0x567   : > { %v4069_v47 = vpop.f32.mrf.mxu1  ;;  %11110 = vmatmul.mubr.msk.bf16.gmra.mxu1 %vm2877_vm1, %v18063_v22 }
 0x568   : > { %v15000_v37 = vadd.f32 %v4069_v47, %v14642_v11  ;;  %v15002_v50 = vpop.f32.mrf.mxu0  ;;  %11197 = vmatprep.mubr.msk.bf16.mxu1 %vm12774_vm0, %v17769_v52  ;;  %v12587_v11 = vld [vmem:[%s17589_s3 + $0x98] sm:$0xff]  }
 0x569   : > { %18064 = vst [vmem:[#allocation142_spill] sm:$0xff] %v15002_v50  ;;  %v11011_v58 = vpop.f32.mrf.mxu1 }
 0x56a   : > { %v11444_v28 = vpop.f32.mrf.mxu0 }
 0x56b   : > { %v4072_v55 = vpop.f32.mrf.mxu1  ;;  %v12588_v28 = vld [vmem:[%s17589_s3 + $0x90] sm:$0xff]  }
 0x56c   : > { %v15007_v54 = vadd.f32 %v4072_v55, %v14649_v30  ;;  %v15009_v60 = vpop.f32.mrf.mxu0  ;;  %11626 = vmatmul.mubr.msk.bf16.gmra.mxu0 %vm2877_vm1, %v13586_v9 }
 0x56d   : > { %18065 = vst [vmem:[#allocation143_spill] sm:$0xff] %v15009_v60  ;;  %v11012_v13 = vpop.f32.mrf.mxu1  ;;  %11629 = vmatprep.mubr.msk.bf16.mxu0 %vm12774_vm0, %v17769_v52 }
 0x56e   : > { %v11447_v47 = vpop.f32.mrf.mxu0 }
 0x56f   : > { %v4077_v58 = vpop.f32.mrf.mxu1  ;;  %11198 = vmatmul.mubr.msk.bf16.vlgmr.msra.gmra.mxu1 %vm2877_vm1, %v17983_v38 }
 0x570   : > { %v15021_v30 = vadd.f32 %v4077_v58, %v14663_v20  ;;  %11354 = vmatpush3.bf16.msra.mxu1 %v12587_v11  ;;  %v15023_v55 = vpop.f32.mrf.mxu0  ;;  %11201 = vmatprep.mubr.msk.bf16.mxu1 %vm12774_vm0, %v17769_v52 }
 0x571   : > { %18066 = vst [vmem:[#allocation144_spill] sm:$0xff] %v15023_v55  ;;  %v11015_v13 = vpop.f32.mrf.mxu1  ;;  %11355 = vmatprep.subr.bf16.mxu1 %v17769_v52 }
 0x572   : > { %v11448_v47 = vpop.f32.mrf.mxu0 }
 0x573   : > { %v4080_v60 = vpop.f32.mrf.mxu1 }
 0x574   : > { %v15032_v38 = vadd.f32 %v4080_v60, %v14674_v56  ;;  %v15034_v20 = vpop.f32.mrf.mxu0  ;;  %11630 = vmatmul.mubr.msk.bf16.gmra.mxu0 %vm2877_vm1, %v17965_v32  ;;  %11356 = vmatpush3.bf16.msra.mxu1 %v12588_v28 }
 0x575   : > { %18067 = vst [vmem:[#allocation145_spill] sm:$0xff] %v15034_v20  ;;  %v11016_v11 = vpop.f32.mrf.mxu1  ;;  %11633 = vmatprep.mubr.msk.bf16.mxu0 %vm12774_vm0, %v17769_v52  ;;  %11513 = vmatprep.subr.bf16.mxu1 %v17769_v52 }
 0x576   : > { %v11451_v58 = vpop.f32.mrf.mxu0 }
 0x577   : > { %v4085_v13 = vpop.f32.mrf.mxu1  ;;  %11202 = vmatmul.mubr.msk.bf16.gmra.mxu1 %vm2877_vm1, %v17987_v53 }
 0x578   : > { %v15044_v56 = vadd.f32 %v4085_v13, %v14686_v35  ;;  %v15046_v60 = vpop.f32.mrf.mxu0  ;;  %11205 = vmatprep.mubr.msk.bf16.mxu1 %vm12774_vm0, %v17769_v52 }
 0x579   : > { %18068 = vst [vmem:[#allocation146_spill] sm:$0xff] %v15046_v60  ;;  %v11019_v28 = vpop.f32.mrf.mxu1 }
 0x57a   : > { %v11452_v47 = vpop.f32.mrf.mxu0 }
 0x57b   : > { %v4088_v11 = vpop.f32.mrf.mxu1 }
 0x57c   : > { %v15051_v20 = vadd.f32 %v4088_v11, %v14693_v6  ;;  %v15053_v55 = vpop.f32.mrf.mxu0  ;;  %11634 = vmatmul.mubr.msk.bf16.gmra.mxu0 %vm2877_vm1, %v13621_v45 }
 0x57d   : > { %18069 = vst [vmem:[#allocation147_spill] sm:$0xff] %v15053_v55  ;;  %v11020_v53 = vpop.f32.mrf.mxu1  ;;  %11637 = vmatprep.mubr.msk.bf16.mxu0 %vm12774_vm0, %v17769_v52 }
 0x57e   : > { %v11455_v35 = vpop.f32.mrf.mxu0 }
 0x57f   : > { %v4093_v58 = vpop.f32.mrf.mxu1  ;;  %11206 = vmatmul.mubr.msk.bf16.gmra.mxu1 %vm2877_vm1, %v17991_v23 }
 0x580   : > { %v15062_v13 = vadd.f32 %v4093_v58, %v14704_v2  ;;  %v15064_v28 = vpop.f32.mrf.mxu0  ;;  %11209 = vmatprep.mubr.msk.bf16.mxu1 %vm12774_vm0, %v17769_v52 }
 0x581   : > { %18070 = vst [vmem:[#allocation148_spill] sm:$0xff] %v15064_v28  ;;  %v11023_v6 = vpop.f32.mrf.mxu1 }
 0x582   : > { %v11456_v47 = vpop.f32.mrf.mxu0 }
 0x583   : > { %v4096_v11 = vpop.f32.mrf.mxu1 }
 0x584   : > { %v15069_v53 = vadd.f32 %v4096_v11, %v14711_v3  ;;  %v15071_v55 = vpop.f32.mrf.mxu0  ;;  %11638 = vmatmul.mubr.msk.bf16.gmra.mxu0 %vm2877_vm1, %v13641_v29 }
 0x585   : > { %18071 = vst [vmem:[#allocation149_spill] sm:$0xff] %v15071_v55  ;;  %v11024_v23 = vpop.f32.mrf.mxu1  ;;  %11641 = vmatprep.mubr.msk.bf16.mxu0 %vm12774_vm0, %v17769_v52 }
 0x586   : > { %v11459_v2 = vpop.f32.mrf.mxu0 }
 0x587   : > { %v4101_v35 = vpop.f32.mrf.mxu1  ;;  %11210 = vmatmul.mubr.msk.bf16.gmra.mxu1 %vm2877_vm1, %v17995_v19 }
 0x588   : > { %v15080_v58 = vadd.f32 %v4101_v35, %v14722_v17  ;;  %v15082_v6 = vpop.f32.mrf.mxu0  ;;  %11213 = vmatprep.mubr.msk.bf16.mxu1 %vm12774_vm0, %v17769_v52 }
 0x589   : > { %18072 = vst [vmem:[#allocation150_spill] sm:$0xff] %v15082_v6  ;;  %v11027_v3 = vpop.f32.mrf.mxu1 }
 0x58a   : > { %v11460_v47 = vpop.f32.mrf.mxu0 }
 0x58b   : > { %v4104_v11 = vpop.f32.mrf.mxu1 }
 0x58c   : > { %v15087_v23 = vadd.f32 %v4104_v11, %v14729_v25  ;;  %v15089_v55 = vpop.f32.mrf.mxu0  ;;  %11642 = vmatmul.mubr.msk.bf16.gmra.mxu0 %vm2877_vm1, %v13655_v39 }
 0x58d   : > { %18073 = vst [vmem:[#allocation151_spill] sm:$0xff] %v15089_v55  ;;  %v11028_v19 = vpop.f32.mrf.mxu1  ;;  %11645 = vmatprep.mubr.msk.bf16.mxu0 %vm12774_vm0, %v17769_v52 }
 0x58e   : > { %v11463_v17 = vpop.f32.mrf.mxu0 }
 0x58f   : > { %v4109_v2 = vpop.f32.mrf.mxu1  ;;  %11214 = vmatmul.mubr.msk.bf16.gmra.mxu1 %vm2877_vm1, %v17998_v21 }
 0x590   : > { %v15098_v35 = vadd.f32 %v4109_v2, %v14740_v24  ;;  %v15100_v3 = vpop.f32.mrf.mxu0  ;;  %11217 = vmatprep.mubr.msk.bf16.mxu1 %vm12774_vm0, %v17769_v52 }
 0x591   : > { %18074 = vst [vmem:[#allocation152_spill] sm:$0xff] %v15100_v3  ;;  %v11031_v25 = vpop.f32.mrf.mxu1 }
 0x592   : > { %v11464_v47 = vpop.f32.mrf.mxu0 }
 0x593   : > { %v4112_v11 = vpop.f32.mrf.mxu1 }
 0x594   : > { %v15105_v19 = vadd.f32 %v4112_v11, %v14747_v5  ;;  %v15107_v55 = vpop.f32.mrf.mxu0  ;;  %11646 = vmatmul.mubr.msk.bf16.gmra.mxu0 %vm2877_vm1, %v17974_v14 }
 0x595   : > { %18075 = vst [vmem:[#allocation153_spill] sm:$0xff] %v15107_v55  ;;  %v11032_v17 = vpop.f32.mrf.mxu1  ;;  %11649 = vmatprep.mubr.msk.bf16.mxu0 %vm12774_vm0, %v17769_v52 }
 0x596   : > { %v11467_v24 = vpop.f32.mrf.mxu0 }
 0x597   : > { %v4261_v2 = vpop.f32.mrf.mxu1  ;;  %11218 = vmatmul.mubr.msk.bf16.gmra.mxu1 %vm2877_vm1, %v18001_v16 }
 0x598   : > { %v15116_v25 = vadd.f32 %v4261_v2, %v14758_v42  ;;  %v15118_v47 = vpop.f32.mrf.mxu0  ;;  %11221 = vmatprep.mubr.msk.bf16.mxu1 %vm12774_vm0, %v17769_v52 }
 0x599   : > { %18076 = vst [vmem:[#allocation154_spill] sm:$0xff] %v15118_v47  ;;  %v11039_v5 = vpop.f32.mrf.mxu1 }
 0x59a   : > { %v11468_v11 = vpop.f32.mrf.mxu0 }
 0x59b   : > { %v4264_v55 = vpop.f32.mrf.mxu1 }
 0x59c   : > { %v15123_v17 = vadd.f32 %v4264_v55, %v14765_v51  ;;  %v15125_v3 = vpop.f32.mrf.mxu0  ;;  %11650 = vmatmul.mubr.msk.bf16.gmra.mxu0 %vm2877_vm1, %v17977_v10 }
 0x59d   : > { %18077 = vst [vmem:[#allocation155_spill] sm:$0xff] %v15125_v3  ;;  %v11040_v24 = vpop.f32.mrf.mxu1  ;;  %11653 = vmatprep.mubr.msk.bf16.mxu0 %vm12774_vm0, %v17769_v52 }
 0x59e   : > { %v11471_v42 = vpop.f32.mrf.mxu0 }
 0x59f   : > { %v4269_v2 = vpop.f32.mrf.mxu1  ;;  %11222 = vmatmul.mubr.msk.bf16.gmra.mxu1 %vm2877_vm1, %v18004_v59  ;;  %v18080_v42 = vld [vmem:[#allocation87_spill] sm:$0xff] }
 0x5a0   : > { %v15134_v5 = vadd.f32 %v4269_v2, %v14776_v7  ;;  %v15136_v11 = vpop.f32.mrf.mxu0  ;;  %11225 = vmatprep.mubr.msk.bf16.mxu1 %vm12774_vm0, %v17769_v52 }
 0x5a1   : > { %18078 = vst [vmem:[#allocation156_spill] sm:$0xff] %v15136_v11  ;;  %v11043_v51 = vpop.f32.mrf.mxu1 }
 0x5a2   : > { %v11472_v55 = vpop.f32.mrf.mxu0 }
 0x5a3   : > { %v4272_v3 = vpop.f32.mrf.mxu1 }
 0x5a4   : > { %v15141_v24 = vadd.f32 %v4272_v3, %v14783_v4  ;;  %v15143_v47 = vpop.f32.mrf.mxu0  ;;  %11654 = vmatmul.mubr.msk.bf16.gmra.mxu0 %vm2877_vm1, %v18080_v42 }
 0x5a5   : > { %18079 = vst [vmem:[#allocation157_spill] sm:$0xff] %v15143_v47  ;;  %v11044_v6 = vpop.f32.mrf.mxu1  ;;  %11657 = vmatprep.mubr.msk.bf16.mxu0 %vm12774_vm0, %v17769_v52 }
 0x5a6   : > { %v11475_v7 = vpop.f32.mrf.mxu0 }
 0x5a7   : > { %v4277_v2 = vpop.f32.mrf.mxu1  ;;  %11226 = vmatmul.mubr.msk.bf16.gmra.mxu1 %vm2877_vm1, %v18008_v26  ;;  %v18083_v7 = vld [vmem:[#allocation88_spill] sm:$0xff] }
 0x5a8   : > { %v15152_v51 = vadd.f32 %v4277_v2, %v14794_v62  ;;  %v15154_v55 = vpop.f32.mrf.mxu0  ;;  %11229 = vmatprep.mubr.msk.bf16.mxu1 %vm12774_vm0, %v17769_v52 }
 0x5a9   : > { %18081 = vst [vmem:[#allocation87_spill] sm:$0xff] %v15154_v55  ;;  %v11047_v4 = vpop.f32.mrf.mxu1 }
 0x5aa   : > { %v11476_v3 = vpop.f32.mrf.mxu0 }
 0x5ab   : > { %v4280_v47 = vpop.f32.mrf.mxu1 }
 0x5ac   : > { %v15159_v6 = vadd.f32 %v4280_v47, %v14801_v34  ;;  %v15161_v11 = vpop.f32.mrf.mxu0  ;;  %11658 = vmatmul.mubr.msk.bf16.gmra.mxu0 %vm2877_vm1, %v18083_v7 }
 0x5ad   : > { %18082 = vst [vmem:[#allocation158_spill] sm:$0xff] %v15161_v11  ;;  %v11048_v28 = vpop.f32.mrf.mxu1  ;;  %11661 = vmatprep.mubr.msk.bf16.mxu0 %vm12774_vm0, %v17769_v52 }
 0x5ae   : > { %v11479_v62 = vpop.f32.mrf.mxu0  ;;  %v18085_v28 = vld [vmem:[#allocation77_spill] sm:$0xff] }
 0x5af   : > { %v4285_v2 = vpop.f32.mrf.mxu1  ;;  %11230 = vmatmul.mubr.msk.bf16.gmra.mxu1 %vm2877_vm1, %v18013_v40  ;;  %v18087_v62 = vld [vmem:[#allocation89_spill] sm:$0xff] }
 0x5b0   : > { %v15170_v4 = vadd.f32 %v4285_v2, %v14812_v57  ;;  %v15172_v3 = vpop.f32.mrf.mxu0  ;;  %11233 = vmatprep.mubr.msk.bf16.mxu1 %vm12774_vm0, %v17769_v52 }
 0x5b1   : > { %18084 = vst [vmem:[#allocation88_spill] sm:$0xff] %v15172_v3  ;;  %v11051_v34 = vpop.f32.mrf.mxu1 }
 0x5b2   : > { %v11480_v47 = vpop.f32.mrf.mxu0  ;;  %v18088_v34 = vld [vmem:[#allocation119_spill] sm:$0xff] }
 0x5b3   : > { %v4288_v11 = vpop.f32.mrf.mxu1 }
 0x5b4   : > { %v15177_v55 = vadd.f32 %v4288_v11, %v18085_v28  ;;  %v15179_v60 = vpop.f32.mrf.mxu0  ;;  %11662 = vmatmul.mubr.msk.bf16.gmra.mxu0 %vm2877_vm1, %v18087_v62 }
 0x5b5   : > { %18086 = vst [vmem:[#allocation77_spill] sm:$0xff] %v15179_v60  ;;  %v11052_v50 = vpop.f32.mrf.mxu1  ;;  %11665 = vmatprep.mubr.msk.bf16.mxu0 %vm12774_vm0, %v17769_v52 }
 0x5b6   : > { %v11483_v57 = vpop.f32.mrf.mxu0  ;;  %v18090_v50 = vld [vmem:[#allocation10_spill] sm:$0xff] }
 0x5b7   : > { %v4293_v2 = vpop.f32.mrf.mxu1  ;;  %11234 = vmatmul.mubr.msk.bf16.gmra.mxu1 %vm2877_vm1, %v18019_v49  ;;  %v18092_v57 = vld [vmem:[#allocation92_spill] sm:$0xff] }
 0x5b8   : > { %v15188_v47 = vadd.f32 %v4293_v2, %v18088_v34  ;;  %v15190_v3 = vpop.f32.mrf.mxu0  ;;  %11237 = vmatprep.mubr.msk.bf16.mxu1 %vm12774_vm0, %v17769_v52 }
 0x5b9   : > { %18089 = vst [vmem:[#allocation89_spill] sm:$0xff] %v15190_v3  ;;  %v11055_v11 = vpop.f32.mrf.mxu1 }
 0x5ba   : > { %v11484_v28 = vpop.f32.mrf.mxu0 }
 0x5bb   : > { %v4296_v60 = vpop.f32.mrf.mxu1 }
 0x5bc   : > { %v15195_v40 = vadd.f32 %v4296_v60, %v18090_v50  ;;  %v15197_v26 = vpop.f32.mrf.mxu0  ;;  %11666 = vmatmul.mubr.msk.bf16.gmra.mxu0 %vm2877_vm1, %v18092_v57 }
 0x5bd   : > { %18091 = vst [vmem:[#allocation119_spill] sm:$0xff] %v15197_v26  ;;  %v11056_v49 = vpop.f32.mrf.mxu1  ;;  %11669 = vmatprep.mubr.msk.bf16.mxu0 %vm12774_vm0, %v17769_v52 }
 0x5be   : > { %v11487_v2 = vpop.f32.mrf.mxu0  ;;  %v18094_v49 = vld [vmem:[#allocation80_spill] sm:$0xff] }
 0x5bf   : > { %v4301_v34 = vpop.f32.mrf.mxu1  ;;  %11238 = vmatmul.mubr.msk.bf16.gmra.mxu1 %vm2877_vm1, %v18025_v31  ;;  %v18096_v2 = vld [vmem:[#allocation94_spill] sm:$0xff] }
 0x5c0   : > { %v15206_v11 = vadd.f32 %v4301_v34, %v14848_v36  ;;  %v15208_v28 = vpop.f32.mrf.mxu0  ;;  %11241 = vmatprep.mubr.msk.bf16.mxu1 %vm12774_vm0, %v17769_v52 }
 0x5c1   : > { %18093 = vst [vmem:[#allocation10_spill] sm:$0xff] %v15208_v28  ;;  %v11059_v60 = vpop.f32.mrf.mxu1 }
 0x5c2   : > { %v11488_v50 = vpop.f32.mrf.mxu0 }
 0x5c3   : > { %v4304_v26 = vpop.f32.mrf.mxu1 }
 0x5c4   : > { %v15213_v3 = vadd.f32 %v4304_v26, %v18094_v49  ;;  %v15215_v59 = vpop.f32.mrf.mxu0  ;;  %11670 = vmatmul.mubr.msk.bf16.gmra.mxu0 %vm2877_vm1, %v18096_v2 }
 0x5c5   : > { %18095 = vst [vmem:[#allocation92_spill] sm:$0xff] %v15215_v59  ;;  %v11060_v31 = vpop.f32.mrf.mxu1  ;;  %11757 = vmatprep.mubr.msk.bf16.mxu0 %vm12774_vm0, %v17769_v52 }
 0x5c6   : > { %v11491_v36 = vpop.f32.mrf.mxu0  ;;  %v18098_v31 = vld [vmem:[#allocation124_spill] sm:$0xff] }
 0x5c7   : > { %v4309_v34 = vpop.f32.mrf.mxu1  ;;  %11242 = vmatmul.mubr.msk.bf16.gmra.mxu1 %vm2877_vm1, %v18030_v8 }
 0x5c8   : > { %v15224_v60 = vadd.f32 %v4309_v34, %v14866_v18  ;;  %v15226_v50 = vpop.f32.mrf.mxu0  ;;  %11245 = vmatprep.mubr.msk.bf16.mxu1 %vm12774_vm0, %v17769_v52 }
 0x5c9   : > { %18097 = vst [vmem:[#allocation80_spill] sm:$0xff] %v15226_v50  ;;  %v11063_v26 = vpop.f32.mrf.mxu1 }
 0x5ca   : > { %v11492_v49 = vpop.f32.mrf.mxu0  ;;  %v18100_v26 = vld [vmem:[#allocation51_spill] sm:$0xff] }
 0x5cb   : > { %v4312_v59 = vpop.f32.mrf.mxu1 }
 0x5cc   : > { %v15231_v28 = vadd.f32 %v4312_v59, %v18098_v31  ;;  %v15233_v16 = vpop.f32.mrf.mxu0  ;;  %11758 = vmatmul.mubr.msk.bf16.vlgmr.msra.gmra.mxu0 %vm2877_vm1, %v18035_v27 }
 0x5cd   : > { %18099 = vst [vmem:[#allocation94_spill] sm:$0xff] %v15233_v16  ;;  %v11064_v36 = vpop.f32.mrf.mxu1  ;;  %11761 = vmatprep.mubr.msk.bf16.mxu0 %vm12774_vm0, %v17769_v52 }
 0x5ce   : > { %v11495_v18 = vpop.f32.mrf.mxu0  ;;  %v18102_v36 = vld [vmem:[#allocation127_spill] sm:$0xff] }
 0x5cf   : > { %v4317_v34 = vpop.f32.mrf.mxu1  ;;  %11246 = vmatmul.mubr.msk.bf16.gmra.mxu1 %vm2877_vm1, %v18036_v61 }
 0x5d0   : > { %v15242_v49 = vadd.f32 %v4317_v34, %v18100_v26  ;;  %v15244_v50 = vpop.f32.mrf.mxu0  ;;  %11249 = vmatprep.mubr.msk.bf16.mxu1 %vm12774_vm0, %v17769_v52 }
 0x5d1   : > { %18101 = vst [vmem:[#allocation124_spill] sm:$0xff] %v15244_v50  ;;  %v11067_v59 = vpop.f32.mrf.mxu1 }
 0x5d2   : > { %v11496_v31 = vpop.f32.mrf.mxu0  ;;  %v18104_v59 = vld [vmem:[#allocation54_spill] sm:$0xff] }
 0x5d3   : > { %v4320_v27 = vpop.f32.mrf.mxu1 }
 0x5d4   : > { %v15249_v16 = vadd.f32 %v4320_v27, %v18102_v36  ;;  %v15251_v8 = vpop.f32.mrf.mxu0  ;;  %11762 = vmatmul.mubr.msk.bf16.gmra.mxu0 %vm2877_vm1, %v18041_v33 }
 0x5d5   : > { %18103 = vst [vmem:[#allocation51_spill] sm:$0xff] %v15251_v8  ;;  %v11068_v18 = vpop.f32.mrf.mxu1  ;;  %11765 = vmatprep.mubr.msk.bf16.mxu0 %vm12774_vm0, %v17769_v52 }
 0x5d6   : > { %v11499_v34 = vpop.f32.mrf.mxu0  ;;  %v18106_v18 = vld [vmem:[#allocation130_spill] sm:$0xff] }
 0x5d7   : > { %v4325_v26 = vpop.f32.mrf.mxu1  ;;  %11250 = vmatmul.mubr.msk.bf16.gmra.mxu1 %vm2877_vm1, %v18042_v41 }
 0x5d8   : > { %v15260_v31 = vadd.f32 %v4325_v26, %v18104_v59  ;;  %v15262_v50 = vpop.f32.mrf.mxu0  ;;  %11253 = vmatprep.mubr.msk.bf16.mxu1 %vm12774_vm0, %v17769_v52 }
 0x5d9   : > { %18105 = vst [vmem:[#allocation127_spill] sm:$0xff] %v15262_v50  ;;  %v11071_v27 = vpop.f32.mrf.mxu1 }
 0x5da   : > { %v11500_v36 = vpop.f32.mrf.mxu0  ;;  %v18108_v27 = vld [vmem:[#allocation57_spill] sm:$0xff] }
 0x5db   : > { %v4328_v33 = vpop.f32.mrf.mxu1 }
 0x5dc   : > { %v15267_v8 = vadd.f32 %v4328_v33, %v18106_v18  ;;  %v15269_v61 = vpop.f32.mrf.mxu0  ;;  %11766 = vmatmul.mubr.msk.bf16.gmra.mxu0 %vm2877_vm1, %v18047_v0 }
 0x5dd   : > { %18107 = vst [vmem:[#allocation54_spill] sm:$0xff] %v15269_v61  ;;  %v11072_v34 = vpop.f32.mrf.mxu1  ;;  %11769 = vmatprep.mubr.msk.bf16.mxu0 %vm12774_vm0, %v17769_v52 }
 0x5de   : > { %v11503_v26 = vpop.f32.mrf.mxu0  ;;  %v18110_v34 = vld [vmem:[#allocation133_spill] sm:$0xff] }
 0x5df   : > { %v4333_v59 = vpop.f32.mrf.mxu1  ;;  %11254 = vmatmul.mubr.msk.bf16.gmra.mxu1 %vm2877_vm1, %v18048_v15 }
 0x5e0   : > { %v15278_v36 = vadd.f32 %v4333_v59, %v18108_v27  ;;  %v15280_v50 = vpop.f32.mrf.mxu0  ;;  %11257 = vmatprep.mubr.msk.bf16.mxu1 %vm12774_vm0, %v17769_v52 }
 0x5e1   : > { %18109 = vst [vmem:[#allocation130_spill] sm:$0xff] %v15280_v50  ;;  %v11075_v33 = vpop.f32.mrf.mxu1 }
 0x5e2   : > { %v11504_v18 = vpop.f32.mrf.mxu0  ;;  %v18112_v33 = vld [vmem:[#allocation60_spill] sm:$0xff] }
 0x5e3   : > { %v4336_v0 = vpop.f32.mrf.mxu1 }
 0x5e4   : > { %v15285_v61 = vadd.f32 %v4336_v0, %v18110_v34  ;;  %v15287_v41 = vpop.f32.mrf.mxu0  ;;  %11770 = vmatmul.mubr.msk.bf16.gmra.mxu0 %vm2877_vm1, %v18053_v12 }
 0x5e5   : > { %18111 = vst [vmem:[#allocation57_spill] sm:$0xff] %v15287_v41  ;;  %v11076_v26 = vpop.f32.mrf.mxu1  ;;  %11773 = vmatprep.mubr.msk.bf16.mxu0 %vm12774_vm0, %v17769_v52 }
 0x5e6   : > { %v11507_v59 = vpop.f32.mrf.mxu0  ;;  %v18114_v26 = vld [vmem:[#allocation136_spill] sm:$0xff] }
 0x5e7   : > { %v4341_v27 = vpop.f32.mrf.mxu1  ;;  %11258 = vmatmul.mubr.msk.bf16.gmra.mxu1 %vm2877_vm1, %v18054_v1 }
 0x5e8   : > { %v15296_v18 = vadd.f32 %v4341_v27, %v18112_v33  ;;  %v15298_v50 = vpop.f32.mrf.mxu0  ;;  %11261 = vmatprep.mubr.msk.bf16.mxu1 %vm12774_vm0, %v17769_v52 }
 0x5e9   : > { %18113 = vst [vmem:[#allocation133_spill] sm:$0xff] %v15298_v50  ;;  %v11079_v0 = vpop.f32.mrf.mxu1 }
 0x5ea   : > { %v11508_v34 = vpop.f32.mrf.mxu0 }
 0x5eb   : > { %v4344_v12 = vpop.f32.mrf.mxu1 }
 0x5ec   : > { %v15303_v41 = vadd.f32 %v4344_v12, %v18114_v26  ;;  %v15305_v15 = vpop.f32.mrf.mxu0  ;;  %11774 = vmatmul.mubr.msk.bf16.gmra.mxu0 %vm2877_vm1, %v18058_v46 }
 0x5ed   : > { %18115 = vst [vmem:[#allocation60_spill] sm:$0xff] %v15305_v15  ;;  %v11080_v59 = vpop.f32.mrf.mxu1  ;;  %11777 = vmatprep.mubr.msk.bf16.mxu0 %vm12774_vm0, %v17769_v52 }
 0x5ee   : > { %v11511_v27 = vpop.f32.mrf.mxu0  ;;  %v18117_v59 = vld [vmem:[#allocation138_spill] sm:$0xff] }
 0x5ef   : > { %v4349_v33 = vpop.f32.mrf.mxu1  ;;  %11262 = vmatmul.mubr.msk.bf16.gmra.mxu1 %vm2877_vm1, %v18059_v48 }
 0x5f0   : > { %v15314_v0 = vadd.f32 %v4349_v33, %v14964_v63  ;;  %v15316_v34 = vpop.f32.mrf.mxu0  ;;  %11265 = vmatprep.mubr.msk.bf16.mxu1 %vm12774_vm0, %v17769_v52 }
 0x5f1   : > { %18116 = vst [vmem:[#allocation136_spill] sm:$0xff] %v15316_v34  ;;  %v11083_v12 = vpop.f32.mrf.mxu1 }
 0x5f2   : > { %v11512_v26 = vpop.f32.mrf.mxu0 }
 0x5f3   : > { %v4352_v46 = vpop.f32.mrf.mxu1 }
 0x5f4   : > { %v15321_v15 = vadd.f32 %v4352_v46, %v18117_v59  ;;  %v15323_v50 = vpop.f32.mrf.mxu0  ;;  %11778 = vmatmul.mubr.msk.bf16.gmra.mxu0 %vm2877_vm1, %v17960_v44 }
 0x5f5   : > { %18118 = vst [vmem:[#allocation138_spill] sm:$0xff] %v15323_v50  ;;  %v11084_v27 = vpop.f32.mrf.mxu1  ;;  %11781 = vmatprep.mubr.msk.bf16.mxu0 %vm12774_vm0, %v17769_v52 }
 0x5f6   : > { %v11599_v63 = vpop.f32.mrf.mxu0  ;;  %v18120_v27 = vld [vmem:[#allocation140_spill] sm:$0xff] }
 0x5f7   : > { %v4357_v33 = vpop.f32.mrf.mxu1  ;;  %11266 = vmatmul.mubr.msk.bf16.gmra.mxu1 %vm2877_vm1, %v18063_v22  ;;  %v18172_v22 = vld [vmem:[#allocation32_spill] sm:$0xff] }
 0x5f8   : > { %v15332_v12 = vadd.f32 %v4357_v33, %v14982_v43  ;;  %v15334_v26 = vpop.f32.mrf.mxu0  ;;  %11269 = vmatprep.mubr.msk.bf16.mxu1 %vm12774_vm0, %v17769_v52 }
 0x5f9   : > { %18119 = vst [vmem:[#allocation159_spill] sm:$0xff] %v15334_v26  ;;  %v11087_v46 = vpop.f32.mrf.mxu1  ;;  %v18122_v26 = vld [vmem:[#allocation46_spill] sm:$0xff] }
 0x5fa   : > { %v11600_v59 = vpop.f32.mrf.mxu0 }
 0x5fb   : > { %v4360_v44 = vpop.f32.mrf.mxu1 }
 0x5fc   : > { %v15339_v50 = vadd.f32 %v4360_v44, %v18120_v27  ;;  %v15341_v34 = vpop.f32.mrf.mxu0  ;;  %11782 = vmatmul.mubr.msk.bf16.gmra.mxu0 %vm2877_vm1, %v13586_v9 }
 0x5fd   : > { %18121 = vst [vmem:[#allocation140_spill] sm:$0xff] %v15341_v34  ;;  %v11088_v63 = vpop.f32.mrf.mxu1  ;;  %11785 = vmatprep.mubr.msk.bf16.mxu0 %vm12774_vm0, %v17769_v52 }
 0x5fe   : > { %v11603_v43 = vpop.f32.mrf.mxu0 }
 0x5ff   : > { %v4365_v33 = vpop.f32.mrf.mxu1  ;;  %11270 = vmatmul.mubr.msk.bf16.gmra.mxu1 %vm2877_vm1, %v18122_v26 }
 0x600   : > { %v15350_v46 = vadd.f32 %v4365_v33, %v15000_v37  ;;  %v15352_v59 = vpop.f32.mrf.mxu0  ;;  %11357 = vmatprep.mubr.msk.bf16.mxu1 %vm12774_vm0, %v17769_v52  ;;  %v12591_v37 = vld [vmem:[%s17589_s3 + $0xb8] sm:$0xff]  }
 0x601   : > { %18123 = vst [vmem:[#allocation160_spill] sm:$0xff] %v15352_v59  ;;  %v11091_v44 = vpop.f32.mrf.mxu1 }
 0x602   : > { %v11604_v27 = vpop.f32.mrf.mxu0 }
 0x603   : > { %v4368_v9 = vpop.f32.mrf.mxu1  ;;  %v18125_v27 = vld [vmem:[#allocation21_spill] sm:$0xff] }
 0x604   : > { %v15357_v63 = vadd.f32 %v4368_v9, %v15007_v54  ;;  %v15359_v34 = vpop.f32.mrf.mxu0  ;;  %11786 = vmatmul.mubr.msk.bf16.gmra.mxu0 %vm2877_vm1, %v17965_v32  ;;  %v12592_v32 = vld [vmem:[%s17589_s3 + $0xb0] sm:$0xff]  }
 0x605   : > { %18124 = vst [vmem:[#allocation161_spill] sm:$0xff] %v15359_v34  ;;  %v11092_v43 = vpop.f32.mrf.mxu1  ;;  %11789 = vmatprep.mubr.msk.bf16.mxu0 %vm12774_vm0, %v17769_v52 }
 0x606   : > { %v11607_v33 = vpop.f32.mrf.mxu0 }
 0x607   : > { %v4373_v44 = vpop.f32.mrf.mxu1  ;;  %11358 = vmatmul.mubr.msk.bf16.vlgmr.msra.gmra.mxu1 %vm2877_vm1, %v18125_v27 }
 0x608   : > { %v15371_v54 = vadd.f32 %v4373_v44, %v15021_v30  ;;  %11514 = vmatpush3.bf16.msra.mxu1 %v12591_v37  ;;  %v15373_v9 = vpop.f32.mrf.mxu0  ;;  %11361 = vmatprep.mubr.msk.bf16.mxu1 %vm12774_vm0, %v17769_v52 }
 0x609   : > { %18126 = vst [vmem:[#allocation21_spill] sm:$0xff] %v15373_v9  ;;  %v11095_v43 = vpop.f32.mrf.mxu1  ;;  %11515 = vmatprep.subr.bf16.mxu1 %v17769_v52  ;;  %v18128_v9 = vld [vmem:[#allocation22_spill] sm:$0xff] }
 0x60a   : > { %v11608_v33 = vpop.f32.mrf.mxu0 }
 0x60b   : > { %v4376_v34 = vpop.f32.mrf.mxu1 }
 0x60c   : > { %v15382_v27 = vadd.f32 %v4376_v34, %v15032_v38  ;;  %v15384_v30 = vpop.f32.mrf.mxu0  ;;  %11790 = vmatmul.mubr.msk.bf16.gmra.mxu0 %vm2877_vm1, %v13621_v45  ;;  %11516 = vmatpush3.bf16.msra.mxu1 %v12592_v32 }
 0x60d   : > { %18127 = vst [vmem:[#allocation162_spill] sm:$0xff] %v15384_v30  ;;  %v11096_v37 = vpop.f32.mrf.mxu1  ;;  %11793 = vmatprep.mubr.msk.bf16.mxu0 %vm12774_vm0, %v17769_v52  ;;  %11673 = vmatprep.subr.bf16.mxu1 %v17769_v52 }
 0x60e   : > { %v11611_v44 = vpop.f32.mrf.mxu0 }
 0x60f   : > { %v4381_v43 = vpop.f32.mrf.mxu1  ;;  %11362 = vmatmul.mubr.msk.bf16.gmra.mxu1 %vm2877_vm1, %v18128_v9 }
 0x610   : > { %v15394_v38 = vadd.f32 %v4381_v43, %v15044_v56  ;;  %v15396_v34 = vpop.f32.mrf.mxu0  ;;  %11365 = vmatprep.mubr.msk.bf16.mxu1 %vm12774_vm0, %v17769_v52 }
 0x611   : > { %18129 = vst [vmem:[#allocation22_spill] sm:$0xff] %v15396_v34  ;;  %v11099_v45 = vpop.f32.mrf.mxu1  ;;  %v18131_v34 = vld [vmem:[#allocation23_spill] sm:$0xff] }
 0x612   : > { %v11612_v32 = vpop.f32.mrf.mxu0 }
 0x613   : > { %v4384_v33 = vpop.f32.mrf.mxu1 }
 0x614   : > { %v15401_v37 = vadd.f32 %v4384_v33, %v15051_v20  ;;  %v15403_v30 = vpop.f32.mrf.mxu0  ;;  %11794 = vmatmul.mubr.msk.bf16.gmra.mxu0 %vm2877_vm1, %v13641_v29 }
 0x615   : > { %18130 = vst [vmem:[#allocation163_spill] sm:$0xff] %v15403_v30  ;;  %v11100_v44 = vpop.f32.mrf.mxu1  ;;  %11797 = vmatprep.mubr.msk.bf16.mxu0 %vm12774_vm0, %v17769_v52 }
 0x616   : > { %v11615_v56 = vpop.f32.mrf.mxu0 }
 0x617   : > { %v4389_v43 = vpop.f32.mrf.mxu1  ;;  %11366 = vmatmul.mubr.msk.bf16.gmra.mxu1 %vm2877_vm1, %v18131_v34 }
 0x618   : > { %v15412_v45 = vadd.f32 %v4389_v43, %v15062_v13  ;;  %v15414_v32 = vpop.f32.mrf.mxu0  ;;  %11369 = vmatprep.mubr.msk.bf16.mxu1 %vm12774_vm0, %v17769_v52 }
 0x619   : > { %18132 = vst [vmem:[#allocation23_spill] sm:$0xff] %v15414_v32  ;;  %v11103_v20 = vpop.f32.mrf.mxu1  ;;  %v18134_v32 = vld [vmem:[#allocation24_spill] sm:$0xff] }
 0x61a   : > { %v11616_v33 = vpop.f32.mrf.mxu0 }
 0x61b   : > { %v4392_v29 = vpop.f32.mrf.mxu1 }
 0x61c   : > { %v15419_v44 = vadd.f32 %v4392_v29, %v15069_v53  ;;  %v15421_v30 = vpop.f32.mrf.mxu0  ;;  %11798 = vmatmul.mubr.msk.bf16.gmra.mxu0 %vm2877_vm1, %v13655_v39 }
 0x61d   : > { %18133 = vst [vmem:[#allocation164_spill] sm:$0xff] %v15421_v30  ;;  %v11104_v56 = vpop.f32.mrf.mxu1  ;;  %11801 = vmatprep.mubr.msk.bf16.mxu0 %vm12774_vm0, %v17769_v52 }
 0x61e   : > { %v11619_v13 = vpop.f32.mrf.mxu0 }
 0x61f   : > { %v4397_v43 = vpop.f32.mrf.mxu1  ;;  %11370 = vmatmul.mubr.msk.bf16.gmra.mxu1 %vm2877_vm1, %v18134_v32 }
 0x620   : > { %v15430_v20 = vadd.f32 %v4397_v43, %v15080_v58  ;;  %v15432_v33 = vpop.f32.mrf.mxu0  ;;  %11373 = vmatprep.mubr.msk.bf16.mxu1 %vm12774_vm0, %v17769_v52 }
 0x621   : > { %18135 = vst [vmem:[#allocation24_spill] sm:$0xff] %v15432_v33  ;;  %v11107_v53 = vpop.f32.mrf.mxu1  ;;  %v18137_v33 = vld [vmem:[#allocation25_spill] sm:$0xff] }
 0x622   : > { %v11620_v29 = vpop.f32.mrf.mxu0 }
 0x623   : > { %v4400_v39 = vpop.f32.mrf.mxu1 }
 0x624   : > { %v15437_v56 = vadd.f32 %v4400_v39, %v15087_v23  ;;  %v15439_v30 = vpop.f32.mrf.mxu0  ;;  %11802 = vmatmul.mubr.msk.bf16.gmra.mxu0 %vm2877_vm1, %v17974_v14 }
 0x625   : > { %18136 = vst [vmem:[#allocation165_spill] sm:$0xff] %v15439_v30  ;;  %v11108_v13 = vpop.f32.mrf.mxu1  ;;  %11805 = vmatprep.mubr.msk.bf16.mxu0 %vm12774_vm0, %v17769_v52 }
 0x626   : > { %v11623_v58 = vpop.f32.mrf.mxu0 }
 0x627   : > { %v4405_v43 = vpop.f32.mrf.mxu1  ;;  %11374 = vmatmul.mubr.msk.bf16.gmra.mxu1 %vm2877_vm1, %v18137_v33 }
 0x628   : > { %v15448_v53 = vadd.f32 %v4405_v43, %v15098_v35  ;;  %v15450_v29 = vpop.f32.mrf.mxu0  ;;  %11377 = vmatprep.mubr.msk.bf16.mxu1 %vm12774_vm0, %v17769_v52  ;;  %v18140_v43 = vld [vmem:[#allocation52_spill] sm:$0xff] }
 0x629   : > { %18138 = vst [vmem:[#allocation25_spill] sm:$0xff] %v15450_v29  ;;  %v11111_v23 = vpop.f32.mrf.mxu1  ;;  %v4654_v29 = vadd.f32 %v18140_v43, %v15116_v25  ;;  %v18145_v43 = vld [vmem:[#allocation55_spill] sm:$0xff] }
 0x62a   : > { %v11624_v39 = vpop.f32.mrf.mxu0  ;;  %v18141_v23 = vld [vmem:[#allocation26_spill] sm:$0xff] }
 0x62b   : > { %v4408_v14 = vpop.f32.mrf.mxu1 }
 0x62c   : > { %v15455_v13 = vadd.f32 %v4408_v14, %v15105_v19  ;;  %v15457_v30 = vpop.f32.mrf.mxu0  ;;  %11806 = vmatmul.mubr.msk.bf16.gmra.mxu0 %vm2877_vm1, %v17977_v10 }
 0x62d   : > { %18139 = vst [vmem:[#allocation166_spill] sm:$0xff] %v15457_v30  ;;  %v11112_v58 = vpop.f32.mrf.mxu1  ;;  %11809 = vmatprep.mubr.msk.bf16.mxu0 %vm12774_vm0, %v17769_v52 }
 0x62e   : > { %v11627_v35 = vpop.f32.mrf.mxu0  ;;  %v18143_v58 = vld [vmem:[#allocation2_spill] sm:$0xff] }
 0x62f   : > { %v4745_v59 = vpop.f32.mrf.mxu1  ;;  %11378 = vmatmul.mubr.msk.bf16.gmra.mxu1 %vm2877_vm1, %v18141_v23  ;;  %v4655_v30 = vadd.f32 %v18143_v58, %v15123_v17 }
 0x630   : > { %v15467_v39 = vadd.f32 %v4745_v59, %v4654_v29  ;;  %v15469_v19 = vpop.f32.mrf.mxu0  ;;  %11381 = vmatprep.mubr.msk.bf16.mxu1 %vm12774_vm0, %v17769_v52 }
 0x631   : > { %18142 = vst [vmem:[#allocation52_spill] sm:$0xff] %v15469_v19  ;;  %v11199_v10 = vpop.f32.mrf.mxu1  ;;  %v18146_v19 = vld [vmem:[#allocation27_spill] sm:$0xff] }
 0x632   : > { %v11628_v14 = vpop.f32.mrf.mxu0  ;;  %v4656_v10 = vadd.f32 %v18145_v43, %v15134_v5 }
 0x633   : > { %v4748_v35 = vpop.f32.mrf.mxu1 }
 0x634   : > { %v15475_v26 = vadd.f32 %v4748_v35, %v4655_v30  ;;  %v15477_v25 = vpop.f32.mrf.mxu0  ;;  %11810 = vmatmul.mubr.msk.bf16.gmra.mxu0 %vm2877_vm1, %v18080_v42  ;;  %v18148_v35 = vld [vmem:[#allocation56_spill] sm:$0xff] }
 0x635   : > { %18144 = vst [vmem:[#allocation26_spill] sm:$0xff] %v15477_v25  ;;  %v11200_v59 = vpop.f32.mrf.mxu1  ;;  %11813 = vmatprep.mubr.msk.bf16.mxu0 %vm12774_vm0, %v17769_v52 }
 0x636   : > { %v11631_v29 = vpop.f32.mrf.mxu0  ;;  %v4657_v59 = vadd.f32 %v18148_v35, %v15141_v24 }
 0x637   : > { %v4753_v14 = vpop.f32.mrf.mxu1  ;;  %11382 = vmatmul.mubr.msk.bf16.gmra.mxu1 %vm2877_vm1, %v18146_v19 }
 0x638   : > { %v15487_v17 = vadd.f32 %v4753_v14, %v4656_v10  ;;  %v15489_v30 = vpop.f32.mrf.mxu0  ;;  %11385 = vmatprep.mubr.msk.bf16.mxu1 %vm12774_vm0, %v17769_v52  ;;  %v18150_v14 = vld [vmem:[#allocation3_spill] sm:$0xff] }
 0x639   : > { %18147 = vst [vmem:[#allocation2_spill] sm:$0xff] %v15489_v30  ;;  %v11203_v42 = vpop.f32.mrf.mxu1  ;;  %v18151_v30 = vld [vmem:[#allocation28_spill] sm:$0xff] }
 0x63a   : > { %v11632_v58 = vpop.f32.mrf.mxu0  ;;  %v4658_v42 = vadd.f32 %v18150_v14, %v15152_v51 }
 0x63b   : > { %v4756_v29 = vpop.f32.mrf.mxu1 }
 0x63c   : > { %v15495_v25 = vadd.f32 %v4756_v29, %v4657_v59  ;;  %v15497_v5 = vpop.f32.mrf.mxu0  ;;  %11814 = vmatmul.mubr.msk.bf16.gmra.mxu0 %vm2877_vm1, %v18083_v7  ;;  %v18153_v29 = vld [vmem:[#allocation58_spill] sm:$0xff] }
 0x63d   : > { %18149 = vst [vmem:[#allocation55_spill] sm:$0xff] %v15497_v5  ;;  %v11204_v43 = vpop.f32.mrf.mxu1  ;;  %11817 = vmatprep.mubr.msk.bf16.mxu0 %vm12774_vm0, %v17769_v52 }
 0x63e   : > { %v11635_v10 = vpop.f32.mrf.mxu0  ;;  %v4659_v43 = vadd.f32 %v18153_v29, %v15159_v6 }
 0x63f   : > { %v4761_v58 = vpop.f32.mrf.mxu1  ;;  %11386 = vmatmul.mubr.msk.bf16.gmra.mxu1 %vm2877_vm1, %v18151_v30 }
 0x640   : > { %v15507_v24 = vadd.f32 %v4761_v58, %v4658_v42  ;;  %v15509_v35 = vpop.f32.mrf.mxu0  ;;  %11389 = vmatprep.mubr.msk.bf16.mxu1 %vm12774_vm0, %v17769_v52  ;;  %v18155_v58 = vld [vmem:[#allocation59_spill] sm:$0xff] }
 0x641   : > { %18152 = vst [vmem:[#allocation27_spill] sm:$0xff] %v15509_v35  ;;  %v11207_v7 = vpop.f32.mrf.mxu1  ;;  %v18156_v35 = vld [vmem:[#allocation29_spill] sm:$0xff] }
 0x642   : > { %v11636_v59 = vpop.f32.mrf.mxu0  ;;  %v4660_v7 = vadd.f32 %v18155_v58, %v15170_v4 }
 0x643   : > { %v4764_v10 = vpop.f32.mrf.mxu1 }
 0x644   : > { %v15515_v5 = vadd.f32 %v4764_v10, %v4659_v43  ;;  %v15517_v51 = vpop.f32.mrf.mxu0  ;;  %11818 = vmatmul.mubr.msk.bf16.gmra.mxu0 %vm2877_vm1, %v18087_v62  ;;  %v18158_v10 = vld [vmem:[#allocation4_spill] sm:$0xff] }
 0x645   : > { %18154 = vst [vmem:[#allocation56_spill] sm:$0xff] %v15517_v51  ;;  %v11208_v14 = vpop.f32.mrf.mxu1  ;;  %11821 = vmatprep.mubr.msk.bf16.mxu0 %vm12774_vm0, %v17769_v52 }
 0x646   : > { %v11639_v42 = vpop.f32.mrf.mxu0  ;;  %v4661_v14 = vadd.f32 %v18158_v10, %v15177_v55 }
 0x647   : > { %v4769_v59 = vpop.f32.mrf.mxu1  ;;  %11390 = vmatmul.mubr.msk.bf16.gmra.mxu1 %vm2877_vm1, %v18156_v35 }
 0x648   : > { %v15527_v6 = vadd.f32 %v4769_v59, %v4660_v7  ;;  %v15529_v29 = vpop.f32.mrf.mxu0  ;;  %11393 = vmatprep.mubr.msk.bf16.mxu1 %vm12774_vm0, %v17769_v52  ;;  %v18160_v59 = vld [vmem:[#allocation62_spill] sm:$0xff] }
 0x649   : > { %18157 = vst [vmem:[#allocation3_spill] sm:$0xff] %v15529_v29  ;;  %v11211_v62 = vpop.f32.mrf.mxu1  ;;  %v18161_v29 = vld [vmem:[#allocation30_spill] sm:$0xff] }
 0x64a   : > { %v11640_v43 = vpop.f32.mrf.mxu0  ;;  %v4662_v62 = vadd.f32 %v18160_v59, %v15188_v47 }
 0x64b   : > { %v4772_v42 = vpop.f32.mrf.mxu1 }
 0x64c   : > { %v15535_v51 = vadd.f32 %v4772_v42, %v4661_v14  ;;  %v15537_v4 = vpop.f32.mrf.mxu0  ;;  %11822 = vmatmul.mubr.msk.bf16.gmra.mxu0 %vm2877_vm1, %v18092_v57  ;;  %v18163_v42 = vld [vmem:[#allocation5_spill] sm:$0xff] }
 0x64d   : > { %18159 = vst [vmem:[#allocation28_spill] sm:$0xff] %v15537_v4  ;;  %v11212_v58 = vpop.f32.mrf.mxu1  ;;  %11825 = vmatprep.mubr.msk.bf16.mxu0 %vm12774_vm0, %v17769_v52 }
 0x64e   : > { %v11643_v7 = vpop.f32.mrf.mxu0  ;;  %v4663_v58 = vadd.f32 %v18163_v42, %v15195_v40 }
 0x64f   : > { %v4777_v43 = vpop.f32.mrf.mxu1  ;;  %11394 = vmatmul.mubr.msk.bf16.gmra.mxu1 %vm2877_vm1, %v18161_v29 }
 0x650   : > { %v15547_v55 = vadd.f32 %v4777_v43, %v4662_v62  ;;  %v15549_v10 = vpop.f32.mrf.mxu0  ;;  %11397 = vmatprep.mubr.msk.bf16.mxu1 %vm12774_vm0, %v17769_v52  ;;  %v18165_v43 = vld [vmem:[#allocation65_spill] sm:$0xff] }
 0x651   : > { %18162 = vst [vmem:[#allocation58_spill] sm:$0xff] %v15549_v10  ;;  %v11215_v57 = vpop.f32.mrf.mxu1  ;;  %v18166_v10 = vld [vmem:[#allocation31_spill] sm:$0xff] }
 0x652   : > { %v11644_v14 = vpop.f32.mrf.mxu0  ;;  %v4664_v57 = vadd.f32 %v18165_v43, %v15206_v11  ;;  %v18170_v43 = vld [vmem:[#allocation95_spill] sm:$0xff] }
 0x653   : > { %v4780_v7 = vpop.f32.mrf.mxu1 }
 0x654   : > { %v15555_v4 = vadd.f32 %v4780_v7, %v4663_v58  ;;  %v15557_v47 = vpop.f32.mrf.mxu0  ;;  %11826 = vmatmul.mubr.msk.bf16.gmra.mxu0 %vm2877_vm1, %v18096_v2  ;;  %v18168_v7 = vld [vmem:[#allocation6_spill] sm:$0xff] }
 0x655   : > { %18164 = vst [vmem:[#allocation59_spill] sm:$0xff] %v15557_v47  ;;  %v11216_v59 = vpop.f32.mrf.mxu1  ;;  %11829 = vmatprep.mubr.msk.bf16.mxu0 %vm12774_vm0, %v17769_v52 }
 0x656   : > { %v11647_v62 = vpop.f32.mrf.mxu0  ;;  %v4665_v59 = vadd.f32 %v18168_v7, %v15213_v3 }
 0x657   : > { %v4785_v14 = vpop.f32.mrf.mxu1  ;;  %11398 = vmatmul.mubr.msk.bf16.gmra.mxu1 %vm2877_vm1, %v18166_v10 }
 0x658   : > { %v15567_v40 = vadd.f32 %v4785_v14, %v4664_v57  ;;  %v15569_v42 = vpop.f32.mrf.mxu0  ;;  %11401 = vmatprep.mubr.msk.bf16.mxu1 %vm12774_vm0, %v17769_v52 }
 0x659   : > { %18167 = vst [vmem:[#allocation29_spill] sm:$0xff] %v15569_v42  ;;  %v11219_v2 = vpop.f32.mrf.mxu1  ;;  %v18171_v42 = vld [vmem:[#allocation68_spill] sm:$0xff] }
 0x65a   : > { %v11648_v58 = vpop.f32.mrf.mxu0  ;;  %v4666_v2 = vadd.f32 %v18171_v42, %v15224_v60 }
 0x65b   : > { %v4788_v62 = vpop.f32.mrf.mxu1 }
 0x65c   : > { %v15575_v47 = vadd.f32 %v4788_v62, %v4665_v59  ;;  %v15577_v11 = vpop.f32.mrf.mxu0  ;;  %11830 = vmatmul.mubr.msk.bf16.gmra.mxu0 %vm2877_vm1, %v18170_v43  ;;  %v18174_v43 = vld [vmem:[#allocation7_spill] sm:$0xff] }
 0x65d   : > { %18169 = vst [vmem:[#allocation4_spill] sm:$0xff] %v15577_v11  ;;  %v11220_v57 = vpop.f32.mrf.mxu1  ;;  %11921 = vmatprep.mubr.msk.bf16.mxu0 %vm12774_vm0, %v17769_v52 }
 0x65e   : > { %v11651_v14 = vpop.f32.mrf.mxu0  ;;  %v4667_v57 = vadd.f32 %v18174_v43, %v15231_v28  ;;  %v18180_v43 = vld [vmem:[#allocation71_spill] sm:$0xff] }
 0x65f   : > { %v4793_v58 = vpop.f32.mrf.mxu1  ;;  %11402 = vmatmul.mubr.msk.bf16.gmra.mxu1 %vm2877_vm1, %v18172_v22 }
 0x660   : > { %v15587_v3 = vadd.f32 %v4793_v58, %v4666_v2  ;;  %v15589_v7 = vpop.f32.mrf.mxu0  ;;  %11405 = vmatprep.mubr.msk.bf16.mxu1 %vm12774_vm0, %v17769_v52  ;;  %v18176_v2 = vld [vmem:[#allocation70_spill] sm:$0xff] }
 0x661   : > { %18173 = vst [vmem:[#allocation62_spill] sm:$0xff] %v15589_v7  ;;  %v11223_v59 = vpop.f32.mrf.mxu1  ;;  %v4668_v58 = vadd.f32 %v18176_v2, %v15242_v49  ;;  %v18177_v7 = vld [vmem:[#allocation33_spill] sm:$0xff] }
 0x662   : > { %v11652_v62 = vpop.f32.mrf.mxu0 }
 0x663   : > { %v4796_v14 = vpop.f32.mrf.mxu1 }
 0x664   : > { %v15595_v11 = vadd.f32 %v4796_v14, %v4667_v57  ;;  %v15597_v60 = vpop.f32.mrf.mxu0  ;;  %v4669_v57 = vadd.f32 %v18180_v43, %v15249_v16  ;;  %v18186_v43 = vld [vmem:[#allocation72_spill] sm:$0xff] }
 0x665   : > { %18175 = vst [vmem:[#allocation30_spill] sm:$0xff] %v15597_v60  ;;  %v11224_v42 = vpop.f32.mrf.mxu1 }
 0x666   : > { %v11655_v48 = vpop.f32.mrf.mxu0 }
 0x667   : > { %v4801_v1 = vpop.f32.mrf.mxu1  ;;  %11406 = vmatmul.mubr.msk.bf16.gmra.mxu1 %vm2877_vm1, %v18177_v7 }
 0x668   : > { %v15603_v21 = vadd.f32 %v4801_v1, %v4668_v58  ;;  %v15605_v59 = vpop.f32.mrf.mxu0  ;;  %11409 = vmatprep.mubr.msk.bf16.mxu1 %vm12774_vm0, %v17769_v52  ;;  %v18182_v1 = vld [vmem:[#allocation8_spill] sm:$0xff] }
 0x669   : > { %18179 = vst [vmem:[#allocation65_spill] sm:$0xff] %v15605_v59  ;;  %v11227_v28 = vpop.f32.mrf.mxu1  ;;  %v4670_v58 = vadd.f32 %v18182_v1, %v15260_v31  ;;  %v18183_v59 = vld [vmem:[#allocation34_spill] sm:$0xff] }
 0x66a   : > { %18178 = vst [vmem:[#allocation5_spill] sm:$0xff] %v15603_v21  ;;  %v11656_v62 = vpop.f32.mrf.mxu0 }
 0x66b   : > { %v4804_v48 = vpop.f32.mrf.mxu1 }
 0x66c   : > { %v15611_v14 = vadd.f32 %v4804_v48, %v4669_v57  ;;  %v15613_v49 = vpop.f32.mrf.mxu0  ;;  %v4671_v57 = vadd.f32 %v18186_v43, %v15267_v8  ;;  %v18192_v43 = vld [vmem:[#allocation75_spill] sm:$0xff] }
 0x66d   : > { %18181 = vst [vmem:[#allocation31_spill] sm:$0xff] %v15613_v49  ;;  %v11228_v42 = vpop.f32.mrf.mxu1 }
 0x66e   : > { %v11659_v2 = vpop.f32.mrf.mxu0 }
 0x66f   : > { %v4809_v60 = vpop.f32.mrf.mxu1  ;;  %11410 = vmatmul.mubr.msk.bf16.gmra.mxu1 %vm2877_vm1, %v18183_v59 }
 0x670   : > { %v15619_v21 = vadd.f32 %v4809_v60, %v4670_v58  ;;  %v15621_v28 = vpop.f32.mrf.mxu0  ;;  %11413 = vmatprep.mubr.msk.bf16.mxu1 %vm12774_vm0, %v17769_v52  ;;  %v18188_v60 = vld [vmem:[#allocation73_spill] sm:$0xff] }
 0x671   : > { %18185 = vst [vmem:[#allocation95_spill] sm:$0xff] %v15621_v28  ;;  %v11231_v16 = vpop.f32.mrf.mxu1  ;;  %v4672_v58 = vadd.f32 %v18188_v60, %v15278_v36  ;;  %v18189_v28 = vld [vmem:[#allocation35_spill] sm:$0xff] }
 0x672   : > { %18184 = vst [vmem:[#allocation6_spill] sm:$0xff] %v15619_v21  ;;  %v11660_v62 = vpop.f32.mrf.mxu0 }
 0x673   : > { %v4812_v48 = vpop.f32.mrf.mxu1 }
 0x674   : > { %v15627_v42 = vadd.f32 %v4812_v48, %v4671_v57  ;;  %v15629_v31 = vpop.f32.mrf.mxu0  ;;  %v4673_v57 = vadd.f32 %v18192_v43, %v15285_v61  ;;  %v18198_v43 = vld [vmem:[#allocation9_spill] sm:$0xff] }
 0x675   : > { %18187 = vst [vmem:[#allocation68_spill] sm:$0xff] %v15629_v31  ;;  %v11232_v2 = vpop.f32.mrf.mxu1 }
 0x676   : > { %v11663_v1 = vpop.f32.mrf.mxu0 }
 0x677   : > { %v4817_v49 = vpop.f32.mrf.mxu1  ;;  %11414 = vmatmul.mubr.msk.bf16.gmra.mxu1 %vm2877_vm1, %v18189_v28 }
 0x678   : > { %v15635_v21 = vadd.f32 %v4817_v49, %v4672_v58  ;;  %v15637_v16 = vpop.f32.mrf.mxu0  ;;  %11417 = vmatprep.mubr.msk.bf16.mxu1 %vm12774_vm0, %v17769_v52  ;;  %v18194_v49 = vld [vmem:[#allocation76_spill] sm:$0xff] }
 0x679   : > { %18191 = vst [vmem:[#allocation7_spill] sm:$0xff] %v15637_v16  ;;  %v11235_v8 = vpop.f32.mrf.mxu1  ;;  %v4674_v58 = vadd.f32 %v18194_v49, %v15296_v18  ;;  %v18195_v16 = vld [vmem:[#allocation36_spill] sm:$0xff] }
 0x67a   : > { %18190 = vst [vmem:[#allocation32_spill] sm:$0xff] %v15635_v21  ;;  %v11664_v62 = vpop.f32.mrf.mxu0 }
 0x67b   : > { %v4820_v48 = vpop.f32.mrf.mxu1 }
 0x67c   : > { %v15643_v2 = vadd.f32 %v4820_v48, %v4673_v57  ;;  %v15645_v36 = vpop.f32.mrf.mxu0  ;;  %v4675_v57 = vadd.f32 %v18198_v43, %v15303_v41  ;;  %v18204_v43 = vld [vmem:[#allocation78_spill] sm:$0xff] }
 0x67d   : > { %18193 = vst [vmem:[#allocation70_spill] sm:$0xff] %v15645_v36  ;;  %v11236_v1 = vpop.f32.mrf.mxu1 }
 0x67e   : > { %v11667_v60 = vpop.f32.mrf.mxu0 }
 0x67f   : > { %v4825_v31 = vpop.f32.mrf.mxu1  ;;  %11418 = vmatmul.mubr.msk.bf16.gmra.mxu1 %vm2877_vm1, %v18195_v16 }
 0x680   : > { %v15651_v21 = vadd.f32 %v4825_v31, %v4674_v58  ;;  %v15653_v8 = vpop.f32.mrf.mxu0  ;;  %11421 = vmatprep.mubr.msk.bf16.mxu1 %vm12774_vm0, %v17769_v52  ;;  %v18200_v31 = vld [vmem:[#allocation42_spill] sm:$0xff] }
 0x681   : > { %18197 = vst [vmem:[#allocation71_spill] sm:$0xff] %v15653_v8  ;;  %v11239_v61 = vpop.f32.mrf.mxu1  ;;  %v4676_v58 = vadd.f32 %v18200_v31, %v15314_v0  ;;  %v18201_v8 = vld [vmem:[#allocation37_spill] sm:$0xff] }
 0x682   : > { %18196 = vst [vmem:[#allocation33_spill] sm:$0xff] %v15651_v21  ;;  %v11668_v62 = vpop.f32.mrf.mxu0 }
 0x683   : > { %v4828_v48 = vpop.f32.mrf.mxu1 }
 0x684   : > { %v15659_v1 = vadd.f32 %v4828_v48, %v4675_v57  ;;  %v15661_v18 = vpop.f32.mrf.mxu0  ;;  %v4677_v57 = vadd.f32 %v18204_v43, %v15321_v15  ;;  %v18210_v43 = vld [vmem:[#allocation43_spill] sm:$0xff] }
 0x685   : > { %18199 = vst [vmem:[#allocation8_spill] sm:$0xff] %v15661_v18  ;;  %v11240_v60 = vpop.f32.mrf.mxu1 }
 0x686   : > { %v11671_v49 = vpop.f32.mrf.mxu0 }
 0x687   : > { %v4833_v36 = vpop.f32.mrf.mxu1  ;;  %11422 = vmatmul.mubr.msk.bf16.gmra.mxu1 %vm2877_vm1, %v18201_v8 }
 0x688   : > { %v15667_v21 = vadd.f32 %v4833_v36, %v4676_v58  ;;  %v15669_v61 = vpop.f32.mrf.mxu0  ;;  %11425 = vmatprep.mubr.msk.bf16.mxu1 %vm12774_vm0, %v17769_v52  ;;  %v18206_v36 = vld [vmem:[#allocation79_spill] sm:$0xff] }
 0x689   : > { %18203 = vst [vmem:[#allocation72_spill] sm:$0xff] %v15669_v61  ;;  %v11243_v41 = vpop.f32.mrf.mxu1  ;;  %v4678_v58 = vadd.f32 %v18206_v36, %v15332_v12  ;;  %v18207_v61 = vld [vmem:[#allocation38_spill] sm:$0xff] }
 0x68a   : > { %18202 = vst [vmem:[#allocation34_spill] sm:$0xff] %v15667_v21  ;;  %v11672_v62 = vpop.f32.mrf.mxu0 }
 0x68b   : > { %v4836_v48 = vpop.f32.mrf.mxu1 }
 0x68c   : > { %v15675_v60 = vadd.f32 %v4836_v48, %v4677_v57  ;;  %v15677_v0 = vpop.f32.mrf.mxu0  ;;  %v4679_v57 = vadd.f32 %v18210_v43, %v15339_v50  ;;  %v18215_v43 = vld [vmem:[#allocation81_spill] sm:$0xff] }
 0x68d   : > { %18205 = vst [vmem:[#allocation73_spill] sm:$0xff] %v15677_v0  ;;  %v11244_v49 = vpop.f32.mrf.mxu1 }
 0x68e   : > { %v11759_v31 = vpop.f32.mrf.mxu0 }
 0x68f   : > { %v4841_v18 = vpop.f32.mrf.mxu1  ;;  %11426 = vmatmul.mubr.msk.bf16.gmra.mxu1 %vm2877_vm1, %v18207_v61 }
 0x690   : > { %v15683_v21 = vadd.f32 %v4841_v18, %v4678_v58  ;;  %v15685_v41 = vpop.f32.mrf.mxu0  ;;  %11429 = vmatprep.mubr.msk.bf16.mxu1 %vm12774_vm0, %v17769_v52  ;;  %v18212_v18 = vld [vmem:[#allocation11_spill] sm:$0xff] }
 0x691   : > { %18209 = vst [vmem:[#allocation75_spill] sm:$0xff] %v15685_v41  ;;  %v11247_v15 = vpop.f32.mrf.mxu1  ;;  %v4680_v58 = vadd.f32 %v18212_v18, %v15350_v46  ;;  %v18213_v41 = vld [vmem:[#allocation39_spill] sm:$0xff] }
 0x692   : > { %18208 = vst [vmem:[#allocation35_spill] sm:$0xff] %v15683_v21  ;;  %v11760_v62 = vpop.f32.mrf.mxu0 }
 0x693   : > { %v4844_v48 = vpop.f32.mrf.mxu1 }
 0x694   : > { %v15691_v49 = vadd.f32 %v4844_v48, %v4679_v57  ;;  %v15693_v12 = vpop.f32.mrf.mxu0  ;;  %v4681_v57 = vadd.f32 %v18215_v43, %v15357_v63 }
 0x695   : > { %18211 = vst [vmem:[#allocation76_spill] sm:$0xff] %v15693_v12  ;;  %v11248_v31 = vpop.f32.mrf.mxu1 }
 0x696   : > { %v11763_v36 = vpop.f32.mrf.mxu0 }
 0x697   : > { %v4849_v0 = vpop.f32.mrf.mxu1  ;;  %11430 = vmatmul.mubr.msk.bf16.gmra.mxu1 %vm2877_vm1, %v18213_v41 }
 0x698   : > { %v15699_v21 = vadd.f32 %v4849_v0, %v4680_v58  ;;  %v15701_v15 = vpop.f32.mrf.mxu0  ;;  %11517 = vmatprep.mubr.msk.bf16.mxu1 %vm12774_vm0, %v17769_v52  ;;  %v12593_v0 = vld [vmem:[%s17589_s3 + $0xd8] sm:$0xff]  }
 0x699   : > { %18214 = vst [vmem:[#allocation36_spill] sm:$0xff] %v15701_v15  ;;  %v11251_v50 = vpop.f32.mrf.mxu1  ;;  %v18217_v58 = vld [vmem:[#allocation45_spill] sm:$0xff] }
 0x69a   : > { %v11764_v62 = vpop.f32.mrf.mxu0  ;;  %v4682_v15 = vadd.f32 %v18217_v58, %v15371_v54 }
 0x69b   : > { %v4852_v48 = vpop.f32.mrf.mxu1  ;;  %v12594_v62 = vld [vmem:[%s17589_s3 + $0xd0] sm:$0xff]  }
 0x69c   : > { %v15707_v31 = vadd.f32 %v4852_v48, %v4681_v57  ;;  %v15709_v46 = vpop.f32.mrf.mxu0  ;;  %v18219_v57 = vld [vmem:[#allocation82_spill] sm:$0xff] }
 0x69d   : > { %18216 = vst [vmem:[#allocation9_spill] sm:$0xff] %v15709_v46  ;;  %v11252_v36 = vpop.f32.mrf.mxu1  ;;  %v4683_v48 = vadd.f32 %v18219_v57, %v15382_v27  ;;  %v18339_v46 = vld [vmem:[#allocation46_spill] sm:$0xff] }
 0x69e   : > { %v11767_v18 = vpop.f32.mrf.mxu0 }
 0x69f   : > { %v4857_v12 = vpop.f32.mrf.mxu1  ;;  %11518 = vmatmul.mubr.msk.bf16.vlgmr.msra.gmra.mxu1 %vm2877_vm1, %v18128_v9  ;;  %v18221_v18 = vld [vmem:[#allocation12_spill] sm:$0xff] }
 0x6a0   : > { %v15718_v50 = vadd.f32 %v4857_v12, %v4682_v15  ;;  %11674 = vmatpush3.bf16.msra.mxu1 %v12593_v0  ;;  %v15720_v63 = vpop.f32.mrf.mxu0  ;;  %11521 = vmatprep.mubr.msk.bf16.mxu1 %vm12774_vm0, %v17769_v52  ;;  %v4684_v58 = vadd.f32 %v18221_v18, %v15394_v38 }
 0x6a1   : > { %18218 = vst [vmem:[#allocation42_spill] sm:$0xff] %v15720_v63  ;;  %v11255_v43 = vpop.f32.mrf.mxu1  ;;  %11675 = vmatprep.subr.bf16.mxu1 %v17769_v52  ;;  %v18335_v63 = vld [vmem:[#allocation91_spill] sm:$0xff] }
 0x6a2   : > { %v11768_v54 = vpop.f32.mrf.mxu0 }
 0x6a3   : > { %v4860_v9 = vpop.f32.mrf.mxu1 }
 0x6a4   : > { %v15730_v12 = vadd.f32 %v4860_v9, %v4683_v48  ;;  %v15732_v15 = vpop.f32.mrf.mxu0  ;;  %11676 = vmatpush3.bf16.msra.mxu1 %v12594_v62  ;;  %v18223_v48 = vld [vmem:[#allocation84_spill] sm:$0xff] }
 0x6a5   : > { %18220 = vst [vmem:[#allocation37_spill] sm:$0xff] %v15732_v15  ;;  %v11256_v0 = vpop.f32.mrf.mxu1  ;;  %11833 = vmatprep.subr.bf16.mxu1 %v17769_v52  ;;  %v4685_v9 = vadd.f32 %v18223_v48, %v15401_v37  ;;  %v18227_v48 = vld [vmem:[#allocation85_spill] sm:$0xff] }
 0x6a6   : > { %v11771_v36 = vpop.f32.mrf.mxu0 }
 0x6a7   : > { %v4865_v43 = vpop.f32.mrf.mxu1  ;;  %11522 = vmatmul.mubr.msk.bf16.gmra.mxu1 %vm2877_vm1, %v18131_v34  ;;  %v18225_v34 = vld [vmem:[#allocation48_spill] sm:$0xff] }
 0x6a8   : > { %v15739_v54 = vadd.f32 %v4865_v43, %v4684_v58  ;;  %v15741_v27 = vpop.f32.mrf.mxu0  ;;  %11525 = vmatprep.mubr.msk.bf16.mxu1 %vm12774_vm0, %v17769_v52  ;;  %v4686_v58 = vadd.f32 %v18225_v34, %v15412_v45 }
 0x6a9   : > { %18222 = vst [vmem:[#allocation78_spill] sm:$0xff] %v15741_v27  ;;  %v11259_v57 = vpop.f32.mrf.mxu1 }
 0x6aa   : > { %v11772_v62 = vpop.f32.mrf.mxu0 }
 0x6ab   : > { %v4868_v0 = vpop.f32.mrf.mxu1 }
 0x6ac   : > { %v15747_v36 = vadd.f32 %v4868_v0, %v4685_v9  ;;  %v15749_v38 = vpop.f32.mrf.mxu0  ;;  %v4687_v9 = vadd.f32 %v18227_v48, %v15419_v44  ;;  %v18231_v48 = vld [vmem:[#allocation14_spill] sm:$0xff] }
 0x6ad   : > { %18224 = vst [vmem:[#allocation79_spill] sm:$0xff] %v15749_v38  ;;  %v11260_v18 = vpop.f32.mrf.mxu1  ;;  %v18332_v38 = vld [vmem:[#allocation44_spill] sm:$0xff] }
 0x6ae   : > { %v11775_v15 = vpop.f32.mrf.mxu0 }
 0x6af   : > { %v4873_v43 = vpop.f32.mrf.mxu1  ;;  %11526 = vmatmul.mubr.msk.bf16.gmra.mxu1 %vm2877_vm1, %v18134_v32  ;;  %v18229_v32 = vld [vmem:[#allocation13_spill] sm:$0xff] }
 0x6b0   : > { %v15755_v27 = vadd.f32 %v4873_v43, %v4686_v58  ;;  %v15757_v57 = vpop.f32.mrf.mxu0  ;;  %11529 = vmatprep.mubr.msk.bf16.mxu1 %vm12774_vm0, %v17769_v52  ;;  %v4688_v58 = vadd.f32 %v18229_v32, %v15430_v20 }
 0x6b1   : > { %18226 = vst [vmem:[#allocation38_spill] sm:$0xff] %v15757_v57  ;;  %v11263_v37 = vpop.f32.mrf.mxu1 }
 0x6b2   : > { %v11776_v62 = vpop.f32.mrf.mxu0 }
 0x6b3   : > { %v4876_v15 = vpop.f32.mrf.mxu1 }
 0x6b4   : > { %v15763_v0 = vadd.f32 %v4876_v15, %v4687_v9  ;;  %v15765_v45 = vpop.f32.mrf.mxu0  ;;  %v4689_v9 = vadd.f32 %v18231_v48, %v15437_v56  ;;  %v18235_v48 = vld [vmem:[#allocation16_spill] sm:$0xff] }
 0x6b5   : > { %18228 = vst [vmem:[#allocation43_spill] sm:$0xff] %v15765_v45  ;;  %v11264_v18 = vpop.f32.mrf.mxu1 }
 0x6b6   : > { %v11779_v34 = vpop.f32.mrf.mxu0 }
 0x6b7   : > { %v4881_v43 = vpop.f32.mrf.mxu1  ;;  %11530 = vmatmul.mubr.msk.bf16.gmra.mxu1 %vm2877_vm1, %v18137_v33  ;;  %v18233_v33 = vld [vmem:[#allocation15_spill] sm:$0xff] }
 0x6b8   : > { %v15771_v57 = vadd.f32 %v4881_v43, %v4688_v58  ;;  %v15773_v37 = vpop.f32.mrf.mxu0  ;;  %11533 = vmatprep.mubr.msk.bf16.mxu1 %vm12774_vm0, %v17769_v52  ;;  %v4690_v58 = vadd.f32 %v18233_v33, %v15448_v53 }
 0x6b9   : > { %18230 = vst [vmem:[#allocation11_spill] sm:$0xff] %v15773_v37  ;;  %v11267_v44 = vpop.f32.mrf.mxu1 }
 0x6ba   : > { %v11780_v62 = vpop.f32.mrf.mxu0 }
 0x6bb   : > { %v4884_v15 = vpop.f32.mrf.mxu1 }
 0x6bc   : > { %v15779_v18 = vadd.f32 %v4884_v15, %v4689_v9  ;;  %v15781_v20 = vpop.f32.mrf.mxu0  ;;  %v4691_v9 = vadd.f32 %v18235_v48, %v15455_v13  ;;  %v18239_v48 = vld [vmem:[#allocation18_spill] sm:$0xff] }
 0x6bd   : > { %18232 = vst [vmem:[#allocation39_spill] sm:$0xff] %v15781_v20  ;;  %v11268_v34 = vpop.f32.mrf.mxu1  ;;  %v18326_v20 = vld [vmem:[#allocation111_spill] sm:$0xff] }
 0x6be   : > { %v11783_v32 = vpop.f32.mrf.mxu0 }
 0x6bf   : > { %v4889_v43 = vpop.f32.mrf.mxu1  ;;  %11534 = vmatmul.mubr.msk.bf16.gmra.mxu1 %vm2877_vm1, %v18141_v23  ;;  %v18237_v23 = vld [vmem:[#allocation17_spill] sm:$0xff] }
 0x6c0   : > { %v15787_v37 = vadd.f32 %v4889_v43, %v4690_v58  ;;  %v15789_v44 = vpop.f32.mrf.mxu0  ;;  %11537 = vmatprep.mubr.msk.bf16.mxu1 %vm12774_vm0, %v17769_v52  ;;  %v5147_v58 = vadd.f32 %v18237_v23, %v15467_v39 }
 0x6c1   : > { %18234 = vst [vmem:[#allocation81_spill] sm:$0xff] %v15789_v44  ;;  %v11271_v56 = vpop.f32.mrf.mxu1 }
 0x6c2   : > { %v11784_v62 = vpop.f32.mrf.mxu0 }
 0x6c3   : > { %v4892_v15 = vpop.f32.mrf.mxu1 }
 0x6c4   : > { %v15795_v34 = vadd.f32 %v4892_v15, %v4691_v9  ;;  %v15797_v53 = vpop.f32.mrf.mxu0  ;;  %v5148_v9 = vadd.f32 %v18239_v48, %v15475_v26  ;;  %v18243_v48 = vld [vmem:[#allocation69_spill] sm:$0xff] }
 0x6c5   : > { %18236 = vst [vmem:[#allocation45_spill] sm:$0xff] %v15797_v53  ;;  %v11272_v32 = vpop.f32.mrf.mxu1  ;;  %v18323_v53 = vld [vmem:[#allocation110_spill] sm:$0xff] }
 0x6c6   : > { %v11787_v33 = vpop.f32.mrf.mxu0 }
 0x6c7   : > { %v5247_v43 = vpop.f32.mrf.mxu1  ;;  %11538 = vmatmul.mubr.msk.bf16.gmra.mxu1 %vm2877_vm1, %v18146_v19  ;;  %v18241_v19 = vld [vmem:[#allocation19_spill] sm:$0xff] }
 0x6c8   : > { %v15803_v44 = vadd.f32 %v5247_v43, %v5147_v58  ;;  %v15805_v56 = vpop.f32.mrf.mxu0  ;;  %11541 = vmatprep.mubr.msk.bf16.mxu1 %vm12774_vm0, %v17769_v52  ;;  %v5149_v58 = vadd.f32 %v18241_v19, %v15487_v17 }
 0x6c9   : > { %18238 = vst [vmem:[#allocation82_spill] sm:$0xff] %v15805_v56  ;;  %v11359_v13 = vpop.f32.mrf.mxu1 }
 0x6ca   : > { %v11788_v62 = vpop.f32.mrf.mxu0 }
 0x6cb   : > { %v5250_v15 = vpop.f32.mrf.mxu1 }
 0x6cc   : > { %v15811_v32 = vadd.f32 %v5250_v15, %v5148_v9  ;;  %v15813_v39 = vpop.f32.mrf.mxu0  ;;  %v5150_v9 = vadd.f32 %v18243_v48, %v15495_v25  ;;  %v18247_v48 = vld [vmem:[#allocation83_spill] sm:$0xff] }
 0x6cd   : > { %18240 = vst [vmem:[#allocation12_spill] sm:$0xff] %v15813_v39  ;;  %v11360_v33 = vpop.f32.mrf.mxu1  ;;  %v18320_v39 = vld [vmem:[#allocation109_spill] sm:$0xff] }
 0x6ce   : > { %v11791_v23 = vpop.f32.mrf.mxu0 }
 0x6cf   : > { %v5255_v43 = vpop.f32.mrf.mxu1  ;;  %11542 = vmatmul.mubr.msk.bf16.gmra.mxu1 %vm2877_vm1, %v18151_v30  ;;  %v18245_v30 = vld [vmem:[#allocation74_spill] sm:$0xff] }
 0x6d0   : > { %v15819_v56 = vadd.f32 %v5255_v43, %v5149_v58  ;;  %v15821_v13 = vpop.f32.mrf.mxu0  ;;  %11545 = vmatprep.mubr.msk.bf16.mxu1 %vm12774_vm0, %v17769_v52  ;;  %v5151_v58 = vadd.f32 %v18245_v30, %v15507_v24 }
 0x6d1   : > { %18242 = vst [vmem:[#allocation84_spill] sm:$0xff] %v15821_v13  ;;  %v11363_v26 = vpop.f32.mrf.mxu1 }
 0x6d2   : > { %v11792_v62 = vpop.f32.mrf.mxu0 }
 0x6d3   : > { %v5258_v15 = vpop.f32.mrf.mxu1 }
 0x6d4   : > { %v15827_v33 = vadd.f32 %v5258_v15, %v5150_v9  ;;  %v15829_v17 = vpop.f32.mrf.mxu0  ;;  %v5152_v9 = vadd.f32 %v18247_v48, %v15515_v5  ;;  %v18251_v48 = vld [vmem:[#allocation96_spill] sm:$0xff] }
 0x6d5   : > { %18244 = vst [vmem:[#allocation48_spill] sm:$0xff] %v15829_v17  ;;  %v11364_v23 = vpop.f32.mrf.mxu1  ;;  %v18317_v17 = vld [vmem:[#allocation108_spill] sm:$0xff] }
 0x6d6   : > { %v11795_v19 = vpop.f32.mrf.mxu0 }
 0x6d7   : > { %v5263_v43 = vpop.f32.mrf.mxu1  ;;  %11546 = vmatmul.mubr.msk.bf16.gmra.mxu1 %vm2877_vm1, %v18156_v35  ;;  %v18249_v35 = vld [vmem:[#allocation86_spill] sm:$0xff] }
 0x6d8   : > { %v15835_v13 = vadd.f32 %v5263_v43, %v5151_v58  ;;  %v15837_v26 = vpop.f32.mrf.mxu0  ;;  %11549 = vmatprep.mubr.msk.bf16.mxu1 %vm12774_vm0, %v17769_v52  ;;  %v5153_v58 = vadd.f32 %v18249_v35, %v15527_v6 }
 0x6d9   : > { %18246 = vst [vmem:[#allocation85_spill] sm:$0xff] %v15837_v26  ;;  %v11367_v25 = vpop.f32.mrf.mxu1 }
 0x6da   : > { %v11796_v62 = vpop.f32.mrf.mxu0 }
 0x6db   : > { %v5266_v15 = vpop.f32.mrf.mxu1 }
 0x6dc   : > { %v15843_v23 = vadd.f32 %v5266_v15, %v5152_v9  ;;  %v15845_v24 = vpop.f32.mrf.mxu0  ;;  %v5154_v9 = vadd.f32 %v18251_v48, %v15535_v51  ;;  %v18255_v48 = vld [vmem:[#allocation61_spill] sm:$0xff] }
 0x6dd   : > { %18248 = vst [vmem:[#allocation13_spill] sm:$0xff] %v15845_v24  ;;  %v11368_v19 = vpop.f32.mrf.mxu1  ;;  %v18314_v24 = vld [vmem:[#allocation107_spill] sm:$0xff] }
 0x6de   : > { %v11799_v30 = vpop.f32.mrf.mxu0 }
 0x6df   : > { %v5271_v43 = vpop.f32.mrf.mxu1  ;;  %11550 = vmatmul.mubr.msk.bf16.gmra.mxu1 %vm2877_vm1, %v18161_v29  ;;  %v18253_v29 = vld [vmem:[#allocation97_spill] sm:$0xff] }
 0x6e0   : > { %v15851_v26 = vadd.f32 %v5271_v43, %v5153_v58  ;;  %v15853_v25 = vpop.f32.mrf.mxu0  ;;  %11553 = vmatprep.mubr.msk.bf16.mxu1 %vm12774_vm0, %v17769_v52  ;;  %v5155_v58 = vadd.f32 %v18253_v29, %v15547_v55 }
 0x6e1   : > { %18250 = vst [vmem:[#allocation14_spill] sm:$0xff] %v15853_v25  ;;  %v11371_v5 = vpop.f32.mrf.mxu1 }
 0x6e2   : > { %v11800_v62 = vpop.f32.mrf.mxu0 }
 0x6e3   : > { %v5274_v15 = vpop.f32.mrf.mxu1 }
 0x6e4   : > { %v15859_v19 = vadd.f32 %v5274_v15, %v5154_v9  ;;  %v15861_v6 = vpop.f32.mrf.mxu0  ;;  %v5156_v9 = vadd.f32 %v18255_v48, %v15555_v4  ;;  %v18259_v48 = vld [vmem:[#allocation64_spill] sm:$0xff] }
 0x6e5   : > { %18252 = vst [vmem:[#allocation15_spill] sm:$0xff] %v15861_v6  ;;  %v11372_v30 = vpop.f32.mrf.mxu1  ;;  %v18311_v6 = vld [vmem:[#allocation106_spill] sm:$0xff] }
 0x6e6   : > { %v11803_v35 = vpop.f32.mrf.mxu0 }
 0x6e7   : > { %v5279_v43 = vpop.f32.mrf.mxu1  ;;  %11554 = vmatmul.mubr.msk.bf16.gmra.mxu1 %vm2877_vm1, %v18166_v10  ;;  %v18257_v10 = vld [vmem:[#allocation98_spill] sm:$0xff] }
 0x6e8   : > { %v15867_v25 = vadd.f32 %v5279_v43, %v5155_v58  ;;  %v15869_v5 = vpop.f32.mrf.mxu0  ;;  %11557 = vmatprep.mubr.msk.bf16.mxu1 %vm12774_vm0, %v17769_v52  ;;  %v5157_v58 = vadd.f32 %v18257_v10, %v15567_v40 }
 0x6e9   : > { %18254 = vst [vmem:[#allocation16_spill] sm:$0xff] %v15869_v5  ;;  %v11375_v51 = vpop.f32.mrf.mxu1 }
 0x6ea   : > { %v11804_v62 = vpop.f32.mrf.mxu0 }
 0x6eb   : > { %v5282_v15 = vpop.f32.mrf.mxu1 }
 0x6ec   : > { %v15875_v30 = vadd.f32 %v5282_v15, %v5156_v9  ;;  %v15877_v55 = vpop.f32.mrf.mxu0  ;;  %v5158_v9 = vadd.f32 %v18259_v48, %v15575_v47  ;;  %v18263_v48 = vld [vmem:[#allocation67_spill] sm:$0xff] }
 0x6ed   : > { %18256 = vst [vmem:[#allocation17_spill] sm:$0xff] %v15877_v55  ;;  %v11376_v35 = vpop.f32.mrf.mxu1  ;;  %v18308_v55 = vld [vmem:[#allocation105_spill] sm:$0xff] }
 0x6ee   : > { %v11807_v29 = vpop.f32.mrf.mxu0 }
 0x6ef   : > { %v5287_v43 = vpop.f32.mrf.mxu1  ;;  %11558 = vmatmul.mubr.msk.bf16.gmra.mxu1 %vm2877_vm1, %v18172_v22  ;;  %v18261_v22 = vld [vmem:[#allocation99_spill] sm:$0xff] }
 0x6f0   : > { %v15883_v5 = vadd.f32 %v5287_v43, %v5157_v58  ;;  %v15885_v51 = vpop.f32.mrf.mxu0  ;;  %11561 = vmatprep.mubr.msk.bf16.mxu1 %vm12774_vm0, %v17769_v52  ;;  %v5159_v58 = vadd.f32 %v18261_v22, %v15587_v3 }
 0x6f1   : > { %18258 = vst [vmem:[#allocation18_spill] sm:$0xff] %v15885_v51  ;;  %v11379_v4 = vpop.f32.mrf.mxu1 }
 0x6f2   : > { %v11808_v62 = vpop.f32.mrf.mxu0 }
 0x6f3   : > { %v5290_v15 = vpop.f32.mrf.mxu1 }
 0x6f4   : > { %v15891_v35 = vadd.f32 %v5290_v15, %v5158_v9  ;;  %v15893_v40 = vpop.f32.mrf.mxu0  ;;  %v5160_v9 = vadd.f32 %v18263_v48, %v15595_v11  ;;  %v18268_v48 = vld [vmem:[#allocation112_spill] sm:$0xff] }
 0x6f5   : > { %18260 = vst [vmem:[#allocation19_spill] sm:$0xff] %v15893_v40  ;;  %v11380_v29 = vpop.f32.mrf.mxu1 }
 0x6f6   : > { %v11811_v10 = vpop.f32.mrf.mxu0 }
 0x6f7   : > { %v5295_v43 = vpop.f32.mrf.mxu1  ;;  %11562 = vmatmul.mubr.msk.bf16.gmra.mxu1 %vm2877_vm1, %v18177_v7  ;;  %v18265_v7 = vld [vmem:[#allocation5_spill] sm:$0xff] }
 0x6f8   : > { %v15899_v51 = vadd.f32 %v5295_v43, %v5159_v58  ;;  %v15901_v4 = vpop.f32.mrf.mxu0  ;;  %11565 = vmatprep.mubr.msk.bf16.mxu1 %vm12774_vm0, %v17769_v52  ;;  %v18266_v58 = vld [vmem:[#allocation100_spill] sm:$0xff] }
 0x6f9   : > { %18262 = vst [vmem:[#allocation69_spill] sm:$0xff] %v15901_v4  ;;  %v11383_v47 = vpop.f32.mrf.mxu1  ;;  %v5161_v43 = vadd.f32 %v18266_v58, %v18265_v7 }
 0x6fa   : > { %v11812_v62 = vpop.f32.mrf.mxu0 }
 0x6fb   : > { %v5298_v15 = vpop.f32.mrf.mxu1 }
 0x6fc   : > { %v15907_v29 = vadd.f32 %v5298_v15, %v5160_v9  ;;  %v15909_v3 = vpop.f32.mrf.mxu0  ;;  %v5162_v9 = vadd.f32 %v18268_v48, %v15611_v14  ;;  %v18273_v48 = vld [vmem:[#allocation114_spill] sm:$0xff] }
 0x6fd   : > { %18264 = vst [vmem:[#allocation74_spill] sm:$0xff] %v15909_v3  ;;  %v11384_v10 = vpop.f32.mrf.mxu1 }
 0x6fe   : > { %v11815_v22 = vpop.f32.mrf.mxu0 }
 0x6ff   : > { %v5303_v40 = vpop.f32.mrf.mxu1  ;;  %11566 = vmatmul.mubr.msk.bf16.gmra.mxu1 %vm2877_vm1, %v18183_v59  ;;  %v18270_v59 = vld [vmem:[#allocation6_spill] sm:$0xff] }
 0x700   : > { %v15915_v4 = vadd.f32 %v5303_v40, %v5161_v43  ;;  %v15917_v47 = vpop.f32.mrf.mxu0  ;;  %11569 = vmatprep.mubr.msk.bf16.mxu1 %vm12774_vm0, %v17769_v52  ;;  %v18271_v40 = vld [vmem:[#allocation113_spill] sm:$0xff] }
 0x701   : > { %18267 = vst [vmem:[#allocation83_spill] sm:$0xff] %v15917_v47  ;;  %v11387_v11 = vpop.f32.mrf.mxu1  ;;  %v5163_v43 = vadd.f32 %v18271_v40, %v18270_v59 }
 0x702   : > { %v11816_v62 = vpop.f32.mrf.mxu0 }
 0x703   : > { %v5306_v15 = vpop.f32.mrf.mxu1 }
 0x704   : > { %v15923_v10 = vadd.f32 %v5306_v15, %v5162_v9  ;;  %v15925_v22 = vpop.f32.mrf.mxu0  ;;  %v5164_v9 = vadd.f32 %v18273_v48, %v15627_v42  ;;  %v18278_v48 = vld [vmem:[#allocation116_spill] sm:$0xff] }
 0x705   : > { %18269 = vst [vmem:[#allocation86_spill] sm:$0xff] %v15925_v22  ;;  %v11388_v7 = vpop.f32.mrf.mxu1 }
 0x706   : > { %v11819_v58 = vpop.f32.mrf.mxu0 }
 0x707   : > { %v5311_v3 = vpop.f32.mrf.mxu1  ;;  %11570 = vmatmul.mubr.msk.bf16.gmra.mxu1 %vm2877_vm1, %v18189_v28  ;;  %v18275_v28 = vld [vmem:[#allocation32_spill] sm:$0xff] }
 0x708   : > { %v15931_v47 = vadd.f32 %v5311_v3, %v5163_v43  ;;  %v15933_v11 = vpop.f32.mrf.mxu0  ;;  %11573 = vmatprep.mubr.msk.bf16.mxu1 %vm12774_vm0, %v17769_v52  ;;  %v18276_v3 = vld [vmem:[#allocation115_spill] sm:$0xff] }
 0x709   : > { %18272 = vst [vmem:[#allocation96_spill] sm:$0xff] %v15933_v11  ;;  %v11391_v14 = vpop.f32.mrf.mxu1  ;;  %v5165_v43 = vadd.f32 %v18276_v3, %v18275_v28 }
 0x70a   : > { %v11820_v62 = vpop.f32.mrf.mxu0 }
 0x70b   : > { %v5314_v15 = vpop.f32.mrf.mxu1 }
 0x70c   : > { %v15939_v7 = vadd.f32 %v5314_v15, %v5164_v9  ;;  %v15941_v58 = vpop.f32.mrf.mxu0  ;;  %v5166_v9 = vadd.f32 %v18278_v48, %v15643_v2  ;;  %v18283_v48 = vld [vmem:[#allocation117_spill] sm:$0xff] }
 0x70d   : > { %18274 = vst [vmem:[#allocation97_spill] sm:$0xff] %v15941_v58  ;;  %v11392_v59 = vpop.f32.mrf.mxu1 }
 0x70e   : > { %v11823_v40 = vpop.f32.mrf.mxu0 }
 0x70f   : > { %v5319_v22 = vpop.f32.mrf.mxu1  ;;  %11574 = vmatmul.mubr.msk.bf16.gmra.mxu1 %vm2877_vm1, %v18195_v16  ;;  %v18280_v16 = vld [vmem:[#allocation33_spill] sm:$0xff] }
 0x710   : > { %v15947_v11 = vadd.f32 %v5319_v22, %v5165_v43  ;;  %v15949_v14 = vpop.f32.mrf.mxu0  ;;  %11577 = vmatprep.mubr.msk.bf16.mxu1 %vm12774_vm0, %v17769_v52  ;;  %v18281_v22 = vld [vmem:[#allocation41_spill] sm:$0xff] }
 0x711   : > { %18277 = vst [vmem:[#allocation61_spill] sm:$0xff] %v15949_v14  ;;  %v11395_v42 = vpop.f32.mrf.mxu1  ;;  %v5167_v43 = vadd.f32 %v18281_v22, %v18280_v16 }
 0x712   : > { %v11824_v62 = vpop.f32.mrf.mxu0 }
 0x713   : > { %v5322_v15 = vpop.f32.mrf.mxu1 }
 0x714   : > { %v15955_v59 = vadd.f32 %v5322_v15, %v5166_v9  ;;  %v15957_v40 = vpop.f32.mrf.mxu0  ;;  %v5168_v9 = vadd.f32 %v18283_v48, %v15659_v1  ;;  %v18288_v48 = vld [vmem:[#allocation120_spill] sm:$0xff] }
 0x715   : > { %18279 = vst [vmem:[#allocation98_spill] sm:$0xff] %v15957_v40  ;;  %v11396_v28 = vpop.f32.mrf.mxu1 }
 0x716   : > { %v11827_v3 = vpop.f32.mrf.mxu0 }
 0x717   : > { %v5327_v58 = vpop.f32.mrf.mxu1  ;;  %11578 = vmatmul.mubr.msk.bf16.gmra.mxu1 %vm2877_vm1, %v18201_v8  ;;  %v18285_v8 = vld [vmem:[#allocation34_spill] sm:$0xff] }
 0x718   : > { %v15963_v14 = vadd.f32 %v5327_v58, %v5167_v43  ;;  %v15965_v42 = vpop.f32.mrf.mxu0  ;;  %11581 = vmatprep.mubr.msk.bf16.mxu1 %vm12774_vm0, %v17769_v52  ;;  %v18286_v58 = vld [vmem:[#allocation118_spill] sm:$0xff] }
 0x719   : > { %18282 = vst [vmem:[#allocation64_spill] sm:$0xff] %v15965_v42  ;;  %v11399_v2 = vpop.f32.mrf.mxu1  ;;  %v5169_v43 = vadd.f32 %v18286_v58, %v18285_v8  ;;  %v18289_v8 = vld [vmem:[#allocation35_spill] sm:$0xff]  ;;  %v18290_v58 = vld [vmem:[#allocation121_spill] sm:$0xff] }
 0x71a   : > { %v11828_v62 = vpop.f32.mrf.mxu0 }
 0x71b   : > { %v5330_v15 = vpop.f32.mrf.mxu1 }
 0x71c   : > { %v15971_v28 = vadd.f32 %v5330_v15, %v5168_v9  ;;  %v15973_v3 = vpop.f32.mrf.mxu0  ;;  %v5170_v9 = vadd.f32 %v18288_v48, %v15675_v60 }
 0x71d   : > { %18284 = vst [vmem:[#allocation99_spill] sm:$0xff] %v15973_v3  ;;  %v11400_v16 = vpop.f32.mrf.mxu1  ;;  %v5171_v3 = vadd.f32 %v18290_v58, %v18289_v8  ;;  %v18293_v58 = vld [vmem:[#allocation40_spill] sm:$0xff] }
 0x71e   : > { %v11831_v22 = vpop.f32.mrf.mxu0 }
 0x71f   : > { %v5335_v40 = vpop.f32.mrf.mxu1  ;;  %11582 = vmatmul.mubr.msk.bf16.gmra.mxu1 %vm2877_vm1, %v18207_v61 }
 0x720   : > { %v15979_v42 = vadd.f32 %v5335_v40, %v5169_v43  ;;  %v15981_v2 = vpop.f32.mrf.mxu0  ;;  %11585 = vmatprep.mubr.msk.bf16.mxu1 %vm12774_vm0, %v17769_v52 }
 0x721   : > { %18287 = vst [vmem:[#allocation67_spill] sm:$0xff] %v15981_v2  ;;  %v11403_v1 = vpop.f32.mrf.mxu1  ;;  %v18305_v2 = vld [vmem:[#allocation104_spill] sm:$0xff] }
 0x722   : > { %v11832_v62 = vpop.f32.mrf.mxu0  ;;  %v18291_v1 = vld [vmem:[#allocation122_spill] sm:$0xff] }
 0x723   : > { %v5338_v15 = vpop.f32.mrf.mxu1  ;;  %v5172_v60 = vadd.f32 %v18291_v1, %v15691_v49 }
 0x724   : > { %v15987_v16 = vadd.f32 %v5338_v15, %v5170_v9  ;;  %v18292_v15 = vld [vmem:[#allocation123_spill] sm:$0xff] }
 0x725   : > { %v11404_v22 = vpop.f32.mrf.mxu1 }
 0x726   : > { %v5173_v22 = vadd.f32 %v18292_v15, %v15699_v21  ;;  %v12595_v21 = vld [vmem:[%s17589_s3 + $0xf8] sm:$0xff]  }
 0x727   : > { %v5343_v61 = vpop.f32.mrf.mxu1  ;;  %11586 = vmatmul.mubr.msk.bf16.gmra.mxu1 %vm2877_vm1, %v18213_v41 }
 0x728   : > { %v15993_v40 = vadd.f32 %v5343_v61, %v5171_v3  ;;  %11589 = vmatprep.mubr.msk.bf16.mxu1 %vm12774_vm0, %v17769_v52  ;;  %v18294_v61 = vld [vmem:[#allocation20_spill] sm:$0xff] }
 0x729   : > { %v11407_v43 = vpop.f32.mrf.mxu1  ;;  %v5174_v49 = vadd.f32 %v18294_v61, %v15707_v31  ;;  %v12596_v31 = vld [vmem:[%s17589_s3 + $0xf0] sm:$0xff]  }
 0x72b   : > { %v5346_v62 = vpop.f32.mrf.mxu1 }
 0x72c   : > { %v15999_v48 = vadd.f32 %v5346_v62, %v5172_v60  ;;  %v18295_v62 = vld [vmem:[#allocation125_spill] sm:$0xff] }
 0x72d   : > { %v11408_v9 = vpop.f32.mrf.mxu1 }
 0x72e   : > { %v5175_v9 = vadd.f32 %v18295_v62, %v15718_v50 }
 0x72f   : > { %v5351_v8 = vpop.f32.mrf.mxu1  ;;  %11590 = vmatmul.mubr.msk.bf16.gmra.mxu1 %vm2877_vm1, %v18293_v58 }
 0x730   : > { %v16005_v41 = vadd.f32 %v5351_v8, %v5173_v22  ;;  %11677 = vmatprep.mubr.msk.bf16.mxu1 %vm12774_vm0, %v17769_v52  ;;  %v18296_v22 = vld [vmem:[#allocation101_spill] sm:$0xff] }
 0x731   : > { %v11411_v3 = vpop.f32.mrf.mxu1 }
 0x732   : > { %v18297_v3 = vld [vmem:[#allocation126_spill] sm:$0xff] }
 0x733   : > { %v5354_v43 = vpop.f32.mrf.mxu1  ;;  %v5176_v50 = vadd.f32 %v18297_v3, %v15730_v12 }
 0x734   : > { %v16011_v1 = vadd.f32 %v5354_v43, %v5174_v49 }
 0x735   : > { %v11412_v60 = vpop.f32.mrf.mxu1 }
 0x737   : > { %v5359_v15 = vpop.f32.mrf.mxu1  ;;  %11678 = vmatmul.mubr.msk.bf16.vlgmr.msra.gmra.mxu1 %vm2877_vm1, %v18296_v22  ;;  %v18300_v22 = vld [vmem:[#allocation129_spill] sm:$0xff] }
 0x738   : > { %v16020_v8 = vadd.f32 %v5359_v15, %v5175_v9  ;;  %11834 = vmatpush3.bf16.msra.mxu1 %v12595_v21  ;;  %11681 = vmatprep.mubr.msk.bf16.mxu1 %vm12774_vm0, %v17769_v52  ;;  %v18298_v21 = vld [vmem:[#allocation128_spill] sm:$0xff]  ;;  %v18299_v9 = vld [vmem:[#allocation102_spill] sm:$0xff] }
 0x739   : > { %v11415_v58 = vpop.f32.mrf.mxu1  ;;  %11835 = vmatprep.subr.bf16.mxu1 %v17769_v52  ;;  %v5177_v60 = vadd.f32 %v18298_v21, %v15739_v54  ;;  %v18302_v21 = vld [vmem:[#allocation103_spill] sm:$0xff] }
 0x73a   : > { %v5178_v58 = vadd.f32 %v18300_v22, %v15747_v36 }
 0x73b   : > { %v5362_v61 = vpop.f32.mrf.mxu1 }
 0x73c   : > { %v16030_v49 = vadd.f32 %v5362_v61, %v5176_v50  ;;  %11836 = vmatpush3.bf16.msra.mxu1 %v12596_v31  ;;  %v18301_v61 = vld [vmem:[#allocation131_spill] sm:$0xff] }
 0x73d   : > { %v11416_v43 = vpop.f32.mrf.mxu1  ;;  %11985 = vmatprep.subr.bf16.mxu1 %v17769_v52  ;;  %v5179_v54 = vadd.f32 %v18301_v61, %v15755_v27 }
 0x73f   : > { %v5367_v62 = vpop.f32.mrf.mxu1  ;;  %11682 = vmatmul.mubr.msk.bf16.gmra.mxu1 %vm2877_vm1, %v18299_v9 }
 0x740   : > { %v16037_v15 = vadd.f32 %v5367_v62, %v5177_v60  ;;  %11685 = vmatprep.mubr.msk.bf16.mxu1 %vm12774_vm0, %v17769_v52 }
 0x741   : > { %v11419_v12 = vpop.f32.mrf.mxu1 }
 0x742   : > { %v18303_v12 = vld [vmem:[#allocation132_spill] sm:$0xff] }
 0x743   : > { %v5370_v31 = vpop.f32.mrf.mxu1  ;;  %v5180_v36 = vadd.f32 %v18303_v12, %v15763_v0 }
 0x744   : > { %v16043_v3 = vadd.f32 %v5370_v31, %v5178_v58 }
 0x745   : > { %v11420_v50 = vpop.f32.mrf.mxu1 }
 0x746   : > { %v18304_v50 = vld [vmem:[#allocation134_spill] sm:$0xff] }
 0x747   : > { %v5375_v43 = vpop.f32.mrf.mxu1  ;;  %11686 = vmatmul.mubr.msk.bf16.gmra.mxu1 %vm2877_vm1, %v18302_v21  ;;  %v5181_v27 = vadd.f32 %v18304_v50, %v15771_v57 }
 0x748   : > { %v16049_v60 = vadd.f32 %v5375_v43, %v5179_v54  ;;  %11689 = vmatprep.mubr.msk.bf16.mxu1 %vm12774_vm0, %v17769_v52 }
 0x749   : > { %v11423_v62 = vpop.f32.mrf.mxu1 }
 0x74a   : > { %v18306_v62 = vld [vmem:[#allocation135_spill] sm:$0xff] }
 0x74b   : > { %v5378_v22 = vpop.f32.mrf.mxu1  ;;  %v5182_v0 = vadd.f32 %v18306_v62, %v15779_v18 }
 0x74c   : > { %v16055_v58 = vadd.f32 %v5378_v22, %v5180_v36 }
 0x74d   : > { %v11424_v31 = vpop.f32.mrf.mxu1 }
 0x74e   : > { %v18307_v31 = vld [vmem:[#allocation137_spill] sm:$0xff] }
 0x74f   : > { %v5383_v61 = vpop.f32.mrf.mxu1  ;;  %11690 = vmatmul.mubr.msk.bf16.gmra.mxu1 %vm2877_vm1, %v18305_v2  ;;  %v5183_v57 = vadd.f32 %v18307_v31, %v15787_v37 }
 0x750   : > { %v16061_v54 = vadd.f32 %v5383_v61, %v5181_v27  ;;  %11693 = vmatprep.mubr.msk.bf16.mxu1 %vm12774_vm0, %v17769_v52 }
 0x751   : > { %v11427_v43 = vpop.f32.mrf.mxu1 }
 0x752   : > { %v18309_v43 = vld [vmem:[#allocation63_spill] sm:$0xff] }
 0x753   : > { %v5386_v12 = vpop.f32.mrf.mxu1  ;;  %v5184_v18 = vadd.f32 %v18309_v43, %v15795_v34 }
 0x754   : > { %v16067_v36 = vadd.f32 %v5386_v12, %v5182_v0 }
 0x755   : > { %v11428_v22 = vpop.f32.mrf.mxu1 }
 0x756   : > { %v18310_v22 = vld [vmem:[#allocation139_spill] sm:$0xff] }
 0x757   : > { %v5391_v50 = vpop.f32.mrf.mxu1  ;;  %11694 = vmatmul.mubr.msk.bf16.gmra.mxu1 %vm2877_vm1, %v18308_v55  ;;  %v5640_v37 = vadd.f32 %v18310_v22, %v15803_v44 }
 0x758   : > { %v16073_v27 = vadd.f32 %v5391_v50, %v5183_v57  ;;  %11697 = vmatprep.mubr.msk.bf16.mxu1 %vm12774_vm0, %v17769_v52 }
 0x759   : > { %v11431_v61 = vpop.f32.mrf.mxu1 }
 0x75a   : > { %v18312_v61 = vld [vmem:[#allocation66_spill] sm:$0xff] }
 0x75b   : > { %v5394_v62 = vpop.f32.mrf.mxu1  ;;  %v5641_v34 = vadd.f32 %v18312_v61, %v15811_v32 }
 0x75c   : > { %v16079_v0 = vadd.f32 %v5394_v62, %v5184_v18 }
 0x75d   : > { %v11432_v12 = vpop.f32.mrf.mxu1 }
 0x75e   : > { %v18313_v12 = vld [vmem:[#allocation141_spill] sm:$0xff] }
 0x75f   : > { %v5731_v31 = vpop.f32.mrf.mxu1  ;;  %11698 = vmatmul.mubr.msk.bf16.gmra.mxu1 %vm2877_vm1, %v18311_v6  ;;  %v5642_v44 = vadd.f32 %v18313_v12, %v15819_v56 }
 0x760   : > { %v16085_v57 = vadd.f32 %v5731_v31, %v5640_v37  ;;  %11701 = vmatprep.mubr.msk.bf16.mxu1 %vm12774_vm0, %v17769_v52 }
 0x761   : > { %v11519_v50 = vpop.f32.mrf.mxu1 }
 0x762   : > { %v18315_v50 = vld [vmem:[#allocation142_spill] sm:$0xff] }
 0x763   : > { %v5734_v43 = vpop.f32.mrf.mxu1  ;;  %v5643_v32 = vadd.f32 %v18315_v50, %v15827_v33 }
 0x764   : > { %v16091_v18 = vadd.f32 %v5734_v43, %v5641_v34 }
 0x765   : > { %v11520_v62 = vpop.f32.mrf.mxu1 }
 0x766   : > { %v18316_v62 = vld [vmem:[#allocation143_spill] sm:$0xff] }
 0x767   : > { %v5739_v22 = vpop.f32.mrf.mxu1  ;;  %11702 = vmatmul.mubr.msk.bf16.gmra.mxu1 %vm2877_vm1, %v18314_v24  ;;  %v5644_v56 = vadd.f32 %v18316_v62, %v15835_v13 }
 0x768   : > { %v16097_v37 = vadd.f32 %v5739_v22, %v5642_v44  ;;  %11705 = vmatprep.mubr.msk.bf16.mxu1 %vm12774_vm0, %v17769_v52 }
 0x769   : > { %v11523_v31 = vpop.f32.mrf.mxu1 }
 0x76a   : > { %v18318_v31 = vld [vmem:[#allocation144_spill] sm:$0xff] }
 0x76b   : > { %v5742_v61 = vpop.f32.mrf.mxu1  ;;  %v5645_v33 = vadd.f32 %v18318_v31, %v15843_v23 }
 0x76c   : > { %v16103_v34 = vadd.f32 %v5742_v61, %v5643_v32 }
 0x76d   : > { %v11524_v43 = vpop.f32.mrf.mxu1 }
 0x76e   : > { %v18319_v43 = vld [vmem:[#allocation145_spill] sm:$0xff] }
 0x76f   : > { %v5747_v12 = vpop.f32.mrf.mxu1  ;;  %11706 = vmatmul.mubr.msk.bf16.gmra.mxu1 %vm2877_vm1, %v18317_v17  ;;  %v5646_v13 = vadd.f32 %v18319_v43, %v15851_v26 }
 0x770   : > { %v16109_v44 = vadd.f32 %v5747_v12, %v5644_v56  ;;  %11709 = vmatprep.mubr.msk.bf16.mxu1 %vm12774_vm0, %v17769_v52 }
 0x771   : > { %v11527_v22 = vpop.f32.mrf.mxu1 }
 0x772   : > { %v18321_v22 = vld [vmem:[#allocation146_spill] sm:$0xff] }
 0x773   : > { %v5750_v50 = vpop.f32.mrf.mxu1  ;;  %v5647_v23 = vadd.f32 %v18321_v22, %v15859_v19 }
 0x774   : > { %v16115_v32 = vadd.f32 %v5750_v50, %v5645_v33 }
 0x775   : > { %v11528_v61 = vpop.f32.mrf.mxu1 }
 0x776   : > { %v18322_v61 = vld [vmem:[#allocation147_spill] sm:$0xff] }
 0x777   : > { %v5755_v62 = vpop.f32.mrf.mxu1  ;;  %11710 = vmatmul.mubr.msk.bf16.gmra.mxu1 %vm2877_vm1, %v18320_v39  ;;  %v5648_v26 = vadd.f32 %v18322_v61, %v15867_v25 }
 0x778   : > { %v16121_v56 = vadd.f32 %v5755_v62, %v5646_v13  ;;  %11713 = vmatprep.mubr.msk.bf16.mxu1 %vm12774_vm0, %v17769_v52 }
 0x779   : > { %v11531_v12 = vpop.f32.mrf.mxu1 }
 0x77a   : > { %v18324_v12 = vld [vmem:[#allocation148_spill] sm:$0xff] }
 0x77b   : > { %v5758_v31 = vpop.f32.mrf.mxu1  ;;  %v5649_v19 = vadd.f32 %v18324_v12, %v15875_v30 }
 0x77c   : > { %v16127_v33 = vadd.f32 %v5758_v31, %v5647_v23 }
 0x77d   : > { %v11532_v50 = vpop.f32.mrf.mxu1 }
 0x77e   : > { %v18325_v50 = vld [vmem:[#allocation149_spill] sm:$0xff] }
 0x77f   : > { %v5763_v43 = vpop.f32.mrf.mxu1  ;;  %11714 = vmatmul.mubr.msk.bf16.gmra.mxu1 %vm2877_vm1, %v18323_v53  ;;  %v5650_v25 = vadd.f32 %v18325_v50, %v15883_v5  ;;  %v12597_v5 = vld [vmem:[%s17591_s5 + $0x38] sm:$0xff]  }
 0x780   : > { %v16133_v13 = vadd.f32 %v5763_v43, %v5648_v26  ;;  %11717 = vmatprep.mubr.msk.bf16.mxu1 %vm12774_vm0, %v17769_v52  ;;  %11914 = vmatpush3.bf16.msra.mxu0 %v12597_v5  ;;  %v18331_v5 = vld [vmem:[#allocation153_spill] sm:$0xff] }
 0x781   : > { %v11535_v62 = vpop.f32.mrf.mxu1  ;;  %11915 = vmatprep.subr.bf16.mxu0 %v17769_v52 }
 0x782   : > { %v18327_v62 = vld [vmem:[#allocation150_spill] sm:$0xff] }
 0x783   : > { %v5766_v22 = vpop.f32.mrf.mxu1  ;;  %v5651_v30 = vadd.f32 %v18327_v62, %v15891_v35  ;;  %v18330_v62 = vld [vmem:[#allocation152_spill] sm:$0xff] }
 0x784   : > { %v16139_v23 = vadd.f32 %v5766_v22, %v5649_v19 }
 0x785   : > { %v11536_v31 = vpop.f32.mrf.mxu1 }
 0x786   : > { %v18328_v31 = vld [vmem:[#allocation151_spill] sm:$0xff] }
 0x787   : > { %v5771_v61 = vpop.f32.mrf.mxu1  ;;  %11718 = vmatmul.mubr.msk.bf16.gmra.mxu1 %vm2877_vm1, %v18326_v20  ;;  %v5652_v50 = vadd.f32 %v18328_v31, %v15899_v51  ;;  %v5654_v31 = vadd.f32 %v18331_v5, %v15915_v4 }
 0x788   : > { %v16145_v26 = vadd.f32 %v5771_v61, %v5650_v25  ;;  %11721 = vmatprep.mubr.msk.bf16.mxu1 %vm12774_vm0, %v17769_v52  ;;  %v18329_v61 = vld [vmem:[#allocation90_spill] sm:$0xff] }
 0x789   : > { %v11539_v43 = vpop.f32.mrf.mxu1 }
 0x78b   : > { %v5774_v12 = vpop.f32.mrf.mxu1 }
 0x78c   : > { %v16151_v19 = vadd.f32 %v5774_v12, %v5651_v30  ;;  %v5653_v30 = vadd.f32 %v18330_v62, %v15907_v29 }
 0x78d   : > { %v11540_v22 = vpop.f32.mrf.mxu1 }
 0x78f   : > { %v5779_v25 = vpop.f32.mrf.mxu1  ;;  %11722 = vmatmul.mubr.msk.bf16.gmra.mxu1 %vm2877_vm1, %v18329_v61 }
 0x790   : > { %v16161_v43 = vadd.f32 %v5779_v25, %v5652_v50  ;;  %11725 = vmatprep.mubr.msk.bf16.mxu1 %vm12774_vm0, %v17769_v52 }
 0x791   : > { %v11543_v35 = vpop.f32.mrf.mxu1 }
 0x792   : > { %v18333_v35 = vld [vmem:[#allocation154_spill] sm:$0xff] }
 0x793   : > { %v5782_v12 = vpop.f32.mrf.mxu1  ;;  %v5655_v29 = vadd.f32 %v18333_v35, %v15923_v10 }
 0x794   : > { %v16167_v22 = vadd.f32 %v5782_v12, %v5653_v30 }
 0x795   : > { %v11544_v51 = vpop.f32.mrf.mxu1 }
 0x796   : > { %v18334_v51 = vld [vmem:[#allocation155_spill] sm:$0xff] }
 0x797   : > { %v5787_v45 = vpop.f32.mrf.mxu1  ;;  %11726 = vmatmul.mubr.msk.bf16.gmra.mxu1 %vm2877_vm1, %v18332_v38  ;;  %v5656_v4 = vadd.f32 %v18334_v51, %v15931_v47 }
 0x798   : > { %v16173_v50 = vadd.f32 %v5787_v45, %v5654_v31  ;;  %11729 = vmatprep.mubr.msk.bf16.mxu1 %vm12774_vm0, %v17769_v52 }
 0x799   : > { %v11547_v25 = vpop.f32.mrf.mxu1 }
 0x79a   : > { %v18336_v25 = vld [vmem:[#allocation156_spill] sm:$0xff] }
 0x79b   : > { %v5790_v62 = vpop.f32.mrf.mxu1  ;;  %v5657_v10 = vadd.f32 %v18336_v25, %v15939_v7 }
 0x79c   : > { %v16179_v30 = vadd.f32 %v5790_v62, %v5655_v29 }
 0x79d   : > { %v11548_v12 = vpop.f32.mrf.mxu1 }
 0x79e   : > { %v18338_v12 = vld [vmem:[#allocation157_spill] sm:$0xff] }
 0x79f   : > { %v5795_v5 = vpop.f32.mrf.mxu1  ;;  %11730 = vmatmul.mubr.msk.bf16.gmra.mxu1 %vm2877_vm1, %v18335_v63  ;;  %v5658_v47 = vadd.f32 %v18338_v12, %v15947_v11 }
 0x7a0   : > { %v16185_v45 = vadd.f32 %v5795_v5, %v5656_v4  ;;  %11733 = vmatprep.mubr.msk.bf16.mxu1 %vm12774_vm0, %v17769_v52 }
 0x7a1   : > { %v11551_v31 = vpop.f32.mrf.mxu1 }
 0x7a2   : > { %v18340_v31 = vld [vmem:[#allocation87_spill] sm:$0xff] }
 0x7a3   : > { %v5798_v35 = vpop.f32.mrf.mxu1  ;;  %v5659_v7 = vadd.f32 %v18340_v31, %v15955_v59  ;;  %v12598_v59 = vld [vmem:[%s17591_s5 + $0x30] sm:$0xff]  }
 0x7a4   : > { %v16191_v29 = vadd.f32 %v5798_v35, %v5657_v10  ;;  %11916 = vmatpush3.bf16.msra.mxu0 %v12598_v59  ;;  %v18348_v59 = vld [vmem:[#allocation89_spill] sm:$0xff] }
 0x7a5   : > { %v11552_v62 = vpop.f32.mrf.mxu1  ;;  %11917 = vmatprep.subr.bf16.mxu0 %v17769_v52 }
 0x7a6   : > { %18337 = vst [vmem:[#allocation5_spill] sm:$0xff] %v16191_v29  ;;  %v18341_v62 = vld [vmem:[#allocation158_spill] sm:$0xff]  ;;  %v18342_v29 = vld [vmem:[#allocation93_spill] sm:$0xff] }
 0x7a7   : > { %v5803_v51 = vpop.f32.mrf.mxu1  ;;  %11734 = vmatmul.mubr.msk.bf16.gmra.mxu1 %vm2877_vm1, %v18339_v46  ;;  %v5660_v11 = vadd.f32 %v18341_v62, %v15963_v14 }
 0x7a8   : > { %v16197_v4 = vadd.f32 %v5803_v51, %v5658_v47  ;;  %11737 = vmatprep.mubr.msk.bf16.mxu1 %vm12774_vm0, %v17769_v52 }
 0x7a9   : > { %v11555_v5 = vpop.f32.mrf.mxu1 }
 0x7aa   : > { %v18344_v5 = vld [vmem:[#allocation88_spill] sm:$0xff] }
 0x7ab   : > { %v5806_v25 = vpop.f32.mrf.mxu1  ;;  %v5661_v31 = vadd.f32 %v18344_v5, %v15971_v28  ;;  %v5663_v5 = vadd.f32 %v18348_v59, %v15987_v16 }
 0x7ac   : > { %v16203_v10 = vadd.f32 %v5806_v25, %v5659_v7 }
 0x7ad   : > { %v11556_v35 = vpop.f32.mrf.mxu1 }
 0x7ae   : > { %v18346_v35 = vld [vmem:[#allocation77_spill] sm:$0xff] }
 0x7af   : > { %v5811_v12 = vpop.f32.mrf.mxu1  ;;  %11738 = vmatmul.mubr.msk.bf16.gmra.mxu1 %vm2877_vm1, %v18342_v29  ;;  %v5662_v62 = vadd.f32 %v18346_v35, %v15979_v42 }
 0x7b0   : > { %v16209_v47 = vadd.f32 %v5811_v12, %v5660_v11  ;;  %11741 = vmatprep.mubr.msk.bf16.mxu1 %vm12774_vm0, %v17769_v52  ;;  %v18347_v12 = vld [vmem:[#allocation47_spill] sm:$0xff] }
 0x7b1   : > { %v11559_v51 = vpop.f32.mrf.mxu1 }
 0x7b2   : > { %18343 = vst [vmem:[#allocation100_spill] sm:$0xff] %v16209_v47  ;;  %v18351_v47 = vld [vmem:[#allocation49_spill] sm:$0xff] }
 0x7b3   : > { %v5814_v7 = vpop.f32.mrf.mxu1 }
 0x7b4   : > { %v16218_v14 = vadd.f32 %v5814_v7, %v5661_v31 }
 0x7b5   : > { %v11560_v25 = vpop.f32.mrf.mxu1 }
 0x7b6   : > { %18345 = vst [vmem:[#allocation112_spill] sm:$0xff] %v16218_v14  ;;  %v18350_v14 = vld [vmem:[#allocation119_spill] sm:$0xff] }
 0x7b7   : > { %v5819_v11 = vpop.f32.mrf.mxu1  ;;  %11742 = vmatmul.mubr.msk.bf16.gmra.mxu1 %vm2877_vm1, %v18347_v12  ;;  %v5664_v42 = vadd.f32 %v18350_v14, %v15993_v40 }
 0x7b8   : > { %v16225_v51 = vadd.f32 %v5819_v11, %v5662_v62  ;;  %11745 = vmatprep.mubr.msk.bf16.mxu1 %vm12774_vm0, %v17769_v52 }
 0x7b9   : > { %v11563_v28 = vpop.f32.mrf.mxu1 }
 0x7ba   : > { %v18352_v28 = vld [vmem:[#allocation10_spill] sm:$0xff] }
 0x7bb   : > { %v5822_v31 = vpop.f32.mrf.mxu1  ;;  %v5665_v16 = vadd.f32 %v18352_v28, %v15999_v48 }
 0x7bc   : > { %v16231_v7 = vadd.f32 %v5822_v31, %v5663_v5 }
 0x7bd   : > { %v11564_v25 = vpop.f32.mrf.mxu1 }
 0x7be   : > { %18349 = vst [vmem:[#allocation6_spill] sm:$0xff] %v16231_v7  ;;  %v18353_v25 = vld [vmem:[#allocation92_spill] sm:$0xff]  ;;  %v18354_v7 = vld [vmem:[#allocation50_spill] sm:$0xff] }
 0x7bf   : > { %v5827_v35 = vpop.f32.mrf.mxu1  ;;  %11746 = vmatmul.mubr.msk.bf16.gmra.mxu1 %vm2877_vm1, %v18351_v47  ;;  %v5666_v40 = vadd.f32 %v18353_v25, %v16005_v41  ;;  %v12599_v41 = vld [vmem:[%s17591_s5 + $0x58] sm:$0xff]  }
 0x7c0   : > { %v16237_v62 = vadd.f32 %v5827_v35, %v5664_v42  ;;  %11749 = vmatprep.mubr.msk.bf16.mxu1 %vm12774_vm0, %v17769_v52 }
 0x7c1   : > { %v11567_v11 = vpop.f32.mrf.mxu1 }
 0x7c2   : > { %v18355_v11 = vld [vmem:[#allocation80_spill] sm:$0xff] }
 0x7c3   : > { %v5830_v59 = vpop.f32.mrf.mxu1  ;;  %v5667_v48 = vadd.f32 %v18355_v11, %v16011_v1 }
 0x7c4   : > { %v16243_v5 = vadd.f32 %v5830_v59, %v5665_v16 }
 0x7c5   : > { %v11568_v31 = vpop.f32.mrf.mxu1 }
 0x7c6   : > { %v18356_v31 = vld [vmem:[#allocation94_spill] sm:$0xff] }
 0x7c7   : > { %v5835_v14 = vpop.f32.mrf.mxu1  ;;  %11750 = vmatmul.mubr.msk.bf16.gmra.mxu1 %vm2877_vm1, %v18354_v7  ;;  %v5668_v25 = vadd.f32 %v18356_v31, %v16020_v8 }
 0x7c8   : > { %v16249_v42 = vadd.f32 %v5835_v14, %v5666_v40  ;;  %11837 = vmatprep.mubr.msk.bf16.mxu1 %vm12774_vm0, %v17769_v52 }
 0x7c9   : > { %v11571_v35 = vpop.f32.mrf.mxu1 }
 0x7ca   : > { %v18357_v35 = vld [vmem:[#allocation124_spill] sm:$0xff] }
 0x7cb   : > { %v5838_v28 = vpop.f32.mrf.mxu1  ;;  %v5669_v11 = vadd.f32 %v18357_v35, %v16030_v49  ;;  %v12600_v49 = vld [vmem:[%s17591_s5 + $0x28] sm:$0xff]  }
 0x7cc   : > { %v16255_v16 = vadd.f32 %v5838_v28, %v5667_v48  ;;  %11918 = vmatpush3.bf16.msra.mxu0 %v12600_v49 }
 0x7cd   : > { %v11572_v59 = vpop.f32.mrf.mxu1  ;;  %11919 = vmatprep.subr.bf16.mxu0 %v17769_v52 }
 0x7ce   : > { %v18358_v59 = vld [vmem:[#allocation51_spill] sm:$0xff] }
 0x7cf   : > { %v5843_v40 = vpop.f32.mrf.mxu1  ;;  %11838 = vmatmul.mubr.msk.bf16.vlgmr.msra.gmra.mxu1 %vm2877_vm1, %v18299_v9  ;;  %v5670_v31 = vadd.f32 %v18358_v59, %v16037_v15 }
 0x7d0   : > { %v16264_v14 = vadd.f32 %v5843_v40, %v5668_v25  ;;  %11841 = vmatprep.mubr.msk.bf16.mxu1 %vm12774_vm0, %v17769_v52  ;;  %11986 = vmatpush3.bf16.msra.mxu1 %v12599_v41  ;;  %v18359_v40 = vld [vmem:[#allocation127_spill] sm:$0xff] }
 0x7d1   : > { %v11575_v1 = vpop.f32.mrf.mxu1  ;;  %11987 = vmatprep.subr.bf16.mxu1 %v17769_v52 }
 0x7d2   : > { %v5671_v1 = vadd.f32 %v18359_v40, %v16043_v3 }
 0x7d3   : > { %v5846_v48 = vpop.f32.mrf.mxu1 }
 0x7d4   : > { %v16271_v28 = vadd.f32 %v5846_v48, %v5669_v11  ;;  %v18360_v11 = vld [vmem:[#allocation54_spill] sm:$0xff] }
 0x7d5   : > { %v11576_v8 = vpop.f32.mrf.mxu1  ;;  %v5672_v48 = vadd.f32 %v18360_v11, %v16049_v60  ;;  %v18363_v11 = vld [vmem:[#allocation133_spill] sm:$0xff] }
 0x7d7   : > { %v5851_v9 = vpop.f32.mrf.mxu1  ;;  %11842 = vmatmul.mubr.msk.bf16.gmra.mxu1 %vm2877_vm1, %v18302_v21 }
 0x7d8   : > { %v16277_v25 = vadd.f32 %v5851_v9, %v5670_v31  ;;  %11845 = vmatprep.mubr.msk.bf16.mxu1 %vm12774_vm0, %v17769_v52  ;;  %v18361_v31 = vld [vmem:[#allocation130_spill] sm:$0xff] }
 0x7d9   : > { %v11579_v41 = vpop.f32.mrf.mxu1  ;;  %v5673_v9 = vadd.f32 %v18361_v31, %v16055_v58  ;;  %v5675_v58 = vadd.f32 %v18363_v11, %v16067_v36  ;;  %v18364_v31 = vld [vmem:[#allocation60_spill] sm:$0xff] }
 0x7db   : > { %v5854_v35 = vpop.f32.mrf.mxu1 }
 0x7dc   : > { %v16287_v15 = vadd.f32 %v5854_v35, %v5671_v1  ;;  %v18362_v1 = vld [vmem:[#allocation57_spill] sm:$0xff] }
 0x7dd   : > { %v11580_v21 = vpop.f32.mrf.mxu1  ;;  %v5674_v60 = vadd.f32 %v18362_v1, %v16061_v54  ;;  %v12601_v54 = vld [vmem:[%s17591_s5 + $0x50] sm:$0xff]  }
 0x7de   : > { %11988 = vmatpush3.bf16.msra.mxu1 %v12601_v54  ;;  %v18367_v54 = vld [vmem:[#allocation159_spill] sm:$0xff] }
 0x7df   : > { %v5859_v8 = vpop.f32.mrf.mxu1  ;;  %11846 = vmatmul.mubr.msk.bf16.gmra.mxu1 %vm2877_vm1, %v18305_v2  ;;  %11989 = vmatprep.subr.bf16.mxu1 %v17769_v52 }
 0x7e0   : > { %v16293_v59 = vadd.f32 %v5859_v8, %v5672_v48  ;;  %11849 = vmatprep.mubr.msk.bf16.mxu1 %vm12774_vm0, %v17769_v52 }
 0x7e1   : > { %v11583_v3 = vpop.f32.mrf.mxu1 }
 0x7e3   : > { %v5862_v49 = vpop.f32.mrf.mxu1 }
 0x7e4   : > { %v16299_v41 = vadd.f32 %v5862_v49, %v5673_v9 }
 0x7e5   : > { %v11584_v40 = vpop.f32.mrf.mxu1 }
 0x7e6   : > { %v18365_v40 = vld [vmem:[#allocation136_spill] sm:$0xff] }
 0x7e7   : > { %v5867_v35 = vpop.f32.mrf.mxu1  ;;  %11850 = vmatmul.mubr.msk.bf16.gmra.mxu1 %vm2877_vm1, %v18308_v55  ;;  %v5676_v55 = vadd.f32 %v18364_v31, %v16073_v27  ;;  %v5677_v1 = vadd.f32 %v18365_v40, %v16079_v0  ;;  %v6134_v0 = vadd.f32 %v18367_v54, %v16091_v18 }
 0x7e8   : > { %v16305_v2 = vadd.f32 %v5867_v35, %v5674_v60  ;;  %11853 = vmatprep.mubr.msk.bf16.mxu1 %vm12774_vm0, %v17769_v52 }
 0x7e9   : > { %v11587_v21 = vpop.f32.mrf.mxu1 }
 0x7ea   : > { %v18366_v21 = vld [vmem:[#allocation138_spill] sm:$0xff] }
 0x7eb   : > { %v5870_v48 = vpop.f32.mrf.mxu1  ;;  %v6133_v11 = vadd.f32 %v18366_v21, %v16085_v57  ;;  %v12602_v57 = vld [vmem:[%s17591_s5 + $0x20] sm:$0xff]  }
 0x7ec   : > { %v16311_v8 = vadd.f32 %v5870_v48, %v5675_v58  ;;  %11920 = vmatpush3.bf16.msra.mxu0 %v12602_v57 }
 0x7ed   : > { %v11588_v3 = vpop.f32.mrf.mxu1  ;;  %11949 = vmatprep.subr.bf16.mxu0 %v17769_v52 }
 0x7ef   : > { %v5875_v9 = vpop.f32.mrf.mxu1  ;;  %11854 = vmatmul.mubr.msk.bf16.gmra.mxu1 %vm2877_vm1, %v18311_v6 }
 0x7f0   : > { %v16321_v49 = vadd.f32 %v5875_v9, %v5676_v55  ;;  %11857 = vmatprep.mubr.msk.bf16.mxu1 %vm12774_vm0, %v17769_v52  ;;  %v18368_v9 = vld [vmem:[#allocation140_spill] sm:$0xff] }
 0x7f1   : > { %v11591_v36 = vpop.f32.mrf.mxu1 }
 0x7f3   : > { %v5878_v60 = vpop.f32.mrf.mxu1 }
 0x7f4   : > { %v16327_v35 = vadd.f32 %v5878_v60, %v5677_v1  ;;  %v18369_v1 = vld [vmem:[#allocation160_spill] sm:$0xff] }
 0x7f5   : > { %v11592_v27 = vpop.f32.mrf.mxu1  ;;  %v6136_v60 = vadd.f32 %v18369_v1, %v16103_v34 }
 0x7f7   : > { %v6233_v58 = vpop.f32.mrf.mxu1  ;;  %11858 = vmatmul.mubr.msk.bf16.gmra.mxu1 %vm2877_vm1, %v18314_v24  ;;  %v6135_v24 = vadd.f32 %v18368_v9, %v16097_v37  ;;  %v18372_v9 = vld [vmem:[#allocation162_spill] sm:$0xff] }
 0x7f8   : > { %v16333_v6 = vadd.f32 %v6233_v58, %v6133_v11  ;;  %11861 = vmatprep.mubr.msk.bf16.mxu1 %vm12774_vm0, %v17769_v52  ;;  %v18370_v11 = vld [vmem:[#allocation161_spill] sm:$0xff] }
 0x7f9   : > { %v11679_v48 = vpop.f32.mrf.mxu1  ;;  %v6137_v58 = vadd.f32 %v18370_v11, %v16109_v44  ;;  %v6139_v44 = vadd.f32 %v18372_v9, %v16121_v56  ;;  %v12603_v56 = vld [vmem:[%s17591_s5 + $0x48] sm:$0xff]  }
 0x7fa   : > { %11990 = vmatpush3.bf16.msra.mxu1 %v12603_v56 }
 0x7fb   : > { %v6236_v3 = vpop.f32.mrf.mxu1  ;;  %11991 = vmatprep.subr.bf16.mxu1 %v17769_v52 }
 0x7fc   : > { %v16339_v31 = vadd.f32 %v6236_v3, %v6134_v0  ;;  %v18371_v0 = vld [vmem:[#allocation21_spill] sm:$0xff] }
 0x7fd   : > { %v11680_v55 = vpop.f32.mrf.mxu1  ;;  %v6138_v34 = vadd.f32 %v18371_v0, %v16115_v32 }
 0x7ff   : > { %v6241_v36 = vpop.f32.mrf.mxu1  ;;  %11862 = vmatmul.mubr.msk.bf16.gmra.mxu1 %vm2877_vm1, %v18317_v17 }
 0x800   : > { %v16348_v40 = vadd.f32 %v6241_v36, %v6135_v24  ;;  %11865 = vmatprep.mubr.msk.bf16.mxu1 %vm12774_vm0, %v17769_v52 }
 0x801   : > { %v11683_v18 = vpop.f32.mrf.mxu1 }
 0x802   : > { %v18373_v18 = vld [vmem:[#allocation22_spill] sm:$0xff] }
 0x803   : > { %v6244_v27 = vpop.f32.mrf.mxu1  ;;  %v6140_v32 = vadd.f32 %v18373_v18, %v16127_v33 }
 0x804   : > { %v16355_v21 = vadd.f32 %v6244_v27, %v6136_v60 }
 0x805   : > { %v11684_v37 = vpop.f32.mrf.mxu1 }
 0x806   : > { %v18374_v37 = vld [vmem:[#allocation163_spill] sm:$0xff] }
 0x807   : > { %v6249_v17 = vpop.f32.mrf.mxu1  ;;  %11866 = vmatmul.mubr.msk.bf16.gmra.mxu1 %vm2877_vm1, %v18320_v39 }
 0x808   : > { %v16361_v48 = vadd.f32 %v6249_v17, %v6137_v58  ;;  %11869 = vmatprep.mubr.msk.bf16.mxu1 %vm12774_vm0, %v17769_v52  ;;  %v18375_v17 = vld [vmem:[#allocation23_spill] sm:$0xff] }
 0x809   : > { %v11687_v54 = vpop.f32.mrf.mxu1 }
 0x80a   : > { %v6142_v54 = vadd.f32 %v18375_v17, %v16139_v23 }
 0x80b   : > { %v6252_v3 = vpop.f32.mrf.mxu1 }
 0x80c   : > { %v16367_v55 = vadd.f32 %v6252_v3, %v6138_v34  ;;  %v18376_v3 = vld [vmem:[#allocation164_spill] sm:$0xff] }
 0x80d   : > { %v11688_v57 = vpop.f32.mrf.mxu1 }
 0x80e   : > { %v6143_v57 = vadd.f32 %v18376_v3, %v16145_v26 }
 0x80f   : > { %v6257_v24 = vpop.f32.mrf.mxu1  ;;  %11870 = vmatmul.mubr.msk.bf16.gmra.mxu1 %vm2877_vm1, %v18323_v53  ;;  %v6141_v53 = vadd.f32 %v18374_v37, %v16133_v13  ;;  %v18379_v37 = vld [vmem:[#allocation25_spill] sm:$0xff] }
 0x810   : > { %v16373_v39 = vadd.f32 %v6257_v24, %v6139_v44  ;;  %11873 = vmatprep.mubr.msk.bf16.mxu1 %vm12774_vm0, %v17769_v52  ;;  %v18377_v24 = vld [vmem:[#allocation24_spill] sm:$0xff] }
 0x811   : > { %v11691_v36 = vpop.f32.mrf.mxu1  ;;  %v6144_v23 = vadd.f32 %v18377_v24, %v16151_v19  ;;  %v18382_v24 = vld [vmem:[#allocation26_spill] sm:$0xff] }
 0x813   : > { %v6260_v1 = vpop.f32.mrf.mxu1 }
 0x814   : > { %v16379_v60 = vadd.f32 %v6260_v1, %v6140_v32  ;;  %v18378_v1 = vld [vmem:[#allocation165_spill] sm:$0xff] }
 0x815   : > { %v11692_v27 = vpop.f32.mrf.mxu1  ;;  %v6145_v26 = vadd.f32 %v18378_v1, %v16161_v43  ;;  %v18384_v1 = vld [vmem:[#allocation2_spill] sm:$0xff] }
 0x817   : > { %v6265_v11 = vpop.f32.mrf.mxu1  ;;  %11874 = vmatmul.mubr.msk.bf16.gmra.mxu1 %vm2877_vm1, %v18326_v20 }
 0x818   : > { %v16389_v58 = vadd.f32 %v6265_v11, %v6141_v53  ;;  %11877 = vmatprep.mubr.msk.bf16.mxu1 %vm12774_vm0, %v17769_v52  ;;  %v6146_v53 = vadd.f32 %v18379_v37, %v16167_v22  ;;  %v18381_v22 = vld [vmem:[#allocation52_spill] sm:$0xff] }
 0x819   : > { %v11695_v33 = vpop.f32.mrf.mxu1  ;;  %v6148_v3 = vadd.f32 %v18381_v22, %v16179_v30  ;;  %v18388_v22 = vld [vmem:[#allocation56_spill] sm:$0xff] }
 0x81a   : > { %v18380_v33 = vld [vmem:[#allocation166_spill] sm:$0xff] }
 0x81b   : > { %v6268_v0 = vpop.f32.mrf.mxu1  ;;  %v6147_v17 = vadd.f32 %v18380_v33, %v16173_v50  ;;  %v6149_v50 = vadd.f32 %v18382_v24, %v16185_v45  ;;  %v18390_v24 = vld [vmem:[#allocation3_spill] sm:$0xff] }
 0x81c   : > { %v16395_v34 = vadd.f32 %v6268_v0, %v6142_v54 }
 0x81d   : > { %v11696_v13 = vpop.f32.mrf.mxu1 }
 0x81f   : > { %v6273_v9 = vpop.f32.mrf.mxu1  ;;  %11878 = vmatmul.mubr.msk.bf16.gmra.mxu1 %vm2877_vm1, %v18329_v61  ;;  %v12605_v61 = vld [vmem:[%s17591_s5 + $0x40] sm:$0xff]  }
 0x820   : > { %v16401_v20 = vadd.f32 %v6273_v9, %v6143_v57  ;;  %11881 = vmatprep.mubr.msk.bf16.mxu1 %vm12774_vm0, %v17769_v52  ;;  %11992 = vmatpush3.bf16.msra.mxu1 %v12605_v61 }
 0x821   : > { %v11699_v44 = vpop.f32.mrf.mxu1  ;;  %12057 = vmatprep.subr.bf16.mxu1 %v17769_v52 }
 0x823   : > { %v6276_v36 = vpop.f32.mrf.mxu1 }
 0x824   : > { %v16407_v18 = vadd.f32 %v6276_v36, %v6144_v23 }
 0x825   : > { %v11700_v32 = vpop.f32.mrf.mxu1 }
 0x826   : > { %v18383_v32 = vld [vmem:[#allocation5_spill] sm:$0xff] }
 0x827   : > { %v6281_v56 = vpop.f32.mrf.mxu1  ;;  %11882 = vmatmul.mubr.msk.bf16.gmra.mxu1 %vm2877_vm1, %v18332_v38  ;;  %v6150_v30 = vadd.f32 %v18384_v1, %v18383_v32  ;;  %v18391_v32 = vld [vmem:[#allocation28_spill] sm:$0xff] }
 0x828   : > { %v16416_v27 = vadd.f32 %v6281_v56, %v6145_v26  ;;  %11885 = vmatprep.mubr.msk.bf16.mxu1 %vm12774_vm0, %v17769_v52  ;;  %v6155_v1 = vadd.f32 %v18391_v32, %v16225_v51 }
 0x829   : > { %v11703_v19 = vpop.f32.mrf.mxu1 }
 0x82a   : > { %v18385_v19 = vld [vmem:[#allocation55_spill] sm:$0xff] }
 0x82b   : > { %v6284_v43 = vpop.f32.mrf.mxu1  ;;  %v6151_v45 = vadd.f32 %v18385_v19, %v16197_v4  ;;  %v18393_v19 = vld [vmem:[#allocation58_spill] sm:$0xff] }
 0x82c   : > { %v16423_v11 = vadd.f32 %v6284_v43, %v6146_v53  ;;  %v18386_v43 = vld [vmem:[#allocation27_spill] sm:$0xff] }
 0x82d   : > { %v11704_v38 = vpop.f32.mrf.mxu1 }
 0x82e   : > { %v6152_v38 = vadd.f32 %v18386_v43, %v16203_v10 }
 0x82f   : > { %v6289_v54 = vpop.f32.mrf.mxu1  ;;  %11886 = vmatmul.mubr.msk.bf16.gmra.mxu1 %vm2877_vm1, %v18335_v63 }
 0x830   : > { %v16429_v0 = vadd.f32 %v6289_v54, %v6147_v17  ;;  %11889 = vmatprep.mubr.msk.bf16.mxu1 %vm12774_vm0, %v17769_v52 }
 0x831   : > { %v11707_v13 = vpop.f32.mrf.mxu1 }
 0x832   : > { %v18387_v13 = vld [vmem:[#allocation100_spill] sm:$0xff] }
 0x833   : > { %v6292_v57 = vpop.f32.mrf.mxu1  ;;  %v6153_v4 = vadd.f32 %v18388_v22, %v18387_v13  ;;  %v18395_v13 = vld [vmem:[#allocation29_spill] sm:$0xff] }
 0x834   : > { %v16435_v9 = vadd.f32 %v6292_v57, %v6148_v3  ;;  %v6158_v22 = vadd.f32 %v18395_v13, %v16243_v5 }
 0x835   : > { %v11708_v44 = vpop.f32.mrf.mxu1 }
 0x836   : > { %v18389_v44 = vld [vmem:[#allocation112_spill] sm:$0xff] }
 0x837   : > { %v6297_v23 = vpop.f32.mrf.mxu1  ;;  %11890 = vmatmul.mubr.msk.bf16.gmra.mxu1 %vm2877_vm1, %v18339_v46  ;;  %v6154_v10 = vadd.f32 %v18390_v24, %v18389_v44  ;;  %v18396_v44 = vld [vmem:[#allocation4_spill] sm:$0xff] }
 0x838   : > { %v16441_v63 = vadd.f32 %v6297_v23, %v6149_v50  ;;  %11893 = vmatprep.mubr.msk.bf16.mxu1 %vm12774_vm0, %v17769_v52 }
 0x839   : > { %v11711_v36 = vpop.f32.mrf.mxu1 }
 0x83b   : > { %v6300_v26 = vpop.f32.mrf.mxu1 }
 0x83c   : > { %v16447_v56 = vadd.f32 %v6300_v26, %v6150_v30 }
 0x83d   : > { %v11712_v61 = vpop.f32.mrf.mxu1 }
 0x83e   : > { %v18392_v61 = vld [vmem:[#allocation6_spill] sm:$0xff] }
 0x83f   : > { %v6305_v37 = vpop.f32.mrf.mxu1  ;;  %11894 = vmatmul.mubr.msk.bf16.gmra.mxu1 %vm2877_vm1, %v18342_v29 }
 0x840   : > { %v16453_v46 = vadd.f32 %v6305_v37, %v6151_v45  ;;  %11897 = vmatprep.mubr.msk.bf16.mxu1 %vm12774_vm0, %v17769_v52  ;;  %v6156_v45 = vadd.f32 %v18393_v19, %v18392_v61 }
 0x841   : > { %v11715_v53 = vpop.f32.mrf.mxu1 }
 0x843   : > { %v6308_v33 = vpop.f32.mrf.mxu1 }
 0x844   : > { %v16459_v17 = vadd.f32 %v6308_v33, %v6152_v38  ;;  %v18394_v38 = vld [vmem:[#allocation59_spill] sm:$0xff] }
 0x845   : > { %v11716_v54 = vpop.f32.mrf.mxu1  ;;  %v6157_v51 = vadd.f32 %v18394_v38, %v16237_v62  ;;  %v6159_v62 = vadd.f32 %v18396_v44, %v16249_v42 }
 0x847   : > { %v6313_v3 = vpop.f32.mrf.mxu1  ;;  %11898 = vmatmul.mubr.msk.bf16.gmra.mxu1 %vm2877_vm1, %v18347_v12 }
 0x848   : > { %v16465_v29 = vadd.f32 %v6313_v3, %v6153_v4  ;;  %11901 = vmatprep.mubr.msk.bf16.mxu1 %vm12774_vm0, %v17769_v52 }
 0x849   : > { %v11719_v57 = vpop.f32.mrf.mxu1 }
 0x84b   : > { %v6316_v50 = vpop.f32.mrf.mxu1 }
 0x84c   : > { %v16471_v23 = vadd.f32 %v6316_v50, %v6154_v10  ;;  %v18397_v10 = vld [vmem:[#allocation53_spill] sm:$0xff] }
 0x84d   : > { %v11720_v36 = vpop.f32.mrf.mxu1 }
 0x84e   : > { %v18398_v36 = vld [vmem:[#allocation62_spill] sm:$0xff] }
 0x84f   : > { %v6321_v30 = vpop.f32.mrf.mxu1  ;;  %11902 = vmatmul.mubr.msk.bf16.gmra.mxu1 %vm2877_vm1, %v18351_v47  ;;  %v6160_v5 = vadd.f32 %v18398_v36, %v16255_v16  ;;  %v18401_v16 = vld [vmem:[#allocation31_spill] sm:$0xff] }
 0x850   : > { %v16477_v12 = vadd.f32 %v6321_v30, %v6155_v1  ;;  %11905 = vmatprep.mubr.msk.bf16.mxu1 %vm12774_vm0, %v17769_v52 }
 0x851   : > { %v11723_v26 = vpop.f32.mrf.mxu1 }
 0x852   : > { %v18399_v26 = vld [vmem:[#allocation30_spill] sm:$0xff] }
 0x853   : > { %v6324_v37 = vpop.f32.mrf.mxu1  ;;  %v6161_v42 = vadd.f32 %v18399_v26, %v16264_v14  ;;  %v18402_v14 = vld [vmem:[#allocation95_spill] sm:$0xff] }
 0x854   : > { %v16483_v53 = vadd.f32 %v6324_v37, %v6156_v45  ;;  %v18400_v37 = vld [vmem:[#allocation65_spill] sm:$0xff] }
 0x855   : > { %v11724_v43 = vpop.f32.mrf.mxu1 }
 0x856   : > { %v6162_v43 = vadd.f32 %v18400_v37, %v16271_v28  ;;  %v18403_v28 = vld [vmem:[#allocation68_spill] sm:$0xff] }
 0x857   : > { %v6329_v33 = vpop.f32.mrf.mxu1  ;;  %11906 = vmatmul.mubr.msk.bf16.gmra.mxu1 %vm2877_vm1, %v18354_v7 }
 0x858   : > { %v16489_v47 = vadd.f32 %v6329_v33, %v6157_v51  ;;  %11909 = vmatprep.mubr.msk.bf16.mxu1 %vm12774_vm0, %v17769_v52 }
 0x859   : > { %v11727_v54 = vpop.f32.mrf.mxu1 }
 0x85a   : > { %v6163_v54 = vadd.f32 %v18401_v16, %v16277_v25  ;;  %v18404_v25 = vld [vmem:[#allocation7_spill] sm:$0xff] }
 0x85b   : > { %v6332_v4 = vpop.f32.mrf.mxu1 }
 0x85c   : > { %v16495_v3 = vadd.f32 %v6332_v4, %v6158_v22 }
 0x85d   : > { %v11728_v57 = vpop.f32.mrf.mxu1 }
 0x85e   : > { %v6164_v57 = vadd.f32 %v18402_v14, %v16287_v15  ;;  %v18405_v15 = vld [vmem:[#allocation70_spill] sm:$0xff] }
 0x85f   : > { %v6337_v24 = vpop.f32.mrf.mxu1  ;;  %11910 = vmatmul.mubr.msk.bf16.gmra.mxu1 %vm2877_vm1, %v18397_v10  ;;  %v6165_v10 = vadd.f32 %v18403_v28, %v16293_v59  ;;  %v18406_v59 = vld [vmem:[#allocation71_spill] sm:$0xff] }
 0x860   : > { %v16501_v7 = vadd.f32 %v6337_v24, %v6159_v62  ;;  %11993 = vmatprep.mubr.msk.bf16.mxu1 %vm12774_vm0, %v17769_v52 }
 0x861   : > { %v11731_v50 = vpop.f32.mrf.mxu1 }
 0x863   : > { %v6340_v32 = vpop.f32.mrf.mxu1 }
 0x864   : > { %v16507_v1 = vadd.f32 %v6340_v32, %v6160_v5  ;;  %v6166_v32 = vadd.f32 %v18404_v25, %v16299_v41  ;;  %v18407_v41 = vld [vmem:[#allocation8_spill] sm:$0xff] }
 0x865   : > { %v11732_v30 = vpop.f32.mrf.mxu1 }
 0x867   : > { %v6345_v61 = vpop.f32.mrf.mxu1 }
 0x868   : > { %v16511_v19 = vadd.f32 %v6345_v61, %v6161_v42  ;;  %v6167_v61 = vadd.f32 %v18405_v15, %v16305_v2  ;;  %v18408_v2 = vld [vmem:[#allocation72_spill] sm:$0xff] }
 0x869   : > { %v11735_v45 = vpop.f32.mrf.mxu1 }
 0x86b   : > { %v6348_v38 = vpop.f32.mrf.mxu1 }
 0x86c   : > { %v16515_v51 = vadd.f32 %v6348_v38, %v6162_v43  ;;  %v6168_v38 = vadd.f32 %v18406_v59, %v16311_v8  ;;  %v18409_v8 = vld [vmem:[#allocation73_spill] sm:$0xff] }
 0x86d   : > { %v11736_v33 = vpop.f32.mrf.mxu1 }
 0x86f   : > { %v6353_v13 = vpop.f32.mrf.mxu1 }
 0x870   : > { %v16519_v22 = vadd.f32 %v6353_v13, %v6163_v54  ;;  %v6169_v13 = vadd.f32 %v18407_v41, %v16321_v49  ;;  %v16554_v49 = vld [vmem:[%s17590_s4] ss:$0 sm:$0xff] }
 0x871   : > { %v11739_v4 = vpop.f32.mrf.mxu1 }
 0x873   : > { %v6356_v44 = vpop.f32.mrf.mxu1 }
 0x874   : > { %v16523_v62 = vadd.f32 %v6356_v44, %v6164_v57  ;;  %v6170_v44 = vadd.f32 %v18408_v2, %v16327_v35 }
 0x875   : > { %v11740_v24 = vpop.f32.mrf.mxu1 }
 0x877   : > { %v6361_v50 = vpop.f32.mrf.mxu1 }
 0x878   : > { %v16527_v36 = vadd.f32 %v6361_v50, %v6165_v10  ;;  %v6626_v50 = vadd.f32 %v18409_v8, %v16333_v6  ;;  %v18411_v6 = vld [vmem:[#allocation76_spill] sm:$0xff] }
 0x879   : > { %v11743_v5 = vpop.f32.mrf.mxu1  ;;  %v6628_v59 = vadd.f32 %v18411_v6, %v16348_v40 }
 0x87b   : > { %v6364_v30 = vpop.f32.mrf.mxu1 }
 0x87c   : > { %v16531_v26 = vadd.f32 %v6364_v30, %v6166_v32  ;;  %v18410_v30 = vld [vmem:[#allocation75_spill] sm:$0xff] }
 0x87d   : > { %v11744_v42 = vpop.f32.mrf.mxu1 }
 0x87e   : > { %v6627_v42 = vadd.f32 %v18410_v30, %v16339_v31 }
 0x87f   : > { %v6369_v45 = vpop.f32.mrf.mxu1 }
 0x880   : > { %v16535_v37 = vadd.f32 %v6369_v45, %v6167_v61 }
 0x881   : > { %v11747_v43 = vpop.f32.mrf.mxu1 }
 0x883   : > { %v6372_v33 = vpop.f32.mrf.mxu1 }
 0x884   : > { %v16539_v16 = vadd.f32 %v6372_v33, %v6168_v38 }
 0x885   : > { %v11748_v54 = vpop.f32.mrf.mxu1 }
 0x887   : > { %v6377_v4 = vpop.f32.mrf.mxu1 }
 0x888   : > { %v16543_v14 = vadd.f32 %v6377_v4, %v6169_v13 }
 0x889   : > { %v11751_v57 = vpop.f32.mrf.mxu1 }
 0x88a   : > { %v18412_v57 = vld [vmem:[#allocation36_spill] sm:$0xff] }
 0x88b   : > { %v6380_v24 = vpop.f32.mrf.mxu1  ;;  %v6629_v31 = vadd.f32 %v18412_v57, %v16355_v21  ;;  %v12604_v21 = vld [vmem:[%s17591_s5 + $0x18] sm:$0xff]  }
 0x88c   : > { %v16547_v28 = vadd.f32 %v6380_v24, %v6170_v44 }
 0x88d   : > { %v11752_v10 = vpop.f32.mrf.mxu1 }
 0x88f   : > { %v6717_v5 = vpop.f32.mrf.mxu1 }
 0x890   : > { %v6868_v25 = vadd.f32 %v6717_v5, %v6626_v50  ;;  %v18413_v50 = vld [vmem:[#allocation9_spill] sm:$0xff] }
 0x891   : > { %v11839_v32 = vpop.f32.mrf.mxu1  ;;  %v6630_v40 = vadd.f32 %v18413_v50, %v16361_v48 }
 0x892   : > { %v6913_v35 = vadd.f32 %v16554_v49, %v6868_v25 }
 0x893   : > { %v6720_v15 = vpop.f32.mrf.mxu1 }
 0x894   : > { %v6869_v61 = vadd.f32 %v6720_v15, %v6627_v42  ;;  %v6951_v33 = vmax.f32 %v6913_v35, 0.0  ;;  %v18414_v35 = vld [vmem:[#allocation42_spill] sm:$0xff] }
 0x895   : > { %v11840_v45 = vpop.f32.mrf.mxu1 }
 0x896   : > { %v6914_v43 = vadd.f32 %v16554_v49, %v6869_v61  ;;  %v6631_v61 = vadd.f32 %v18414_v35, %v16367_v55  ;;  %v18415_v55 = vld [vmem:[#allocation37_spill] sm:$0xff] }
 0x897   : > { %v6725_v38 = vpop.f32.mrf.mxu1 }
 0x898   : > { %v6952_v54 = vmax.f32 %v6914_v43, 0.0  ;;  %v6870_v41 = vadd.f32 %v6725_v38, %v6628_v59  ;;  %v12606_v59 = vld [vmem:[%s17591_s5 + $0x10] sm:$0xff]  }
 0x899   : > { %v11843_v13 = vpop.f32.mrf.mxu1 }
 0x89a   : > { %v16562_v4 = vpack.c.bf16 %v6952_v54, %v6951_v33  ;;  %v6915_v44 = vadd.f32 %v16554_v49, %v6870_v41  ;;  %v6632_v33 = vadd.f32 %v18415_v55, %v16373_v39  ;;  %v12609_v39 = vld [vmem:[%s17591_s5 + $0x98] sm:$0xff]  }
 0x89b   : > { %v6728_v2 = vpop.f32.mrf.mxu1 }
 0x89c   : > { %v6871_v24 = vadd.f32 %v6728_v2, %v6629_v31  ;;  %v6953_v25 = vmax.f32 %v6915_v44, 0.0  ;;  %v18416_v44 = vld [vmem:[#allocation78_spill] sm:$0xff] }
 0x89d   : > { %v11844_v10 = vpop.f32.mrf.mxu1 }
 0x89e   : > { %v6916_v8 = vadd.f32 %v16554_v49, %v6871_v24  ;;  %v6633_v24 = vadd.f32 %v18416_v44, %v16379_v60  ;;  %v12607_v10 = vld [vmem:[%s17591_s5 + $0x8] sm:$0xff]  }
 0x89f   : > { %v6733_v5 = vpop.f32.mrf.mxu1 }
 0x8a0   : > { %v6954_v32 = vmax.f32 %v6916_v8, 0.0  ;;  %v6872_v30 = vadd.f32 %v6733_v5, %v6630_v40 }
 0x8a1   : > { %v11847_v42 = vpop.f32.mrf.mxu1 }
 0x8a2   : > { %v16573_v15 = vpack.c.bf16 %v6954_v32, %v6953_v25  ;;  %v6917_v43 = vadd.f32 %v16554_v49, %v6872_v30  ;;  %v18417_v25 = vld [vmem:[#allocation79_spill] sm:$0xff]  ;;  %v12608_v30 = vld [vmem:[%s17591_s5] sm:$0xff]   ;;  %v12610_v42 = vld [vmem:[%s17591_s5 + $0x90] sm:$0xff]  }
 0x8a3   : > { %v6736_v45 = vpop.f32.mrf.mxu1  ;;  %v6634_v32 = vadd.f32 %v18417_v25, %v16389_v58 }
 0x8a4   : > { %v6873_v6 = vadd.f32 %v6736_v45, %v6631_v61  ;;  %11922 = vmatmul.mubr.msk.bf16.vlgmr.msra.gmra.mxu0 %vm7048_vm2, %v16573_v15  ;;  %v6955_v41 = vmax.f32 %v6917_v43, 0.0 }
 0x8a5   : > { %11950 = vmatpush3.bf16.msra.mxu0 %v12604_v21  ;;  %v11848_v48 = vpop.f32.mrf.mxu1  ;;  %11925 = vmatprep.mubr.msk.bf16.mxu0 %vm12774_vm0, %v17769_v52 }
 0x8a6   : > { %v6918_v38 = vadd.f32 %v16554_v49, %v6873_v6  ;;  %11951 = vmatprep.subr.bf16.mxu0 %v17769_v52  ;;  %v18418_v6 = vld [vmem:[#allocation38_spill] sm:$0xff] }
 0x8a7   : > { %v6741_v54 = vpop.f32.mrf.mxu1  ;;  %v6635_v48 = vadd.f32 %v18418_v6, %v16395_v34  ;;  %v18422_v6 = vld [vmem:[#allocation81_spill] sm:$0xff] }
 0x8a8   : > { %v6956_v13 = vmax.f32 %v6918_v38, 0.0  ;;  %v6874_v57 = vadd.f32 %v6741_v54, %v6632_v33 }
 0x8a9   : > { %v11851_v31 = vpop.f32.mrf.mxu1  ;;  %11952 = vmatpush3.bf16.msra.mxu0 %v12606_v59  ;;  %v12612_v59 = vld [vmem:[%s17591_s5 + $0x88] sm:$0xff]  }
 0x8aa   : > { %v16589_v2 = vpack.c.bf16 %v6956_v13, %v6955_v41  ;;  %11953 = vmatprep.subr.bf16.mxu0 %v17769_v52  ;;  %v6919_v50 = vadd.f32 %v16554_v49, %v6874_v57  ;;  %v18419_v41 = vld [vmem:[#allocation43_spill] sm:$0xff]  ;;  %v12613_v57 = vld [vmem:[%s17591_s5 + $0x80] sm:$0xff]  }
 0x8ab   : > { %v6744_v8 = vpop.f32.mrf.mxu1  ;;  %v6636_v13 = vadd.f32 %v18419_v41, %v16401_v20 }
 0x8ac   : > { %v6875_v40 = vadd.f32 %v6744_v8, %v6633_v24  ;;  %11926 = vmatmul.mubr.msk.bf16.gmra.mxu0 %vm7048_vm2, %v16589_v2  ;;  %11994 = vmatmul.mubr.msk.bf16.vlgmr.msra.gmra.mxu1 %vm7048_vm2, %v16589_v2  ;;  %v6957_v35 = vmax.f32 %v6919_v50, 0.0  ;;  %v18420_v50 = vld [vmem:[#allocation11_spill] sm:$0xff] }
 0x8ad   : > { %v11852_v60 = vpop.f32.mrf.mxu1  ;;  %11929 = vmatprep.mubr.msk.bf16.mxu0 %vm12774_vm0, %v17769_v52  ;;  %11997 = vmatprep.mubr.msk.bf16.mxu1 %vm12774_vm0, %v17769_v52 }
 0x8ae   : > { %v6920_v5 = vadd.f32 %v16554_v49, %v6875_v40  ;;  %11954 = vmatpush3.bf16.msra.mxu0 %v12607_v10  ;;  %12058 = vmatpush3.bf16.msra.mxu1 %v12609_v39  ;;  %v6637_v40 = vadd.f32 %v18420_v50, %v16407_v18 }
 0x8af   : > { %v6749_v21 = vpop.f32.mrf.mxu1  ;;  %11955 = vmatprep.subr.bf16.mxu0 %v17769_v52  ;;  %12059 = vmatprep.subr.bf16.mxu1 %v17769_v52 }
 0x8b0   : > { %v6958_v61 = vmax.f32 %v6920_v5, 0.0  ;;  %v6876_v45 = vadd.f32 %v6749_v21, %v6634_v32  ;;  %v18421_v32 = vld [vmem:[#allocation39_spill] sm:$0xff] }
 0x8b1   : > { %v11855_v43 = vpop.f32.mrf.mxu1 }
 0x8b2   : > { %v16620_v58 = vpack.c.bf16 %v6958_v61, %v6957_v35  ;;  %11956 = vmatpush3.bf16.msra.mxu0 %v12608_v30  ;;  %12060 = vmatpush3.bf16.msra.mxu1 %v12610_v42  ;;  %v6921_v55 = vadd.f32 %v16554_v49, %v6876_v45  ;;  %v6638_v30 = vadd.f32 %v18421_v32, %v16416_v27 }
 0x8b3   : > { %v6752_v38 = vpop.f32.mrf.mxu1  ;;  %12021 = vmatprep.subr.bf16.mxu0 %v17769_v52  ;;  %12061 = vmatprep.subr.bf16.mxu1 %v17769_v52 }
 0x8b4   : > { %v6877_v33 = vadd.f32 %v6752_v38, %v6635_v48  ;;  %11930 = vmatmul.mubr.msk.bf16.gmra.mxu0 %vm7048_vm2, %v16620_v58  ;;  %11998 = vmatmul.mubr.msk.bf16.gmra.mxu1 %vm7048_vm2, %v16620_v58  ;;  %v6959_v44 = vmax.f32 %v6921_v55, 0.0  ;;  %v6639_v48 = vadd.f32 %v18422_v6, %v16423_v11  ;;  %v18423_v11 = vld [vmem:[#allocation45_spill] sm:$0xff] }
 0x8b5   : > { %v11856_v34 = vpop.f32.mrf.mxu1  ;;  %11933 = vmatprep.mubr.msk.bf16.mxu0 %vm12774_vm0, %v17769_v52  ;;  %12001 = vmatprep.mubr.msk.bf16.mxu1 %vm12774_vm0, %v17769_v52 }
 0x8b6   : > { %v6922_v54 = vadd.f32 %v16554_v49, %v6877_v33  ;;  %12062 = vmatpush3.bf16.msra.mxu1 %v12612_v59  ;;  %v6640_v34 = vadd.f32 %v18423_v11, %v16429_v0 }
 0x8b7   : > { %v6757_v31 = vpop.f32.mrf.mxu1  ;;  %12063 = vmatprep.subr.bf16.mxu1 %v17769_v52 }
 0x8b8   : > { %v6960_v24 = vmax.f32 %v6922_v54, 0.0  ;;  %v6878_v10 = vadd.f32 %v6757_v31, %v6636_v13 }
 0x8b9   : > { %v11859_v39 = vpop.f32.mrf.mxu1 }
 0x8ba   : > { %v16645_v8 = vpack.c.bf16 %v6960_v24, %v6959_v44  ;;  %12064 = vmatpush3.bf16.msra.mxu1 %v12613_v57  ;;  %v6923_v20 = vadd.f32 %v16554_v49, %v6878_v10  ;;  %v18424_v24 = vld [vmem:[#allocation82_spill] sm:$0xff] }
 0x8bb   : > { %v6760_v60 = vpop.f32.mrf.mxu1  ;;  %12129 = vmatprep.subr.bf16.mxu1 %v17769_v52  ;;  %v6641_v10 = vadd.f32 %v18424_v24, %v16435_v9  ;;  %v18425_v9 = vld [vmem:[#allocation12_spill] sm:$0xff] }
 0x8bc   : > { %v6879_v5 = vadd.f32 %v6760_v60, %v6637_v40  ;;  %11934 = vmatmul.mubr.msk.bf16.gmra.mxu0 %vm7048_vm2, %v16645_v8  ;;  %12002 = vmatmul.mubr.msk.bf16.gmra.mxu1 %vm7048_vm2, %v16645_v8  ;;  %v6961_v21 = vmax.f32 %v6923_v20, 0.0  ;;  %v6642_v20 = vadd.f32 %v18425_v9, %v16441_v63 }
 0x8bd   : > { %v11860_v25 = vpop.f32.mrf.mxu1  ;;  %11937 = vmatprep.mubr.msk.bf16.mxu0 %vm12774_vm0, %v17769_v52  ;;  %12005 = vmatprep.mubr.msk.bf16.mxu1 %vm12774_vm0, %v17769_v52 }
 0x8be   : > { %v6924_v18 = vadd.f32 %v16554_v49, %v6879_v5 }
 0x8bf   : > { %v6765_v42 = vpop.f32.mrf.mxu1 }
 0x8c0   : > { %v6962_v35 = vmax.f32 %v6924_v18, 0.0  ;;  %v6880_v61 = vadd.f32 %v6765_v42, %v6638_v30 }
 0x8c1   : > { %v11863_v45 = vpop.f32.mrf.mxu1 }
 0x8c2   : > { %v16662_v43 = vpack.c.bf16 %v6962_v35, %v6961_v21  ;;  %v6925_v38 = vadd.f32 %v16554_v49, %v6880_v61  ;;  %v18426_v21 = vld [vmem:[#allocation84_spill] sm:$0xff] }
 0x8c3   : > { %v6768_v59 = vpop.f32.mrf.mxu1  ;;  %v6643_v35 = vadd.f32 %v18426_v21, %v16447_v56  ;;  %v18427_v56 = vld [vmem:[#allocation48_spill] sm:$0xff] }
 0x8c4   : > { %v6881_v55 = vadd.f32 %v6768_v59, %v6639_v48  ;;  %11938 = vmatmul.mubr.msk.bf16.gmra.mxu0 %vm7048_vm2, %v16662_v43  ;;  %12006 = vmatmul.mubr.msk.bf16.gmra.mxu1 %vm7048_vm2, %v16662_v43  ;;  %v6963_v41 = vmax.f32 %v6925_v38, 0.0  ;;  %v6644_v59 = vadd.f32 %v18427_v56, %v16453_v46 }
 0x8c5   : > { %v11864_v27 = vpop.f32.mrf.mxu1  ;;  %11941 = vmatprep.mubr.msk.bf16.mxu0 %vm12774_vm0, %v17769_v52  ;;  %12009 = vmatprep.mubr.msk.bf16.mxu1 %vm12774_vm0, %v17769_v52 }
 0x8c6   : > { %v6926_v33 = vadd.f32 %v16554_v49, %v6881_v55 }
 0x8c7   : > { %v6773_v54 = vpop.f32.mrf.mxu1 }
 0x8c8   : > { %v6964_v13 = vmax.f32 %v6926_v33, 0.0  ;;  %v6882_v57 = vadd.f32 %v6773_v54, %v6640_v34  ;;  %v12611_v34 = vld [vmem:[%s17591_s5 + $0x78] sm:$0xff]  }
 0x8c9   : > { %v11867_v31 = vpop.f32.mrf.mxu1 }
 0x8ca   : > { %v16678_v44 = vpack.c.bf16 %v6964_v13, %v6963_v41  ;;  %v6927_v50 = vadd.f32 %v16554_v49, %v6882_v57  ;;  %v18428_v41 = vld [vmem:[#allocation85_spill] sm:$0xff] }
 0x8cb   : > { %v6776_v39 = vpop.f32.mrf.mxu1  ;;  %v6645_v13 = vadd.f32 %v18428_v41, %v16459_v17 }
 0x8cc   : > { %v6883_v40 = vadd.f32 %v6776_v39, %v6641_v10  ;;  %11942 = vmatmul.mubr.msk.bf16.gmra.mxu0 %vm7048_vm2, %v16678_v44  ;;  %12010 = vmatmul.mubr.msk.bf16.gmra.mxu1 %vm7048_vm2, %v16678_v44  ;;  %v6965_v25 = vmax.f32 %v6927_v50, 0.0  ;;  %v12614_v10 = vld [vmem:[%s17591_s5 + $0x70] sm:$0xff]   ;;  %v18429_v39 = vld [vmem:[#allocation13_spill] sm:$0xff] }
 0x8cd   : > { %v11868_v0 = vpop.f32.mrf.mxu1  ;;  %11945 = vmatprep.mubr.msk.bf16.mxu0 %vm12774_vm0, %v17769_v52  ;;  %12013 = vmatprep.mubr.msk.bf16.mxu1 %vm12774_vm0, %v17769_v52  ;;  %v6646_v50 = vadd.f32 %v18429_v39, %v16465_v29  ;;  %v12615_v29 = vld [vmem:[%s17591_s5 + $0x68] sm:$0xff]  }
 0x8ce   : > { %v6928_v60 = vadd.f32 %v16554_v49, %v6883_v40 }
 0x8cf   : > { %v6781_v5 = vpop.f32.mrf.mxu1 }
 0x8d0   : > { %v6966_v18 = vmax.f32 %v6928_v60, 0.0  ;;  %v6884_v32 = vadd.f32 %v6781_v5, %v6642_v20  ;;  %v18430_v5 = vld [vmem:[#allocation14_spill] sm:$0xff] }
 0x8d1   : > { %v11871_v30 = vpop.f32.mrf.mxu1 }
 0x8d2   : > { %v16694_v42 = vpack.c.bf16 %v6966_v18, %v6965_v25  ;;  %v6929_v45 = vadd.f32 %v16554_v49, %v6884_v32  ;;  %v6647_v25 = vadd.f32 %v18430_v5, %v16471_v23  ;;  %v12617_v18 = vld [vmem:[%s17591_s5 + $0xd8] sm:$0xff]   ;;  %v18435_v5 = vld [vmem:[#allocation19_spill] sm:$0xff] }
 0x8d3   : > { %v6784_v61 = vpop.f32.mrf.mxu1 }
 0x8d4   : > { %v6885_v6 = vadd.f32 %v6784_v61, %v6643_v35  ;;  %11946 = vmatmul.mubr.msk.bf16.gmra.mxu0 %vm7048_vm2, %v16694_v42  ;;  %12014 = vmatmul.mubr.msk.bf16.gmra.mxu1 %vm7048_vm2, %v16694_v42  ;;  %v6967_v55 = vmax.f32 %v6929_v45, 0.0  ;;  %v18431_v61 = vld [vmem:[#allocation15_spill] sm:$0xff] }
 0x8d5   : > { %v11872_v63 = vpop.f32.mrf.mxu1  ;;  %11957 = vmatprep.mubr.msk.bf16.mxu0 %vm12774_vm0, %v17769_v52  ;;  %12017 = vmatprep.mubr.msk.bf16.mxu1 %vm12774_vm0, %v17769_v52  ;;  %v6648_v45 = vadd.f32 %v18431_v61, %v16477_v12 }
 0x8d6   : > { %v6930_v48 = vadd.f32 %v16554_v49, %v6885_v6  ;;  %v12618_v6 = vld [vmem:[%s17591_s5 + $0xd0] sm:$0xff]  }
 0x8d7   : > { %v6789_v38 = vpop.f32.mrf.mxu1 }
 0x8d8   : > { %v6968_v27 = vmax.f32 %v6930_v48, 0.0  ;;  %v6886_v33 = vadd.f32 %v6789_v38, %v6644_v59 }
 0x8d9   : > { %v11875_v11 = vpop.f32.mrf.mxu1 }
 0x8da   : > { %v16713_v54 = vpack.c.bf16 %v6968_v27, %v6967_v55  ;;  %v6931_v31 = vadd.f32 %v16554_v49, %v6886_v33  ;;  %v18432_v55 = vld [vmem:[#allocation16_spill] sm:$0xff]  ;;  %v12620_v33 = vld [vmem:[%s17591_s5 + $0xc8] sm:$0xff]  }
 0x8db   : > { %v6792_v57 = vpop.f32.mrf.mxu1  ;;  %v6649_v27 = vadd.f32 %v18432_v55, %v16483_v53 }
 0x8dc   : > { %v6887_v24 = vadd.f32 %v6792_v57, %v6645_v13  ;;  %11958 = vmatmul.mubr.msk.bf16.vlgmr.msra.gmra.mxu0 %vm7048_vm2, %v16562_v4  ;;  %12018 = vmatmul.mubr.msk.bf16.gmra.mxu1 %vm7048_vm2, %v16713_v54  ;;  %v6969_v40 = vmax.f32 %v6931_v31, 0.0  ;;  %v18433_v57 = vld [vmem:[#allocation17_spill] sm:$0xff] }
 0x8dd   : > { %12022 = vmatpush3.bf16.msra.mxu0 %v12611_v34  ;;  %v11876_v46 = vpop.f32.mrf.mxu1  ;;  %11961 = vmatprep.mubr.msk.bf16.mxu0 %vm12774_vm0, %v17769_v52  ;;  %v6650_v31 = vadd.f32 %v18433_v57, %v16489_v47 }
 0x8de   : > { %v6932_v17 = vadd.f32 %v16554_v49, %v6887_v24  ;;  %12065 = vmatprep.mubr.msk.bf16.mxu1 %vm12774_vm0, %v17769_v52  ;;  %12023 = vmatprep.subr.bf16.mxu0 %v17769_v52 }
 0x8df   : > { %v6797_v4 = vpop.f32.mrf.mxu1 }
 0x8e0   : > { %v6970_v0 = vmax.f32 %v6932_v17, 0.0  ;;  %v6888_v60 = vadd.f32 %v6797_v4, %v6646_v50  ;;  %v18434_v4 = vld [vmem:[#allocation18_spill] sm:$0xff] }
 0x8e1   : > { %v11879_v9 = vpop.f32.mrf.mxu1  ;;  %12024 = vmatpush3.bf16.msra.mxu0 %v12614_v10 }
 0x8e2   : > { %v16733_v20 = vpack.c.bf16 %v6970_v0, %v6969_v40  ;;  %12025 = vmatprep.subr.bf16.mxu0 %v17769_v52  ;;  %v6933_v30 = vadd.f32 %v16554_v49, %v6888_v60  ;;  %v6651_v40 = vadd.f32 %v18434_v4, %v16495_v3 }
 0x8e3   : > { %v6800_v32 = vpop.f32.mrf.mxu1 }
 0x8e4   : > { %v6889_v21 = vadd.f32 %v6800_v32, %v6647_v25  ;;  %11962 = vmatmul.mubr.msk.bf16.gmra.mxu0 %vm7048_vm2, %v16573_v15  ;;  %12066 = vmatmul.mubr.msk.bf16.vlgmr.msra.gmra.mxu1 %vm7048_vm2, %v16678_v44  ;;  %v12616_v15 = vld [vmem:[%s17591_s5 + $0x60] sm:$0xff]   ;;  %v6971_v48 = vmax.f32 %v6933_v30, 0.0  ;;  %v6652_v25 = vadd.f32 %v18435_v5, %v16501_v7 }
 0x8e5   : > { %v11880_v23 = vpop.f32.mrf.mxu1  ;;  %11965 = vmatprep.mubr.msk.bf16.mxu0 %vm12774_vm0, %v17769_v52  ;;  %12069 = vmatprep.mubr.msk.bf16.mxu1 %vm12774_vm0, %v17769_v52 }
 0x8e6   : > { %v6934_v35 = vadd.f32 %v16554_v49, %v6889_v21  ;;  %12026 = vmatpush3.bf16.msra.mxu0 %v12615_v29  ;;  %12130 = vmatpush3.bf16.msra.mxu1 %v12617_v18  ;;  %v18436_v23 = vld [vmem:[#allocation69_spill] sm:$0xff] }
 0x8e7   : > { %v6805_v63 = vpop.f32.mrf.mxu1  ;;  %12027 = vmatprep.subr.bf16.mxu0 %v17769_v52  ;;  %12131 = vmatprep.subr.bf16.mxu1 %v17769_v52 }
 0x8e8   : > { %v6972_v56 = vmax.f32 %v6934_v35, 0.0  ;;  %v6890_v59 = vadd.f32 %v6805_v63, %v6648_v45  ;;  %v6653_v35 = vadd.f32 %v18436_v23, %v16507_v1  ;;  %v18437_v1 = vld [vmem:[#allocation74_spill] sm:$0xff] }
 0x8e9   : > { %v11883_v38 = vpop.f32.mrf.mxu1  ;;  %v6654_v63 = vadd.f32 %v18437_v1, %v16511_v19 }
 0x8ea   : > { %v16764_v12 = vpack.c.bf16 %v6972_v56, %v6971_v48  ;;  %12028 = vmatpush3.bf16.msra.mxu0 %v12616_v15  ;;  %12132 = vmatpush3.bf16.msra.mxu1 %v12618_v6  ;;  %v6935_v34 = vadd.f32 %v16554_v49, %v6890_v59 }
 0x8eb   : > { %v6808_v11 = vpop.f32.mrf.mxu1  ;;  %12093 = vmatprep.subr.bf16.mxu0 %v17769_v52  ;;  %12133 = vmatprep.subr.bf16.mxu1 %v17769_v52 }
 0x8ec   : > { %v6891_v41 = vadd.f32 %v6808_v11, %v6649_v27  ;;  %11966 = vmatmul.mubr.msk.bf16.gmra.mxu0 %vm7048_vm2, %v16589_v2  ;;  %12070 = vmatmul.mubr.msk.bf16.gmra.mxu1 %vm7048_vm2, %v16694_v42  ;;  %v12621_v2 = vld [vmem:[%s17591_s5 + $0xc0] sm:$0xff]   ;;  %v6973_v46 = vmax.f32 %v6935_v34, 0.0  ;;  %v18438_v27 = vld [vmem:[#allocation83_spill] sm:$0xff] }
 0x8ed   : > { %v11884_v53 = vpop.f32.mrf.mxu1  ;;  %11969 = vmatprep.mubr.msk.bf16.mxu0 %vm12774_vm0, %v17769_v52  ;;  %12073 = vmatprep.mubr.msk.bf16.mxu1 %vm12774_vm0, %v17769_v52 }
 0x8ee   : > { %v6936_v13 = vadd.f32 %v16554_v49, %v6891_v41  ;;  %12134 = vmatpush3.bf16.msra.mxu1 %v12620_v33  ;;  %v6655_v33 = vadd.f32 %v18438_v27, %v16515_v51  ;;  %v18439_v51 = vld [vmem:[#allocation86_spill] sm:$0xff] }
 0x8ef   : > { %v6813_v24 = vpop.f32.mrf.mxu1  ;;  %12135 = vmatprep.subr.bf16.mxu1 %v17769_v52 }
 0x8f0   : > { %v6974_v10 = vmax.f32 %v6936_v13, 0.0  ;;  %v6892_v17 = vadd.f32 %v6813_v24, %v6650_v31  ;;  %v6656_v13 = vadd.f32 %v18439_v51, %v16519_v22 }
 0x8f1   : > { %v11887_v39 = vpop.f32.mrf.mxu1 }
 0x8f2   : > { %v16789_v50 = vpack.c.bf16 %v6974_v10, %v6973_v46  ;;  %12136 = vmatpush3.bf16.msra.mxu1 %v12621_v2  ;;  %v6937_v47 = vadd.f32 %v16554_v49, %v6892_v17  ;;  %v18440_v17 = vld [vmem:[#allocation96_spill] sm:$0xff] }
 0x8f3   : > { %v6816_v0 = vpop.f32.mrf.mxu1  ;;  %12201 = vmatprep.subr.bf16.mxu1 %v17769_v52  ;;  %v6657_v39 = vadd.f32 %v18440_v17, %v16523_v62  ;;  %v18441_v62 = vld [vmem:[#allocation97_spill] sm:$0xff]  ;;  %v12628_v17 = vld [vmem:[%s17591_s5 + $0x108] sm:$0xff]  }
 0x8f4   : > { %v6893_v60 = vadd.f32 %v6816_v0, %v6651_v40  ;;  %11970 = vmatmul.mubr.msk.bf16.gmra.mxu0 %vm7048_vm2, %v16620_v58  ;;  %12074 = vmatmul.mubr.msk.bf16.gmra.mxu1 %vm7048_vm2, %v16713_v54  ;;  %v6975_v18 = vmax.f32 %v6937_v47, 0.0 }
 0x8f5   : > { %v11888_v9 = vpop.f32.mrf.mxu1  ;;  %11973 = vmatprep.mubr.msk.bf16.mxu0 %vm12774_vm0, %v17769_v52  ;;  %12077 = vmatprep.mubr.msk.bf16.mxu1 %vm12774_vm0, %v17769_v52 }
 0x8f6   : > { %v6938_v3 = vadd.f32 %v16554_v49, %v6893_v60  ;;  %v6658_v60 = vadd.f32 %v18441_v62, %v16527_v36 }
 0x8f7   : > { %v6821_v29 = vpop.f32.mrf.mxu1 }
 0x8f8   : > { %v6976_v32 = vmax.f32 %v6938_v3, 0.0  ;;  %v6894_v30 = vadd.f32 %v6821_v29, %v6652_v25 }
 0x8f9   : > { %v11891_v58 = vpop.f32.mrf.mxu1 }
 0x8fa   : > { %v16806_v21 = vpack.c.bf16 %v6976_v32, %v6975_v18  ;;  %v6939_v45 = vadd.f32 %v16554_v49, %v6894_v30  ;;  %v12619_v18 = vld [vmem:[%s17591_s5 + $0xb8] sm:$0xff]  }
 0x8fb   : > { %v6824_v61 = vpop.f32.mrf.mxu1  ;;  %v18442_v30 = vld [vmem:[#allocation61_spill] sm:$0xff] }
 0x8fc   : > { %v6895_v15 = vadd.f32 %v6824_v61, %v6653_v35  ;;  %11974 = vmatmul.mubr.msk.bf16.gmra.mxu0 %vm7048_vm2, %v16645_v8  ;;  %12078 = vmatmul.mubr.msk.bf16.gmra.mxu1 %vm7048_vm2, %v16733_v20  ;;  %v6977_v56 = vmax.f32 %v6939_v45, 0.0  ;;  %v6659_v58 = vadd.f32 %v18442_v30, %v16531_v26  ;;  %v12622_v45 = vld [vmem:[%s17591_s5 + $0xb0] sm:$0xff]  }
 0x8fd   : > { %v11892_v7 = vpop.f32.mrf.mxu1  ;;  %11977 = vmatprep.mubr.msk.bf16.mxu0 %vm12774_vm0, %v17769_v52  ;;  %12081 = vmatprep.mubr.msk.bf16.mxu1 %vm12774_vm0, %v17769_v52 }
 0x8fe   : > { %v6940_v6 = vadd.f32 %v16554_v49, %v6895_v15  ;;  %v18443_v15 = vld [vmem:[#allocation98_spill] sm:$0xff] }
 0x8ff   : > { %v6829_v48 = vpop.f32.mrf.mxu1  ;;  %v6660_v7 = vadd.f32 %v18443_v15, %v16535_v37  ;;  %v12623_v37 = vld [vmem:[%s17591_s5 + $0xa8] sm:$0xff]  }
 0x900   : > { %v6978_v59 = vmax.f32 %v6940_v6, 0.0  ;;  %v6896_v38 = vadd.f32 %v6829_v48, %v6654_v63 }
 0x901   : > { %v11895_v8 = vpop.f32.mrf.mxu1 }
 0x902   : > { %v16822_v55 = vpack.c.bf16 %v6978_v59, %v6977_v56  ;;  %v6941_v34 = vadd.f32 %v16554_v49, %v6896_v38  ;;  %v18444_v59 = vld [vmem:[#allocation64_spill] sm:$0xff]  ;;  %v12625_v8 = vld [vmem:[%s17591_s5 + $0x118] sm:$0xff]  }
 0x903   : > { %v6832_v11 = vpop.f32.mrf.mxu1  ;;  %v6661_v38 = vadd.f32 %v18444_v59, %v16539_v16 }
 0x904   : > { %v6897_v41 = vadd.f32 %v6832_v11, %v6655_v33  ;;  %11978 = vmatmul.mubr.msk.bf16.gmra.mxu0 %vm7048_vm2, %v16662_v43  ;;  %12082 = vmatmul.mubr.msk.bf16.gmra.mxu1 %vm7048_vm2, %v16764_v12  ;;  %v6979_v31 = vmax.f32 %v6941_v34, 0.0 }
 0x905   : > { %v11896_v19 = vpop.f32.mrf.mxu1  ;;  %11981 = vmatprep.mubr.msk.bf16.mxu0 %vm12774_vm0, %v17769_v52  ;;  %12085 = vmatprep.mubr.msk.bf16.mxu1 %vm12774_vm0, %v17769_v52 }
 0x906   : > { %v6942_v53 = vadd.f32 %v16554_v49, %v6897_v41  ;;  %v18445_v41 = vld [vmem:[#allocation99_spill] sm:$0xff] }
 0x907   : > { %v6837_v57 = vpop.f32.mrf.mxu1  ;;  %v6662_v19 = vadd.f32 %v18445_v41, %v16543_v14 }
 0x908   : > { %v6980_v2 = vmax.f32 %v6942_v53, 0.0  ;;  %v6898_v24 = vadd.f32 %v6837_v57, %v6656_v13  ;;  %v12626_v53 = vld [vmem:[%s17591_s5 + $0x110] sm:$0xff]  }
 0x909   : > { %v11899_v46 = vpop.f32.mrf.mxu1 }
 0x90a   : > { %v16838_v10 = vpack.c.bf16 %v6980_v2, %v6979_v31  ;;  %v6943_v40 = vadd.f32 %v16554_v49, %v6898_v24  ;;  %v18446_v24 = vld [vmem:[#allocation67_spill] sm:$0xff] }
 0x90b   : > { %v6840_v4 = vpop.f32.mrf.mxu1  ;;  %v6663_v46 = vadd.f32 %v18446_v24, %v16547_v28 }
 0x90c   : > { %v6899_v0 = vadd.f32 %v6840_v4, %v6657_v39  ;;  %11982 = vmatmul.mubr.msk.bf16.gmra.mxu0 %vm7048_vm2, %v16678_v44  ;;  %12086 = vmatmul.mubr.msk.bf16.gmra.mxu1 %vm7048_vm2, %v16789_v50  ;;  %v6981_v3 = vmax.f32 %v6943_v40, 0.0 }
 0x90d   : > { %v11900_v22 = vpop.f32.mrf.mxu1  ;;  %12029 = vmatprep.mubr.msk.bf16.mxu0 %vm12774_vm0, %v17769_v52  ;;  %12089 = vmatprep.mubr.msk.bf16.mxu1 %vm12774_vm0, %v17769_v52 }
 0x90e   : > { %v6944_v47 = vadd.f32 %v16554_v49, %v6899_v0  ;;  %v12629_v22 = vld [vmem:[%s17591_s5 + $0x100] sm:$0xff]  }
 0x90f   : > { %v6845_v9 = vpop.f32.mrf.mxu1 }
 0x910   : > { %v6982_v5 = vmax.f32 %v6944_v47, 0.0  ;;  %v6900_v25 = vadd.f32 %v6845_v9, %v6658_v60  ;;  %v12630_v9 = vld [vmem:[%s17591_s5 + $0xf0] sm:$0xff]  }
 0x911   : > { %v11903_v29 = vpop.f32.mrf.mxu1 }
 0x912   : > { %v16857_v32 = vpack.c.bf16 %v6982_v5, %v6981_v3  ;;  %v6945_v35 = vadd.f32 %v16554_v49, %v6900_v25  ;;  %v12632_v3 = vld [vmem:[%s17591_s5 + $0xe0] sm:$0xff]  }
 0x913   : > { %v6848_v23 = vpop.f32.mrf.mxu1 }
 0x914   : > { %v6901_v61 = vadd.f32 %v6848_v23, %v6659_v58  ;;  %12030 = vmatmul.mubr.msk.bf16.vlgmr.msra.gmra.mxu0 %vm7048_vm2, %v16662_v43  ;;  %12090 = vmatmul.mubr.msk.bf16.gmra.mxu1 %vm7048_vm2, %v16806_v21  ;;  %v6983_v6 = vmax.f32 %v6945_v35, 0.0 }
 0x915   : > { %12094 = vmatpush3.bf16.msra.mxu0 %v12619_v18  ;;  %v11904_v36 = vpop.f32.mrf.mxu1  ;;  %12033 = vmatprep.mubr.msk.bf16.mxu0 %vm12774_vm0, %v17769_v52 }
 0x916   : > { %v6946_v26 = vadd.f32 %v16554_v49, %v6901_v61  ;;  %12137 = vmatprep.mubr.msk.bf16.mxu1 %vm12774_vm0, %v17769_v52  ;;  %12095 = vmatprep.subr.bf16.mxu0 %v17769_v52 }
 0x917   : > { %v6853_v43 = vpop.f32.mrf.mxu1 }
 0x918   : > { %v6984_v1 = vmax.f32 %v6946_v26, 0.0  ;;  %v6902_v63 = vadd.f32 %v6853_v43, %v6660_v7 }
 0x919   : > { %v11907_v48 = vpop.f32.mrf.mxu1  ;;  %12096 = vmatpush3.bf16.msra.mxu0 %v12622_v45 }
 0x91a   : > { %v16877_v56 = vpack.c.bf16 %v6984_v1, %v6983_v6  ;;  %12097 = vmatprep.subr.bf16.mxu0 %v17769_v52  ;;  %v6947_v33 = vadd.f32 %v16554_v49, %v6902_v63 }
 0x91b   : > { %v6856_v27 = vpop.f32.mrf.mxu1 }
 0x91c   : > { %v6903_v11 = vadd.f32 %v6856_v27, %v6661_v38  ;;  %12034 = vmatmul.mubr.msk.bf16.gmra.mxu0 %vm7048_vm2, %v16678_v44  ;;  %12138 = vmatmul.mubr.msk.bf16.vlgmr.msra.gmra.mxu1 %vm7048_vm2, %v16764_v12  ;;  %v12624_v44 = vld [vmem:[%s17591_s5 + $0xa0] sm:$0xff]   ;;  %v6985_v13 = vmax.f32 %v6947_v33, 0.0 }
 0x91d   : > { %v11908_v16 = vpop.f32.mrf.mxu1  ;;  %12037 = vmatprep.mubr.msk.bf16.mxu0 %vm12774_vm0, %v17769_v52  ;;  %12141 = vmatprep.mubr.msk.bf16.mxu1 %vm12774_vm0, %v17769_v52 }
 0x91e   : > { %v6948_v34 = vadd.f32 %v16554_v49, %v6903_v11  ;;  %12098 = vmatpush3.bf16.msra.mxu0 %v12623_v37  ;;  %12202 = vmatpush3.bf16.msra.mxu1 %v12625_v8 }
 0x91f   : > { %v6861_v51 = vpop.f32.mrf.mxu1  ;;  %12099 = vmatprep.subr.bf16.mxu0 %v17769_v52  ;;  %12203 = vmatprep.subr.bf16.mxu1 %v17769_v52 }
 0x920   : > { %v6986_v57 = vmax.f32 %v6948_v34, 0.0  ;;  %v6904_v31 = vadd.f32 %v6861_v51, %v6662_v19  ;;  %v18447_v34 = vmov 0  }
 0x921   : > { %v11911_v2 = vpop.f32.mrf.mxu1 }
 0x922   : > { %v16908_v14 = vpack.c.bf16 %v6986_v57, %v6985_v13  ;;  %12100 = vmatpush3.bf16.msra.mxu0 %v12624_v44  ;;  %12204 = vmatpush3.bf16.msra.mxu1 %v12626_v53  ;;  %v6949_v4 = vadd.f32 %v16554_v49, %v6904_v31 }
 0x923   : > { %v6864_v39 = vpop.f32.mrf.mxu1  ;;  %12165 = vmatprep.subr.bf16.mxu0 %v17769_v52  ;;  %12205 = vmatprep.subr.bf16.mxu1 %v17769_v52 }
 0x924   : > { %v6905_v40 = vadd.f32 %v6864_v39, %v6663_v46  ;;  %12038 = vmatmul.mubr.msk.bf16.gmra.mxu0 %vm7048_vm2, %v16694_v42  ;;  %12142 = vmatmul.mubr.msk.bf16.gmra.mxu1 %vm7048_vm2, %v16789_v50  ;;  %v6987_v47 = vmax.f32 %v6949_v4, 0.0 }
 0x925   : > { %v11912_v28 = vpop.f32.mrf.mxu1  ;;  %12041 = vmatprep.mubr.msk.bf16.mxu0 %vm12774_vm0, %v17769_v52  ;;  %12145 = vmatprep.mubr.msk.bf16.mxu1 %vm12774_vm0, %v17769_v52 }
 0x926   : > { %v6950_v0 = vadd.f32 %v16554_v49, %v6905_v40  ;;  %12206 = vmatpush3.bf16.msra.mxu1 %v12628_v17  ;;  %v12627_v49 = vld [vmem:[%s17591_s5 + $0xf8] sm:$0xff]  }
 0x927   : > { %12207 = vmatprep.subr.bf16.mxu1 %v17769_v52 }
 0x928   : > { %v6988_v62 = vmax.f32 %v6950_v0, 0.0 }
 0x92a   : > { %v16931_v60 = vpack.c.bf16 %v6988_v62, %v6987_v47  ;;  %12208 = vmatpush3.bf16.msra.mxu1 %v12629_v22 }
 0x92c   : > { %12042 = vmatmul.mubr.msk.bf16.gmra.mxu0 %vm7048_vm2, %v16713_v54  ;;  %12146 = vmatmul.mubr.msk.bf16.gmra.mxu1 %vm7048_vm2, %v16806_v21 }
 0x92d   : > { %12045 = vmatprep.mubr.msk.bf16.mxu0 %vm12774_vm0, %v17769_v52  ;;  %12149 = vmatprep.mubr.msk.bf16.mxu1 %vm12774_vm0, %v17769_v52 }
 0x934   : > { %12046 = vmatmul.mubr.msk.bf16.gmra.mxu0 %vm7048_vm2, %v16733_v20  ;;  %12150 = vmatmul.mubr.msk.bf16.gmra.mxu1 %vm7048_vm2, %v16822_v55 }
 0x935   : > { %12049 = vmatprep.mubr.msk.bf16.mxu0 %vm12774_vm0, %v17769_v52  ;;  %12153 = vmatprep.mubr.msk.bf16.mxu1 %vm12774_vm0, %v17769_v52 }
 0x93c   : > { %12050 = vmatmul.mubr.msk.bf16.gmra.mxu0 %vm7048_vm2, %v16764_v12  ;;  %12154 = vmatmul.mubr.msk.bf16.gmra.mxu1 %vm7048_vm2, %v16838_v10 }
 0x93d   : > { %12053 = vmatprep.mubr.msk.bf16.mxu0 %vm12774_vm0, %v17769_v52  ;;  %12157 = vmatprep.mubr.msk.bf16.mxu1 %vm12774_vm0, %v17769_v52 }
 0x944   : > { %12054 = vmatmul.mubr.msk.bf16.gmra.mxu0 %vm7048_vm2, %v16789_v50  ;;  %12158 = vmatmul.mubr.msk.bf16.gmra.mxu1 %vm7048_vm2, %v16857_v32 }
 0x945   : > { %12101 = vmatprep.mubr.msk.bf16.mxu0 %vm12774_vm0, %v17769_v52  ;;  %12161 = vmatprep.mubr.msk.bf16.mxu1 %vm12774_vm0, %v17769_v52 }
 0x94c   : > { %12102 = vmatmul.mubr.msk.bf16.vlgmr.msra.gmra.mxu0 %vm7048_vm2, %v16694_v42  ;;  %12162 = vmatmul.mubr.msk.bf16.gmra.mxu1 %vm7048_vm2, %v16877_v56  ;;  %v12631_v42 = vld [vmem:[%s17591_s5 + $0xe8] sm:$0xff]  }
 0x94d   : > { %12166 = vmatpush3.bf16.msra.mxu0 %v12627_v49  ;;  %12105 = vmatprep.mubr.msk.bf16.mxu0 %vm12774_vm0, %v17769_v52 }
 0x94e   : > { %12209 = vmatprep.mubr.msk.bf16.mxu1 %vm12774_vm0, %v17769_v52  ;;  %12167 = vmatprep.subr.bf16.mxu0 %v17769_v52 }
 0x951   : > { %12168 = vmatpush3.bf16.msra.mxu0 %v12630_v9 }
 0x952   : > { %12169 = vmatprep.subr.bf16.mxu0 %v17769_v52 }
 0x954   : > { %12106 = vmatmul.mubr.msk.bf16.gmra.mxu0 %vm7048_vm2, %v16713_v54  ;;  %12210 = vmatmul.mubr.msk.bf16.vlgmr.msra.gmra.mxu1 %vm7048_vm2, %v16806_v21 }
 0x955   : > { %12109 = vmatprep.mubr.msk.bf16.mxu0 %vm12774_vm0, %v17769_v52  ;;  %12213 = vmatprep.mubr.msk.bf16.mxu1 %vm12774_vm0, %v17769_v52 }
 0x956   : > { %12170 = vmatpush3.bf16.msra.mxu0 %v12631_v42 }
 0x957   : > { %12171 = vmatprep.subr.bf16.mxu0 %v17769_v52 }
 0x95a   : > { %12172 = vmatpush3.bf16.msra.mxu0 %v12632_v3 }
 0x95c   : > { %12110 = vmatmul.mubr.msk.bf16.gmra.mxu0 %vm7048_vm2, %v16733_v20  ;;  %12214 = vmatmul.mubr.msk.bf16.gmra.mxu1 %vm7048_vm2, %v16822_v55 }
 0x95d   : > { %12113 = vmatprep.mubr.msk.bf16.mxu0 %vm12774_vm0, %v17769_v52  ;;  %12217 = vmatprep.mubr.msk.bf16.mxu1 %vm12774_vm0, %v17769_v52 }
 0x964   : > { %v17004_v54 = vpop.f32.mrf.mxu0  ;;  %12114 = vmatmul.mubr.msk.bf16.gmra.mxu0 %vm7048_vm2, %v16764_v12  ;;  %12218 = vmatmul.mubr.msk.bf16.gmra.mxu1 %vm7048_vm2, %v16838_v10 }
 0x965   : > { %12117 = vmatprep.mubr.msk.bf16.mxu0 %vm12774_vm0, %v17769_v52  ;;  %12221 = vmatprep.mubr.msk.bf16.mxu1 %vm12774_vm0, %v17769_v52 }
 0x966   : > { %v11923_v20 = vpop.f32.mrf.mxu0 }
 0x968   : > { %v17014_v5 = vpop.f32.mrf.mxu0 }
 0x96a   : > { %v11924_v25 = vpop.f32.mrf.mxu0 }
 0x96c   : > { %v17016_v29 = vpop.f32.mrf.mxu0  ;;  %v17018_v18 = vpop.f32.mrf.mxu1  ;;  %12118 = vmatmul.mubr.msk.bf16.gmra.mxu0 %vm7048_vm2, %v16789_v50  ;;  %12222 = vmatmul.mubr.msk.bf16.gmra.mxu1 %vm7048_vm2, %v16857_v32 }
 0x96d   : > { %12121 = vmatprep.mubr.msk.bf16.mxu0 %vm12774_vm0, %v17769_v52  ;;  %12225 = vmatprep.mubr.msk.bf16.mxu1 %vm12774_vm0, %v17769_v52 }
 0x96e   : > { %v11927_v12 = vpop.f32.mrf.mxu0  ;;  %v11995_v30 = vpop.f32.mrf.mxu1 }
 0x970   : > { %v17028_v58 = vpop.f32.mrf.mxu0  ;;  %v17030_v23 = vpop.f32.mrf.mxu1 }
 0x972   : > { %v11928_v35 = vpop.f32.mrf.mxu0  ;;  %v11996_v61 = vpop.f32.mrf.mxu1 }
 0x974   : > { %v7120_v36 = vpop.f32.mrf.mxu0  ;;  %v17032_v45 = vpop.f32.mrf.mxu1  ;;  %12122 = vmatmul.mubr.msk.bf16.gmra.mxu0 %vm7048_vm2, %v16806_v21  ;;  %12226 = vmatmul.mubr.msk.bf16.gmra.mxu1 %vm7048_vm2, %v16877_v56 }
 0x975   : > { %12125 = vmatprep.mubr.msk.bf16.mxu0 %vm12774_vm0, %v17769_v52  ;;  %12229 = vmatprep.mubr.msk.bf16.mxu1 %vm12774_vm0, %v17769_v52 }
 0x976   : > { %v11931_v26 = vpop.f32.mrf.mxu0  ;;  %v11999_v15 = vpop.f32.mrf.mxu1 }
 0x977   : > { %v12638_v26 = vld [vmem:[%s17593_s7 + $0xec] ss:$16 sps:$4 sm:$0xff]  }
 0x978   : > { %v7122_v7 = vpop.f32.mrf.mxu0  ;;  %v17042_v43 = vpop.f32.mrf.mxu1  ;;  %8350 = vmatprep.subr.bf16.mxu1 %v12638_v26 }
 0x97a   : > { %v11932_v6 = vpop.f32.mrf.mxu0  ;;  %v12000_v1 = vpop.f32.mrf.mxu1 }
 0x97c   : > { %v7126_v63 = vpop.f32.mrf.mxu0  ;;  %v7348_v48 = vpop.f32.mrf.mxu1  ;;  %12126 = vmatmul.mubr.msk.bf16.gmra.mxu0 %vm7048_vm2, %v16822_v55  ;;  %12230 = vmatmul.mubr.msk.bf16.gmra.mxu1 %vm7048_vm2, %v16908_v14 }
 0x97d   : > { %12173 = vmatprep.mubr.msk.bf16.mxu0 %vm12774_vm0, %v17769_v52  ;;  %12233 = vmatprep.mubr.msk.bf16.mxu1 %vm12774_vm0, %v17769_v52 }
 0x97e   : > { %v11935_v59 = vpop.f32.mrf.mxu0  ;;  %v12003_v38 = vpop.f32.mrf.mxu1 }
 0x980   : > { %v7128_v37 = vpop.f32.mrf.mxu0  ;;  %v7350_v8 = vpop.f32.mrf.mxu1 }
 0x982   : > { %v11936_v27 = vpop.f32.mrf.mxu0  ;;  %v12004_v33 = vpop.f32.mrf.mxu1 }
 0x984   : > { %v7132_v11 = vpop.f32.mrf.mxu0  ;;  %v7354_v16 = vpop.f32.mrf.mxu1  ;;  %12174 = vmatmul.mubr.msk.bf16.vlgmr.msra.gmra.mxu0 %vm7048_vm2, %v16789_v50  ;;  %12234 = vmatmul.mubr.msk.bf16.gmra.mxu1 %vm7048_vm2, %v16931_v60 }
 0x985   : > { %12177 = vmatprep.mubr.msk.bf16.mxu0 %vm12774_vm0, %v17769_v52  ;;  %8374 = vmatprep.mubr.bf16.mxu1 %v18447_v34 }
 0x986   : > { %v11939_v41 = vpop.f32.mrf.mxu0  ;;  %v12007_v19 = vpop.f32.mrf.mxu1 }
 0x988   : > { %v7134_v44 = vpop.f32.mrf.mxu0  ;;  %v7356_v53 = vpop.f32.mrf.mxu1 }
 0x98a   : > { %v11940_v51 = vpop.f32.mrf.mxu0  ;;  %v12008_v13 = vpop.f32.mrf.mxu1 }
 0x98c   : > { %v17059_v57 = vpop.f32.mrf.mxu0  ;;  %v7360_v31 = vpop.f32.mrf.mxu1  ;;  %12178 = vmatmul.mubr.msk.bf16.gmra.mxu0 %vm7048_vm2, %v16806_v21 }
 0x98d   : > { %12181 = vmatprep.mubr.msk.bf16.mxu0 %vm12774_vm0, %v17769_v52 }
 0x98e   : > { %v11943_v50 = vpop.f32.mrf.mxu0  ;;  %v12011_v2 = vpop.f32.mrf.mxu1 }
 0x990   : > { %v17065_v24 = vpop.f32.mrf.mxu0  ;;  %v7362_v46 = vpop.f32.mrf.mxu1 }
 0x992   : > { %v11944_v17 = vpop.f32.mrf.mxu0  ;;  %v12012_v39 = vpop.f32.mrf.mxu1 }
 0x994   : > { %v17067_v4 = vpop.f32.mrf.mxu0  ;;  %v17069_v40 = vpop.f32.mrf.mxu1  ;;  %12182 = vmatmul.mubr.msk.bf16.gmra.mxu0 %vm7048_vm2, %v16822_v55 }
 0x995   : > { %12185 = vmatprep.mubr.msk.bf16.mxu0 %vm12774_vm0, %v17769_v52 }
 0x996   : > { %v11947_v21 = vpop.f32.mrf.mxu0  ;;  %v12015_v28 = vpop.f32.mrf.mxu1 }
 0x997   : > { %v12645_v21 = vld [vmem:[%s17593_s7 + $0xa0] ss:$16 sps:$4 sm:$0xff]  }
 0x998   : > { %v17075_v0 = vpop.f32.mrf.mxu0  ;;  %v17077_v22 = vpop.f32.mrf.mxu1 }
 0x99a   : > { %v11948_v47 = vpop.f32.mrf.mxu0  ;;  %v12016_v62 = vpop.f32.mrf.mxu1 }
 0x99b   : > { %v12648_v62 = vld [vmem:[%s17593_s7 + $0xa8] ss:$16 sps:$4 sm:$0xff]  }
 0x99c   : > { %v7214_v60 = vpop.f32.mrf.mxu0  ;;  %v17079_v49 = vpop.f32.mrf.mxu1  ;;  %12186 = vmatmul.mubr.msk.bf16.gmra.mxu0 %vm7048_vm2, %v16838_v10  ;;  %v12633_v10 = vld [vmem:[%s17593_s7 + $0xe0] ss:$16 sps:$4 sm:$0xff]  }
 0x99d   : > { %v7215_v9 = vadd.f32 %v7214_v60, %v17004_v54  ;;  %12189 = vmatprep.mubr.msk.bf16.mxu0 %vm12774_vm0, %v17769_v52  ;;  %v12635_v54 = vld [vmem:[%s17593_s7 + $0xe4] ss:$16 sps:$4 sm:$0xff]   ;;  %v12650_v60 = vld [vmem:[%s17593_s7 + $0xac] ss:$16 sps:$4 sm:$0xff]  }
 0x99e   : > { %v11959_v55 = vpop.f32.mrf.mxu0  ;;  %v12019_v42 = vpop.f32.mrf.mxu1  ;;  %8307 = vmatprep.subr.bf16.mxu0 %v12635_v54 }
 0x99f   : > { %v17087_v3 = vadd.f32 %v17018_v18, %v7215_v9  ;;  %8308 = vmatpush1.bf16.msra.mxu0 %v12633_v10 }
 0x9a0   : > { %v7217_v20 = vpop.f32.mrf.mxu0  ;;  %v17089_v25 = vpop.f32.mrf.mxu1 }
 0x9a1   : > { %v7218_v12 = vadd.f32 %v7217_v20, %v17014_v5  ;;  %v12636_v5 = vld [vmem:[%s17593_s7 + $0xe8] ss:$16 sps:$4 sm:$0xff]  }
 0x9a2   : > { %v11960_v30 = vpop.f32.mrf.mxu0  ;;  %v12020_v35 = vpop.f32.mrf.mxu1  ;;  %8351 = vmatpush1.bf16.msra.mxu1 %v12636_v5 }
 0x9a3   : > { %v17099_v61 = vadd.f32 %v17030_v23, %v7218_v12 }
 0x9a4   : > { %v7222_v18 = vpop.f32.mrf.mxu0  ;;  %v17101_v36 = vpop.f32.mrf.mxu1  ;;  %12190 = vmatmul.mubr.msk.bf16.gmra.mxu0 %vm7048_vm2, %v16857_v32 }
 0x9a5   : > { %v7223_v15 = vadd.f32 %v7222_v18, %v17016_v29  ;;  %12193 = vmatprep.mubr.msk.bf16.mxu0 %vm12774_vm0, %v17769_v52 }
 0x9a6   : > { %v11963_v23 = vpop.f32.mrf.mxu0  ;;  %v12067_v7 = vpop.f32.mrf.mxu1 }
 0x9a7   : > { %v17115_v32 = vadd.f32 %v17032_v45, %v7223_v15 }
 0x9a8   : > { %v7225_v6 = vpop.f32.mrf.mxu0  ;;  %v17117_v1 = vpop.f32.mrf.mxu1 }
 0x9a9   : > { %v7226_v63 = vadd.f32 %v7225_v6, %v17028_v58  ;;  %v12639_v58 = vld [vmem:[%s17593_s7 + $0xc0] ss:$16 sps:$4 sm:$0xff]  }
 0x9aa   : > { %v11964_v48 = vpop.f32.mrf.mxu0  ;;  %v12068_v59 = vpop.f32.mrf.mxu1 }
 0x9ab   : > { %v17121_v29 = vadd.f32 %v17042_v43, %v7226_v63  ;;  %v12641_v43 = vld [vmem:[%s17593_s7 + $0xc4] ss:$16 sps:$4 sm:$0xff]  }
 0x9ac   : > { %v7230_v38 = vpop.f32.mrf.mxu0  ;;  %v17123_v37 = vpop.f32.mrf.mxu1  ;;  %12194 = vmatmul.mubr.msk.bf16.gmra.mxu0 %vm7048_vm2, %v16877_v56  ;;  %8309 = vmatprep.subr.bf16.mxu0 %v12641_v43  ;;  %v12644_v56 = vld [vmem:[%s17593_s7 + $0xcc] ss:$16 sps:$4 sm:$0xff]  }
 0x9ad   : > { %12197 = vmatprep.mubr.msk.bf16.mxu0 %vm12774_vm0, %v17769_v52  ;;  %v12642_v52 = vld [vmem:[%s17593_s7 + $0xc8] ss:$16 sps:$4 sm:$0xff]   ;;  %8310 = vmatpush1.bf16.msra.mxu0 %v12639_v58 }
 0x9ae   : > { %v11967_v45 = vpop.f32.mrf.mxu0  ;;  %v12071_v8 = vpop.f32.mrf.mxu1  ;;  %8352 = vmatprep.subr.bf16.mxu1 %v12644_v56 }
 0x9af   : > { %8353 = vmatpush1.bf16.msra.mxu1 %v12642_v52 }
 0x9b0   : > { %v7232_v27 = vpop.f32.mrf.mxu0  ;;  %v17129_v33 = vpop.f32.mrf.mxu1  ;;  %8354 = vmatprep.subr.bf16.mxu1 %v12650_v60 }
 0x9b1   : > { %v12651_v27 = vld [vmem:[%s17593_s7 + $0x80] ss:$16 sps:$4 sm:$0xff]  }
 0x9b2   : > { %v11968_v11 = vpop.f32.mrf.mxu0  ;;  %v12072_v16 = vpop.f32.mrf.mxu1 }
 0x9b3   : > { %8355 = vmatpush1.bf16.msra.mxu1 %v12648_v62 }
 0x9b4   : > { %v7236_v41 = vpop.f32.mrf.mxu0  ;;  %v7606_v19 = vpop.f32.mrf.mxu1  ;;  %12198 = vmatmul.mubr.msk.bf16.gmra.mxu0 %vm7048_vm2, %v16908_v14  ;;  %v12647_v14 = vld [vmem:[%s17593_s7 + $0xa4] ss:$16 sps:$4 sm:$0xff]  }
 0x9b5   : > { %8331 = vmatprep.mubr.bf16.mxu0 %v18447_v34  ;;  %8311 = vmatprep.subr.bf16.mxu0 %v12647_v14  ;;  %v12659_v19 = vld [vmem:[%s17593_s7 + $0x64] ss:$16 sps:$4 sm:$0xff]  }
 0x9b6   : > { %v11971_v44 = vpop.f32.mrf.mxu0  ;;  %v12075_v53 = vpop.f32.mrf.mxu1  ;;  %8312 = vmatpush1.bf16.msra.mxu0 %v12645_v21 }
 0x9b8   : > { %v7238_v51 = vpop.f32.mrf.mxu0  ;;  %v7608_v13 = vpop.f32.mrf.mxu1 }
 0x9ba   : > { %v11972_v31 = vpop.f32.mrf.mxu0  ;;  %v12076_v50 = vpop.f32.mrf.mxu1 }
 0x9bc   : > { %v7242_v2 = vpop.f32.mrf.mxu0  ;;  %v7612_v46 = vpop.f32.mrf.mxu1 }
 0x9be   : > { %v11975_v17 = vpop.f32.mrf.mxu0  ;;  %v12079_v39 = vpop.f32.mrf.mxu1 }
 0x9c0   : > { %v7244_v28 = vpop.f32.mrf.mxu0  ;;  %v7614_v47 = vpop.f32.mrf.mxu1 }
 0x9c2   : > { %v11976_v9 = vpop.f32.mrf.mxu0  ;;  %v12080_v55 = vpop.f32.mrf.mxu1 }
 0x9c4   : > { %v7248_v42 = vpop.f32.mrf.mxu0  ;;  %v7618_v20 = vpop.f32.mrf.mxu1 }
 0x9c5   : > { %v7249_v12 = vadd.f32 %v7248_v42, %v17059_v57 }
 0x9c6   : > { %v11979_v30 = vpop.f32.mrf.mxu0  ;;  %v12083_v35 = vpop.f32.mrf.mxu1 }
 0x9c7   : > { %v17160_v10 = vadd.f32 %v17069_v40, %v7249_v12 }
 0x9c8   : > { %v7251_v54 = vpop.f32.mrf.mxu0  ;;  %v7620_v18 = vpop.f32.mrf.mxu1 }
 0x9c9   : > { %v7252_v5 = vadd.f32 %v7251_v54, %v17065_v24 }
 0x9ca   : > { %v11980_v26 = vpop.f32.mrf.mxu0  ;;  %v12084_v15 = vpop.f32.mrf.mxu1 }
 0x9cb   : > { %v17164_v23 = vadd.f32 %v17077_v22, %v7252_v5 }
 0x9cc   : > { %v7256_v7 = vpop.f32.mrf.mxu0  ;;  %v17166_v6 = vpop.f32.mrf.mxu1 }
 0x9cd   : > { %v7257_v63 = vadd.f32 %v7256_v7, %v17067_v4  ;;  %v12653_v4 = vld [vmem:[%s17593_s7 + $0x84] ss:$16 sps:$4 sm:$0xff]  }
 0x9ce   : > { %v11983_v57 = vpop.f32.mrf.mxu0  ;;  %v12087_v48 = vpop.f32.mrf.mxu1  ;;  %8313 = vmatprep.subr.bf16.mxu0 %v12653_v4 }
 0x9cf   : > { %v17170_v59 = vadd.f32 %v17079_v49, %v7257_v63  ;;  %v12654_v49 = vld [vmem:[%s17593_s7 + $0x88] ss:$16 sps:$4 sm:$0xff]   ;;  %8314 = vmatpush1.bf16.msra.mxu0 %v12651_v27 }
 0x9d0   : > { %v7259_v40 = vpop.f32.mrf.mxu0  ;;  %v17172_v38 = vpop.f32.mrf.mxu1  ;;  %8476 = vmatprep.subr.bf16.mxu0 %v12659_v19 }
 0x9d1   : > { %v7260_v24 = vadd.f32 %v7259_v40, %v17075_v0  ;;  %v12656_v0 = vld [vmem:[%s17593_s7 + $0x8c] ss:$16 sps:$4 sm:$0xff]  }
 0x9d2   : > { %v11984_v45 = vpop.f32.mrf.mxu0  ;;  %v12088_v8 = vpop.f32.mrf.mxu1  ;;  %8356 = vmatprep.subr.bf16.mxu1 %v12656_v0 }
 0x9d3   : > { %v17176_v22 = vadd.f32 %v17089_v25, %v7260_v24  ;;  %8357 = vmatpush1.bf16.msra.mxu1 %v12654_v49 }
 0x9d4   : > { %v7464_v58 = vpop.f32.mrf.mxu0  ;;  %v17187_v43 = vpop.f32.mrf.mxu1 }
 0x9d5   : > { %v7513_v25 = vadd.f32 %v7464_v58, %v17087_v3  ;;  %v12662_v3 = vld [vmem:[%s17593_s7 + $0x6c] ss:$16 sps:$4 sm:$0xff]  }
 0x9d6   : > { %v12031_v11 = vpop.f32.mrf.mxu0  ;;  %v12091_v16 = vpop.f32.mrf.mxu1  ;;  %8519 = vmatprep.subr.bf16.mxu1 %v12662_v3 }
 0x9d7   : > { %v17194_v52 = vadd.f32 %v17101_v36, %v7513_v25 }
 0x9d8   : > { %v7467_v56 = vpop.f32.mrf.mxu0  ;;  %v17196_v41 = vpop.f32.mrf.mxu1 }
 0x9d9   : > { %v7514_v44 = vadd.f32 %v7467_v56, %v17099_v61 }
 0x9da   : > { %v12032_v53 = vpop.f32.mrf.mxu0  ;;  %v12092_v51 = vpop.f32.mrf.mxu1 }
 0x9db   : > { %v17206_v36 = vadd.f32 %v17117_v1, %v7514_v44 }
 0x9dc   : > { %v7472_v13 = vpop.f32.mrf.mxu0  ;;  %v17208_v31 = vpop.f32.mrf.mxu1 }
 0x9dd   : > { %v7515_v50 = vadd.f32 %v7472_v13, %v17115_v32 }
 0x9de   : > { %v12035_v2 = vpop.f32.mrf.mxu0  ;;  %v12139_v46 = vpop.f32.mrf.mxu1 }
 0x9df   : > { %v17212_v17 = vadd.f32 %v17123_v37, %v7515_v50 }
 0x9e0   : > { %v7475_v39 = vpop.f32.mrf.mxu0  ;;  %v17214_v21 = vpop.f32.mrf.mxu1 }
 0x9e1   : > { %v7516_v61 = vadd.f32 %v7475_v39, %v17121_v29 }
 0x9e2   : > { %v12036_v14 = vpop.f32.mrf.mxu0  ;;  %v12140_v28 = vpop.f32.mrf.mxu1 }
 0x9e3   : > { %v17218_v1 = vadd.f32 %v17129_v33, %v7516_v61 }
 0x9e4   : > { %v7480_v47 = vpop.f32.mrf.mxu0  ;;  %v17220_v62 = vpop.f32.mrf.mxu1 }
 0x9e6   : > { %v12039_v60 = vpop.f32.mrf.mxu0  ;;  %v12143_v32 = vpop.f32.mrf.mxu1 }
 0x9e8   : > { %v7482_v9 = vpop.f32.mrf.mxu0  ;;  %v17222_v55 = vpop.f32.mrf.mxu1 }
 0x9ea   : > { %v12040_v37 = vpop.f32.mrf.mxu0  ;;  %v12144_v42 = vpop.f32.mrf.mxu1 }
 0x9ec   : > { %v7486_v20 = vpop.f32.mrf.mxu0  ;;  %v7864_v12 = vpop.f32.mrf.mxu1 }
 0x9ee   : > { %v12043_v30 = vpop.f32.mrf.mxu0  ;;  %v12147_v35 = vpop.f32.mrf.mxu1 }
 0x9f0   : > { %v7488_v29 = vpop.f32.mrf.mxu0  ;;  %v7866_v54 = vpop.f32.mrf.mxu1 }
 0x9f2   : > { %v12044_v18 = vpop.f32.mrf.mxu0  ;;  %v12148_v5 = vpop.f32.mrf.mxu1 }
 0x9f4   : > { %v7492_v33 = vpop.f32.mrf.mxu0  ;;  %v7870_v26 = vpop.f32.mrf.mxu1 }
 0x9f6   : > { %v12047_v15 = vpop.f32.mrf.mxu0  ;;  %v12151_v7 = vpop.f32.mrf.mxu1 }
 0x9f8   : > { %v7494_v63 = vpop.f32.mrf.mxu0  ;;  %v7872_v57 = vpop.f32.mrf.mxu1 }
 0x9fa   : > { %v12048_v48 = vpop.f32.mrf.mxu0  ;;  %v12152_v40 = vpop.f32.mrf.mxu1 }
 0x9fc   : > { %v7498_v24 = vpop.f32.mrf.mxu0  ;;  %v7876_v45 = vpop.f32.mrf.mxu1 }
 0x9fd   : > { %v7517_v8 = vadd.f32 %v7498_v24, %v17160_v10 }
 0x9fe   : > { %v12051_v27 = vpop.f32.mrf.mxu0  ;;  %v12155_v4 = vpop.f32.mrf.mxu1 }
 0x9ff   : > { %v17226_v49 = vadd.f32 %v17166_v6, %v7517_v8 }
 0xa00   : > { %v7501_v58 = vpop.f32.mrf.mxu0  ;;  %v7878_v0 = vpop.f32.mrf.mxu1 }
 0xa01   : > { %v7518_v25 = vadd.f32 %v7501_v58, %v17164_v23 }
 0xa02   : > { %v12052_v11 = vpop.f32.mrf.mxu0  ;;  %v12156_v16 = vpop.f32.mrf.mxu1 }
 0xa03   : > { %v17230_v56 = vadd.f32 %v17172_v38, %v7518_v25 }
 0xa04   : > { %v7506_v19 = vpop.f32.mrf.mxu0  ;;  %v17232_v3 = vpop.f32.mrf.mxu1 }
 0xa05   : > { %v7519_v44 = vadd.f32 %v7506_v19, %v17170_v59 }
 0xa06   : > { %v12055_v10 = vpop.f32.mrf.mxu0  ;;  %v12159_v53 = vpop.f32.mrf.mxu1 }
 0xa07   : > { %v17236_v51 = vadd.f32 %v17187_v43, %v7519_v44 }
 0xa08   : > { %v7509_v6 = vpop.f32.mrf.mxu0  ;;  %v17238_v13 = vpop.f32.mrf.mxu1 }
 0xa09   : > { %v7520_v23 = vadd.f32 %v7509_v6, %v17176_v22 }
 0xa0a   : > { %v12056_v50 = vpop.f32.mrf.mxu0  ;;  %v12160_v2 = vpop.f32.mrf.mxu1 }
 0xa0b   : > { %v17242_v38 = vadd.f32 %v17196_v41, %v7520_v23 }
 0xa0c   : > { %v7716_v46 = vpop.f32.mrf.mxu0  ;;  %v17244_v39 = vpop.f32.mrf.mxu1 }
 0xa0d   : > { %v7765_v59 = vadd.f32 %v7716_v46, %v17194_v52 }
 0xa0e   : > { %v12103_v61 = vpop.f32.mrf.mxu0  ;;  %v12163_v14 = vpop.f32.mrf.mxu1 }
 0xa0f   : > { %v17248_v43 = vadd.f32 %v17208_v31, %v7765_v59 }
 0xa10   : > { %v7719_v28 = vpop.f32.mrf.mxu0  ;;  %v17250_v47 = vpop.f32.mrf.mxu1 }
 0xa11   : > { %v7766_v22 = vadd.f32 %v7719_v28, %v17206_v36 }
 0xa12   : > { %v12104_v60 = vpop.f32.mrf.mxu0  ;;  %v12164_v32 = vpop.f32.mrf.mxu1 }
 0xa13   : > { %v17254_v41 = vadd.f32 %v17214_v21, %v7766_v22 }
 0xa14   : > { %v7724_v9 = vpop.f32.mrf.mxu0  ;;  %v17256_v37 = vpop.f32.mrf.mxu1 }
 0xa15   : > { %v7767_v52 = vadd.f32 %v7724_v9, %v17212_v17 }
 0xa16   : > { %v12107_v42 = vpop.f32.mrf.mxu0  ;;  %v12211_v20 = vpop.f32.mrf.mxu1 }
 0xa17   : > { %v17260_v31 = vadd.f32 %v17220_v62, %v7767_v52 }
 0xa18   : > { %v7727_v12 = vpop.f32.mrf.mxu0  ;;  %v17262_v30 = vpop.f32.mrf.mxu1 }
 0xa19   : > { %v7768_v36 = vadd.f32 %v7727_v12, %v17218_v1 }
 0xa1a   : > { %v12108_v35 = vpop.f32.mrf.mxu0  ;;  %v12212_v29 = vpop.f32.mrf.mxu1 }
 0xa1b   : > { %v17266_v21 = vadd.f32 %v17222_v55, %v7768_v36  ;;  %v17299_v29 = vld [vmem:[%s17592_s6] ss:$0 sm:$0xff] }
 0xa1c   : > { %v7732_v54 = vpop.f32.mrf.mxu0  ;;  %v17268_v18 = vpop.f32.mrf.mxu1 }
 0xa1e   : > { %v12111_v5 = vpop.f32.mrf.mxu0  ;;  %v12215_v17 = vpop.f32.mrf.mxu1 }
 0xa20   : > { %v7734_v33 = vpop.f32.mrf.mxu0  ;;  %v17270_v26 = vpop.f32.mrf.mxu1 }
 0xa22   : > { %v12112_v62 = vpop.f32.mrf.mxu0  ;;  %v12216_v15 = vpop.f32.mrf.mxu1 }
 0xa24   : > { %v7738_v7 = vpop.f32.mrf.mxu0  ;;  %v8116_v63 = vpop.f32.mrf.mxu1 }
 0xa26   : > { %v12115_v57 = vpop.f32.mrf.mxu0  ;;  %v12219_v48 = vpop.f32.mrf.mxu1 }
 0xa28   : > { %v7740_v1 = vpop.f32.mrf.mxu0  ;;  %v8118_v40 = vpop.f32.mrf.mxu1 }
 0xa2a   : > { %v12116_v24 = vpop.f32.mrf.mxu0  ;;  %v12220_v45 = vpop.f32.mrf.mxu1 }
 0xa2c   : > { %v7744_v55 = vpop.f32.mrf.mxu0  ;;  %v8122_v8 = vpop.f32.mrf.mxu1 }
 0xa2e   : > { %v12119_v27 = vpop.f32.mrf.mxu0  ;;  %v12223_v4 = vpop.f32.mrf.mxu1 }
 0xa30   : > { %v7746_v58 = vpop.f32.mrf.mxu0  ;;  %v8124_v0 = vpop.f32.mrf.mxu1 }
 0xa32   : > { %v12120_v25 = vpop.f32.mrf.mxu0  ;;  %v12224_v11 = vpop.f32.mrf.mxu1 }
 0xa33   : > { %v12668_v25 = vld [vmem:[%s17593_s7 + $0x4c] ss:$16 sps:$4 sm:$0xff]  }
 0xa34   : > { %v7750_v16 = vpop.f32.mrf.mxu0  ;;  %v8128_v19 = vpop.f32.mrf.mxu1 }
 0xa35   : > { %v7769_v44 = vadd.f32 %v7750_v16, %v17226_v49  ;;  %v12663_v19 = vld [vmem:[%s17593_s7 + $0x40] ss:$16 sps:$4 sm:$0xff]  }
 0xa36   : > { %v12123_v10 = vpop.f32.mrf.mxu0  ;;  %v12227_v53 = vpop.f32.mrf.mxu1 }
 0xa37   : > { %v17274_v6 = vadd.f32 %v17232_v3, %v7769_v44  ;;  %v12666_v44 = vld [vmem:[%s17593_s7 + $0x48] ss:$16 sps:$4 sm:$0xff]   ;;  %v12671_v10 = vld [vmem:[%s17593_s7 + $0x24] ss:$16 sps:$4 sm:$0xff]   ;;  %v12674_v53 = vld [vmem:[%s17593_s7 + $0x2c] ss:$16 sps:$4 sm:$0xff]  }
 0xa38   : > { %v7753_v23 = vpop.f32.mrf.mxu0  ;;  %v8130_v50 = vpop.f32.mrf.mxu1 }
 0xa39   : > { %v7770_v2 = vadd.f32 %v7753_v23, %v17230_v56 }
 0xa3a   : > { %v12124_v46 = vpop.f32.mrf.mxu0  ;;  %v12228_v59 = vpop.f32.mrf.mxu1 }
 0xa3b   : > { %v17278_v61 = vadd.f32 %v17238_v13, %v7770_v2  ;;  %v12669_v2 = vld [vmem:[%s17593_s7 + $0x20] ss:$16 sps:$4 sm:$0xff]   ;;  %v12672_v46 = vld [vmem:[%s17593_s7 + $0x28] ss:$16 sps:$4 sm:$0xff]   ;;  %v12677_v59 = vld [vmem:[%s17593_s7 + $0x4] ss:$16 sps:$4 sm:$0xff]  }
 0xa3c   : > { %v7758_v14 = vpop.f32.mrf.mxu0  ;;  %v17280_v28 = vpop.f32.mrf.mxu1 }
 0xa3d   : > { %v7771_v22 = vadd.f32 %v7758_v14, %v17236_v51  ;;  %v12680_v14 = vld [vmem:[%s17593_s7 + $0xc] ss:$16 sps:$4 sm:$0xff]  }
 0xa3e   : > { %v12127_v49 = vpop.f32.mrf.mxu0  ;;  %v12231_v60 = vpop.f32.mrf.mxu1 }
 0xa3f   : > { %v17284_v32 = vadd.f32 %v17244_v39, %v7771_v22  ;;  %v12675_v60 = vld [vmem:[%s17593_s7] ss:$16 sps:$4 sm:$0xff]  }
 0xa40   : > { %v7761_v3 = vpop.f32.mrf.mxu0  ;;  %v17286_v9 = vpop.f32.mrf.mxu1 }
 0xa41   : > { %v7772_v56 = vadd.f32 %v7761_v3, %v17242_v38  ;;  %v12678_v3 = vld [vmem:[%s17593_s7 + $0x8] ss:$16 sps:$4 sm:$0xff]  }
 0xa42   : > { %v12128_v52 = vpop.f32.mrf.mxu0  ;;  %v12232_v42 = vpop.f32.mrf.mxu1 }
 0xa43   : > { %v17290_v13 = vadd.f32 %v17250_v47, %v7772_v56  ;;  %v12683_v56 = vld [vmem:[%s17593_s7 + $0x164] ss:$16 sps:$4 sm:$0xff]   ;;  %v12686_v52 = vld [vmem:[%s17593_s7 + $0x16c] ss:$16 sps:$4 sm:$0xff]  }
 0xa44   : > { %v7974_v20 = vpop.f32.mrf.mxu0  ;;  %v17292_v12 = vpop.f32.mrf.mxu1 }
 0xa45   : > { %v8023_v51 = vadd.f32 %v7974_v20, %v17248_v43 }
 0xa46   : > { %v12175_v36 = vpop.f32.mrf.mxu0  ;;  %v12235_v35 = vpop.f32.mrf.mxu1 }
 0xa47   : > { %v8149_v39 = vadd.f32 %v17256_v37, %v8023_v51  ;;  %v12681_v51 = vld [vmem:[%s17593_s7 + $0x160] ss:$16 sps:$4 sm:$0xff]   ;;  %v12684_v36 = vld [vmem:[%s17593_s7 + $0x168] ss:$16 sps:$4 sm:$0xff]   ;;  %v12689_v35 = vld [vmem:[%s17593_s7 + $0x144] ss:$16 sps:$4 sm:$0xff]  }
 0xa48   : > { %v7977_v38 = vpop.f32.mrf.mxu0  ;;  %v17301_v54 = vpop.f32.mrf.mxu1 }
 0xa49   : > { %v8024_v47 = vadd.f32 %v7977_v38, %v17254_v41  ;;  %v8164_v33 = vadd.f32 %v17299_v29, %v8149_v39  ;;  %v12692_v39 = vld [vmem:[%s17593_s7 + $0x14c] ss:$16 sps:$4 sm:$0xff]  }
 0xa4a   : > { %v12176_v5 = vpop.f32.mrf.mxu0  ;;  %v12236_v17 = vpop.f32.mrf.mxu1 }
 0xa4b   : > { %v8150_v43 = vadd.f32 %v17262_v30, %v8024_v47  ;;  %v8172_v63 = vmax.f32 %v8164_v33, 0.0  ;;  %v12687_v5 = vld [vmem:[%s17593_s7 + $0x140] ss:$16 sps:$4 sm:$0xff]   ;;  %v12690_v17 = vld [vmem:[%s17593_s7 + $0x148] ss:$16 sps:$4 sm:$0xff]  }
 0xa4c   : > { %v7982_v62 = vpop.f32.mrf.mxu0 }
 0xa4d   : > { %v8165_v15 = vadd.f32 %v17299_v29, %v8150_v43  ;;  %v8025_v37 = vadd.f32 %v7982_v62, %v17260_v31  ;;  %v12695_v43 = vld [vmem:[%s17593_s7 + $0x124] ss:$16 sps:$4 sm:$0xff]   ;;  %v12698_v62 = vld [vmem:[%s17593_s7 + $0x12c] ss:$16 sps:$4 sm:$0xff]  }
 0xa4e   : > { %v12179_v7 = vpop.f32.mrf.mxu0 }
 0xa4f   : > { %v8173_v57 = vmax.f32 %v8165_v15, 0.0  ;;  %v8151_v48 = vadd.f32 %v17268_v18, %v8025_v37  ;;  %v12657_v18 = vld [vmem:[%s17593_s7 + $0x60] ss:$16 sps:$4 sm:$0xff]  }
 0xa50   : > { %v7985_v1 = vpop.f32.mrf.mxu0  ;;  %v12693_v7 = vld [vmem:[%s17593_s7 + $0x120] ss:$16 sps:$4 sm:$0xff]  }
 0xa51   : > { %v8180_v40 = vpack.c.bf16 %v8173_v57, %v8172_v63  ;;  %v8026_v41 = vadd.f32 %v7985_v1, %v17266_v21  ;;  %v8166_v45 = vadd.f32 %v17299_v29, %v8151_v48  ;;  %v12660_v21 = vld [vmem:[%s17593_s7 + $0x68] ss:$16 sps:$4 sm:$0xff]   ;;  %v12701_v48 = vld [vmem:[%s17593_s7 + $0x104] ss:$16 sps:$4 sm:$0xff]  }
 0xa52   : > { %v12180_v24 = vpop.f32.mrf.mxu0  ;;  %v12696_v63 = vld [vmem:[%s17593_s7 + $0x128] ss:$16 sps:$4 sm:$0xff]  }
 0xa53   : > { %v8152_v55 = vadd.f32 %v17270_v26, %v8026_v41  ;;  %v8174_v4 = vmax.f32 %v8166_v45, 0.0  ;;  %v12665_v26 = vld [vmem:[%s17593_s7 + $0x44] ss:$16 sps:$4 sm:$0xff]   ;;  %v12702_v45 = vld [vmem:[%s17593_s7 + $0x108] ss:$16 sps:$4 sm:$0xff]  }
 0xa54   : > { %v7990_v30 = vpop.f32.mrf.mxu0 }
 0xa55   : > { %v8167_v8 = vadd.f32 %v17299_v29, %v8152_v55 }
 0xa56   : > { %v12183_v27 = vpop.f32.mrf.mxu0 }
 0xa57   : > { %v8175_v31 = vmax.f32 %v8167_v8, 0.0  ;;  %v12710_v8 = vld [vmem:[%s17593_s7 + $0x1ec] ss:$16 sps:$4 sm:$0xff]  }
 0xa58   : > { %v7992_v58 = vpop.f32.mrf.mxu0 }
 0xa59   : > { %v8181_v0 = vpack.c.bf16 %v8175_v31, %v8174_v4 }
 0xa5a   : > { %v12184_v11 = vpop.f32.mrf.mxu0 }
 0xa5b   : > { %10063 = vmatmul.mubr.msk.bf16.vlgmr.msra.gmra.mxu0 %vm7048_vm2, %v8181_v0  ;;  %10064 = vmatmul.mubr.msk.bf16.vlgmr.msra.gmra.mxu1 %vm7048_vm2, %v8181_v0 }
 0xa5c   : > { %8477 = vmatpush1.bf16.msra.mxu0 %v12657_v18  ;;  %8520 = vmatpush1.bf16.msra.mxu1 %v12660_v21  ;;  %v7996_v16 = vpop.f32.mrf.mxu0  ;;  %v12708_v21 = vld [vmem:[%s17593_s7 + $0x1e8] ss:$16 sps:$4 sm:$0xff]  }
 0xa5d   : > { %8478 = vmatprep.subr.bf16.mxu0 %v12665_v26  ;;  %8521 = vmatprep.subr.bf16.mxu1 %v12668_v25  ;;  %v12716_v25 = vld [vmem:[%s17593_s7 + $0x1cc] ss:$16 sps:$4 sm:$0xff]  }
 0xa5e   : > { %v12187_v23 = vpop.f32.mrf.mxu0  ;;  %8500 = vmatprep.mubr.bf16.mxu0 %v18447_v34  ;;  %8543 = vmatprep.mubr.bf16.mxu1 %v18447_v34 }
 0xa60   : > { %8479 = vmatpush1.bf16.msra.mxu0 %v12663_v19  ;;  %8522 = vmatpush1.bf16.msra.mxu1 %v12666_v44  ;;  %v7998_v50 = vpop.f32.mrf.mxu0  ;;  %v12714_v44 = vld [vmem:[%s17593_s7 + $0x1c8] ss:$16 sps:$4 sm:$0xff]  }
 0xa61   : > { %8480 = vmatprep.subr.bf16.mxu0 %v12671_v10  ;;  %8523 = vmatprep.subr.bf16.mxu1 %v12674_v53  ;;  %v12722_v53 = vld [vmem:[%s17593_s7 + $0x1ac] ss:$16 sps:$4 sm:$0xff]  }
 0xa62   : > { %v12188_v22 = vpop.f32.mrf.mxu0 }
 0xa63   : > { %v12726_v22 = vld [vmem:[%s17593_s7 + $0x188] ss:$16 sps:$4 sm:$0xff]  }
 0xa64   : > { %8481 = vmatpush1.bf16.msra.mxu0 %v12669_v2  ;;  %8524 = vmatpush1.bf16.msra.mxu1 %v12672_v46  ;;  %v8002_v49 = vpop.f32.mrf.mxu0  ;;  %v12720_v2 = vld [vmem:[%s17593_s7 + $0x1a8] ss:$16 sps:$4 sm:$0xff]  }
 0xa65   : > { %8482 = vmatprep.subr.bf16.mxu0 %v12677_v59  ;;  %8525 = vmatprep.subr.bf16.mxu1 %v12680_v14  ;;  %v12725_v59 = vld [vmem:[%s17593_s7 + $0x184] ss:$16 sps:$4 sm:$0xff]   ;;  %v12723_v14 = vld [vmem:[%s17593_s7 + $0x180] ss:$16 sps:$4 sm:$0xff]   ;;  %v12729_v49 = vld [vmem:[%s17595_s9 + $0x78] sm:$0xff]  }
 0xa66   : > { %v12191_v42 = vpop.f32.mrf.mxu0 }
 0xa67   : > { %v12734_v42 = vld [vmem:[%s17595_s9 + $0xf0] sm:$0xff]  }
 0xa68   : > { %8483 = vmatpush1.bf16.msra.mxu0 %v12675_v60  ;;  %8526 = vmatpush1.bf16.msra.mxu1 %v12678_v3  ;;  %v8004_v20 = vpop.f32.mrf.mxu0  ;;  %v12730_v60 = vld [vmem:[%s17595_s9 + $0xf8] sm:$0xff]  }
 0xa69   : > { %8661 = vmatprep.subr.bf16.mxu0 %v12683_v56  ;;  %8704 = vmatprep.subr.bf16.mxu1 %v12686_v52  ;;  %v12731_v3 = vld [vmem:[%s17595_s9 + $0x38] sm:$0xff]   ;;  %v12733_v52 = vld [vmem:[%s17595_s9 + $0x70] sm:$0xff]  }
 0xa6a   : > { %v12192_v38 = vpop.f32.mrf.mxu0  ;;  %v12732_v56 = vld [vmem:[%s17595_s9 + $0xb8] sm:$0xff]   ;;  %v12735_v20 = vld [vmem:[%s17595_s9 + $0x30] sm:$0xff]  }
 0xa6b   : > { %10081 = vmatmul.mubr.msk.bf16.vlgmr.msra.gmra.mxu0 %vm7048_vm2, %v8180_v40  ;;  %10082 = vmatmul.mubr.msk.bf16.vlgmr.msra.gmra.mxu1 %vm7048_vm2, %v8180_v40  ;;  %v12740_v38 = vld [vmem:[%s17595_s9 + $0xa8] sm:$0xff]  }
 0xa6c   : > { %8662 = vmatpush1.bf16.msra.mxu0 %v12681_v51  ;;  %8705 = vmatpush1.bf16.msra.mxu1 %v12684_v36  ;;  %v8008_v47 = vpop.f32.mrf.mxu0  ;;  %v12736_v51 = vld [vmem:[%s17595_s9 + $0xb0] sm:$0xff]   ;;  %v12737_v36 = vld [vmem:[%s17595_s9 + $0x68] sm:$0xff]  }
 0xa6d   : > { %v8027_v33 = vadd.f32 %v8008_v47, %v17274_v6  ;;  %8663 = vmatprep.subr.bf16.mxu0 %v12689_v35  ;;  %8706 = vmatprep.subr.bf16.mxu1 %v12692_v39  ;;  %v12738_v35 = vld [vmem:[%s17595_s9 + $0xe8] sm:$0xff]   ;;  %v12741_v47 = vld [vmem:[%s17595_s9 + $0x60] sm:$0xff]  }
 0xa6e   : > { %v12195_v15 = vpop.f32.mrf.mxu0  ;;  %8685 = vmatprep.mubr.bf16.mxu0 %v18447_v34  ;;  %8728 = vmatprep.mubr.bf16.mxu1 %v18447_v34  ;;  %v12739_v39 = vld [vmem:[%s17595_s9 + $0x28] sm:$0xff]  }
 0xa6f   : > { %v8153_v37 = vadd.f32 %v17280_v28, %v8027_v33  ;;  %v12704_v28 = vld [vmem:[%s17593_s7 + $0x10c] ss:$16 sps:$4 sm:$0xff]   ;;  %v12744_v33 = vld [vmem:[%s17595_s9 + $0xa0] sm:$0xff]  }
 0xa70   : > { %8664 = vmatpush1.bf16.msra.mxu0 %v12687_v5  ;;  %8707 = vmatpush1.bf16.msra.mxu1 %v12690_v17  ;;  %v8011_v6 = vpop.f32.mrf.mxu0  ;;  %v12742_v5 = vld [vmem:[%s17595_s9 + $0xe0] sm:$0xff]   ;;  %v12747_v15 = vld [vmem:[%s17595_s9 + $0x18] sm:$0xff]  }
 0xa71   : > { %v8028_v57 = vadd.f32 %v8011_v6, %v17278_v61  ;;  %8665 = vmatprep.subr.bf16.mxu0 %v12695_v43  ;;  %8708 = vmatprep.subr.bf16.mxu1 %v12698_v62  ;;  %v8168_v40 = vadd.f32 %v17299_v29, %v8153_v37  ;;  %v12699_v61 = vld [vmem:[%s17593_s7 + $0x100] ss:$16 sps:$4 sm:$0xff]   ;;  %v12745_v43 = vld [vmem:[%s17595_s9 + $0x58] sm:$0xff]  }
 0xa72   : > { %v12196_v1 = vpop.f32.mrf.mxu0  ;;  %v12743_v17 = vld [vmem:[%s17595_s9 + $0x20] sm:$0xff]   ;;  %v12746_v62 = vld [vmem:[%s17595_s9 + $0xd8] sm:$0xff]   ;;  %v12749_v6 = vld [vmem:[%s17595_s9 + $0x50] sm:$0xff]  }
 0xa73   : > { %v8154_v41 = vadd.f32 %v17286_v9, %v8028_v57  ;;  %v12707_v9 = vld [vmem:[%s17593_s7 + $0x1e4] ss:$16 sps:$4 sm:$0xff]   ;;  %v8176_v4 = vmax.f32 %v8168_v40, 0.0  ;;  %v12748_v37 = vld [vmem:[%s17595_s9 + $0x98] sm:$0xff]   ;;  %v12755_v1 = vld [vmem:[%s17595_s9 + $0x8] sm:$0xff]  }
 0xa74   : > { %8666 = vmatpush1.bf16.msra.mxu0 %v12693_v7  ;;  %8709 = vmatpush1.bf16.msra.mxu1 %v12696_v63  ;;  %v8016_v24 = vpop.f32.mrf.mxu0  ;;  %v12750_v7 = vld [vmem:[%s17595_s9 + $0xd0] sm:$0xff]   ;;  %v12756_v40 = vld [vmem:[%s17595_s9 + $0x88] sm:$0xff]  }
 0xa75   : > { %v8169_v55 = vadd.f32 %v17299_v29, %v8154_v41  ;;  %v8029_v30 = vadd.f32 %v8016_v24, %v17284_v32  ;;  %8667 = vmatprep.subr.bf16.mxu0 %v12701_v48  ;;  %8710 = vmatprep.subr.bf16.mxu1 %v12704_v28  ;;  %v12705_v32 = vld [vmem:[%s17593_s7 + $0x1e0] ss:$16 sps:$4 sm:$0xff]   ;;  %v12753_v48 = vld [vmem:[%s17595_s9 + $0x48] sm:$0xff]  }
 0xa76   : > { %v12199_v27 = vpop.f32.mrf.mxu0  ;;  %v12751_v63 = vld [vmem:[%s17595_s9 + $0x10] sm:$0xff]   ;;  %v12754_v28 = vld [vmem:[%s17595_s9 + $0xc8] sm:$0xff]   ;;  %v12757_v41 = vld [vmem:[%s17595_s9 + $0x40] sm:$0xff]  }
 0xa77   : > { %v8177_v31 = vmax.f32 %v8169_v55, 0.0  ;;  %v8155_v58 = vadd.f32 %v17292_v12, %v8029_v30  ;;  %v12713_v12 = vld [vmem:[%s17593_s7 + $0x1c4] ss:$16 sps:$4 sm:$0xff]  }
 0xa78   : > { %8668 = vmatpush1.bf16.msra.mxu0 %v12699_v61  ;;  %8711 = vmatpush1.bf16.msra.mxu1 %v12702_v45  ;;  %v8019_v18 = vpop.f32.mrf.mxu0  ;;  %v12752_v57 = vld [vmem:[%s17595_s9 + $0x90] sm:$0xff]   ;;  %v12758_v24 = vld [vmem:[%s17595_s9 + $0xc0] sm:$0xff]  }
 0xa79   : > { %v8182_v0 = vpack.c.bf16 %v8177_v31, %v8176_v4  ;;  %v8030_v26 = vadd.f32 %v8019_v18, %v17290_v13  ;;  %8854 = vmatprep.subr.bf16.mxu0 %v12707_v9  ;;  %8897 = vmatprep.subr.bf16.mxu1 %v12710_v8  ;;  %v8170_v16 = vadd.f32 %v17299_v29, %v8155_v58  ;;  %v12711_v13 = vld [vmem:[%s17593_s7 + $0x1c0] ss:$16 sps:$4 sm:$0xff]  }
 0xa7a   : > { %v12200_v11 = vpop.f32.mrf.mxu0  ;;  %v12759_v61 = vld [vmem:[%s17595_s9] sm:$0xff]  }
 0xa7b   : > { %v8156_v19 = vadd.f32 %v17301_v54, %v8030_v26  ;;  %10099 = vmatmul.mubr.msk.bf16.vlgmr.msra.gmra.mxu0 %vm7048_vm2, %v8182_v0  ;;  %10100 = vmatmul.mubr.msk.bf16.vlgmr.msra.gmra.mxu1 %vm7048_vm2, %v8182_v0  ;;  %v12719_v54 = vld [vmem:[%s17593_s7 + $0x1a4] ss:$16 sps:$4 sm:$0xff]   ;;  %v8178_v23 = vmax.f32 %v8170_v16, 0.0 }
 0xa7c   : > { %8855 = vmatpush1.bf16.msra.mxu0 %v12705_v32  ;;  %8898 = vmatpush1.bf16.msra.mxu1 %v12708_v21  ;;  %v12760_v45 = vld [vmem:[%s17595_s9 + $0x80] sm:$0xff]  }
 0xa7d   : > { %v8171_v10 = vadd.f32 %v17299_v29, %v8156_v19  ;;  %8856 = vmatprep.subr.bf16.mxu0 %v12713_v12  ;;  %8899 = vmatprep.subr.bf16.mxu1 %v12716_v25  ;;  %v12717_v29 = vld [vmem:[%s17593_s7 + $0x1a0] ss:$16 sps:$4 sm:$0xff]  }
 0xa7e   : > { %8878 = vmatprep.mubr.bf16.mxu0 %v18447_v34  ;;  %8921 = vmatprep.mubr.bf16.mxu1 %v18447_v34  ;;  %v12728_v34 = vld [vmem:[%s17593_s7 + $0x18c] ss:$16 sps:$4 sm:$0xff]  }
 0xa7f   : > { %v8179_v50 = vmax.f32 %v8171_v10, 0.0 }
 0xa80   : > { %8857 = vmatpush1.bf16.msra.mxu0 %v12711_v13  ;;  %8900 = vmatpush1.bf16.msra.mxu1 %v12714_v44  ;;  %v8942_v13 = vlaneseq }
 0xa81   : > { %v8183_v46 = vpack.c.bf16 %v8179_v50, %v8178_v23  ;;  %8858 = vmatprep.subr.bf16.mxu0 %v12719_v54  ;;  %8901 = vmatprep.subr.bf16.mxu1 %v12722_v53 }
 0xa82   : > { %v8943_v54 = vshrl.u32 %v8942_v13, 7 }
 0xa84   : > { %8859 = vmatpush1.bf16.msra.mxu0 %v12717_v29  ;;  %8902 = vmatpush1.bf16.msra.mxu1 %v12720_v2  ;;  %v8944_v50 = vsub.s32 0, %v8943_v54  ;;  %v8952_v29 = vsub.s32 2, %v8943_v54  ;;  %v8940_v2 = vld [vmem:[%s17594_s8] sm:$0xf] }
 0xa85   : > { %8860 = vmatprep.subr.bf16.mxu0 %v12725_v59  ;;  %8903 = vmatprep.subr.bf16.mxu1 %v12728_v34  ;;  %v8956_v59 = vsub.s32 3, %v8943_v54 }
 0xa88   : > { %8861 = vmatpush1.bf16.msra.mxu0 %v12723_v14  ;;  %8904 = vmatpush1.bf16.msra.mxu1 %v12726_v22 }
 0xa89   : > { %10589 = vmatprep.subr.bf16.mxu0 %v12729_v49  ;;  %10611 = vmatprep.subr.bf16.mxu1 %v12730_v60 }
 0xa8b   : > { %10117 = vmatmul.mubr.msk.bf16.vlgmr.msra.gmra.mxu0 %vm7048_vm2, %v8183_v46  ;;  %10118 = vmatmul.mubr.msk.bf16.vlgmr.msra.gmra.mxu1 %vm7048_vm2, %v8183_v46  ;;  %v8948_v46 = vsub.s32 1, %v8943_v54 }
 0xa8c   : > { %10590 = vmatpush3.bf16.msra.mxu0 %v12731_v3  ;;  %10612 = vmatpush3.bf16.msra.mxu1 %v12732_v56 }
 0xa8d   : > { %10591 = vmatprep.subr.bf16.mxu0 %v12733_v52  ;;  %10613 = vmatprep.subr.bf16.mxu1 %v12734_v42  ;;  %v8945_v52 = vrot.slane %v8940_v2, %v8944_v50 }
 0xa90   : > { %10592 = vmatpush3.bf16.msra.mxu0 %v12735_v20  ;;  %10614 = vmatpush3.bf16.msra.mxu1 %v12736_v51  ;;  %v8953_v20 = vrot.slane %v8940_v2, %v8952_v29  ;;  %v10119_v29 = vld [vmem:[%s17596_s10] ss:$0 sm:$0xff] }
 0xa91   : > { %10593 = vmatprep.subr.bf16.mxu0 %v12737_v36  ;;  %10615 = vmatprep.subr.bf16.mxu1 %v12738_v35  ;;  %v8949_v35 = vrot.slane %v8940_v2, %v8948_v46 }
 0xa94   : > { %10594 = vmatpush3.bf16.msra.mxu0 %v12739_v39  ;;  %10616 = vmatpush3.bf16.msra.mxu1 %v12740_v38  ;;  %v8957_v39 = vrot.slane %v8940_v2, %v8956_v59 }
 0xa95   : > { %10595 = vmatprep.subr.bf16.mxu0 %v12741_v47  ;;  %10617 = vmatprep.subr.bf16.mxu1 %v12742_v5 }
 0xa98   : > { %10596 = vmatpush3.bf16.msra.mxu0 %v12743_v17  ;;  %10618 = vmatpush3.bf16.msra.mxu1 %v12744_v33 }
 0xa99   : > { %10597 = vmatprep.subr.bf16.mxu0 %v12745_v43  ;;  %10619 = vmatprep.subr.bf16.mxu1 %v12746_v62 }
 0xa9c   : > { %10598 = vmatpush3.bf16.msra.mxu0 %v12747_v15  ;;  %10620 = vmatpush3.bf16.msra.mxu1 %v12748_v37 }
 0xa9d   : > { %10599 = vmatprep.subr.bf16.mxu0 %v12749_v6  ;;  %10621 = vmatprep.subr.bf16.mxu1 %v12750_v7 }
 0xaa0   : > { %10600 = vmatpush3.bf16.msra.mxu0 %v12751_v63  ;;  %10622 = vmatpush3.bf16.msra.mxu1 %v12752_v57 }
 0xaa1   : > { %10601 = vmatprep.subr.bf16.mxu0 %v12753_v48  ;;  %10623 = vmatprep.subr.bf16.mxu1 %v12754_v28 }
 0xaa4   : > { %10602 = vmatpush3.bf16.msra.mxu0 %v12755_v1  ;;  %10624 = vmatpush3.bf16.msra.mxu1 %v12756_v40 }
 0xaa5   : > { %10603 = vmatprep.subr.bf16.mxu0 %v12757_v41  ;;  %10625 = vmatprep.subr.bf16.mxu1 %v12758_v24 }
 0xaa8   : > { %10604 = vmatpush3.bf16.msra.mxu0 %v12759_v61  ;;  %10626 = vmatpush3.bf16.msra.mxu1 %v12760_v45 }
 0xb1b   : > { %v8333_v55 = vpop.f32.mrf.mxu0  ;;  %v8376_v30 = vpop.f32.mrf.mxu1 }
 0xb1d   : > { %v8335_v9 = vpop.f32.mrf.mxu0  ;;  %v8378_v8 = vpop.f32.mrf.mxu1 }
 0xb1f   : > { %v8337_v27 = vpop.f32.mrf.mxu0  ;;  %v8380_v4 = vpop.f32.mrf.mxu1 }
 0xb21   : > { %v8339_v31 = vpop.f32.mrf.mxu0  ;;  %v8382_v58 = vpop.f32.mrf.mxu1 }
 0xb2b   : > { %v8502_v18 = vpop.f32.mrf.mxu0  ;;  %v8545_v32 = vpop.f32.mrf.mxu1 }
 0xb2c   : > { %v8503_v60 = vadd.f32 %v8502_v18, %v8333_v55  ;;  %v8546_v3 = vadd.f32 %v8545_v32, %v8376_v30 }
 0xb2d   : > { %v8504_v21 = vpop.f32.mrf.mxu0  ;;  %v8547_v0 = vpop.f32.mrf.mxu1 }
 0xb2e   : > { %v8505_v22 = vadd.f32 %v8504_v21, %v8335_v9  ;;  %v8548_v49 = vadd.f32 %v8547_v0, %v8378_v8 }
 0xb2f   : > { %v8506_v26 = vpop.f32.mrf.mxu0  ;;  %v8549_v12 = vpop.f32.mrf.mxu1 }
 0xb30   : > { %v8507_v38 = vadd.f32 %v8506_v26, %v8337_v27  ;;  %v8550_v47 = vadd.f32 %v8549_v12, %v8380_v4 }
 0xb31   : > { %v8508_v25 = vpop.f32.mrf.mxu0  ;;  %v8551_v11 = vpop.f32.mrf.mxu1 }
 0xb32   : > { %v8509_v62 = vadd.f32 %v8508_v25, %v8339_v31  ;;  %v8552_v15 = vadd.f32 %v8551_v11, %v8382_v58 }
 0xb3b   : > { %v8687_v16 = vpop.f32.mrf.mxu0  ;;  %v8730_v19 = vpop.f32.mrf.mxu1 }
 0xb3c   : > { %v8739_v5 = vadd.f32 %v8687_v16, %v8503_v60  ;;  %v8741_v17 = vadd.f32 %v8730_v19, %v8546_v3 }
 0xb3d   : > { %v8689_v44 = vpop.f32.mrf.mxu0  ;;  %v8732_v10 = vpop.f32.mrf.mxu1 }
 0xb3e   : > { %v8740_v51 = vadd.f32 %v8689_v44, %v8505_v22  ;;  %v8742_v36 = vadd.f32 %v8732_v10, %v8548_v49 }
 0xb3f   : > { %v8691_v53 = vpop.f32.mrf.mxu0  ;;  %v8734_v23 = vpop.f32.mrf.mxu1 }
 0xb40   : > { %v8743_v7 = vadd.f32 %v8691_v53, %v8507_v38  ;;  %v8745_v63 = vadd.f32 %v8734_v23, %v8550_v47 }
 0xb41   : > { %v8693_v34 = vpop.f32.mrf.mxu0  ;;  %v8736_v14 = vpop.f32.mrf.mxu1 }
 0xb42   : > { %v8744_v40 = vadd.f32 %v8693_v34, %v8509_v62  ;;  %v8746_v41 = vadd.f32 %v8736_v14, %v8552_v15 }
 0xb4b   : > { %v8880_v56 = vpop.f32.mrf.mxu0  ;;  %v8923_v42 = vpop.f32.mrf.mxu1 }
 0xb4c   : > { %v8932_v57 = vadd.f32 %v8880_v56, %v8739_v5  ;;  %v8934_v48 = vadd.f32 %v8923_v42, %v8741_v17 }
 0xb4d   : > { %v8882_v33 = vpop.f32.mrf.mxu0  ;;  %v8925_v43 = vpop.f32.mrf.mxu1 }
 0xb4e   : > { %v8933_v37 = vadd.f32 %v8882_v33, %v8740_v51  ;;  %v8935_v6 = vadd.f32 %v8925_v43, %v8742_v36  ;;  %v8962_v4 = vadd.f32 %v8945_v52, %v8932_v57  ;;  %v8964_v31 = vadd.f32 %v8953_v20, %v8934_v48 }
 0xb4f   : > { %v8884_v28 = vpop.f32.mrf.mxu0  ;;  %v8927_v1 = vpop.f32.mrf.mxu1 }
 0xb50   : > { %v8936_v24 = vadd.f32 %v8884_v28, %v8743_v7  ;;  %v8938_v61 = vadd.f32 %v8927_v1, %v8745_v63  ;;  %v8963_v30 = vadd.f32 %v8949_v35, %v8933_v37  ;;  %v8965_v9 = vadd.f32 %v8957_v39, %v8935_v6 }
 0xb51   : > { %v8886_v45 = vpop.f32.mrf.mxu0  ;;  %v8929_v55 = vpop.f32.mrf.mxu1  ;;  %v8970_v19 = vmax.f32 %v8962_v4, 0.0  ;;  %v8972_v13 = vmax.f32 %v8964_v31, 0.0 }
 0xb52   : > { %v8937_v8 = vadd.f32 %v8886_v45, %v8744_v40  ;;  %v8939_v27 = vadd.f32 %v8929_v55, %v8746_v41  ;;  %v8966_v58 = vadd.f32 %v8945_v52, %v8936_v24  ;;  %v8968_v18 = vadd.f32 %v8953_v20, %v8938_v61 }
 0xb53   : > { %v8971_v12 = vmax.f32 %v8963_v30, 0.0  ;;  %v8973_v25 = vmax.f32 %v8965_v9, 0.0 }
 0xb54   : > { %v8967_v32 = vadd.f32 %v8949_v35, %v8937_v8  ;;  %v8969_v21 = vadd.f32 %v8957_v39, %v8939_v27  ;;  %v8974_v0 = vmax.f32 %v8966_v58, 0.0  ;;  %v8976_v26 = vmax.f32 %v8968_v18, 0.0 }
 0xb56   : > { %v8975_v11 = vmax.f32 %v8967_v32, 0.0  ;;  %v8977_v16 = vmax.f32 %v8969_v21, 0.0  ;;  %v8978_v54 = vpack.c.bf16 %v8974_v0, %v8970_v19  ;;  %v8980_v53 = vpack.c.bf16 %v8976_v26, %v8972_v13 }
 0xb58   : > { %v8979_v44 = vpack.c.bf16 %v8975_v11, %v8971_v12  ;;  %v8981_v10 = vpack.c.bf16 %v8977_v16, %v8973_v25 }
 0xb5a   : > { %9277 = vmatprep.mubr.bf16.mxu0 %v8979_v44  ;;  %9318 = vmatprep.mubr.bf16.mxu1 %v8981_v10 }
 0xb5b   : > { %9278 = vmatmul.mubr.bf16.vlgmr.msra.gmra.mxu0 %v8978_v54  ;;  %9319 = vmatmul.mubr.bf16.vlgmr.msra.gmra.mxu1 %v8980_v53 }
 0xc1b   : > { %v10605_v23 = vpop.f32.mrf.mxu0  ;;  %v10627_v50 = vpop.f32.mrf.mxu1 }
 0xc1d   : > { %v10606_v2 = vpop.f32.mrf.mxu0  ;;  %v10628_v46 = vpop.f32.mrf.mxu1 }
 0xc1e   : > { %v10607_v59 = vadd.f32 %v10606_v2, %v10605_v23  ;;  %v10629_v49 = vadd.f32 %v10628_v46, %v10627_v50 }
 0xc1f   : > { %v10608_v34 = vpop.f32.mrf.mxu0  ;;  %v10630_v14 = vpop.f32.mrf.mxu1 }
 0xc20   : > { %v9280_v22 = vadd.f32 %v10607_v59, %v10119_v29 }
 0xc21   : > { %v10609_v60 = vpop.f32.mrf.mxu0  ;;  %v10631_v3 = vpop.f32.mrf.mxu1 }
 0xc22   : > { %v9321_v56 = vadd.f32 %v10629_v49, %v9280_v22  ;;  %v10610_v52 = vadd.f32 %v10609_v60, %v10608_v34  ;;  %v10632_v20 = vadd.f32 %v10631_v3, %v10630_v14 }
 0xc24   : > { %9327 = vst [vmem:[%s386_s18] sm:$0xff] %v9321_v56  ;;  %v9283_v42 = vadd.f32 %v10610_v52, %v10119_v29 }
 0xc26   : > { %v9324_v51 = vadd.f32 %v10632_v20, %v9283_v42 }
 0xc28   : > { %9328 = vst [vmem:[%s386_s18 + $0x8] sm:$0xff] %v9324_v51 }
 0xc29 PF: > { %s21_s17 = sadd.s32 1, %s12770_s17  }
 0xc2a   : > { %p18_p5 = scmp.ge.s32.totalorder %s21_s17, 4  }
 0xc2c   :  { %20 = sbr.rel (!%p18_p5) target bundleno = 1 (0x1), region = 94 }

</bundles_post_ra>
